<compile_context>
chip_gen: v7x
topology: tpu7x:2x2x1
jax: 0.10.0
libtpu: 0.0.40
codegen_flags: <defaults>
</compile_context>

<pallas_src>
import functools
import numpy as np
import jax
import jax.numpy as jnp
from jax import lax
from jax.experimental import pallas as pl
from jax.experimental.pallas import tpu as pltpu


# ---------------------------------------------------------------------------
# Pallas kernel: one grid step == one image (flattened padded spatial grid).
# ---------------------------------------------------------------------------
def pylon_kernel(x_ref, mask_ref, w3_ref, b3_ref, w1_ref, b1_ref, wh_ref, bh_ref,
                 seg_ref, pred_ref, slab_ref, *, w_stride, chunk):
    spad = x_ref.shape[1]          # padded flat spatial length (multiple of chunk)
    c_in = x_ref.shape[2]          # encoder channels
    kp = slab_ref.shape[1]         # 9*C zero-padded to a multiple of 128
    cp = wh_ref.shape[1]           # padded classes (128)

    # ---- build the 9-tap im2col slab once per image -------------------------
    # Tap (dy, dx) of the 3x3 conv at output flat position q reads input flat
    # position q + dy*w_stride + dx, so every tap is a roll of the flattened
    # feature map (XLU work, no sublane-cutting slices / relayout copies).
    # Rolls are done on 32-bit rows; wraparound only touches padding rows that
    # are masked out of pred and discarded by the wrapper.
    x32 = x_ref[0].astype(jnp.float32)                       # (spad, C)
    pieces = []
    for dy in range(3):
        for dx in range(3):
            s = dy * w_stride + dx
            pieces.append(x32 if s == 0 else pltpu.roll(x32, spad - s, axis=0))
    if kp > 9 * c_in:
        pieces.append(jnp.zeros((spad, kp - 9 * c_in), jnp.float32))
    slab_ref[...] = jnp.concatenate(pieces, axis=-1).astype(jnp.bfloat16)

    # ---- chunked row loop: bounds live ranges of the f32 intermediates -------
    def chunk_body(c, pred_acc):
        start = pl.multiple_of(c * chunk, chunk)
        rows = slab_ref[pl.ds(start, chunk), :]              # (chunk, kp) bf16

        # conv6/8/10: all 9 taps fused on K, all 3 branches fused on N (+bias,ReLU)
        h = jnp.dot(rows, w3_ref[...],
                    preferred_element_type=jnp.float32) + b3_ref[...]
        h = jnp.maximum(h, 0.0)                              # (chunk, 3*Mp) f32

        # conv7/9/11: one block-diagonal matmul serves all 3 branches (+bias,ReLU)
        z = jnp.dot(h.astype(jnp.bfloat16), w1_ref[...],
                    preferred_element_type=jnp.float32) + b1_ref[...]
        z = jnp.maximum(z, 0.0)                              # (chunk, 3*Cp) f32

        # elementwise max over the three branches (three 128-lane groups)
        y = jnp.maximum(jnp.maximum(z[:, :cp], z[:, cp:2 * cp]), z[:, 2 * cp:])

        # segmentation head: 1x1 conv (upsampling=1 -> identity), no activation
        seg = jnp.dot(y.astype(jnp.bfloat16), wh_ref[...],
                      preferred_element_type=jnp.float32) + bh_ref[...]  # f32

        # lane-dense bf16 store of the seg chunk (aligned 128-row window)
        seg_ref[0, pl.ds(start, chunk), :] = seg.astype(seg_ref.dtype)

        # AdaptiveMaxPool2d(1): global max over VALID spatial positions only,
        # taken from the f32 values before the bf16 cast.
        masked = seg + mask_ref[pl.ds(start, chunk), :]      # -1e30 on padding rows
        return jnp.maximum(pred_acc, jnp.max(masked, axis=0, keepdims=True))

    pred0 = jnp.full((1, cp), -jnp.inf, dtype=jnp.float32)
    pred = lax.fori_loop(0, spad // chunk, chunk_body, pred0, unroll=True)
    pred_ref[0] = pred


# ---------------------------------------------------------------------------
# Wrapper: layout glue (NCHW->NHWC, zero pad, flatten spatial, masks) in JAX.
# ---------------------------------------------------------------------------
def pylon_forward(feat_nchw, mats, classes, *, chunk=128):
    """feat_nchw: (N, C_enc, H, W) encoder feature map (float32)."""
    w3, b3, w1, b1, wh, bh = mats
    n, c, h, w = feat_nchw.shape
    hp, wq = h + 2, w + 2                       # +1 zero border (conv3x3, pad=1)
    s = hp * wq
    spad = ((s + chunk - 1) // chunk) * chunk   # flat length, multiple of chunk
    kp, mp3 = w3.shape                          # (9C padded to 128, 3*Mp)
    cp3 = w1.shape[1]                           # 3*Cp
    cp = wh.shape[1]                            # Cp (128)

    # NCHW -> NHWC, zero border, flatten spatial row-major, pad flat length, bf16.
    x = jnp.transpose(feat_nchw, (0, 2, 3, 1))
    x = jnp.pad(x, ((0, 0), (1, 1), (1, 1), (0, 0)))
    x = x.reshape(n, s, c)
    x = jnp.pad(x, ((0, 0), (0, spad - s), (0, 0))).astype(jnp.bfloat16)

    # Additive mask over flat positions: 0 for valid output pixels, -1e30 for
    # border/padding rows (excluded from the global max-pool).
    qi = np.arange(spad)
    valid = (qi < s) & ((qi // wq) < h) & ((qi % wq) < w)
    mask = jnp.asarray(np.where(valid, 0.0, -1e30), dtype=jnp.float32).reshape(spad, 1)

    flops = 2 * n * spad * (kp * mp3 + mp3 * cp3 + cp * cp)
    bytes_accessed = int(
        x.size * 2 + mask.size * 4
        + (w3.size + w1.size + wh.size) * 2
        + (b3.size + b1.size + bh.size) * 4
        + n * spad * cp * 2 + n * cp * 4)

    kernel = functools.partial(pylon_kernel, w_stride=wq, chunk=chunk)
    inv = dict(pipeline_mode=pl.Buffered(1))    # grid-invariant operands: 1 buffer

    seg_flat, pred = pl.pallas_call(
        kernel,
        out_shape=(jax.ShapeDtypeStruct((n, spad, cp), jnp.bfloat16),
                   jax.ShapeDtypeStruct((n, 1, cp), jnp.float32)),
        grid=(n,),
        in_specs=[
            pl.BlockSpec((1, spad, c), lambda i: (i, 0, 0)),          # features
            pl.BlockSpec((spad, 1), lambda i: (0, 0), **inv),          # valid mask
            pl.BlockSpec((kp, mp3), lambda i: (0, 0), **inv),          # conv6/8/10 W (tap/K-fused)
            pl.BlockSpec((1, mp3), lambda i: (0, 0), **inv),           # conv6/8/10 b
            pl.BlockSpec((mp3, cp3), lambda i: (0, 0), **inv),         # conv7/9/11 W (block-diag)
            pl.BlockSpec((1, cp3), lambda i: (0, 0), **inv),           # conv7/9/11 b
            pl.BlockSpec((cp, cp), lambda i: (0, 0), **inv),           # seg head W
            pl.BlockSpec((1, cp), lambda i: (0, 0), **inv),            # seg head b
        ],
        out_specs=(
            pl.BlockSpec((1, spad, cp), lambda i: (i, 0, 0)),          # seg (bf16)
            pl.BlockSpec((1, 1, cp), lambda i: (i, 0, 0)),             # pred (f32)
        ),
        scratch_shapes=[pltpu.VMEM((spad, kp), jnp.bfloat16)],         # im2col slab
        compiler_params=pltpu.CompilerParams(dimension_semantics=("parallel",)),
        cost_estimate=pl.CostEstimate(flops=flops, transcendentals=0,
                                      bytes_accessed=bytes_accessed),
    )(x, mask, w3, b3, w1, b1, wh, bh)

    # Drop padding rows/lanes, restore NCHW, cast seg back to f32 (module does .float()).
    seg = seg_flat[:, :s, :].reshape(n, hp, wq, cp)[:, :h, :w, :classes]
    seg = seg.astype(jnp.float32).transpose(0, 3, 1, 2)
    pred = pred[:, 0, :classes]
    return {'pred': pred, 'seg': seg}


# ---------------------------------------------------------------------------
# Deterministic parameter init (shapes follow the module, scaled down).
# ---------------------------------------------------------------------------
def init_raw_params(key, c_enc, mid, classes):
    ks = jax.random.split(key, 14)
    raw = {
        'w3': [0.05 * jax.random.normal(ks[i],     (3, 3, c_enc, mid),   jnp.float32) for i in range(3)],
        'b3': [0.05 * jax.random.normal(ks[3 + i], (mid,),               jnp.float32) for i in range(3)],
        'w1': [0.05 * jax.random.normal(ks[6 + i], (1, 1, mid, classes), jnp.float32) for i in range(3)],
        'b1': [0.05 * jax.random.normal(ks[9 + i], (classes,),           jnp.float32) for i in range(3)],
        'wh': 0.05 * jax.random.normal(ks[12], (1, 1, classes, classes), jnp.float32),
        'bh': 0.05 * jax.random.normal(ks[13], (classes,),               jnp.float32),
    }
    return raw


def raw_to_matmul(raw, c_enc, mid, classes, mid_pad, cls_pad):
    """Reshape + zero-pad conv weights into lane-dense bf16 matmul operands."""
    kp = ((9 * c_enc + 127) // 128) * 128

    # conv6/8/10: (3,3,C,mid) HWIO -> rows ordered (tap-major, channel-minor),
    # branches fused along the columns, K rows zero-padded to kp.
    w3_cols, b3_cols = [], []
    for i in range(3):
        wr = raw['w3'][i].reshape(9 * c_enc, mid)
        w3_cols.append(jnp.pad(wr, ((0, 0), (0, mid_pad - mid))))
        b3_cols.append(jnp.pad(raw['b3'][i], (0, mid_pad - mid)))
    w3 = jnp.concatenate(w3_cols, axis=-1)                              # (9C, 3*Mp)
    w3 = jnp.pad(w3, ((0, kp - 9 * c_enc), (0, 0))).astype(jnp.bfloat16)
    b3 = jnp.concatenate(b3_cols, axis=-1).reshape(1, 3 * mid_pad)      # f32

    # conv7/9/11: block-diagonal (3*Mp, 3*Cp) so one matmul serves all branches.
    w1 = jnp.zeros((3 * mid_pad, 3 * cls_pad), jnp.float32)
    b1_cols = []
    for i in range(3):
        blk = jnp.pad(raw['w1'][i].reshape(mid, classes),
                      ((0, mid_pad - mid), (0, cls_pad - classes)))
        w1 = w1.at[i * mid_pad:(i + 1) * mid_pad,
                   i * cls_pad:(i + 1) * cls_pad].set(blk)
        b1_cols.append(jnp.pad(raw['b1'][i], (0, cls_pad - classes)))
    w1 = w1.astype(jnp.bfloat16)
    b1 = jnp.concatenate(b1_cols, axis=-1).reshape(1, 3 * cls_pad)      # f32

    wh = jnp.pad(raw['wh'].reshape(classes, classes),
                 ((0, cls_pad - classes), (0, cls_pad - classes))).astype(jnp.bfloat16)
    bh = jnp.pad(raw['bh'], (0, cls_pad - classes)).reshape(1, cls_pad)  # f32
    return (w3, b3, w1, b1, wh, bh)


# ---------------------------------------------------------------------------
# Pure-JAX f32 reference (matches the PyTorch forward semantics).
# ---------------------------------------------------------------------------
def reference_forward(feat_nchw, raw):
    def conv(x, wt, b):
        y = jax.lax.conv_general_dilated(
            x, wt, window_strides=(1, 1), padding='SAME',
            dimension_numbers=('NCHW', 'HWIO', 'NCHW'))
        return y + b[None, :, None, None]

    branches = []
    for i in range(3):
        hh = jax.nn.relu(conv(feat_nchw, raw['w3'][i], raw['b3'][i]))
        zz = jax.nn.relu(conv(hh, raw['w1'][i], raw['b1'][i]))
        branches.append(zz)
    y = jnp.maximum(jnp.maximum(branches[0], branches[1]), branches[2])
    seg = conv(y, raw['wh'], raw['bh'])
    pred = jnp.max(seg, axis=(2, 3))
    return {'pred': pred, 'seg': seg}


if __name__ == "__main__":
    # Small stand-in shapes: batch=4 (grid of 4 even steps), encoder channels=8
    # (stand-in for 2048), 16x16 feature map, mid=32 (stand-in for 1024), 14 classes.
    # NOTE: at these toy shapes the kernel is not MXU-bound (K=72); shapes are for
    # correctness validation only, not perf tuning.
    N, C_ENC, H, W = 4, 8, 16, 16
    MID, CLASSES = 32, 14
    MID_PAD, CLS_PAD = 128, 128

    key = jax.random.PRNGKey(0)
    k_feat, k_par = jax.random.split(key)
    feat = jax.random.normal(k_feat, (N, C_ENC, H, W), jnp.float32)

    raw = init_raw_params(k_par, C_ENC, MID, CLASSES)
    mats = raw_to_matmul(raw, C_ENC, MID, CLASSES, MID_PAD, CLS_PAD)

    out = jax.block_until_ready(pylon_forward(feat, mats, CLASSES))
    ref = jax.block_until_ready(reference_forward(feat, raw))

    assert out['pred'].shape == (N, CLASSES)
    assert out['seg'].shape == (N, CLASSES, H, W)
    # bf16 operands / bf16 seg store (kernel) vs f32 reference -> loosened tolerance.
    np.testing.assert_allclose(np.asarray(out['seg']), np.asarray(ref['seg']),
                               rtol=2e-2, atol=2e-2)
    np.testing.assert_allclose(np.asarray(out['pred']), np.asarray(ref['pred']),
                               rtol=2e-2, atol=2e-2)
    print("KERNEL_OK")
</pallas_src>

<mosaic_0001>
module attributes {stable_mosaic.version = 11 : i64} {
  func.func @pylon_kernel(%arg0: i32, %arg1: memref<1x384x8xbf16, #tpu.memory_space<vmem>>, %arg2: memref<384x1xf32, #tpu.memory_space<vmem>>, %arg3: memref<128x384xbf16, #tpu.memory_space<vmem>>, %arg4: memref<1x384xf32, #tpu.memory_space<vmem>>, %arg5: memref<384x384xbf16, #tpu.memory_space<vmem>>, %arg6: memref<1x384xf32, #tpu.memory_space<vmem>>, %arg7: memref<128x128xbf16, #tpu.memory_space<vmem>>, %arg8: memref<1x128xf32, #tpu.memory_space<vmem>>, %arg9: memref<1x384x128xbf16, #tpu.memory_space<vmem>>, %arg10: memref<1x1x128xf32, #tpu.memory_space<vmem>>, %arg11: memref<384x128xbf16, #tpu.memory_space<vmem>>) attributes {dimension_semantics = [#tpu.dimension_semantics<parallel>], iteration_bounds = array<i64: 4>, scalar_prefetch = 0 : i64, scratch_operands = 1 : i64, tpu.core_type = #tpu.core_type<tc>, window_params = [{transform_indices = @transform_0, window_bounds = array<i64: 1, 384, 8>}, {pipeline_mode = #tpu.pipeline_mode<synchronous>, transform_indices = @transform_1, window_bounds = array<i64: 384, 1>}, {pipeline_mode = #tpu.pipeline_mode<synchronous>, transform_indices = @transform_2, window_bounds = array<i64: 128, 384>}, {pipeline_mode = #tpu.pipeline_mode<synchronous>, transform_indices = @transform_3, window_bounds = array<i64: 1, 384>}, {pipeline_mode = #tpu.pipeline_mode<synchronous>, transform_indices = @transform_4, window_bounds = array<i64: 384, 384>}, {pipeline_mode = #tpu.pipeline_mode<synchronous>, transform_indices = @transform_5, window_bounds = array<i64: 1, 384>}, {pipeline_mode = #tpu.pipeline_mode<synchronous>, transform_indices = @transform_6, window_bounds = array<i64: 128, 128>}, {pipeline_mode = #tpu.pipeline_mode<synchronous>, transform_indices = @transform_7, window_bounds = array<i64: 1, 128>}, {transform_indices = @transform_8, window_bounds = array<i64: 1, 384, 128>}, {transform_indices = @transform_9, window_bounds = array<i64: 1, 1, 128>}]} {
    %c0 = arith.constant 0 : index
    %c0_0 = arith.constant 0 : index
    %c0_1 = arith.constant 0 : index
    %0 = vector.load %arg1[%c0, %c0_0, %c0_1] : memref<1x384x8xbf16, #tpu.memory_space<vmem>>, vector<1x384x8xbf16>
    %1 = vector.shape_cast %0 : vector<1x384x8xbf16> to vector<384x8xbf16>
    %2 = arith.extf %1 : vector<384x8xbf16> to vector<384x8xf32>
    %c383_i32 = arith.constant 383 : i32
    %3 = tpu.dynamic_rotate %2 by %c383_i32 dim 0 : vector<384x8xf32>, i32 -> vector<384x8xf32>
    %c382_i32 = arith.constant 382 : i32
    %4 = tpu.dynamic_rotate %2 by %c382_i32 dim 0 : vector<384x8xf32>, i32 -> vector<384x8xf32>
    %c366_i32 = arith.constant 366 : i32
    %5 = tpu.dynamic_rotate %2 by %c366_i32 dim 0 : vector<384x8xf32>, i32 -> vector<384x8xf32>
    %c365_i32 = arith.constant 365 : i32
    %6 = tpu.dynamic_rotate %2 by %c365_i32 dim 0 : vector<384x8xf32>, i32 -> vector<384x8xf32>
    %c364_i32 = arith.constant 364 : i32
    %7 = tpu.dynamic_rotate %2 by %c364_i32 dim 0 : vector<384x8xf32>, i32 -> vector<384x8xf32>
    %c348_i32 = arith.constant 348 : i32
    %8 = tpu.dynamic_rotate %2 by %c348_i32 dim 0 : vector<384x8xf32>, i32 -> vector<384x8xf32>
    %c347_i32 = arith.constant 347 : i32
    %9 = tpu.dynamic_rotate %2 by %c347_i32 dim 0 : vector<384x8xf32>, i32 -> vector<384x8xf32>
    %c346_i32 = arith.constant 346 : i32
    %10 = tpu.dynamic_rotate %2 by %c346_i32 dim 0 : vector<384x8xf32>, i32 -> vector<384x8xf32>
    %cst = arith.constant 0.000000e+00 : f32
    %11 = vector.broadcast %cst : f32 to vector<384x56xf32>
    %12 = tpu.concatenate %2, %3, %4, %5, %6, %7, %8, %9, %10, %11 in 1 : vector<384x8xf32>, vector<384x8xf32>, vector<384x8xf32>, vector<384x8xf32>, vector<384x8xf32>, vector<384x8xf32>, vector<384x8xf32>, vector<384x8xf32>, vector<384x8xf32>, vector<384x56xf32> -> vector<384x128xf32>
    %13 = arith.truncf %12 : vector<384x128xf32> to vector<384x128xbf16>
    %c0_2 = arith.constant 0 : index
    %c0_3 = arith.constant 0 : index
    %14 = vector.load %arg11[%c0_2, %c0_3] : memref<384x128xbf16, #tpu.memory_space<vmem>>, vector<384x128xbf16>
    tpu.vector_store %arg11[%c0_2, %c0_3], %13 {strides = array<i32>} : memref<384x128xbf16, #tpu.memory_space<vmem>>, vector<384x128xbf16>,
    %cst_4 = arith.constant 0xFF800000 : f32
    %15 = vector.broadcast %cst_4 : f32 to vector<1x128xf32>
    %c0_i32 = arith.constant 0 : i32
    %c128_i32 = arith.constant 128 : i32
    %16 = arith.muli %c0_i32, %c128_i32 : i32
    %17 = tpu.assume_multiple %16, 128 : i32
    %18 = arith.index_cast %17 : i32 to index
    %c0_5 = arith.constant 0 : index
    %19 = vector.load %arg11[%18, %c0_5] : memref<384x128xbf16, #tpu.memory_space<vmem>>, vector<128x128xbf16>
    %c0_6 = arith.constant 0 : index
    %c0_7 = arith.constant 0 : index
    %20 = vector.load %arg3[%c0_6, %c0_7] : memref<128x384xbf16, #tpu.memory_space<vmem>>, vector<128x384xbf16>
    %cst_8 = arith.constant dense<0.000000e+00> : vector<128x384xf32>
    %21 = tpu.matmul %19, %20, %cst_8 {dimension_numbers = #tpu.dot_dimension_numbers<[1], [0], [0], [1], [0, 0, 1, 1], [], []>} : vector<128x128xbf16>, vector<128x384xbf16>, vector<128x384xf32> -> vector<128x384xf32>
    %c0_9 = arith.constant 0 : index
    %c0_10 = arith.constant 0 : index
    %22 = vector.load %arg4[%c0_9, %c0_10] : memref<1x384xf32, #tpu.memory_space<vmem>>, vector<1x384xf32>
    %23 = vector.broadcast %22 : vector<1x384xf32> to vector<128x384xf32>
    %24 = arith.addf %21, %23 : vector<128x384xf32>
    %cst_11 = arith.constant 0.000000e+00 : f32
    %25 = vector.broadcast %cst_11 : f32 to vector<128x384xf32>
    %26 = arith.maximumf %24, %25 : vector<128x384xf32>
    %27 = arith.truncf %26 : vector<128x384xf32> to vector<128x384xbf16>
    %c0_12 = arith.constant 0 : index
    %c0_13 = arith.constant 0 : index
    %28 = vector.load %arg5[%c0_12, %c0_13] : memref<384x384xbf16, #tpu.memory_space<vmem>>, vector<384x384xbf16>
    %cst_14 = arith.constant dense<0.000000e+00> : vector<128x384xf32>
    %29 = tpu.matmul %27, %28, %cst_14 {dimension_numbers = #tpu.dot_dimension_numbers<[1], [0], [0], [1], [0, 0, 1, 1], [], []>} : vector<128x384xbf16>, vector<384x384xbf16>, vector<128x384xf32> -> vector<128x384xf32>
    %c0_15 = arith.constant 0 : index
    %c0_16 = arith.constant 0 : index
    %30 = vector.load %arg6[%c0_15, %c0_16] : memref<1x384xf32, #tpu.memory_space<vmem>>, vector<1x384xf32>
    %31 = vector.broadcast %30 : vector<1x384xf32> to vector<128x384xf32>
    %32 = arith.addf %29, %31 : vector<128x384xf32>
    %cst_17 = arith.constant 0.000000e+00 : f32
    %33 = vector.broadcast %cst_17 : f32 to vector<128x384xf32>
    %34 = arith.maximumf %32, %33 : vector<128x384xf32>
    %35 = vector.extract_strided_slice %34 {offsets = [0, 0], sizes = [128, 128], strides = [1, 1]} : vector<128x384xf32> to vector<128x128xf32>
    %36 = vector.extract_strided_slice %34 {offsets = [0, 128], sizes = [128, 128], strides = [1, 1]} : vector<128x384xf32> to vector<128x128xf32>
    %37 = arith.maximumf %35, %36 : vector<128x128xf32>
    %38 = vector.extract_strided_slice %34 {offsets = [0, 256], sizes = [128, 128], strides = [1, 1]} : vector<128x384xf32> to vector<128x128xf32>
    %39 = arith.maximumf %37, %38 : vector<128x128xf32>
    %40 = arith.truncf %39 : vector<128x128xf32> to vector<128x128xbf16>
    %c0_18 = arith.constant 0 : index
    %c0_19 = arith.constant 0 : index
    %41 = vector.load %arg7[%c0_18, %c0_19] : memref<128x128xbf16, #tpu.memory_space<vmem>>, vector<128x128xbf16>
    %cst_20 = arith.constant dense<0.000000e+00> : vector<128x128xf32>
    %42 = tpu.matmul %40, %41, %cst_20 {dimension_numbers = #tpu.dot_dimension_numbers<[1], [0], [0], [1], [0, 0, 1, 1], [], []>} : vector<128x128xbf16>, vector<128x128xbf16>, vector<128x128xf32> -> vector<128x128xf32>
    %c0_21 = arith.constant 0 : index
    %c0_22 = arith.constant 0 : index
    %43 = vector.load %arg8[%c0_21, %c0_22] : memref<1x128xf32, #tpu.memory_space<vmem>>, vector<1x128xf32>
    %44 = vector.broadcast %43 : vector<1x128xf32> to vector<128x128xf32>
    %45 = arith.addf %42, %44 : vector<128x128xf32>
    %46 = arith.truncf %45 : vector<128x128xf32> to vector<128x128xbf16>
    %c0_23 = arith.constant 0 : index
    %47 = arith.index_cast %17 : i32 to index
    %c0_24 = arith.constant 0 : index
    %48 = vector.load %arg9[%c0_23, %47, %c0_24] : memref<1x384x128xbf16, #tpu.memory_space<vmem>>, vector<1x128x128xbf16>
    %49 = vector.shape_cast %48 : vector<1x128x128xbf16> to vector<128x128xbf16>
    %50 = vector.shape_cast %46 : vector<128x128xbf16> to vector<1x128x128xbf16>
    tpu.vector_store %arg9[%c0_23, %47, %c0_24], %50 {strides = array<i32>} : memref<1x384x128xbf16, #tpu.memory_space<vmem>>, vector<1x128x128xbf16>,
    %51 = arith.index_cast %17 : i32 to index
    %c0_25 = arith.constant 0 : index
    %52 = vector.load %arg2[%51, %c0_25] : memref<384x1xf32, #tpu.memory_space<vmem>>, vector<128x1xf32>
    %53 = vector.broadcast %52 : vector<128x1xf32> to vector<128x128xf32>
    %54 = arith.addf %45, %53 : vector<128x128xf32>
    %cst_26 = arith.constant dense<0xFF800000> : vector<128xf32>
    %55 = vector.multi_reduction <maximumf>, %54, %cst_26 [0] : vector<128x128xf32> to vector<128xf32>
    %56 = vector.shape_cast %55 : vector<128xf32> to vector<1x128xf32>
    %57 = arith.maximumf %15, %56 : vector<1x128xf32>
    %c1_i32 = arith.constant 1 : i32
    %c128_i32_27 = arith.constant 128 : i32
    %58 = arith.muli %c1_i32, %c128_i32_27 : i32
    %59 = tpu.assume_multiple %58, 128 : i32
    %60 = arith.index_cast %59 : i32 to index
    %c0_28 = arith.constant 0 : index
    %61 = vector.load %arg11[%60, %c0_28] : memref<384x128xbf16, #tpu.memory_space<vmem>>, vector<128x128xbf16>
    %c0_29 = arith.constant 0 : index
    %c0_30 = arith.constant 0 : index
    %62 = vector.load %arg3[%c0_29, %c0_30] : memref<128x384xbf16, #tpu.memory_space<vmem>>, vector<128x384xbf16>
    %cst_31 = arith.constant dense<0.000000e+00> : vector<128x384xf32>
    %63 = tpu.matmul %61, %62, %cst_31 {dimension_numbers = #tpu.dot_dimension_numbers<[1], [0], [0], [1], [0, 0, 1, 1], [], []>} : vector<128x128xbf16>, vector<128x384xbf16>, vector<128x384xf32> -> vector<128x384xf32>
    %c0_32 = arith.constant 0 : index
    %c0_33 = arith.constant 0 : index
    %64 = vector.load %arg4[%c0_32, %c0_33] : memref<1x384xf32, #tpu.memory_space<vmem>>, vector<1x384xf32>
    %65 = vector.broadcast %64 : vector<1x384xf32> to vector<128x384xf32>
    %66 = arith.addf %63, %65 : vector<128x384xf32>
    %cst_34 = arith.constant 0.000000e+00 : f32
    %67 = vector.broadcast %cst_34 : f32 to vector<128x384xf32>
    %68 = arith.maximumf %66, %67 : vector<128x384xf32>
    %69 = arith.truncf %68 : vector<128x384xf32> to vector<128x384xbf16>
    %c0_35 = arith.constant 0 : index
    %c0_36 = arith.constant 0 : index
    %70 = vector.load %arg5[%c0_35, %c0_36] : memref<384x384xbf16, #tpu.memory_space<vmem>>, vector<384x384xbf16>
    %cst_37 = arith.constant dense<0.000000e+00> : vector<128x384xf32>
    %71 = tpu.matmul %69, %70, %cst_37 {dimension_numbers = #tpu.dot_dimension_numbers<[1], [0], [0], [1], [0, 0, 1, 1], [], []>} : vector<128x384xbf16>, vector<384x384xbf16>, vector<128x384xf32> -> vector<128x384xf32>
    %c0_38 = arith.constant 0 : index
    %c0_39 = arith.constant 0 : index
    %72 = vector.load %arg6[%c0_38, %c0_39] : memref<1x384xf32, #tpu.memory_space<vmem>>, vector<1x384xf32>
    %73 = vector.broadcast %72 : vector<1x384xf32> to vector<128x384xf32>
    %74 = arith.addf %71, %73 : vector<128x384xf32>
    %cst_40 = arith.constant 0.000000e+00 : f32
    %75 = vector.broadcast %cst_40 : f32 to vector<128x384xf32>
    %76 = arith.maximumf %74, %75 : vector<128x384xf32>
    %77 = vector.extract_strided_slice %76 {offsets = [0, 0], sizes = [128, 128], strides = [1, 1]} : vector<128x384xf32> to vector<128x128xf32>
    %78 = vector.extract_strided_slice %76 {offsets = [0, 128], sizes = [128, 128], strides = [1, 1]} : vector<128x384xf32> to vector<128x128xf32>
    %79 = arith.maximumf %77, %78 : vector<128x128xf32>
    %80 = vector.extract_strided_slice %76 {offsets = [0, 256], sizes = [128, 128], strides = [1, 1]} : vector<128x384xf32> to vector<128x128xf32>
    %81 = arith.maximumf %79, %80 : vector<128x128xf32>
    %82 = arith.truncf %81 : vector<128x128xf32> to vector<128x128xbf16>
    %c0_41 = arith.constant 0 : index
    %c0_42 = arith.constant 0 : index
    %83 = vector.load %arg7[%c0_41, %c0_42] : memref<128x128xbf16, #tpu.memory_space<vmem>>, vector<128x128xbf16>
    %cst_43 = arith.constant dense<0.000000e+00> : vector<128x128xf32>
    %84 = tpu.matmul %82, %83, %cst_43 {dimension_numbers = #tpu.dot_dimension_numbers<[1], [0], [0], [1], [0, 0, 1, 1], [], []>} : vector<128x128xbf16>, vector<128x128xbf16>, vector<128x128xf32> -> vector<128x128xf32>
    %c0_44 = arith.constant 0 : index
    %c0_45 = arith.constant 0 : index
    %85 = vector.load %arg8[%c0_44, %c0_45] : memref<1x128xf32, #tpu.memory_space<vmem>>, vector<1x128xf32>
    %86 = vector.broadcast %85 : vector<1x128xf32> to vector<128x128xf32>
    %87 = arith.addf %84, %86 : vector<128x128xf32>
    %88 = arith.truncf %87 : vector<128x128xf32> to vector<128x128xbf16>
    %c0_46 = arith.constant 0 : index
    %89 = arith.index_cast %59 : i32 to index
    %c0_47 = arith.constant 0 : index
    %90 = vector.load %arg9[%c0_46, %89, %c0_47] : memref<1x384x128xbf16, #tpu.memory_space<vmem>>, vector<1x128x128xbf16>
    %91 = vector.shape_cast %90 : vector<1x128x128xbf16> to vector<128x128xbf16>
    %92 = vector.shape_cast %88 : vector<128x128xbf16> to vector<1x128x128xbf16>
    tpu.vector_store %arg9[%c0_46, %89, %c0_47], %92 {strides = array<i32>} : memref<1x384x128xbf16, #tpu.memory_space<vmem>>, vector<1x128x128xbf16>,
    %93 = arith.index_cast %59 : i32 to index
    %c0_48 = arith.constant 0 : index
    %94 = vector.load %arg2[%93, %c0_48] : memref<384x1xf32, #tpu.memory_space<vmem>>, vector<128x1xf32>
    %95 = vector.broadcast %94 : vector<128x1xf32> to vector<128x128xf32>
    %96 = arith.addf %87, %95 : vector<128x128xf32>
    %cst_49 = arith.constant dense<0xFF800000> : vector<128xf32>
    %97 = vector.multi_reduction <maximumf>, %96, %cst_49 [0] : vector<128x128xf32> to vector<128xf32>
    %98 = vector.shape_cast %97 : vector<128xf32> to vector<1x128xf32>
    %99 = arith.maximumf %57, %98 : vector<1x128xf32>
    %c2_i32 = arith.constant 2 : i32
    %c128_i32_50 = arith.constant 128 : i32
    %100 = arith.muli %c2_i32, %c128_i32_50 : i32
    %101 = tpu.assume_multiple %100, 128 : i32
    %102 = arith.index_cast %101 : i32 to index
    %c0_51 = arith.constant 0 : index
    %103 = vector.load %arg11[%102, %c0_51] : memref<384x128xbf16, #tpu.memory_space<vmem>>, vector<128x128xbf16>
    %c0_52 = arith.constant 0 : index
    %c0_53 = arith.constant 0 : index
    %104 = vector.load %arg3[%c0_52, %c0_53] : memref<128x384xbf16, #tpu.memory_space<vmem>>, vector<128x384xbf16>
    %cst_54 = arith.constant dense<0.000000e+00> : vector<128x384xf32>
    %105 = tpu.matmul %103, %104, %cst_54 {dimension_numbers = #tpu.dot_dimension_numbers<[1], [0], [0], [1], [0, 0, 1, 1], [], []>} : vector<128x128xbf16>, vector<128x384xbf16>, vector<128x384xf32> -> vector<128x384xf32>
    %c0_55 = arith.constant 0 : index
    %c0_56 = arith.constant 0 : index
    %106 = vector.load %arg4[%c0_55, %c0_56] : memref<1x384xf32, #tpu.memory_space<vmem>>, vector<1x384xf32>
    %107 = vector.broadcast %106 : vector<1x384xf32> to vector<128x384xf32>
    %108 = arith.addf %105, %107 : vector<128x384xf32>
    %cst_57 = arith.constant 0.000000e+00 : f32
    %109 = vector.broadcast %cst_57 : f32 to vector<128x384xf32>
    %110 = arith.maximumf %108, %109 : vector<128x384xf32>
    %111 = arith.truncf %110 : vector<128x384xf32> to vector<128x384xbf16>
    %c0_58 = arith.constant 0 : index
    %c0_59 = arith.constant 0 : index
    %112 = vector.load %arg5[%c0_58, %c0_59] : memref<384x384xbf16, #tpu.memory_space<vmem>>, vector<384x384xbf16>
    %cst_60 = arith.constant dense<0.000000e+00> : vector<128x384xf32>
    %113 = tpu.matmul %111, %112, %cst_60 {dimension_numbers = #tpu.dot_dimension_numbers<[1], [0], [0], [1], [0, 0, 1, 1], [], []>} : vector<128x384xbf16>, vector<384x384xbf16>, vector<128x384xf32> -> vector<128x384xf32>
    %c0_61 = arith.constant 0 : index
    %c0_62 = arith.constant 0 : index
    %114 = vector.load %arg6[%c0_61, %c0_62] : memref<1x384xf32, #tpu.memory_space<vmem>>, vector<1x384xf32>
    %115 = vector.broadcast %114 : vector<1x384xf32> to vector<128x384xf32>
    %116 = arith.addf %113, %115 : vector<128x384xf32>
    %cst_63 = arith.constant 0.000000e+00 : f32
    %117 = vector.broadcast %cst_63 : f32 to vector<128x384xf32>
    %118 = arith.maximumf %116, %117 : vector<128x384xf32>
    %119 = vector.extract_strided_slice %118 {offsets = [0, 0], sizes = [128, 128], strides = [1, 1]} : vector<128x384xf32> to vector<128x128xf32>
    %120 = vector.extract_strided_slice %118 {offsets = [0, 128], sizes = [128, 128], strides = [1, 1]} : vector<128x384xf32> to vector<128x128xf32>
    %121 = arith.maximumf %119, %120 : vector<128x128xf32>
    %122 = vector.extract_strided_slice %118 {offsets = [0, 256], sizes = [128, 128], strides = [1, 1]} : vector<128x384xf32> to vector<128x128xf32>
    %123 = arith.maximumf %121, %122 : vector<128x128xf32>
    %124 = arith.truncf %123 : vector<128x128xf32> to vector<128x128xbf16>
    %c0_64 = arith.constant 0 : index
    %c0_65 = arith.constant 0 : index
    %125 = vector.load %arg7[%c0_64, %c0_65] : memref<128x128xbf16, #tpu.memory_space<vmem>>, vector<128x128xbf16>
    %cst_66 = arith.constant dense<0.000000e+00> : vector<128x128xf32>
    %126 = tpu.matmul %124, %125, %cst_66 {dimension_numbers = #tpu.dot_dimension_numbers<[1], [0], [0], [1], [0, 0, 1, 1], [], []>} : vector<128x128xbf16>, vector<128x128xbf16>, vector<128x128xf32> -> vector<128x128xf32>
    %c0_67 = arith.constant 0 : index
    %c0_68 = arith.constant 0 : index
    %127 = vector.load %arg8[%c0_67, %c0_68] : memref<1x128xf32, #tpu.memory_space<vmem>>, vector<1x128xf32>
    %128 = vector.broadcast %127 : vector<1x128xf32> to vector<128x128xf32>
    %129 = arith.addf %126, %128 : vector<128x128xf32>
    %130 = arith.truncf %129 : vector<128x128xf32> to vector<128x128xbf16>
    %c0_69 = arith.constant 0 : index
    %131 = arith.index_cast %101 : i32 to index
    %c0_70 = arith.constant 0 : index
    %132 = vector.load %arg9[%c0_69, %131, %c0_70] : memref<1x384x128xbf16, #tpu.memory_space<vmem>>, vector<1x128x128xbf16>
    %133 = vector.shape_cast %132 : vector<1x128x128xbf16> to vector<128x128xbf16>
    %134 = vector.shape_cast %130 : vector<128x128xbf16> to vector<1x128x128xbf16>
    tpu.vector_store %arg9[%c0_69, %131, %c0_70], %134 {strides = array<i32>} : memref<1x384x128xbf16, #tpu.memory_space<vmem>>, vector<1x128x128xbf16>,
    %135 = arith.index_cast %101 : i32 to index
    %c0_71 = arith.constant 0 : index
    %136 = vector.load %arg2[%135, %c0_71] : memref<384x1xf32, #tpu.memory_space<vmem>>, vector<128x1xf32>
    %137 = vector.broadcast %136 : vector<128x1xf32> to vector<128x128xf32>
    %138 = arith.addf %129, %137 : vector<128x128xf32>
    %cst_72 = arith.constant dense<0xFF800000> : vector<128xf32>
    %139 = vector.multi_reduction <maximumf>, %138, %cst_72 [0] : vector<128x128xf32> to vector<128xf32>
    %140 = vector.shape_cast %139 : vector<128xf32> to vector<1x128xf32>
    %141 = arith.maximumf %99, %140 : vector<1x128xf32>
    %c3_i32 = arith.constant 3 : i32
    %c0_73 = arith.constant 0 : index
    %c0_74 = arith.constant 0 : index
    %c0_75 = arith.constant 0 : index
    %142 = vector.load %arg10[%c0_73, %c0_74, %c0_75] : memref<1x1x128xf32, #tpu.memory_space<vmem>>, vector<1x1x128xf32>
    %143 = vector.shape_cast %142 : vector<1x1x128xf32> to vector<1x128xf32>
    %144 = vector.shape_cast %141 : vector<1x128xf32> to vector<1x1x128xf32>
    tpu.vector_store %arg10[%c0_73, %c0_74, %c0_75], %144 {strides = array<i32>} : memref<1x1x128xf32, #tpu.memory_space<vmem>>, vector<1x1x128xf32>,
    return
  }
  func.func @transform_0(%arg0: i32) -> (i32, i32, i32) {
    %c0_i32 = arith.constant 0 : i32
    %c0_i32_0 = arith.constant 0 : i32
    %c0_i32_1 = arith.constant 0 : i32
    return %arg0, %c0_i32, %c0_i32_0 : i32, i32, i32
  }
  func.func @transform_1(%arg0: i32) -> (i32, i32) {
    %c0_i32 = arith.constant 0 : i32
    %c0_i32_0 = arith.constant 0 : i32
    %c0_i32_1 = arith.constant 0 : i32
    return %c0_i32, %c0_i32_0 : i32, i32
  }
  func.func @transform_2(%arg0: i32) -> (i32, i32) {
    %c0_i32 = arith.constant 0 : i32
    %c0_i32_0 = arith.constant 0 : i32
    %c0_i32_1 = arith.constant 0 : i32
    return %c0_i32, %c0_i32_0 : i32, i32
  }
  func.func @transform_3(%arg0: i32) -> (i32, i32) {
    %c0_i32 = arith.constant 0 : i32
    %c0_i32_0 = arith.constant 0 : i32
    %c0_i32_1 = arith.constant 0 : i32
    return %c0_i32, %c0_i32_0 : i32, i32
  }
  func.func @transform_4(%arg0: i32) -> (i32, i32) {
    %c0_i32 = arith.constant 0 : i32
    %c0_i32_0 = arith.constant 0 : i32
    %c0_i32_1 = arith.constant 0 : i32
    return %c0_i32, %c0_i32_0 : i32, i32
  }
  func.func @transform_5(%arg0: i32) -> (i32, i32) {
    %c0_i32 = arith.constant 0 : i32
    %c0_i32_0 = arith.constant 0 : i32
    %c0_i32_1 = arith.constant 0 : i32
    return %c0_i32, %c0_i32_0 : i32, i32
  }
  func.func @transform_6(%arg0: i32) -> (i32, i32) {
    %c0_i32 = arith.constant 0 : i32
    %c0_i32_0 = arith.constant 0 : i32
    %c0_i32_1 = arith.constant 0 : i32
    return %c0_i32, %c0_i32_0 : i32, i32
  }
  func.func @transform_7(%arg0: i32) -> (i32, i32) {
    %c0_i32 = arith.constant 0 : i32
    %c0_i32_0 = arith.constant 0 : i32
    %c0_i32_1 = arith.constant 0 : i32
    return %c0_i32, %c0_i32_0 : i32, i32
  }
  func.func @transform_8(%arg0: i32) -> (i32, i32, i32) {
    %c0_i32 = arith.constant 0 : i32
    %c0_i32_0 = arith.constant 0 : i32
    %c0_i32_1 = arith.constant 0 : i32
    return %arg0, %c0_i32, %c0_i32_0 : i32, i32, i32
  }
  func.func @transform_9(%arg0: i32) -> (i32, i32, i32) {
    %c0_i32 = arith.constant 0 : i32
    %c0_i32_0 = arith.constant 0 : i32
    %c0_i32_1 = arith.constant 0 : i32
    return %arg0, %c0_i32, %c0_i32_0 : i32, i32, i32
  }
}

</mosaic_0001>

<bundles_post_ra>
// kernel: tpu_custom_call.1
= control target key start
LH: loop header
LB: loop body
LE: loop exit
PB: predicated region body
PF: predicated region fallthrough
CT: control target
= control target key end

     0   :  { %s16824_s0 = inlined_call_operand.vmem [shape: bf16[4,384,8], index: 0, kind: input, shape index: {}]   ;;  %s16825_s1 = inlined_call_operand.vmem [shape: f32[384,1], index: 1, kind: input, shape index: {}]   ;;  %s16826_s2 = inlined_call_operand.vmem [shape: bf16[128,384], index: 2, kind: input, shape index: {}]   ;;  %s16827_s3 = inlined_call_operand.vmem [shape: f32[1,384], index: 3, kind: input, shape index: {}]   ;;  %s16828_s4 = inlined_call_operand.vmem [shape: bf16[384,384], index: 4, kind: input, shape index: {}]   ;;  %s16829_s5 = inlined_call_operand.vmem [shape: f32[1,384], index: 5, kind: input, shape index: {}]   ;;  %s16830_s6 = inlined_call_operand.vmem [shape: bf16[128,128], index: 6, kind: input, shape index: {}]   ;;  %s16831_s7 = inlined_call_operand.vmem [shape: f32[1,128], index: 7, kind: input, shape index: {}]   ;;  %s16832_s8 = inlined_call_operand.hbm [shape: bf16[4,384,128], index: 8, kind: output, shape index: {0}]   ;;  %s16833_s9 = inlined_call_operand.hbm [shape: f32[4,1,128], index: 9, kind: output, shape index: {1}]  }
   0x1   :  { %16956 = sst [smem:[#allocation73_spill]] %s16824_s0 }
   0x2   :  { %15 = vsyncpa [#allocation4], 0 }
   0x3   :  { %17 = vsyncpa [#allocation4 + $0x1], 0 }
   0x4   :  { %18 = vsyncpa [#allocation6], 0 }
   0x5   :  { %20 = vsyncpa [#allocation6 + $0x1], 0  ;;  %s11932_s30 = smov 0   ;;  %s11934_s10 = smov 0  }
   0x6   :  { %s11936_s11 = smov 0   ;;  %s11938_s12 = smov 0  }
   0x7 LB: > { %s11953_s13 = sadd.s32 4294967295, %s11868_s12   ;;  %s8640_s14 = sadd.s32 4294967294, %s11868_s12   ;;  %s11868_s12 = sphi %s11938_s12, %s17164_s12   ;;  %s11864_s11 = sphi %s11936_s11, %s17163_s11   ;;  %s11860_s10 = sphi %s11934_s10, %s17162_s10   ;;  %s11856_s30 = sphi %s11932_s30, %s17161_s30  }
   0x8   : > { %s11957_s15 = sadd.s32 1, %s11868_s12   ;;  %s206_s16 = sadd.s32 1, %s11864_s11 }
   0x9   : > { %s203_s17 = ssub.s32 %s11868_s12, %s11957_s15  ;;  %p216_p0 = scmp.ne.s32.totalorder %s11864_s11, %s11860_s10 }
   0xa   : > { %p204_p1 = scmp.eq.s32.totalorder %s203_s17, 0  ;;  %p217_p2 = scmp.eq.s32.totalorder %s11953_s13, 3 }
   0xb   : > { %p222_p3 = scmp.ne.s32.totalorder %s11860_s10, %s11856_s30  ;;  %p223_p4 = scmp.eq.s32.totalorder %s8640_s14, 3 }
   0xc   : > { %s11968_s18 = scalar_select %p204_p1, %s11864_s11, %s206_s16  }
   0xd   : > { %p11970_p5 = por %p217_p2, %p216_p0  ;;  %p11974_p6 = por %p223_p4, %p222_p3 }
   0xe   : > { %p8643_p7 = scmp.ge.s32.totalorder %s11868_s12, 1  ;;  %p296_p8 = scmp.lt.s32.totalorder %s11868_s12, 5 }
  0x10   : > { %p297_p9 = pnand %p8643_p7, %p296_p8 }
  0x12   : > { %300 = sbr.rel (%p297_p9) target bundleno = 2211 (0x8a3), region = 52 }
  0x19   : > { %p336_p10 = scmp.lt.s32.totalorder %s11953_s13, 3  ;;  %v486_v0 = vlaneseq  ;;  %v11365_v1 = vld [vmem:[%s16826_s2 + $0x4] ss:$12 sps:$4 sm:$0xff]   ;;  %v11367_v2 = vld [vmem:[%s16826_s2] ss:$12 sps:$4 sm:$0xff]   ;;  %s16959_s0 = sld [smem:[#allocation73_spill]] }
  0x1a   : > { %3136 = vmatprep.subr.bf16.mxu0 %v11365_v1  ;;  %v11368_v4 = vld [vmem:[%s16826_s2 + $0x1c] ss:$12 sps:$4 sm:$0xff]   ;;  %v11370_v5 = vld [vmem:[%s16826_s2 + $0x18] ss:$12 sps:$4 sm:$0xff]   ;;  %v11371_v6 = vld [vmem:[%s16826_s2 + $0x34] ss:$12 sps:$4 sm:$0xff]  }
  0x1b   : > { %s337_s25 = scalar_select %p336_p10, %s11953_s13, 3  ;;  %v11988_v3 = vshrl.u32 %v486_v0, 7  ;;  %3137 = vmatpush1.bf16.msra.mxu0 %v11367_v2  ;;  %v11373_v7 = vld [vmem:[%s16826_s2 + $0x30] ss:$12 sps:$4 sm:$0xff]   ;;  %v11374_v16 = vld [vmem:[%s16826_s2 + $0x4c] ss:$12 sps:$4 sm:$0xff]  }
  0x1c   : > { %3138 = vmatprep.subr.bf16.mxu0 %v11368_v4  ;;  %v11376_v28 = vld [vmem:[%s16826_s2 + $0x48] ss:$12 sps:$4 sm:$0xff]   ;;  %v11377_v33 = vld [vmem:[%s16826_s2 + $0x64] ss:$12 sps:$4 sm:$0xff]   ;;  %v11380_v42 = vld [vmem:[%s16826_s2 + $0x60] ss:$12 sps:$4 sm:$0xff]  }
  0x1d   : > { %s10347_s14 = smul.u32 192, %s337_s25  ;;  %vm488_vm0 = vcmp.lt.s32.totalorder %v11988_v3, 7  ;;  %vm585_vm1 = vcmp.lt.s32.totalorder %v11988_v3, 6  ;;  %vm682_vm2 = vcmp.lt.s32.totalorder %v11988_v3, 5  ;;  %vm779_vm3 = vcmp.lt.s32.totalorder %v11988_v3, 4  ;;  %s16872_s26 = smov 8  }
  0x1e   : > { %vm876_vm4 = vcmp.lt.s32.totalorder %v11988_v3, 3  ;;  %v11379_v38 = vld [vmem:[%s16826_s2 + $0x8] ss:$12 sps:$4 sm:$0xff]   ;;  %vm973_vm5 = vcmp.lt.s32.totalorder %v11988_v3, 2  ;;  %s16842_s25 = smov 24   ;;  %s16864_s16 = smov 16  }
  0x1f   : > { %s12002_s23 = scalar_lea.vmem %s16959_s0, %s10347_s14  ;;  %3139 = vmatpush1.bf16.msra.mxu0 %v11370_v5  ;;  %v11381_v50 = vld [vmem:[%s16826_s2 + $0x7c] ss:$12 sps:$4 sm:$0xff]   ;;  %9866 = vmatprep.subr.bf16.mxu1 %v11379_v38  ;;  %v11383_v55 = vld [vmem:[%s16826_s2 + $0x20] ss:$12 sps:$4 sm:$0xff]   ;;  %v11387_v63 = vld [vmem:[%s16826_s2 + $0x38] ss:$12 sps:$4 sm:$0xff]  }
  0x20   : > { %v9125_v8 = vld [vmem:[%s12002_s23] sm:$0xff]   ;;  %v9340_v9 = vld [vmem:[%s12002_s23 + $0x8] sm:$0xff]   ;;  %v9341_v10 = vld [vmem:[%s12002_s23 + $0x10] sm:$0xff]   ;;  %3140 = vmatprep.subr.bf16.mxu0 %v11371_v6  ;;  %9867 = vmatpush3.bf16.msra.mxu1 %v11379_v38  ;;  %s16844_s22 = smov 32   ;;  %s16840_s14 = smov 40   ;;  %vm2462_vm6 = vcmask 64512  }
  0x21   : > { %v12014_v11 = vunpack.c.l.bf16 %v9125_v8  ;;  %v12016_v12 = vunpack.c.h.bf16 %v9125_v8  ;;  %v12018_v13 = vunpack.c.l.bf16 %v9340_v9  ;;  %v12020_v14 = vunpack.c.h.bf16 %v9340_v9  ;;  %v12023_v15 = vld [vmem:[%s12002_s23 + $0x18] sm:$0xff]   ;;  %v12148_v9 = vld [vmem:[%s12002_s23 + $0x20] sm:$0xff]   ;;  %9868 = vmatprep.subr.bf16.mxu1 %v11383_v55  ;;  %s16834_s28 = smov 48   ;;  %s16836_s21 = smov 56  }
  0x22   : > { %v12028_v17 = vunpack.c.l.bf16 %v9341_v10  ;;  %v12030_v18 = vunpack.c.h.bf16 %v9341_v10  ;;  %v12033_v19 = vunpack.c.l.bf16 %v12023_v15  ;;  %v11384_v5 = vld [vmem:[%s16826_s2 + $0x78] ss:$12 sps:$4 sm:$0xff]   ;;  %s16960_s29 = smov 48   ;;  %vm2511_vm7 = vcmask 130048   ;;  %s16965_s24 = smov 24  }
  0x23   : > { %v16849_v20 = vrot.slane %v12014_v11, 1  ;;  %v439_v21 = vrot.slane %v12016_v12, 1  ;;  %v440_v22 = vrot.slane %v12018_v13, 1  ;;  %v539_v23 = vrot.slane %v12018_v13, 2  ;;  %3141 = vmatpush1.bf16.msra.mxu0 %v11373_v7  ;;  %v11389_v38 = vld [vmem:[%s16826_s2 + $0xac] ss:$12 sps:$4 sm:$0xff]  }
  0x24   : > { %v540_v24 = vrot.slane %v12020_v14, 2  ;;  %v541_v25 = vrot.slane %v12028_v17, 2  ;;  %v16851_v26 = vrot.slane %v12014_v11, 2  ;;  %v538_v27 = vrot.slane %v12016_v12, 2  ;;  %3142 = vmatprep.subr.bf16.mxu0 %v11374_v16  ;;  %9869 = vmatpush3.bf16.msra.mxu1 %v11383_v55  ;;  %v11385_v16 = vld [vmem:[%s16826_s2 + $0x94] ss:$12 sps:$4 sm:$0xff]  }
  0x25   : > { %v534_v29 = vsel %vm488_vm0, %v439_v21, %v440_v22  ;;  %v535_v30 = vsel %vm488_vm0, %v16849_v20, %v439_v21  ;;  %v16848_v31 = vrot.slane %v12018_v13, 3  ;;  %v637_v32 = vrot.slane %v12020_v14, 3  ;;  %9870 = vmatprep.subr.bf16.mxu1 %v11387_v63 }
  0x26   : > { %v10403_v34 = vpack.i.bf16 %v534_v29, %v535_v30  ;;  %v629_v35 = vsel %vm585_vm1, %v540_v24, %v541_v25  ;;  %v630_v36 = vsel %vm585_vm1, %v539_v23, %v540_v24  ;;  %v631_v37 = vsel %vm585_vm1, %v538_v27, %v539_v23 }
  0x27   : > { %v12071_v39 = vpack.i.bf16 %v629_v35, %v630_v36  ;;  %v632_v40 = vsel %vm585_vm1, %v16851_v26, %v538_v27  ;;  %v638_v41 = vrot.slane %v12028_v17, 3  ;;  %v727_v44 = vsel %vm682_vm2, %v16848_v31, %v637_v32  ;;  %3143 = vmatpush1.bf16.msra.mxu0 %v11376_v28  ;;  %v11388_v27 = vld [vmem:[%s16826_s2 + $0x90] ss:$12 sps:$4 sm:$0xff]  }
  0x28   : > { %10404 = vrot.lane.b32.xlu0 %v10403_v34, %s16872_s26  ;;  %v12083_v43 = vpack.i.bf16 %v631_v37, %v632_v40  ;;  %v16850_v45 = vrot.slane %v12018_v13, 4  ;;  %v734_v47 = vrot.slane %v12020_v14, 4  ;;  %v735_v48 = vrot.slane %v12028_v17, 4  ;;  %3144 = vmatprep.subr.bf16.mxu0 %v11377_v33  ;;  %v11391_v28 = vld [vmem:[%s16826_s2 + $0x50] ss:$12 sps:$4 sm:$0xff]  }
  0x29   : > { %10414 = vrot.lane.b32.xlu1 %v12071_v39, %s16842_s25  ;;  %v726_v46 = vsel %vm682_vm2, %v637_v32, %v638_v41  ;;  %v736_v49 = vrot.slane %v12030_v18, 4  ;;  %v737_v52 = vrot.slane %v12033_v19, 4  ;;  %v16846_v53 = vrot.slane %v12028_v17, 5  ;;  %9871 = vmatpush3.bf16.msra.mxu1 %v11387_v63 }
  0x2a   : > { %v10418_v51 = vpack.i.bf16 %v726_v46, %v727_v44  ;;  %v833_v54 = vrot.slane %v12030_v18, 5  ;;  %v823_v56 = vsel %vm779_vm3, %v734_v47, %v735_v48  ;;  %v824_v57 = vsel %vm779_vm3, %v16850_v45, %v734_v47  ;;  %9872 = vmatprep.subr.bf16.mxu1 %v11391_v28  ;;  %v11392_v44 = vld [vmem:[%s16826_s2 + $0xa8] ss:$12 sps:$4 sm:$0xff]  }
  0x2b   : > { %v822_v58 = vsel %vm779_vm3, %v735_v48, %v736_v49  ;;  %v834_v59 = vrot.slane %v12033_v19, 5  ;;  %v12119_v60 = vpack.i.bf16 %v823_v56, %v824_v57  ;;  %v821_v61 = vsel %vm779_vm3, %v736_v49, %v737_v52  ;;  %3145 = vmatpush1.bf16.msra.mxu0 %v11380_v42 }
  0x2c   : > { %10409 = vrot.lane.b32.xlu0 %v12083_v43, %s16864_s16  ;;  %v919_v62 = vsel %vm876_vm4, %v16846_v53, %v833_v54  ;;  %v12133_v0 = vpack.i.bf16 %v821_v61, %v822_v58  ;;  %v16847_v2 = vrot.slane %v12028_v17, 6  ;;  %v930_v4 = vrot.slane %v12030_v18, 6  ;;  %3146 = vmatprep.subr.bf16.mxu0 %v11381_v50 }
  0x2d   : > { %10419 = vrot.lane.b32.xlu1 %v10418_v51, %s16844_s22  ;;  %v918_v1 = vsel %vm876_vm4, %v833_v54, %v834_v59  ;;  %v931_v6 = vrot.slane %v12033_v19, 6  ;;  %v441_v7 = vrot.slane %v12020_v14, 1  ;;  %v442_v8 = vrot.slane %v12028_v17, 1  ;;  %9873 = vmatpush3.bf16.msra.mxu1 %v11391_v28 }
  0x2e   : > { %v1016_v10 = vsel %vm973_vm5, %v16847_v2, %v930_v4  ;;  %v10433_v21 = vpack.i.bf16 %v918_v1, %v919_v62  ;;  %v542_v24 = vrot.slane %v12030_v18, 2  ;;  %v543_v33 = vrot.slane %v12033_v19, 2  ;;  %v9344_v1 = vld [vmem:[%s12002_s23 + $0x28] sm:$0xff]  }
  0x2f   : > { %v1015_v23 = vsel %vm973_vm5, %v930_v4, %v931_v6  ;;  %v532_v30 = vsel %vm488_vm0, %v441_v7, %v442_v8  ;;  %v533_v32 = vsel %vm488_vm0, %v440_v22, %v441_v7  ;;  %v639_v34 = vrot.slane %v12030_v18, 3  ;;  %3147 = vmatpush1.bf16.msra.mxu0 %v11384_v5  ;;  %v11395_v4 = vld [vmem:[%s16826_s2 + $0x98] ss:$12 sps:$4 sm:$0xff]  }
  0x30   : > { %10424 = vrot.lane.b32.xlu0 %v12119_v60, %s16840_s14  ;;  %v10438_v29 = vpack.i.bf16 %v1015_v23, %v1016_v10  ;;  %v640_v35 = vrot.slane %v12033_v19, 3  ;;  %v12184_v36 = vunpack.c.h.bf16 %v12023_v15  ;;  %v12187_v37 = vunpack.c.l.bf16 %v12148_v9  ;;  %3148 = vmatprep.subr.bf16.mxu0 %v11385_v16  ;;  %v11393_v15 = vld [vmem:[%s16826_s2 + $0x68] ss:$12 sps:$4 sm:$0xff]   ;;  %v11396_v10 = vld [vmem:[%s16826_s2 + $0xb0] ss:$12 sps:$4 sm:$0xff]  }
  0x31   : > { %10429 = vrot.lane.b32.xlu1 %v12133_v0, %s16834_s28  ;;  %v10443_v22 = vpack.i.bf16 %v532_v30, %v533_v32  ;;  %s16838_s28 = smov 64   ;;  %v627_v40 = vsel %vm585_vm1, %v542_v24, %v543_v33  ;;  %v628_v42 = vsel %vm585_vm1, %v541_v25, %v542_v24  ;;  %v725_v47 = vsel %vm682_vm2, %v638_v41, %v639_v34  ;;  %v11394_v25 = vld [vmem:[%s16826_s2 + $0x80] ss:$12 sps:$4 sm:$0xff]  }
  0x32   : > { %v724_v46 = vsel %vm682_vm2, %v639_v34, %v640_v35  ;;  %v738_v48 = vrot.slane %v12184_v36, 4  ;;  %v739_v49 = vrot.slane %v12187_v37, 4  ;;  %v10453_v50 = vpack.i.bf16 %v627_v40, %v628_v42  ;;  %9874 = vmatprep.subr.bf16.mxu1 %v11393_v15 }
  0x33   : > { %3149 = vmatpush1.bf16.msra.mxu0 %v11388_v27  ;;  %v10458_v51 = vpack.i.bf16 %v724_v46, %v725_v47  ;;  %v835_v41 = vrot.slane %v12184_v36, 5  ;;  %v836_v54 = vrot.slane %v12187_v37, 5  ;;  %v932_v57 = vrot.slane %v12184_v36, 6  ;;  %9875 = vmatpush3.bf16.msra.mxu1 %v11393_v15 }
  0x34   : > { %10434 = vrot.lane.b32.xlu0 %v10433_v21, %s16836_s21  ;;  %3150 = vmatprep.subr.bf16.mxu0 %v11389_v38  ;;  %v819_v55 = vsel %vm779_vm3, %v738_v48, %v739_v49  ;;  %v820_v56 = vsel %vm779_vm3, %v737_v52, %v738_v48  ;;  %v443_v58 = vrot.slane %v12030_v18, 1  ;;  %v444_v61 = vrot.slane %v12033_v19, 1 }
  0x35   : > { %10439 = vrot.lane.b32.xlu1 %v10438_v29, %s16838_s28  ;;  %9876 = vmatprep.subr.bf16.mxu1 %v11394_v25  ;;  %v10468_v62 = vpack.i.bf16 %v819_v55, %v820_v56  ;;  %v916_v63 = vsel %vm876_vm4, %v835_v41, %v836_v54  ;;  %v917_v52 = vsel %vm876_vm4, %v834_v59, %v835_v41  ;;  %v544_v23 = vrot.slane %v12184_v36, 2  ;;  %v9345_v56 = vld [vmem:[%s12002_s23 + $0x30] sm:$0xff]  }
  0x36   : > { %v1014_v7 = vsel %vm973_vm5, %v931_v6, %v932_v57  ;;  %v10473_v59 = vpack.i.bf16 %v916_v63, %v917_v52  ;;  %v530_v16 = vsel %vm488_vm0, %v443_v58, %v444_v61  ;;  %v531_v21 = vsel %vm488_vm0, %v442_v8, %v443_v58 }
  0x37   : > { %3151 = vmatpush1.bf16.msra.mxu0 %v11392_v44  ;;  %9877 = vmatpush3.bf16.msra.mxu1 %v11394_v25  ;;  %v545_v24 = vrot.slane %v12187_v37, 2  ;;  %v641_v27 = vrot.slane %v12184_v36, 3  ;;  %v12273_v28 = vunpack.c.h.bf16 %v12148_v9  ;;  %v12275_v29 = vunpack.c.l.bf16 %v9344_v1 }
  0x38   : > { %10444 = vrot.lane.b32.xlu0 %v10443_v22, %s16872_s26  ;;  %9878 = vmatprep.subr.bf16.mxu1 %v11395_v4  ;;  %v10483_v8 = vpack.i.bf16 %v530_v16, %v531_v21  ;;  %v626_v32 = vsel %vm585_vm1, %v543_v33, %v544_v23  ;;  %v445_v48 = vrot.slane %v12184_v36, 1  ;;  %v446_v41 = vrot.slane %v12187_v37, 1 }
  0x39   : > { %10449 = vrot.lane.b32.xlu1 %v12071_v39, %s16864_s16  ;;  %v933_v39 = vrot.slane %v12187_v37, 6  ;;  %v625_v30 = vsel %vm585_vm1, %v544_v23, %v545_v24  ;;  %v723_v34 = vsel %vm682_vm2, %v640_v35, %v641_v27  ;;  %v740_v38 = vrot.slane %v12273_v28, 4 }
  0x3a   : > { %v741_v22 = vrot.slane %v12275_v29, 4  ;;  %v10493_v15 = vpack.i.bf16 %v625_v30, %v626_v32  ;;  %v837_v40 = vrot.slane %v12273_v28, 5  ;;  %v838_v42 = vrot.slane %v12275_v29, 5 }
  0x3b   : > { %v1013_v5 = vsel %vm973_vm5, %v932_v57, %v933_v39  ;;  %9879 = vmatpush3.bf16.msra.mxu1 %v11395_v4  ;;  %v818_v35 = vsel %vm779_vm3, %v739_v49, %v740_v38  ;;  %v934_v46 = vrot.slane %v12273_v28, 6  ;;  %v935_v47 = vrot.slane %v12275_v29, 6 }
  0x3c   : > { %10454 = vrot.lane.b32.xlu0 %v10453_v50, %s16842_s25  ;;  %v10478_v6 = vpack.i.bf16 %v1013_v5, %v1014_v7  ;;  %9880 = vmatprep.subr.bf16.mxu1 %v11396_v10  ;;  %v817_v44 = vsel %vm779_vm3, %v740_v38, %v741_v22  ;;  %v546_v57 = vrot.slane %v12273_v28, 2  ;;  %v529_v63 = vsel %vm488_vm0, %v444_v61, %v445_v48 }
  0x3d   : > { %10459 = vrot.lane.b32.xlu1 %v10458_v51, %s16844_s22  ;;  %v10508_v25 = vpack.i.bf16 %v817_v44, %v818_v35  ;;  %v915_v51 = vsel %vm876_vm4, %v836_v54, %v837_v40  ;;  %v1011_v49 = vsel %vm973_vm5, %v934_v46, %v935_v47  ;;  %v1012_v55 = vsel %vm973_vm5, %v933_v39, %v934_v46 }
  0x3e   : > { %v10518_v54 = vpack.i.bf16 %v1011_v49, %v1012_v55  ;;  %v528_v52 = vsel %vm488_vm0, %v445_v48, %v446_v41  ;;  %v547_v4 = vrot.slane %v12275_v29, 2  ;;  %v643_v5 = vrot.slane %v12273_v28, 3 }
  0x3f   : > { %9881 = vmatpush3.bf16.msra.mxu1 %v11396_v10  ;;  %v644_v39 = vrot.slane %v12275_v29, 3  ;;  %v12328_v7 = vunpack.c.h.bf16 %v9344_v1  ;;  %v12330_v10 = vunpack.c.l.bf16 %v9345_v56  ;;  %v447_v38 = vrot.slane %v12273_v28, 1 }
  0x40   : > { %10464 = vrot.lane.b32.xlu0 %v12133_v0, %s16840_s14  ;;  %v642_v0 = vrot.slane %v12187_v37, 3  ;;  %v623_v61 = vsel %vm585_vm1, %v546_v57, %v547_v4  ;;  %v448_v44 = vrot.slane %v12275_v29, 1  ;;  %vm2560_vm8 = vcmask 195584  }
  0x41   : > { %10469 = vrot.lane.b32.xlu1 %v10468_v62, %s16960_s29  ;;  %v720_v1 = vsel %vm682_vm2, %v643_v5, %v644_v39  ;;  %v742_v21 = vrot.slane %v12328_v7, 4  ;;  %v839_v23 = vrot.slane %v12328_v7, 5  ;;  %v548_v46 = vrot.slane %v12328_v7, 2 }
  0x42   : > { %v722_v9 = vsel %vm682_vm2, %v641_v27, %v642_v0  ;;  %v721_v16 = vsel %vm682_vm2, %v642_v0, %v643_v5  ;;  %v840_v27 = vrot.slane %v12330_v10, 5  ;;  %v549_v48 = vrot.slane %v12330_v10, 2 }
  0x43   : > { %v10498_v33 = vpack.i.bf16 %v722_v9, %v723_v34  ;;  %v816_v32 = vsel %vm779_vm3, %v741_v22, %v742_v21  ;;  %v937_v9 = vrot.slane %v12330_v10, 6  ;;  %v12355_v34 = vld [vmem:[%s12002_s23 + $0x38] sm:$0xff]   ;;  %vm2609_vm9 = vcmask 261120  }
  0x44   : > { %10474 = vrot.lane.b32.xlu0 %v10473_v59, %s16836_s21  ;;  %v624_v59 = vsel %vm585_vm1, %v545_v24, %v546_v57  ;;  %v10538_v24 = vpack.i.bf16 %v720_v1, %v721_v16  ;;  %v12377_v55 = vunpack.c.l.bf16 %v12355_v34  ;;  %vm2658_vm10 = vcmask 326656  }
  0x45   : > { %10479 = vrot.lane.b32.xlu1 %v10478_v6, %s16838_s28  ;;  %v743_v6 = vrot.slane %v12330_v10, 4  ;;  %v10533_v30 = vpack.i.bf16 %v623_v61, %v624_v59  ;;  %vm2707_vm11 = vcmask 392192   ;;  %vm2756_vm12 = vcmask 457728  }
  0x46   : > { %v842_v16 = vrot.slane %v12377_v55, 5  ;;  %vm2854_vm13 = vcmask 588800   ;;  %vm2805_vm14 = vcmask 523264  }
  0x47   : > { %v815_v0 = vsel %vm779_vm3, %v742_v21, %v743_v6  ;;  %vm12627_vm15 = vmpackc.low %vm2854_vm13, %vm2854_vm13 }
  0x48   : > { %10484 = vrot.lane.b32.xlu0 %v10483_v8, %s16872_s26  ;;  %v936_v8 = vrot.slane %v12328_v7, 6 }
  0x49   : > { %10489 = vrot.lane.b32.xlu1 %v10453_v50, %s16864_s16  ;;  %v914_v50 = vsel %vm876_vm4, %v837_v40, %v838_v42  ;;  %v10548_v40 = vpack.i.bf16 %v815_v0, %v816_v32  ;;  %v16853_v0 = vmov 0  }
  0x4a   : > { %v10513_v58 = vpack.i.bf16 %v914_v50, %v915_v51  ;;  %v1009_v22 = vsel %vm973_vm5, %v936_v8, %v937_v9  ;;  %v1010_v35 = vsel %vm973_vm5, %v935_v47, %v936_v8  ;;  %v645_v50 = vrot.slane %v12328_v7, 3  ;;  %3168 = vmatprep.mubr.bf16.mxu0 %v16853_v0  ;;  %11363 = vset.pattern.permute.xlu0 %v16853_v0 }
  0x4b   : > { %v646_v51 = vrot.slane %v12330_v10, 3  ;;  %v10558_v57 = vpack.i.bf16 %v1009_v22, %v1010_v35  ;;  %v526_v47 = vsel %vm488_vm0, %v447_v38, %v448_v44  ;;  %v450_v8 = vrot.slane %v12330_v10, 1  ;;  %11364 = vset.pattern.permute.xlu1 %v16853_v0 }
  0x4c   : > { %10494 = vrot.lane.b32.xlu0 %v10493_v15, %s16842_s25  ;;  %v719_v5 = vsel %vm682_vm2, %v644_v39, %v645_v50  ;;  %v939_v39 = vrot.slane %v12377_v55, 6 }
  0x4d   : > { %10499 = vrot.lane.b32.xlu1 %v10498_v33, %s16844_s22  ;;  %v913_v33 = vsel %vm876_vm4, %v838_v42, %v839_v23  ;;  %v12374_v42 = vunpack.c.h.bf16 %v9345_v56  ;;  %v745_v56 = vrot.slane %v12377_v55, 4 }
  0x4f   : > { %v841_v59 = vrot.slane %v12374_v42, 5  ;;  %v938_v21 = vrot.slane %v12374_v42, 6 }
  0x50   : > { %10504 = vrot.lane.b32.xlu0 %v10468_v62, %s16840_s14  ;;  %v10523_v62 = vpack.i.bf16 %v528_v52, %v529_v63  ;;  %v622_v52 = vsel %vm585_vm1, %v547_v4, %v548_v46 }
  0x51   : > { %10509 = vrot.lane.b32.xlu1 %v10508_v25, %s16960_s29  ;;  %v1007_v32 = vsel %vm973_vm5, %v938_v21, %v939_v39 }
  0x54   : > { %10514 = vrot.lane.b32.xlu0 %v10513_v58, %s16836_s21  ;;  %v527_v58 = vsel %vm488_vm0, %v446_v41, %v447_v38  ;;  %v718_v41 = vsel %vm682_vm2, %v645_v50, %v646_v51  ;;  %v1008_v38 = vsel %vm973_vm5, %v937_v9, %v938_v21  ;;  %v551_v9 = vrot.slane %v12377_v55, 2 }
  0x55   : > { %10519 = vrot.lane.b32.xlu1 %v10518_v54, %s16838_s28  ;;  %v10563_v63 = vpack.i.bf16 %v526_v47, %v527_v58  ;;  %v621_v54 = vsel %vm585_vm1, %v548_v46, %v549_v48  ;;  %v10578_v61 = vpack.i.bf16 %v718_v41, %v719_v5  ;;  %v10598_v35 = vpack.i.bf16 %v1007_v32, %v1008_v38 }
  0x56   : > { %v550_v46 = vrot.slane %v12374_v42, 2  ;;  %v647_v50 = vrot.slane %v12374_v42, 3  ;;  %v451_v21 = vrot.slane %v12374_v42, 1 }
  0x58   : > { %10524 = vrot.lane.b32.xlu0 %v10523_v62, %s16872_s26  ;;  %v10573_v62 = vpack.i.bf16 %v621_v54, %v622_v52  ;;  %v620_v58 = vsel %vm585_vm1, %v549_v48, %v550_v46  ;;  %v717_v54 = vsel %vm682_vm2, %v646_v51, %v647_v50 }
  0x59   : > { %10529 = vrot.lane.b32.xlu1 %v10493_v15, %s16864_s16  ;;  %v912_v15 = vsel %vm876_vm4, %v839_v23, %v840_v27  ;;  %v449_v23 = vrot.slane %v12328_v7, 1 }
  0x5a   : > { %v10553_v49 = vpack.i.bf16 %v912_v15, %v913_v33  ;;  %v9347_v15 = vld [vmem:[%s12002_s23 + $0x40] sm:$0xff]  }
  0x5b   : > { %v524_v33 = vsel %vm488_vm0, %v449_v23, %v450_v8  ;;  %v525_v22 = vsel %vm488_vm0, %v448_v44, %v449_v23  ;;  %v12439_v47 = vunpack.c.l.bf16 %v9347_v15  ;;  %v619_v44 = vsel %vm585_vm1, %v550_v46, %v551_v9 }
  0x5c   : > { %10534 = vrot.lane.b32.xlu0 %v10533_v30, %s16842_s25  ;;  %v10613_v5 = vpack.i.bf16 %v619_v44, %v620_v58  ;;  %v452_v23 = vrot.slane %v12377_v55, 1 }
  0x5d   : > { %10539 = vrot.lane.b32.xlu1 %v10538_v24, %s16844_s22  ;;  %v844_v41 = vrot.slane %v12439_v47, 5 }
  0x60   : > { %10544 = vrot.lane.b32.xlu0 %v10508_v25, %s16840_s14  ;;  %v744_v25 = vrot.slane %v12374_v42, 4 }
  0x61   : > { %10549 = vrot.lane.b32.xlu1 %v10548_v40, %s16960_s29 }
  0x62   : > { %v813_v4 = vsel %vm779_vm3, %v744_v25, %v745_v56  ;;  %v814_v1 = vsel %vm779_vm3, %v743_v6, %v744_v25  ;;  %v911_v6 = vsel %vm876_vm4, %v840_v27, %v841_v59  ;;  %v747_v25 = vrot.slane %v12439_v47, 4 }
  0x63   : > { %v10588_v24 = vpack.i.bf16 %v813_v4, %v814_v1  ;;  %v9348_v1 = vld [vmem:[%s12002_s23 + $0x48] sm:$0xff]  }
  0x64   : > { %10554 = vrot.lane.b32.xlu0 %v10553_v49, %s16836_s21  ;;  %v648_v49 = vrot.slane %v12377_v55, 3 }
  0x65   : > { %10559 = vrot.lane.b32.xlu1 %v10558_v57, %s16838_s28  ;;  %v12437_v57 = vunpack.c.h.bf16 %v12355_v34 }
  0x66   : > { %v716_v34 = vsel %vm682_vm2, %v647_v50, %v648_v49 }
  0x67   : > { %v843_v52 = vrot.slane %v12437_v57, 5  ;;  %v10618_v48 = vpack.i.bf16 %v716_v34, %v717_v54  ;;  %v552_v38 = vrot.slane %v12437_v57, 2  ;;  %v649_v50 = vrot.slane %v12437_v57, 3 }
  0x68   : > { %10564 = vrot.lane.b32.xlu0 %v10563_v63, %s16872_s26  ;;  %v746_v63 = vrot.slane %v12437_v57, 4 }
  0x69   : > { %10569 = vrot.lane.b32.xlu1 %v10533_v30, %s16864_s16  ;;  %v910_v30 = vsel %vm876_vm4, %v841_v59, %v842_v16  ;;  %v941_v59 = vrot.slane %v12439_v47, 6 }
  0x6a   : > { %v10593_v27 = vpack.i.bf16 %v910_v30, %v911_v6  ;;  %v811_v4 = vsel %vm779_vm3, %v746_v63, %v747_v25  ;;  %v812_v51 = vsel %vm779_vm3, %v745_v56, %v746_v63  ;;  %v908_v30 = vsel %vm876_vm4, %v843_v52, %v844_v41 }
  0x6b   : > { %v909_v6 = vsel %vm876_vm4, %v842_v16, %v843_v52  ;;  %v522_v16 = vsel %vm488_vm0, %v451_v21, %v452_v23 }
  0x6c   : > { %10574 = vrot.lane.b32.xlu0 %v10573_v62, %s16842_s25 }
  0x6d   : > { %10579 = vrot.lane.b32.xlu1 %v10578_v61, %s16844_s22  ;;  %v940_v61 = vrot.slane %v12437_v57, 6 }
  0x6f   : > { %v1005_v56 = vsel %vm973_vm5, %v940_v61, %v941_v59  ;;  %v1006_v32 = vsel %vm973_vm5, %v939_v39, %v940_v61  ;;  %v523_v39 = vsel %vm488_vm0, %v450_v8, %v451_v21 }
  0x70   : > { %10584 = vrot.lane.b32.xlu0 %v10548_v40, %s16840_s14  ;;  %v10603_v40 = vpack.i.bf16 %v524_v33, %v525_v22  ;;  %v553_v33 = vrot.slane %v12439_v47, 2  ;;  %v12482_v22 = vunpack.c.h.bf16 %v9347_v15  ;;  %v10638_v46 = vpack.i.bf16 %v1005_v56, %v1006_v32 }
  0x71   : > { %10589 = vrot.lane.b32.xlu1 %v10588_v24, %s16960_s29  ;;  %v650_v15 = vrot.slane %v12439_v47, 3  ;;  %v10643_v34 = vpack.i.bf16 %v522_v16, %v523_v39  ;;  %v9349_v39 = vld [vmem:[%s12002_s23 + $0x50] sm:$0xff]  }
  0x72   : > { %v748_v44 = vrot.slane %v12482_v22, 4  ;;  %v845_v63 = vrot.slane %v12482_v22, 5  ;;  %v942_v8 = vrot.slane %v12482_v22, 6  ;;  %v617_v52 = vsel %vm585_vm1, %v552_v38, %v553_v33 }
  0x73   : > { %v714_v61 = vsel %vm682_vm2, %v649_v50, %v650_v15  ;;  %v554_v21 = vrot.slane %v12482_v22, 2 }
  0x74   : > { %10594 = vrot.lane.b32.xlu0 %v10593_v27, %s16836_s21  ;;  %v12484_v27 = vunpack.c.l.bf16 %v9348_v1 }
  0x75   : > { %10599 = vrot.lane.b32.xlu1 %v10598_v35, %s16838_s28  ;;  %v10633_v35 = vpack.i.bf16 %v908_v30, %v909_v6  ;;  %v12515_v30 = vunpack.c.h.bf16 %v9348_v1 }
  0x76   : > { %v749_v58 = vrot.slane %v12484_v27, 4  ;;  %v846_v54 = vrot.slane %v12484_v27, 5  ;;  %v555_v56 = vrot.slane %v12484_v27, 2  ;;  %v652_v1 = vrot.slane %v12484_v27, 3 }
  0x78   : > { %10604 = vrot.lane.b32.xlu0 %v10603_v40, %s16872_s26  ;;  %v453_v40 = vrot.slane %v12437_v57, 1 }
  0x79   : > { %10609 = vrot.lane.b32.xlu1 %v10573_v62, %s16864_s16  ;;  %v10628_v62 = vpack.i.bf16 %v811_v4, %v812_v51  ;;  %v715_v4 = vsel %vm682_vm2, %v648_v49, %v649_v50  ;;  %v943_v51 = vrot.slane %v12484_v27, 6  ;;  %v809_v49 = vsel %vm779_vm3, %v748_v44, %v749_v58 }
  0x7a   : > { %v10658_v32 = vpack.i.bf16 %v714_v61, %v715_v4  ;;  %v1004_v50 = vsel %vm973_vm5, %v941_v59, %v942_v8  ;;  %v615_v59 = vsel %vm585_vm1, %v554_v21, %v555_v56  ;;  %v847_v61 = vrot.slane %v12515_v30, 5 }
  0x7c   : > { %10614 = vrot.lane.b32.xlu0 %v10613_v5, %s16842_s25 }
  0x7d   : > { %10619 = vrot.lane.b32.xlu1 %v10618_v48, %s16844_s22  ;;  %v618_v48 = vsel %vm585_vm1, %v551_v9, %v552_v38  ;;  %v651_v9 = vrot.slane %v12482_v22, 3  ;;  %v810_v38 = vsel %vm779_vm3, %v747_v25, %v748_v44  ;;  %v1003_v25 = vsel %vm973_vm5, %v942_v8, %v943_v51 }
  0x7e   : > { %v10653_v6 = vpack.i.bf16 %v617_v52, %v618_v48  ;;  %v10668_v16 = vpack.i.bf16 %v809_v49, %v810_v38  ;;  %v12550_v52 = vunpack.c.l.bf16 %v9349_v39 }
  0x80   : > { %10624 = vrot.lane.b32.xlu0 %v10588_v24, %s16840_s14  ;;  %v454_v24 = vrot.slane %v12439_v47, 1  ;;  %v751_v8 = vrot.slane %v12550_v52, 4  ;;  %v848_v4 = vrot.slane %v12550_v52, 5  ;;  %v945_v38 = vrot.slane %v12550_v52, 6 }
  0x81   : > { %10629 = vrot.lane.b32.xlu1 %v10628_v62, %s16960_s29 }
  0x84   : > { %10634 = vrot.lane.b32.xlu0 %v10633_v35, %s16836_s21  ;;  %v750_v35 = vrot.slane %v12515_v30, 4 }
  0x85   : > { %10639 = vrot.lane.b32.xlu1 %v10638_v46, %s16838_s28  ;;  %v906_v46 = vsel %vm876_vm4, %v845_v63, %v846_v54 }
  0x86   : > { %v807_v49 = vsel %vm779_vm3, %v750_v35, %v751_v8 }
  0x88   : > { %10644 = vrot.lane.b32.xlu0 %v10643_v34, %s16872_s26  ;;  %v10678_v34 = vpack.i.bf16 %v1003_v25, %v1004_v50 }
  0x89   : > { %10649 = vrot.lane.b32.xlu1 %v10613_v5, %s16864_s16  ;;  %v907_v5 = vsel %vm876_vm4, %v844_v41, %v845_v63  ;;  %v520_v41 = vsel %vm488_vm0, %v453_v40, %v454_v24  ;;  %v521_v63 = vsel %vm488_vm0, %v452_v23, %v453_v40  ;;  %v712_v23 = vsel %vm682_vm2, %v651_v9, %v652_v1 }
  0x8a   : > { %v10673_v44 = vpack.i.bf16 %v906_v46, %v907_v5  ;;  %v10683_v48 = vpack.i.bf16 %v520_v41, %v521_v63  ;;  %v713_v40 = vsel %vm682_vm2, %v650_v15, %v651_v9  ;;  %v808_v15 = vsel %vm779_vm3, %v749_v58, %v750_v35  ;;  %v11399_v35 = vld [vmem:[%s16828_s4 + $0x4] ss:$12 sps:$4 sm:$0xff]  }
  0x8b   : > { %v944_v9 = vrot.slane %v12515_v30, 6  ;;  %v905_v5 = vsel %vm876_vm4, %v846_v54, %v847_v61  ;;  %v12590_v58 = vpack.i.bf16 %v807_v49, %v808_v15  ;;  %3915 = vmatprep.subr.bf16.mxu0 %v11399_v35  ;;  %v11424_v35 = vld [vmem:[%s16828_s4 + $0xc8] ss:$12 sps:$4 sm:$0xff]  }
  0x8c   : > { %10654 = vrot.lane.b32.xlu0 %v10653_v6, %s16842_s25  ;;  %9546 = vmatprep.subr.bf16.mxu1 %v11424_v35 }
  0x8d   : > { %10659 = vrot.lane.b32.xlu1 %v10658_v32, %s16844_s22  ;;  %v1001_v54 = vsel %vm973_vm5, %v944_v9, %v945_v38 }
  0x90   : > { %10664 = vrot.lane.b32.xlu0 %v10628_v62, %s16840_s14  ;;  %v616_v62 = vsel %vm585_vm1, %v553_v33, %v554_v21  ;;  %v10698_v33 = vpack.i.bf16 %v712_v23, %v713_v40 }
  0x91   : > { %10669 = vrot.lane.b32.xlu1 %v10668_v16, %s16960_s29  ;;  %v12570_v32 = vpack.i.bf16 %v615_v59, %v616_v62 }
  0x94   : > { %10674 = vrot.lane.b32.xlu0 %v10673_v44, %s16836_s21 }
  0x95   : > { %10679 = vrot.lane.b32.xlu1 %v10678_v34, %s16838_s28  ;;  %v1002_v34 = vsel %vm973_vm5, %v943_v51, %v944_v9 }
  0x96   : > { %v10718_v49 = vpack.i.bf16 %v1001_v54, %v1002_v34 }
  0x98   : > { %10684 = vrot.lane.b32.xlu0 %v10683_v48, %s16872_s26 }
  0x99   : > { %10689 = vrot.lane.b32.xlu1 %v10653_v6, %s16864_s16  ;;  %v904_v6 = vsel %vm876_vm4, %v847_v61, %v848_v4 }
  0x9a   : > { %v10405_v21 = vpop.permute.xlu0 %10404  ;;  %v10713_v44 = vpack.i.bf16 %v904_v6, %v905_v5 }
  0x9b   : > { %v10415_v46 = vpop.permute.xlu1 %10414  ;;  %v10407_v39 = vunpack.i.h.bf16 %v10405_v21  ;;  %v10406_v25 = vunpack.i.l.bf16 %v10405_v21 }
  0x9c   : > { %10694 = vrot.lane.b32.xlu0 %v12570_v32, %s16842_s25  ;;  %v10417_v41 = vunpack.i.h.bf16 %v10415_v46  ;;  %v10416_v63 = vunpack.i.l.bf16 %v10415_v46  ;;  %s16968_s25 = smov 56  }
  0x9d   : > { %10699 = vrot.lane.b32.xlu1 %v10698_v33, %s16844_s22  ;;  %v2464_v23 = vsel %vm2462_vm6, %v12016_v12, %v10407_v39  ;;  %v2463_v40 = vsel %vm2462_vm6, %v12014_v11, %v10406_v25 }
  0x9e   : > { %v10410_v50 = vpop.permute.xlu0 %10409 }
  0x9f   : > { %v10412_v48 = vunpack.i.h.bf16 %v10410_v50  ;;  %v10411_v59 = vunpack.i.l.bf16 %v10410_v50  ;;  %v10420_v62 = vpop.permute.xlu1 %10419 }
  0xa0   : > { %v10422_v61 = vunpack.i.h.bf16 %v10420_v62  ;;  %v10421_v33 = vunpack.i.l.bf16 %v10420_v62  ;;  %10704 = vrot.lane.b32.xlu0 %v10668_v16, %s16840_s14  ;;  %s16966_s14 = smov 40  }
  0xa1   : > { %v2512_v21 = vsel %vm2511_vm7, %v2463_v40, %v10411_v59  ;;  %v2513_v51 = vsel %vm2511_vm7, %v2464_v23, %v10412_v48  ;;  %10709 = vrot.lane.b32.xlu1 %v12590_v58, %s16960_s29 }
  0xa2   : > { %v2561_v15 = vsel %vm2560_vm8, %v2512_v21, %v10416_v63  ;;  %v2562_v9 = vsel %vm2560_vm8, %v2513_v51, %v10417_v41  ;;  %v10425_v46 = vpop.permute.xlu0 %10424  ;;  %v11693_v51 = vld [vmem:[%s16828_s4 + $0xc0] ss:$12 sps:$4 sm:$0xff]  }
  0xa3   : > { %v2610_v6 = vsel %vm2609_vm9, %v2561_v15, %v10421_v33  ;;  %v2611_v5 = vsel %vm2609_vm9, %v2562_v9, %v10422_v61  ;;  %v10427_v39 = vunpack.i.h.bf16 %v10425_v46  ;;  %v10426_v16 = vunpack.i.l.bf16 %v10425_v46  ;;  %v10430_v25 = vpop.permute.xlu1 %10429 }
  0xa4   : > { %v10432_v50 = vunpack.i.h.bf16 %v10430_v25  ;;  %v10431_v48 = vunpack.i.l.bf16 %v10430_v25  ;;  %10714 = vrot.lane.b32.xlu0 %v10713_v44, %s16836_s21  ;;  %s16964_s21 = smov 32  }
  0xa5   : > { %v2659_v54 = vsel %vm2658_vm10, %v2610_v6, %v10426_v16  ;;  %v2660_v34 = vsel %vm2658_vm10, %v2611_v5, %v10427_v39  ;;  %10719 = vrot.lane.b32.xlu1 %v10718_v49, %s16838_s28  ;;  %v11397_v49 = vld [vmem:[%s16828_s4] ss:$12 sps:$4 sm:$0xff]   ;;  %v11402_v6 = vld [vmem:[%s16828_s4 + $0x1c] ss:$12 sps:$4 sm:$0xff]   ;;  %s16967_s28 = smov 64  }
  0xa6   : > { %v10435_v41 = vpop.permute.xlu0 %10434  ;;  %v2708_v23 = vsel %vm2707_vm11, %v2659_v54, %v10431_v48  ;;  %v2709_v40 = vsel %vm2707_vm11, %v2660_v34, %v10432_v50  ;;  %v11400_v48 = vld [vmem:[%s16828_s4 + $0x18] ss:$12 sps:$4 sm:$0xff]  }
  0xa7   : > { %v10437_v63 = vunpack.i.h.bf16 %v10435_v41  ;;  %v10436_v59 = vunpack.i.l.bf16 %v10435_v41  ;;  %v10440_v62 = vpop.permute.xlu1 %10439  ;;  %v11405_v41 = vld [vmem:[%s16828_s4 + $0x34] ss:$12 sps:$4 sm:$0xff]  }
  0xa8   : > { %v10442_v44 = vunpack.i.h.bf16 %v10440_v62  ;;  %v10441_v61 = vunpack.i.l.bf16 %v10440_v62 }
  0xa9   : > { %v2757_v33 = vsel %vm2756_vm12, %v2708_v23, %v10436_v59  ;;  %v2758_v21 = vsel %vm2756_vm12, %v2709_v40, %v10437_v63  ;;  %10729 = vrot.lane.b32.xlu1 %v12570_v32, %s16864_s16 }
  0xaa   : > { %v2806_v15 = vsel %vm2805_vm14, %v2757_v33, %v10441_v61  ;;  %v2807_v9 = vsel %vm2805_vm14, %v2758_v21, %v10442_v44  ;;  %v10445_v46 = vpop.permute.xlu0 %10444  ;;  %v11403_v21 = vld [vmem:[%s16828_s4 + $0x30] ss:$12 sps:$4 sm:$0xff]  }
  0xab   : > { %v10447_v5 = vunpack.i.h.bf16 %v10445_v46  ;;  %v10446_v39 = vunpack.i.l.bf16 %v10445_v46  ;;  %v10450_v16 = vpop.permute.xlu1 %10449  ;;  %v9387_v25 = vpack.c.bf16 %v2807_v9, %v2806_v15 }
  0xac   : > { %v10452_v35 = vunpack.i.h.bf16 %v10450_v16  ;;  %v10451_v50 = vunpack.i.l.bf16 %v10450_v16 }
  0xad   : > { %v2466_v54 = vsel %vm2462_vm6, %v12020_v14, %v10447_v5  ;;  %v2465_v34 = vsel %vm2462_vm6, %v12018_v13, %v10446_v39  ;;  %9388 = vmatmul.mubr.msk.bf16.vlgmr.msra.gmra.mrb[0].mxu0 %vm12627_vm15, %v9387_v25  ;;  %9882 = vmatprep.mubr.msk.bf16.mxu1 %vm12627_vm15, %v9387_v25 }
  0xae   : > { %v10455_v63 = vpop.permute.xlu0 %10454  ;;  %3178 = vmatprep.mubr.bf16.mxu0 %v16853_v0  ;;  %3916 = vmatpush1.bf16.msra.mxu0 %v11397_v49  ;;  %v2514_v40 = vsel %vm2511_vm7, %v2465_v34, %v10451_v50  ;;  %v2515_v44 = vsel %vm2511_vm7, %v2466_v54, %v10452_v35  ;;  %v11408_v49 = vld [vmem:[%s16828_s4 + $0x4c] ss:$12 sps:$4 sm:$0xff]   ;;  %v11406_v54 = vld [vmem:[%s16828_s4 + $0x48] ss:$12 sps:$4 sm:$0xff]  }
  0xaf   : > { %v10457_v59 = vunpack.i.h.bf16 %v10455_v63  ;;  %v10456_v62 = vunpack.i.l.bf16 %v10455_v63  ;;  %v10460_v23 = vpop.permute.xlu1 %10459  ;;  %3917 = vmatprep.subr.bf16.mxu0 %v11402_v6 }
  0xb0   : > { %v10462_v61 = vunpack.i.h.bf16 %v10460_v23  ;;  %v10461_v33 = vunpack.i.l.bf16 %v10460_v23 }
  0xb1   : > { %v2563_v15 = vsel %vm2560_vm8, %v2514_v40, %v10456_v62  ;;  %v2564_v9 = vsel %vm2560_vm8, %v2515_v44, %v10457_v59 }
  0xb2   : > { %v10465_v46 = vpop.permute.xlu0 %10464  ;;  %3918 = vmatpush1.bf16.msra.mxu0 %v11400_v48  ;;  %v2612_v16 = vsel %vm2609_vm9, %v2563_v15, %v10461_v33  ;;  %v2613_v25 = vsel %vm2609_vm9, %v2564_v9, %v10462_v61  ;;  %v11411_v48 = vld [vmem:[%s16828_s4 + $0x64] ss:$12 sps:$4 sm:$0xff]   ;;  %v11409_v15 = vld [vmem:[%s16828_s4 + $0x60] ss:$12 sps:$4 sm:$0xff]  }
  0xb3   : > { %v10467_v6 = vunpack.i.h.bf16 %v10465_v46  ;;  %v10466_v5 = vunpack.i.l.bf16 %v10465_v46  ;;  %v10470_v39 = vpop.permute.xlu1 %10469  ;;  %3919 = vmatprep.subr.bf16.mxu0 %v11405_v41 }
  0xb4   : > { %v10472_v35 = vunpack.i.h.bf16 %v10470_v39  ;;  %v10471_v50 = vunpack.i.l.bf16 %v10470_v39 }
  0xb5   : > { %v2661_v34 = vsel %vm2658_vm10, %v2612_v16, %v10466_v5  ;;  %v2662_v63 = vsel %vm2658_vm10, %v2613_v25, %v10467_v6  ;;  %v11429_v16 = vld [vmem:[%s16828_s4 + $0xe0] ss:$12 sps:$4 sm:$0xff]  }
  0xb6   : > { %v10475_v59 = vpop.permute.xlu0 %10474  ;;  %3920 = vmatpush1.bf16.msra.mxu0 %v11403_v21  ;;  %v2710_v40 = vsel %vm2707_vm11, %v2661_v34, %v10471_v50  ;;  %v2711_v44 = vsel %vm2707_vm11, %v2662_v63, %v10472_v35  ;;  %v11414_v21 = vld [vmem:[%s16828_s4 + $0x7c] ss:$12 sps:$4 sm:$0xff]  }
  0xb7   : > { %v10477_v41 = vunpack.i.h.bf16 %v10475_v59  ;;  %v10476_v62 = vunpack.i.l.bf16 %v10475_v59  ;;  %v10480_v23 = vpop.permute.xlu1 %10479  ;;  %3921 = vmatprep.subr.bf16.mxu0 %v11408_v49  ;;  %v11425_v49 = vld [vmem:[%s16828_s4 + $0x8] ss:$12 sps:$4 sm:$0xff]  }
  0xb8   : > { %v10482_v61 = vunpack.i.h.bf16 %v10480_v23  ;;  %v10481_v33 = vunpack.i.l.bf16 %v10480_v23  ;;  %v11430_v23 = vld [vmem:[%s16828_s4 + $0x20] ss:$12 sps:$4 sm:$0xff]  }
  0xb9   : > { %v2759_v9 = vsel %vm2756_vm12, %v2710_v40, %v10476_v62  ;;  %v2760_v46 = vsel %vm2756_vm12, %v2711_v44, %v10477_v41  ;;  %v11412_v41 = vld [vmem:[%s16828_s4 + $0x78] ss:$12 sps:$4 sm:$0xff]  }
  0xba   : > { %v2808_v6 = vsel %vm2805_vm14, %v2759_v9, %v10481_v33  ;;  %v2809_v5 = vsel %vm2805_vm14, %v2760_v46, %v10482_v61  ;;  %v10485_v39 = vpop.permute.xlu0 %10484  ;;  %3922 = vmatpush1.bf16.msra.mxu0 %v11406_v54 }
  0xbb   : > { %v10487_v25 = vunpack.i.h.bf16 %v10485_v39  ;;  %v10486_v35 = vunpack.i.l.bf16 %v10485_v39  ;;  %v10490_v50 = vpop.permute.xlu1 %10489  ;;  %v9390_v34 = vpack.c.bf16 %v2809_v5, %v2808_v6  ;;  %3923 = vmatprep.subr.bf16.mxu0 %v11411_v48  ;;  %v11417_v48 = vld [vmem:[%s16828_s4 + $0x94] ss:$12 sps:$4 sm:$0xff]   ;;  %v11415_v39 = vld [vmem:[%s16828_s4 + $0x90] ss:$12 sps:$4 sm:$0xff]  }
  0xbc   : > { %v10492_v63 = vunpack.i.h.bf16 %v10490_v50  ;;  %v10491_v59 = vunpack.i.l.bf16 %v10490_v50  ;;  %v11439_v50 = vld [vmem:[%s16828_s4 + $0x110] ss:$12 sps:$4 sm:$0xff]  }
  0xbd   : > { %v2468_v62 = vsel %vm2462_vm6, %v12030_v18, %v10487_v25  ;;  %v2467_v54 = vsel %vm2462_vm6, %v12028_v17, %v10486_v35  ;;  %9391 = vmatmul.mubr.msk.bf16.gmra.mrb[4].mxu0 %vm12627_vm15, %v9390_v34  ;;  %9883 = vmatmul.mubr.msk.bf16.vlgmr.msra.gmra.mrb[0].mxu1 %vm12627_vm15, %v9390_v34  ;;  %v11434_v18 = vld [vmem:[%s16828_s4 + $0xf8] ss:$12 sps:$4 sm:$0xff]  }
  0xbe   : > { %v10495_v40 = vpop.permute.xlu0 %10494  ;;  %3188 = vmatprep.mubr.bf16.mxu0 %v16853_v0  ;;  %3924 = vmatpush1.bf16.msra.mxu0 %v11409_v15  ;;  %v2516_v9 = vsel %vm2511_vm7, %v2467_v54, %v10491_v59  ;;  %v2517_v46 = vsel %vm2511_vm7, %v2468_v62, %v10492_v63 }
  0xbf   : > { %v10497_v44 = vunpack.i.h.bf16 %v10495_v40  ;;  %v10496_v61 = vunpack.i.l.bf16 %v10495_v40  ;;  %v10500_v33 = vpop.permute.xlu1 %10499  ;;  %3925 = vmatprep.subr.bf16.mxu0 %v11414_v21  ;;  %9547 = vmatpush3.bf16.msra.mxu1 %v11425_v49  ;;  %v11420_v21 = vld [vmem:[%s16828_s4 + $0xac] ss:$12 sps:$4 sm:$0xff]  }
  0xc0   : > { %v10502_v6 = vunpack.i.h.bf16 %v10500_v33  ;;  %v10501_v5 = vunpack.i.l.bf16 %v10500_v33  ;;  %9548 = vmatprep.subr.bf16.mxu1 %v11429_v16  ;;  %v11435_v49 = vld [vmem:[%s16828_s4 + $0x38] ss:$12 sps:$4 sm:$0xff]  }
  0xc1   : > { %v2565_v15 = vsel %vm2560_vm8, %v2516_v9, %v10496_v61  ;;  %v2566_v25 = vsel %vm2560_vm8, %v2517_v46, %v10497_v44  ;;  %v11418_v44 = vld [vmem:[%s16828_s4 + $0xa8] ss:$12 sps:$4 sm:$0xff]  }
  0xc2   : > { %v10505_v35 = vpop.permute.xlu0 %10504  ;;  %3926 = vmatpush1.bf16.msra.mxu0 %v11412_v41  ;;  %v2614_v59 = vsel %vm2609_vm9, %v2565_v15, %v10501_v5  ;;  %v2615_v62 = vsel %vm2609_vm9, %v2566_v25, %v10502_v6  ;;  %v11444_v9 = vld [vmem:[%s16828_s4 + $0x128] ss:$12 sps:$4 sm:$0xff]  }
  0xc3   : > { %v10507_v34 = vunpack.i.h.bf16 %v10505_v35  ;;  %v10506_v16 = vunpack.i.l.bf16 %v10505_v35  ;;  %v10510_v63 = vpop.permute.xlu1 %10509  ;;  %3927 = vmatprep.subr.bf16.mxu0 %v11417_v48  ;;  %9549 = vmatpush3.bf16.msra.mxu1 %v11430_v23  ;;  %v11423_v48 = vld [vmem:[%s16828_s4 + $0xc4] ss:$12 sps:$4 sm:$0xff]  }
  0xc4   : > { %v10512_v54 = vunpack.i.h.bf16 %v10510_v63  ;;  %v10511_v40 = vunpack.i.l.bf16 %v10510_v63  ;;  %9550 = vmatprep.subr.bf16.mxu1 %v11434_v18  ;;  %v11440_v23 = vld [vmem:[%s16828_s4 + $0x50] ss:$12 sps:$4 sm:$0xff]  }
  0xc5   : > { %v2663_v41 = vsel %vm2658_vm10, %v2614_v59, %v10506_v16  ;;  %v2664_v61 = vsel %vm2658_vm10, %v2615_v62, %v10507_v34  ;;  %v11421_v34 = vld [vmem:[%s16828_s4 + $0xc0] ss:$12 sps:$4 sm:$0xff]  }
  0xc6   : > { %v10515_v33 = vpop.permute.xlu0 %10514  ;;  %3928 = vmatpush1.bf16.msra.mxu0 %v11415_v39  ;;  %v2712_v5 = vsel %vm2707_vm11, %v2663_v41, %v10511_v40  ;;  %v2713_v15 = vsel %vm2707_vm11, %v2664_v61, %v10512_v54 }
  0xc7   : > { %v10517_v46 = vunpack.i.h.bf16 %v10515_v33  ;;  %v10516_v18 = vunpack.i.l.bf16 %v10515_v33  ;;  %v10520_v6 = vpop.permute.xlu1 %10519  ;;  %3929 = vmatprep.subr.bf16.mxu0 %v11420_v21  ;;  %9551 = vmatpush3.bf16.msra.mxu1 %v11435_v49  ;;  %v11428_v21 = vld [vmem:[%s16828_s4 + $0xdc] ss:$12 sps:$4 sm:$0xff]  }
  0xc8   : > { %v10522_v25 = vunpack.i.h.bf16 %v10520_v6  ;;  %v10521_v35 = vunpack.i.l.bf16 %v10520_v6  ;;  %9552 = vmatprep.subr.bf16.mxu1 %v11439_v50  ;;  %v11445_v49 = vld [vmem:[%s16828_s4 + $0x68] ss:$12 sps:$4 sm:$0xff]   ;;  %v11449_v50 = vld [vmem:[%s16828_s4 + $0x140] ss:$12 sps:$4 sm:$0xff]  }
  0xc9   : > { %v2761_v39 = vsel %vm2756_vm12, %v2712_v5, %v10516_v18  ;;  %v2762_v16 = vsel %vm2756_vm12, %v2713_v15, %v10517_v46 }
  0xca   : > { %v2810_v63 = vsel %vm2805_vm14, %v2761_v39, %v10521_v35  ;;  %v2811_v59 = vsel %vm2805_vm14, %v2762_v16, %v10522_v25  ;;  %v10525_v62 = vpop.permute.xlu0 %10524  ;;  %3930 = vmatpush1.bf16.msra.mxu0 %v11418_v44 }
  0xcb   : > { %v10527_v54 = vunpack.i.h.bf16 %v10525_v62  ;;  %v10526_v40 = vunpack.i.l.bf16 %v10525_v62  ;;  %v10530_v41 = vpop.permute.xlu1 %10529  ;;  %v9393_v61 = vpack.c.bf16 %v2811_v59, %v2810_v63  ;;  %3931 = vmatprep.subr.bf16.mxu0 %v11423_v48  ;;  %9553 = vmatpush3.bf16.msra.mxu1 %v11440_v23  ;;  %v11426_v48 = vld [vmem:[%s16828_s4 + $0xd8] ss:$12 sps:$4 sm:$0xff]  }
  0xcc   : > { %v10532_v33 = vunpack.i.h.bf16 %v10530_v41  ;;  %v10531_v46 = vunpack.i.l.bf16 %v10530_v41  ;;  %9554 = vmatprep.subr.bf16.mxu1 %v11444_v9  ;;  %v11438_v62 = vld [vmem:[%s16828_s4 + $0x10c] ss:$12 sps:$4 sm:$0xff]  }
  0xcd   : > { %v2470_v18 = vsel %vm2462_vm6, %v12184_v36, %v10527_v54  ;;  %v2469_v6 = vsel %vm2462_vm6, %v12033_v19, %v10526_v40  ;;  %9394 = vmatmul.mubr.msk.bf16.gmra.mrb[8].mxu0 %vm12627_vm15, %v9393_v61  ;;  %9886 = vmatprep.mubr.msk.bf16.mxu1 %vm12627_vm15, %v9393_v61  ;;  %v11433_v19 = vld [vmem:[%s16828_s4 + $0xf4] ss:$12 sps:$4 sm:$0xff]  }
  0xce   : > { %v10535_v44 = vpop.permute.xlu0 %10534  ;;  %3198 = vmatprep.mubr.bf16.mxu0 %v16853_v0  ;;  %3932 = vmatpush1.bf16.msra.mxu0 %v11421_v34  ;;  %v2518_v5 = vsel %vm2511_vm7, %v2469_v6, %v10531_v46  ;;  %v2519_v15 = vsel %vm2511_vm7, %v2470_v18, %v10532_v33  ;;  %v11436_v18 = vld [vmem:[%s16828_s4 + $0x108] ss:$12 sps:$4 sm:$0xff]  }
  0xcf   : > { %v10537_v23 = vunpack.i.h.bf16 %v10535_v44  ;;  %v10536_v9 = vunpack.i.l.bf16 %v10535_v44  ;;  %v10540_v36 = vpop.permute.xlu1 %10539  ;;  %3933 = vmatprep.subr.bf16.mxu0 %v11428_v21  ;;  %9555 = vmatpush3.bf16.msra.mxu1 %v11445_v49  ;;  %v11431_v21 = vld [vmem:[%s16828_s4 + $0xf0] ss:$12 sps:$4 sm:$0xff]  }
  0xd0   : > { %v10542_v25 = vunpack.i.h.bf16 %v10540_v36  ;;  %v10541_v35 = vunpack.i.l.bf16 %v10540_v36  ;;  %9556 = vmatprep.subr.bf16.mxu1 %v11449_v50 }
  0xd1   : > { %v2567_v34 = vsel %vm2560_vm8, %v2518_v5, %v10536_v9  ;;  %v2568_v39 = vsel %vm2560_vm8, %v2519_v15, %v10537_v23  ;;  %v11443_v23 = vld [vmem:[%s16828_s4 + $0x124] ss:$12 sps:$4 sm:$0xff]  }
  0xd2   : > { %v10545_v16 = vpop.permute.xlu0 %10544  ;;  %3934 = vmatpush1.bf16.msra.mxu0 %v11426_v48  ;;  %v2616_v50 = vsel %vm2609_vm9, %v2567_v34, %v10541_v35  ;;  %v2617_v54 = vsel %vm2609_vm9, %v2568_v39, %v10542_v25 }
  0xd3   : > { %v10547_v63 = vunpack.i.h.bf16 %v10545_v16  ;;  %v10546_v59 = vunpack.i.l.bf16 %v10545_v16  ;;  %v10550_v49 = vpop.permute.xlu1 %10549  ;;  %3935 = vmatprep.subr.bf16.mxu0 %v11433_v19  ;;  %v11441_v16 = vld [vmem:[%s16828_s4 + $0x120] ss:$12 sps:$4 sm:$0xff]  }
  0xd4   : > { %v10552_v40 = vunpack.i.h.bf16 %v10550_v49  ;;  %v10551_v41 = vunpack.i.l.bf16 %v10550_v49 }
  0xd5   : > { %v2665_v61 = vsel %vm2658_vm10, %v2616_v50, %v10546_v59  ;;  %v2666_v33 = vsel %vm2658_vm10, %v2617_v54, %v10547_v63 }
  0xd6   : > { %v10555_v46 = vpop.permute.xlu0 %10554  ;;  %3936 = vmatpush1.bf16.msra.mxu0 %v11431_v21  ;;  %v2714_v9 = vsel %vm2707_vm11, %v2665_v61, %v10551_v41  ;;  %v2715_v36 = vsel %vm2707_vm11, %v2666_v33, %v10552_v40  ;;  %v11446_v33 = vld [vmem:[%s16828_s4 + $0x138] ss:$12 sps:$4 sm:$0xff]  }
  0xd7   : > { %v10557_v6 = vunpack.i.h.bf16 %v10555_v46  ;;  %v10556_v44 = vunpack.i.l.bf16 %v10555_v46  ;;  %v10560_v48 = vpop.permute.xlu1 %10559  ;;  %3937 = vmatprep.subr.bf16.mxu0 %v11438_v62  ;;  %v11448_v62 = vld [vmem:[%s16828_s4 + $0x13c] ss:$12 sps:$4 sm:$0xff]  }
  0xd8   : > { %v10562_v19 = vunpack.i.h.bf16 %v10560_v48  ;;  %v10561_v5 = vunpack.i.l.bf16 %v10560_v48 }
  0xd9   : > { %v2763_v15 = vsel %vm2756_vm12, %v2714_v9, %v10556_v44  ;;  %v2764_v25 = vsel %vm2756_vm12, %v2715_v36, %v10557_v6 }
  0xda   : > { %v2812_v35 = vsel %vm2805_vm14, %v2763_v15, %v10561_v5  ;;  %v2813_v34 = vsel %vm2805_vm14, %v2764_v25, %v10562_v19  ;;  %v10565_v39 = vpop.permute.xlu0 %10564  ;;  %3938 = vmatpush1.bf16.msra.mxu0 %v11436_v18 }
  0xdb   : > { %v10567_v21 = vunpack.i.h.bf16 %v10565_v39  ;;  %v10566_v63 = vunpack.i.l.bf16 %v10565_v39  ;;  %v10570_v59 = vpop.permute.xlu1 %10569  ;;  %v9396_v49 = vpack.c.bf16 %v2813_v34, %v2812_v35  ;;  %3939 = vmatprep.subr.bf16.mxu0 %v11443_v23 }
  0xdc   : > { %v10572_v50 = vunpack.i.h.bf16 %v10570_v59  ;;  %v10571_v54 = vunpack.i.l.bf16 %v10570_v59 }
  0xdd   : > { %v2472_v40 = vsel %vm2462_vm6, %v12273_v28, %v10567_v21  ;;  %v2471_v41 = vsel %vm2462_vm6, %v12187_v37, %v10566_v63  ;;  %9397 = vmatmul.mubr.msk.bf16.gmra.mrb[12].mxu0 %vm12627_vm15, %v9396_v49  ;;  %9887 = vmatmul.mubr.msk.bf16.gmra.mrb[4].mxu1 %vm12627_vm15, %v9396_v49 }
  0xde   : > { %v10575_v61 = vpop.permute.xlu0 %10574  ;;  %3208 = vmatprep.mubr.bf16.mxu0 %v16853_v0  ;;  %3940 = vmatpush1.bf16.msra.mxu0 %v11441_v16  ;;  %v2520_v37 = vsel %vm2511_vm7, %v2471_v41, %v10571_v54  ;;  %v2521_v6 = vsel %vm2511_vm7, %v2472_v40, %v10572_v50 }
  0xdf   : > { %v10577_v46 = vunpack.i.h.bf16 %v10575_v61  ;;  %v10576_v18 = vunpack.i.l.bf16 %v10575_v61  ;;  %v10580_v28 = vpop.permute.xlu1 %10579  ;;  %3941 = vmatprep.subr.bf16.mxu0 %v11448_v62 }
  0xe0   : > { %v10582_v44 = vunpack.i.h.bf16 %v10580_v28  ;;  %v10581_v48 = vunpack.i.l.bf16 %v10580_v28 }
  0xe1   : > { %v2569_v23 = vsel %vm2560_vm8, %v2520_v37, %v10576_v18  ;;  %v2570_v9 = vsel %vm2560_vm8, %v2521_v6, %v10577_v46 }
  0xe2   : > { %v10585_v36 = vpop.permute.xlu0 %10584  ;;  %3942 = vmatpush1.bf16.msra.mxu0 %v11446_v33  ;;  %v2618_v25 = vsel %vm2609_vm9, %v2569_v23, %v10581_v48  ;;  %v2619_v35 = vsel %vm2609_vm9, %v2570_v9, %v10582_v44 }
  0xe3   : > { %v10587_v19 = vunpack.i.h.bf16 %v10585_v36  ;;  %v10586_v5 = vunpack.i.l.bf16 %v10585_v36  ;;  %v10590_v15 = vpop.permute.xlu1 %10589 }
  0xe4   : > { %v10592_v34 = vunpack.i.h.bf16 %v10590_v15  ;;  %v10591_v39 = vunpack.i.l.bf16 %v10590_v15 }
  0xe5   : > { %v2667_v16 = vsel %vm2658_vm10, %v2618_v25, %v10586_v5  ;;  %v2668_v21 = vsel %vm2658_vm10, %v2619_v35, %v10587_v19 }
  0xe6   : > { %v10595_v63 = vpop.permute.xlu0 %10594  ;;  %v2716_v50 = vsel %vm2707_vm11, %v2667_v16, %v10591_v39  ;;  %v2717_v54 = vsel %vm2707_vm11, %v2668_v21, %v10592_v34 }
  0xe7   : > { %v10597_v59 = vunpack.i.h.bf16 %v10595_v63  ;;  %v10596_v49 = vunpack.i.l.bf16 %v10595_v63  ;;  %v10600_v62 = vpop.permute.xlu1 %10599 }
  0xe8   : > { %v10602_v40 = vunpack.i.h.bf16 %v10600_v62  ;;  %v10601_v41 = vunpack.i.l.bf16 %v10600_v62 }
  0xe9   : > { %v2765_v61 = vsel %vm2756_vm12, %v2716_v50, %v10596_v49  ;;  %v2766_v33 = vsel %vm2756_vm12, %v2717_v54, %v10597_v59 }
  0xea   : > { %v2814_v46 = vsel %vm2805_vm14, %v2765_v61, %v10601_v41  ;;  %v2815_v18 = vsel %vm2805_vm14, %v2766_v33, %v10602_v40  ;;  %v10605_v28 = vpop.permute.xlu0 %10604 }
  0xeb   : > { %v10607_v37 = vunpack.i.h.bf16 %v10605_v28  ;;  %v10606_v6 = vunpack.i.l.bf16 %v10605_v28  ;;  %v10610_v44 = vpop.permute.xlu1 %10609  ;;  %v9399_v48 = vpack.c.bf16 %v2815_v18, %v2814_v46 }
  0xec   : > { %v10612_v23 = vunpack.i.h.bf16 %v10610_v44  ;;  %v10611_v9 = vunpack.i.l.bf16 %v10610_v44 }
  0xed   : > { %v2474_v36 = vsel %vm2462_vm6, %v12328_v7, %v10607_v37  ;;  %v2473_v19 = vsel %vm2462_vm6, %v12275_v29, %v10606_v6  ;;  %9400 = vmatmul.mubr.msk.bf16.gmra.mrb[16].mxu0 %vm12627_vm15, %v9399_v48  ;;  %9890 = vmatprep.mubr.msk.bf16.mxu1 %vm12627_vm15, %v9399_v48 }
  0xee   : > { %v10615_v5 = vpop.permute.xlu0 %10614  ;;  %3218 = vmatprep.mubr.bf16.mxu0 %v16853_v0  ;;  %v2522_v34 = vsel %vm2511_vm7, %v2473_v19, %v10611_v9  ;;  %v2523_v39 = vsel %vm2511_vm7, %v2474_v36, %v10612_v23 }
  0xef   : > { %v10617_v15 = vunpack.i.h.bf16 %v10615_v5  ;;  %v10616_v25 = vunpack.i.l.bf16 %v10615_v5  ;;  %v10620_v35 = vpop.permute.xlu1 %10619 }
  0xf0   : > { %v10622_v7 = vunpack.i.h.bf16 %v10620_v35  ;;  %v10621_v16 = vunpack.i.l.bf16 %v10620_v35 }
  0xf1   : > { %v2571_v29 = vsel %vm2560_vm8, %v2522_v34, %v10616_v25  ;;  %v2572_v21 = vsel %vm2560_vm8, %v2523_v39, %v10617_v15 }
  0xf2   : > { %v10625_v63 = vpop.permute.xlu0 %10624  ;;  %v2620_v50 = vsel %vm2609_vm9, %v2571_v29, %v10621_v16  ;;  %v2621_v54 = vsel %vm2609_vm9, %v2572_v21, %v10622_v7 }
  0xf3   : > { %v10627_v59 = vunpack.i.h.bf16 %v10625_v63  ;;  %v10626_v49 = vunpack.i.l.bf16 %v10625_v63  ;;  %v10630_v62 = vpop.permute.xlu1 %10629 }
  0xf4   : > { %v10632_v40 = vunpack.i.h.bf16 %v10630_v62  ;;  %v10631_v41 = vunpack.i.l.bf16 %v10630_v62 }
  0xf5   : > { %v2669_v61 = vsel %vm2658_vm10, %v2620_v50, %v10626_v49  ;;  %v2670_v33 = vsel %vm2658_vm10, %v2621_v54, %v10627_v59  ;;  %v11450_v59 = vld [vmem:[%s16828_s4 + $0x80] ss:$12 sps:$4 sm:$0xff]  }
  0xf6   : > { %v10635_v46 = vpop.permute.xlu0 %10634  ;;  %v2718_v6 = vsel %vm2707_vm11, %v2669_v61, %v10631_v41  ;;  %v2719_v44 = vsel %vm2707_vm11, %v2670_v33, %v10632_v40  ;;  %9557 = vmatpush3.bf16.msra.mxu1 %v11450_v59  ;;  %v11453_v33 = vld [vmem:[%s16828_s4 + $0x154] ss:$12 sps:$4 sm:$0xff]  }
  0xf7   : > { %v10637_v18 = vunpack.i.h.bf16 %v10635_v46  ;;  %v10636_v28 = vunpack.i.l.bf16 %v10635_v46  ;;  %v10640_v37 = vpop.permute.xlu1 %10639  ;;  %v11454_v46 = vld [vmem:[%s16828_s4 + $0x158] ss:$12 sps:$4 sm:$0xff]   ;;  %3943 = vmatprep.subr.bf16.mxu0 %v11453_v33 }
  0xf8   : > { %v10642_v48 = vunpack.i.h.bf16 %v10640_v37  ;;  %v10641_v23 = vunpack.i.l.bf16 %v10640_v37  ;;  %v11455_v37 = vld [vmem:[%s16828_s4 + $0x98] ss:$12 sps:$4 sm:$0xff]   ;;  %9558 = vmatprep.subr.bf16.mxu1 %v11454_v46 }
  0xf9   : > { %v2767_v9 = vsel %vm2756_vm12, %v2718_v6, %v10636_v28  ;;  %v2768_v36 = vsel %vm2756_vm12, %v2719_v44, %v10637_v18  ;;  %v11451_v28 = vld [vmem:[%s16828_s4 + $0x150] ss:$12 sps:$4 sm:$0xff]  }
  0xfa   : > { %v2816_v19 = vsel %vm2805_vm14, %v2767_v9, %v10641_v23  ;;  %v2817_v5 = vsel %vm2805_vm14, %v2768_v36, %v10642_v48  ;;  %v10645_v15 = vpop.permute.xlu0 %10644  ;;  %3944 = vmatpush1.bf16.msra.mxu0 %v11451_v28  ;;  %9559 = vmatpush3.bf16.msra.mxu1 %v11455_v37 }
  0xfb   : > { %v10647_v25 = vunpack.i.h.bf16 %v10645_v15  ;;  %v10646_v35 = vunpack.i.l.bf16 %v10645_v15  ;;  %v10650_v34 = vpop.permute.xlu1 %10649  ;;  %v9402_v39 = vpack.c.bf16 %v2817_v5, %v2816_v19 }
  0xfc   : > { %v10652_v7 = vunpack.i.h.bf16 %v10650_v34  ;;  %v10651_v16 = vunpack.i.l.bf16 %v10650_v34 }
  0xfd   : > { %v2476_v29 = vsel %vm2462_vm6, %v12374_v42, %v10647_v25  ;;  %v2475_v21 = vsel %vm2462_vm6, %v12330_v10, %v10646_v35  ;;  %9403 = vmatmul.mubr.msk.bf16.gmra.mrb[20].mxu0 %vm12627_vm15, %v9402_v39  ;;  %9891 = vmatmul.mubr.msk.bf16.gmra.mrb[8].mxu1 %vm12627_vm15, %v9402_v39  ;;  %v11458_v25 = vld [vmem:[%s16828_s4 + $0x16c] ss:$12 sps:$4 sm:$0xff]   ;;  %v11459_v35 = vld [vmem:[%s16828_s4 + $0x170] ss:$12 sps:$4 sm:$0xff]   ;;  %v11456_v39 = vld [vmem:[%s16828_s4 + $0x168] ss:$12 sps:$4 sm:$0xff]  }
  0xfe   : > { %v10655_v63 = vpop.permute.xlu0 %10654  ;;  %3228 = vmatprep.mubr.bf16.mxu0 %v16853_v0  ;;  %v2524_v42 = vsel %vm2511_vm7, %v2475_v21, %v10651_v16  ;;  %v2525_v10 = vsel %vm2511_vm7, %v2476_v29, %v10652_v7  ;;  %v11460_v7 = vld [vmem:[%s16828_s4 + $0xb0] ss:$12 sps:$4 sm:$0xff]   ;;  %3945 = vmatprep.subr.bf16.mxu0 %v11458_v25 }
  0xff   : > { %v10657_v49 = vunpack.i.h.bf16 %v10655_v63  ;;  %v10656_v62 = vunpack.i.l.bf16 %v10655_v63  ;;  %v10660_v50 = vpop.permute.xlu1 %10659  ;;  %9560 = vmatprep.subr.bf16.mxu1 %v11459_v35  ;;  %3946 = vmatpush1.bf16.msra.mxu0 %v11456_v39 }
 0x100   : > { %v10662_v54 = vunpack.i.h.bf16 %v10660_v50  ;;  %v10661_v40 = vunpack.i.l.bf16 %v10660_v50  ;;  %9561 = vmatpush3.bf16.msra.mxu1 %v11460_v7 }
 0x101   : > { %v2573_v41 = vsel %vm2560_vm8, %v2524_v42, %v10656_v62  ;;  %v2574_v61 = vsel %vm2560_vm8, %v2525_v10, %v10657_v49 }
 0x102   : > { %v10665_v18 = vpop.permute.xlu0 %10664  ;;  %v2622_v23 = vsel %vm2609_vm9, %v2573_v41, %v10661_v40  ;;  %v2623_v9 = vsel %vm2609_vm9, %v2574_v61, %v10662_v54 }
 0x103   : > { %v10667_v6 = vunpack.i.h.bf16 %v10665_v18  ;;  %v10666_v44 = vunpack.i.l.bf16 %v10665_v18  ;;  %v10670_v48 = vpop.permute.xlu1 %10669 }
 0x104   : > { %v10672_v36 = vunpack.i.h.bf16 %v10670_v48  ;;  %v10671_v19 = vunpack.i.l.bf16 %v10670_v48 }
 0x105   : > { %v2671_v5 = vsel %vm2658_vm10, %v2622_v23, %v10666_v44  ;;  %v2672_v15 = vsel %vm2658_vm10, %v2623_v9, %v10667_v6 }
 0x106   : > { %v10675_v34 = vpop.permute.xlu0 %10674  ;;  %v2720_v63 = vsel %vm2707_vm11, %v2671_v5, %v10671_v19  ;;  %v2721_v59 = vsel %vm2707_vm11, %v2672_v15, %v10672_v36 }
 0x107   : > { %v10677_v16 = vunpack.i.h.bf16 %v10675_v34  ;;  %v10676_v29 = vunpack.i.l.bf16 %v10675_v34  ;;  %v10680_v21 = vpop.permute.xlu1 %10679 }
 0x108   : > { %v10682_v49 = vunpack.i.h.bf16 %v10680_v21  ;;  %v10681_v62 = vunpack.i.l.bf16 %v10680_v21 }
 0x109   : > { %v2769_v50 = vsel %vm2756_vm12, %v2720_v63, %v10676_v29  ;;  %v2770_v42 = vsel %vm2756_vm12, %v2721_v59, %v10677_v16 }
 0x10a   : > { %v2818_v10 = vsel %vm2805_vm14, %v2769_v50, %v10681_v62  ;;  %v2819_v54 = vsel %vm2805_vm14, %v2770_v42, %v10682_v49  ;;  %v10685_v40 = vpop.permute.xlu0 %10684 }
 0x10b   : > { %v10687_v41 = vunpack.i.h.bf16 %v10685_v40  ;;  %v10686_v61 = vunpack.i.l.bf16 %v10685_v40  ;;  %v10690_v33 = vpop.permute.xlu1 %10689  ;;  %v9405_v46 = vpack.c.bf16 %v2819_v54, %v2818_v10 }
 0x10c   : > { %v10692_v18 = vunpack.i.h.bf16 %v10690_v33  ;;  %v10691_v28 = vunpack.i.l.bf16 %v10690_v33 }
 0x10d   : > { %v2478_v37 = vsel %vm2462_vm6, %v12437_v57, %v10687_v41  ;;  %v2477_v6 = vsel %vm2462_vm6, %v12377_v55, %v10686_v61  ;;  %9406 = vmatmul.mubr.msk.bf16.gmra.mrb[24].mxu0 %vm12627_vm15, %v9405_v46  ;;  %9894 = vmatprep.mubr.msk.bf16.mxu1 %vm12627_vm15, %v9405_v46 }
 0x10e   : > { %v10695_v44 = vpop.permute.xlu0 %10694  ;;  %3238 = vmatprep.mubr.bf16.mxu0 %v16853_v0  ;;  %v2526_v36 = vsel %vm2511_vm7, %v2477_v6, %v10691_v28  ;;  %v2527_v19 = vsel %vm2511_vm7, %v2478_v37, %v10692_v18  ;;  %v11463_v37 = vld [vmem:[%s16828_s4 + $0x184] ss:$12 sps:$4 sm:$0xff]   ;;  %v11476_v6 = vld [vmem:[%s16828_s4 + $0x188] ss:$12 sps:$4 sm:$0xff]  }
 0x10f   : > { %v10697_v48 = vunpack.i.h.bf16 %v10695_v44  ;;  %v10696_v23 = vunpack.i.l.bf16 %v10695_v44  ;;  %v10700_v9 = vpop.permute.xlu1 %10699  ;;  %4028 = vmatprep.subr.bf16.mxu0 %v11463_v37  ;;  %9898 = vmatprep.subr.bf16.mxu1 %v11476_v6  ;;  %v12943_v44 = vsub.s32 0, %v11988_v3 }
 0x110   : > { %v10702_v57 = vunpack.i.h.bf16 %v10700_v9  ;;  %v10701_v5 = vunpack.i.l.bf16 %v10700_v9 }
 0x111   : > { %v2575_v55 = vsel %vm2560_vm8, %v2526_v36, %v10696_v23  ;;  %v2576_v15 = vsel %vm2560_vm8, %v2527_v19, %v10697_v48  ;;  %v2991_v48 = vld [vmem:[%s16827_s3] sm:$0x7]  ;;  %v12949_v23 = vsub.s32 1, %v11988_v3 }
 0x112   : > { %v10705_v25 = vpop.permute.xlu0 %10704  ;;  %v2624_v7 = vsel %vm2609_vm9, %v2575_v55, %v10701_v5  ;;  %v2625_v16 = vsel %vm2609_vm9, %v2576_v15, %v10702_v57  ;;  %v12952_v9 = vrot.slane %v2991_v48, %v12943_v44 }
 0x113   : > { %v10707_v35 = vunpack.i.h.bf16 %v10705_v25  ;;  %v10706_v34 = vunpack.i.l.bf16 %v10705_v25  ;;  %v10710_v39 = vpop.permute.xlu1 %10709  ;;  %v12955_v36 = vrot.slane %v2991_v48, %v12949_v23 }
 0x114   : > { %v10712_v29 = vunpack.i.h.bf16 %v10710_v39  ;;  %v10711_v21 = vunpack.i.l.bf16 %v10710_v39 }
 0x115   : > { %v2673_v63 = vsel %vm2658_vm10, %v2624_v7, %v10706_v34  ;;  %v2674_v59 = vsel %vm2658_vm10, %v2625_v16, %v10707_v35 }
 0x116   : > { %v10715_v49 = vpop.permute.xlu0 %10714  ;;  %v2722_v10 = vsel %vm2707_vm11, %v2673_v63, %v10711_v21  ;;  %v2723_v54 = vsel %vm2707_vm11, %v2674_v59, %v10712_v29  ;;  %v11461_v59 = vld [vmem:[%s16828_s4 + $0x180] ss:$12 sps:$4 sm:$0xff]  }
 0x117   : > { %v10717_v62 = vunpack.i.h.bf16 %v10715_v49  ;;  %v10716_v50 = vunpack.i.l.bf16 %v10715_v49  ;;  %v10720_v42 = vpop.permute.xlu1 %10719  ;;  %v12965_v49 = vsub.s32 2, %v11988_v3 }
 0x118   : > { %v10722_v40 = vunpack.i.h.bf16 %v10720_v42  ;;  %v10721_v41 = vunpack.i.l.bf16 %v10720_v42  ;;  %v11464_v42 = vld [vmem:[%s16828_s4 + $0x198] ss:$12 sps:$4 sm:$0xff]  }
 0x119   : > { %v2771_v61 = vsel %vm2756_vm12, %v2722_v10, %v10716_v50  ;;  %v2772_v33 = vsel %vm2756_vm12, %v2723_v54, %v10717_v62  ;;  %16963 = vst [vmem:[#allocation9_spill] sm:$0xff] %v12965_v49  ;;  %v11466_v62 = vld [vmem:[%s16828_s4 + $0x19c] ss:$12 sps:$4 sm:$0xff]   ;;  %v11477_v50 = vld [vmem:[%s16828_s4 + $0x1a0] ss:$12 sps:$4 sm:$0xff]   ;;  %v12977_v10 = vrot.slane %v2991_v48, %v12965_v49 }
 0x11a   : > { %v2820_v46 = vsel %vm2805_vm14, %v2771_v61, %v10721_v41  ;;  %v2821_v18 = vsel %vm2805_vm14, %v2772_v33, %v10722_v40  ;;  %v11469_v54 = vld [vmem:[%s16828_s4 + $0x1b4] ss:$12 sps:$4 sm:$0xff]   ;;  %v11481_v40 = vld [vmem:[%s16828_s4 + $0x1b8] ss:$12 sps:$4 sm:$0xff]   ;;  %v11467_v33 = vld [vmem:[%s16828_s4 + $0x1b0] ss:$12 sps:$4 sm:$0xff]  }
 0x11b   : > { %v9408_v28 = vpack.c.bf16 %v2821_v18, %v2820_v46  ;;  %v11482_v48 = vld [vmem:[%s16828_s4 + $0x1d0] ss:$12 sps:$4 sm:$0xff]  }
 0x11d   : > { %9409 = vmatmul.mubr.msk.bf16.gmra.mrb[28].mxu0 %vm12627_vm15, %v9408_v28  ;;  %9895 = vmatmul.mubr.msk.bf16.gmra.mrb[12].mxu1 %vm12627_vm15, %v9408_v28 }
 0x180   : > { %v3170_v19 = vpop.f32.mrb[0].mxu0 }
 0x181   : > { %v3171_v57 = vadd.f32 %v3170_v19, %v12952_v9  ;;  %v3172_v5 = vpop.f32.mrb[1].mxu0 }
 0x182   : > { %v3173_v55 = vadd.f32 %v3172_v5, %v12955_v36  ;;  %v3174_v15 = vpop.f32.mrb[2].mxu0 }
 0x183   : > { %v3175_v25 = vadd.f32 %v3174_v15, %v12952_v9  ;;  %v3176_v35 = vpop.f32.mrb[3].mxu0  ;;  %v3346_v39 = vmax.f32 %v3171_v57, 0.0 }
 0x184   : > { %v3177_v34 = vadd.f32 %v3176_v35, %v12955_v36  ;;  %v3347_v16 = vmax.f32 %v3173_v55, 0.0 }
 0x185   : > { %v3349_v7 = vmax.f32 %v3175_v25, 0.0 }
 0x186   : > { %v3350_v29 = vmax.f32 %v3177_v34, 0.0 }
 0x187   : > { %v3394_v21 = vpack.c.bf16 %v3349_v7, %v3346_v39 }
 0x188   : > { %v3395_v63 = vpack.c.bf16 %v3350_v29, %v3347_v16  ;;  %v11470_v16 = vld [vmem:[%s16828_s4 + $0x1c8] ss:$12 sps:$4 sm:$0xff]   ;;  %v11475_v29 = vld [vmem:[%s16828_s4 + $0x1e4] ss:$12 sps:$4 sm:$0xff]  }
 0x18a   : > { %3947 = vmatprep.mubr.bf16.mxu0 %v3395_v63  ;;  %4173 = vmatprep.mubr.bf16.mxu1 %v3395_v63 }
 0x18b   : > { %3948 = vmatmul.mubr.bf16.vlgmr.msra.gmra.mrb[32].mxu0 %v3394_v21  ;;  %4174 = vmatmul.mubr.bf16.vlgmr.msra.gmra.mrb[16].mxu1 %v3394_v21 }
 0x18c   : > { %4029 = vmatpush1.bf16.msra.mxu0 %v11461_v59  ;;  %9899 = vmatpush3.bf16.msra.mxu1 %v11476_v6  ;;  %v11472_v6 = vld [vmem:[%s16828_s4 + $0x1cc] ss:$12 sps:$4 sm:$0xff]  }
 0x18d   : > { %4030 = vmatprep.subr.bf16.mxu0 %v11466_v62  ;;  %9900 = vmatprep.subr.bf16.mxu1 %v11477_v50 }
 0x190   : > { %v3180_v41 = vpop.f32.mrb[4].mxu0  ;;  %v9884_v61 = vpop.f32.mrb[0].mxu1  ;;  %4031 = vmatpush1.bf16.msra.mxu0 %v11464_v42  ;;  %9901 = vmatpush3.bf16.msra.mxu1 %v11477_v50  ;;  %v11486_v50 = vld [vmem:[%s16828_s4 + $0x1e8] ss:$12 sps:$4 sm:$0xff]  }
 0x191   : > { %v3181_v46 = vadd.f32 %v3180_v41, %v12952_v9  ;;  %v3292_v18 = vadd.f32 %v9884_v61, %v12977_v10  ;;  %v3182_v28 = vpop.f32.mrb[5].mxu0  ;;  %v3283_v37 = vpop.f32.mrb[1].mxu1  ;;  %4032 = vmatprep.subr.bf16.mxu0 %v11469_v54  ;;  %9902 = vmatprep.subr.bf16.mxu1 %v11481_v40 }
 0x192   : > { %v3183_v19 = vadd.f32 %v3182_v28, %v12955_v36  ;;  %v3284_v57 = vadd.f32 %v3283_v37, %v12977_v10  ;;  %v3184_v5 = vpop.f32.mrb[6].mxu0  ;;  %v9885_v55 = vpop.f32.mrb[2].mxu1 }
 0x193   : > { %v3185_v15 = vadd.f32 %v3184_v5, %v12952_v9  ;;  %v3295_v25 = vadd.f32 %v9885_v55, %v12977_v10  ;;  %v3186_v35 = vpop.f32.mrb[7].mxu0  ;;  %v3286_v34 = vpop.f32.mrb[3].mxu1  ;;  %v3352_v21 = vmax.f32 %v3181_v46, 0.0  ;;  %v3354_v63 = vmax.f32 %v3292_v18, 0.0  ;;  %v11480_v46 = vld [vmem:[%s16828_s4 + $0x1fc] ss:$12 sps:$4 sm:$0xff]  }
 0x194   : > { %v3187_v39 = vadd.f32 %v3186_v35, %v12955_v36  ;;  %v3287_v7 = vadd.f32 %v3286_v34, %v12977_v10  ;;  %4033 = vmatpush1.bf16.msra.mxu0 %v11467_v33  ;;  %9903 = vmatpush3.bf16.msra.mxu1 %v11481_v40  ;;  %v3353_v42 = vmax.f32 %v3183_v19, 0.0  ;;  %v3348_v54 = vmax.f32 %v3284_v57, 0.0  ;;  %v11473_v40 = vld [vmem:[%s16828_s4 + $0x1e0] ss:$12 sps:$4 sm:$0xff]   ;;  %v11491_v19 = vld [vmem:[%s16828_s4 + $0x218] ss:$12 sps:$4 sm:$0xff]  }
 0x195   : > { %v3355_v59 = vmax.f32 %v3185_v15, 0.0  ;;  %v3357_v62 = vmax.f32 %v3295_v25, 0.0  ;;  %4034 = vmatprep.subr.bf16.mxu0 %v11472_v6  ;;  %9904 = vmatprep.subr.bf16.mxu1 %v11482_v48  ;;  %v11487_v18 = vld [vmem:[%s16828_s4 + $0x200] ss:$12 sps:$4 sm:$0xff]   ;;  %v11478_v6 = vld [vmem:[%s16828_s4 + $0x1f8] ss:$12 sps:$4 sm:$0xff]  }
 0x196   : > { %v3356_v41 = vmax.f32 %v3187_v39, 0.0  ;;  %v3351_v61 = vmax.f32 %v3287_v7, 0.0  ;;  %v11483_v55 = vld [vmem:[%s16828_s4 + $0x210] ss:$12 sps:$4 sm:$0xff]   ;;  %v11490_v35 = vld [vmem:[%s16828_s4 + $0x22c] ss:$12 sps:$4 sm:$0xff]  }
 0x197   : > { %v3397_v33 = vpack.c.bf16 %v3355_v59, %v3352_v21  ;;  %v13011_v28 = vpack.c.bf16 %v3357_v62, %v3354_v63  ;;  %v11492_v34 = vld [vmem:[%s16828_s4 + $0x230] ss:$12 sps:$4 sm:$0xff]   ;;  %v11488_v63 = vld [vmem:[%s16828_s4 + $0x228] ss:$12 sps:$4 sm:$0xff]  }
 0x198   : > { %v3398_v37 = vpack.c.bf16 %v3356_v41, %v3353_v42  ;;  %v13013_v5 = vpack.c.bf16 %v3351_v61, %v3348_v54  ;;  %4035 = vmatpush1.bf16.msra.mxu0 %v11470_v16  ;;  %9905 = vmatpush3.bf16.msra.mxu1 %v11482_v48  ;;  %v11485_v48 = vld [vmem:[%s16828_s4 + $0x214] ss:$12 sps:$4 sm:$0xff]  }
 0x199   : > { %4036 = vmatprep.subr.bf16.mxu0 %v11475_v29  ;;  %9906 = vmatprep.subr.bf16.mxu1 %v11486_v50 }
 0x19a   : > { %3957 = vmatprep.mubr.bf16.mxu0 %v3398_v37  ;;  %4181 = vmatprep.mubr.bf16.mxu1 %v3398_v37 }
 0x19b   : > { %3958 = vmatmul.mubr.bf16.gmra.mrb[36].mxu0 %v3397_v33  ;;  %4182 = vmatmul.mubr.bf16.gmra.mrb[20].mxu1 %v3397_v33 }
 0x19c   : > { %4037 = vmatpush1.bf16.msra.mxu0 %v11473_v40  ;;  %9907 = vmatpush3.bf16.msra.mxu1 %v11486_v50 }
 0x19d   : > { %4038 = vmatprep.subr.bf16.mxu0 %v11480_v46  ;;  %9908 = vmatprep.subr.bf16.mxu1 %v11487_v18 }
 0x1a0   : > { %v3190_v57 = vpop.f32.mrb[8].mxu0  ;;  %4039 = vmatpush1.bf16.msra.mxu0 %v11478_v6  ;;  %9909 = vmatpush3.bf16.msra.mxu1 %v11487_v18 }
 0x1a1   : > { %v3191_v15 = vadd.f32 %v3190_v57, %v12952_v9  ;;  %v3192_v25 = vpop.f32.mrb[9].mxu0  ;;  %4040 = vmatprep.subr.bf16.mxu0 %v11485_v48  ;;  %9910 = vmatprep.subr.bf16.mxu1 %v11491_v19 }
 0x1a2   : > { %v3193_v39 = vadd.f32 %v3192_v25, %v12955_v36  ;;  %v3194_v7 = vpop.f32.mrb[10].mxu0 }
 0x1a3   : > { %v3195_v16 = vadd.f32 %v3194_v7, %v12952_v9  ;;  %v3196_v29 = vpop.f32.mrb[11].mxu0  ;;  %v3358_v59 = vmax.f32 %v3191_v15, 0.0 }
 0x1a4   : > { %v3197_v21 = vadd.f32 %v3196_v29, %v12955_v36  ;;  %4041 = vmatpush1.bf16.msra.mxu0 %v11483_v55  ;;  %9911 = vmatpush3.bf16.msra.mxu1 %v11491_v19  ;;  %v3359_v50 = vmax.f32 %v3193_v39, 0.0 }
 0x1a5   : > { %v3361_v62 = vmax.f32 %v3195_v16, 0.0  ;;  %4042 = vmatprep.subr.bf16.mxu0 %v11490_v35  ;;  %9912 = vmatprep.subr.bf16.mxu1 %v11492_v34 }
 0x1a6   : > { %v3362_v42 = vmax.f32 %v3197_v21, 0.0 }
 0x1a7   : > { %v3400_v54 = vpack.c.bf16 %v3361_v62, %v3358_v59 }
 0x1a8   : > { %v3401_v41 = vpack.c.bf16 %v3362_v42, %v3359_v50  ;;  %4043 = vmatpush1.bf16.msra.mxu0 %v11488_v63  ;;  %9913 = vmatpush3.bf16.msra.mxu1 %v11492_v34 }
 0x1aa   : > { %3967 = vmatprep.mubr.bf16.mxu0 %v3401_v41  ;;  %4189 = vmatprep.mubr.bf16.mxu1 %v3401_v41 }
 0x1ab   : > { %3968 = vmatmul.mubr.bf16.gmra.mrb[40].mxu0 %v3400_v54  ;;  %4190 = vmatmul.mubr.bf16.gmra.mrb[24].mxu1 %v3400_v54 }
 0x1b0   : > { %v3200_v61 = vpop.f32.mrb[12].mxu0  ;;  %v9888_v33 = vpop.f32.mrb[4].mxu1 }
 0x1b1   : > { %v3201_v37 = vadd.f32 %v3200_v61, %v12952_v9  ;;  %v3308_v40 = vadd.f32 %v9888_v33, %v12977_v10  ;;  %v3202_v46 = vpop.f32.mrb[13].mxu0  ;;  %v3299_v18 = vpop.f32.mrb[5].mxu1  ;;  %v455_v33 = vrot.slane %v12482_v22, 1 }
 0x1b2   : > { %v3203_v6 = vadd.f32 %v3202_v46, %v12955_v36  ;;  %v3300_v48 = vadd.f32 %v3299_v18, %v12977_v10  ;;  %v3204_v19 = vpop.f32.mrb[14].mxu0  ;;  %v9889_v57 = vpop.f32.mrb[6].mxu1  ;;  %v9350_v46 = vld [vmem:[%s12002_s23 + $0x58] sm:$0xff]   ;;  %v654_v18 = vrot.slane %v12550_v52, 3 }
 0x1b3   : > { %v3205_v55 = vadd.f32 %v3204_v19, %v12952_v9  ;;  %v3311_v15 = vadd.f32 %v9889_v57, %v12977_v10  ;;  %v3206_v25 = vpop.f32.mrb[15].mxu0  ;;  %v3302_v35 = vpop.f32.mrb[7].mxu1  ;;  %v3364_v7 = vmax.f32 %v3201_v37, 0.0  ;;  %v3366_v16 = vmax.f32 %v3308_v40, 0.0  ;;  %v11773_v19 = vld [vmem:[%s12002_s23 + $0x50] sm:$0xff]  }
 0x1b4   : > { %v3207_v34 = vadd.f32 %v3206_v25, %v12955_v36  ;;  %v3303_v39 = vadd.f32 %v3302_v35, %v12977_v10  ;;  %v3365_v63 = vmax.f32 %v3203_v6, 0.0  ;;  %v3360_v59 = vmax.f32 %v3300_v48, 0.0 }
 0x1b5   : > { %v3367_v29 = vmax.f32 %v3205_v55, 0.0  ;;  %v3369_v21 = vmax.f32 %v3311_v15, 0.0  ;;  %v456_v37 = vrot.slane %v12484_v27, 1  ;;  %v653_v40 = vrot.slane %v12515_v30, 3 }
 0x1b6   : > { %v3368_v62 = vmax.f32 %v3207_v34, 0.0  ;;  %v3363_v50 = vmax.f32 %v3303_v39, 0.0  ;;  %v556_v6 = vrot.slane %v12515_v30, 2  ;;  %v557_v48 = vrot.slane %v12550_v52, 2 }
 0x1b7   : > { %v3403_v42 = vpack.c.bf16 %v3367_v29, %v3364_v7  ;;  %v13057_v54 = vpack.c.bf16 %v3369_v21, %v3366_v16  ;;  %v13069_v57 = vunpack.c.h.bf16 %v11773_v19  ;;  %v518_v55 = vsel %vm488_vm0, %v455_v33, %v456_v37 }
 0x1b8   : > { %v3404_v41 = vpack.c.bf16 %v3368_v62, %v3365_v63  ;;  %v13059_v61 = vpack.c.bf16 %v3363_v50, %v3360_v59  ;;  %v519_v15 = vsel %vm488_vm0, %v454_v24, %v455_v33  ;;  %v711_v25 = vsel %vm682_vm2, %v652_v1, %v653_v40 }
 0x1b9   : > { %v13083_v35 = vunpack.c.l.bf16 %v9350_v46  ;;  %v10723_v34 = vpack.i.bf16 %v518_v55, %v519_v15  ;;  %v710_v32 = vsel %vm682_vm2, %v653_v40, %v654_v18  ;;  %v613_v39 = vsel %vm585_vm1, %v556_v6, %v557_v48 }
 0x1ba   : > { %3977 = vmatprep.mubr.bf16.mxu0 %v3404_v41  ;;  %4197 = vmatprep.mubr.bf16.mxu1 %v3404_v41  ;;  %v614_v24 = vsel %vm585_vm1, %v555_v56, %v556_v6  ;;  %v10738_v7 = vpack.i.bf16 %v710_v32, %v711_v25  ;;  %v752_v1 = vrot.slane %v13069_v57, 4  ;;  %v946_v63 = vrot.slane %v13069_v57, 6 }
 0x1bb   : > { %3978 = vmatmul.mubr.bf16.gmra.mrb[44].mxu0 %v3403_v42  ;;  %4198 = vmatmul.mubr.bf16.gmra.mrb[28].mxu1 %v3403_v42  ;;  %v753_v16 = vrot.slane %v13083_v35, 4  ;;  %v10733_v21 = vpack.i.bf16 %v613_v39, %v614_v24  ;;  %v947_v59 = vrot.slane %v13083_v35, 6  ;;  %v849_v62 = vrot.slane %v13069_v57, 5 }
 0x1bc   : > { %10724 = vrot.lane.b32.xlu0 %v10723_v34, %s16872_s26  ;;  %10739 = vrot.lane.b32.xlu1 %v10738_v7, %s16964_s21  ;;  %v806_v41 = vsel %vm779_vm3, %v751_v8, %v752_v1  ;;  %v850_v33 = vrot.slane %v13083_v35, 5  ;;  %v1000_v15 = vsel %vm973_vm5, %v945_v38, %v946_v63 }
 0x1bd   : > { %v805_v56 = vsel %vm779_vm3, %v752_v1, %v753_v16  ;;  %v999_v55 = vsel %vm973_vm5, %v946_v63, %v947_v59  ;;  %v903_v38 = vsel %vm876_vm4, %v848_v4, %v849_v62  ;;  %v457_v1 = vrot.slane %v12515_v30, 1 }
 0x1be   : > { %v13115_v19 = vpack.i.bf16 %v805_v56, %v806_v41  ;;  %v10758_v39 = vpack.i.bf16 %v999_v55, %v1000_v15  ;;  %v902_v24 = vsel %vm876_vm4, %v849_v62, %v850_v33  ;;  %v656_v56 = vrot.slane %v13083_v35, 3 }
 0x1bf   : > { %v10753_v15 = vpack.i.bf16 %v902_v24, %v903_v38  ;;  %v558_v4 = vrot.slane %v13069_v57, 2 }
 0x1c0   : > { %v3210_v29 = vpop.f32.mrb[16].mxu0  ;;  %10734 = vrot.lane.b32.xlu0 %v10733_v21, %s16965_s24  ;;  %10749 = vrot.lane.b32.xlu1 %v13115_v19, %s16960_s29 }
 0x1c1   : > { %v3211_v50 = vadd.f32 %v3210_v29, %v12952_v9  ;;  %v3212_v42 = vpop.f32.mrb[17].mxu0  ;;  %v458_v29 = vrot.slane %v12550_v52, 1  ;;  %v612_v38 = vsel %vm585_vm1, %v557_v48, %v558_v4 }
 0x1c2   : > { %v3213_v40 = vadd.f32 %v3212_v42, %v12955_v36  ;;  %v3214_v6 = vpop.f32.mrb[18].mxu0  ;;  %v655_v42 = vrot.slane %v13069_v57, 3 }
 0x1c3   : > { %v3215_v25 = vadd.f32 %v3214_v6, %v12952_v9  ;;  %v3216_v8 = vpop.f32.mrb[19].mxu0  ;;  %v3370_v34 = vmax.f32 %v3211_v50, 0.0  ;;  %v13143_v6 = vld [vmem:[%s12002_s23 + $0x60] sm:$0xff]   ;;  %v516_v62 = vsel %vm488_vm0, %v457_v1, %v458_v29 }
 0x1c4   : > { %v3217_v32 = vadd.f32 %v3216_v8, %v12955_v36  ;;  %v3371_v63 = vmax.f32 %v3213_v40, 0.0  ;;  %10744 = vrot.lane.b32.xlu0 %v12590_v58, %s16966_s14  ;;  %10759 = vrot.lane.b32.xlu1 %v10758_v39, %s16967_s28  ;;  %v517_v40 = vsel %vm488_vm0, %v456_v37, %v457_v1  ;;  %v13156_v8 = vunpack.c.h.bf16 %v9350_v46 }
 0x1c5   : > { %v3373_v7 = vmax.f32 %v3215_v25, 0.0  ;;  %v559_v25 = vrot.slane %v13083_v35, 2  ;;  %v708_v58 = vsel %vm682_vm2, %v655_v42, %v656_v56  ;;  %v10763_v46 = vpack.i.bf16 %v516_v62, %v517_v40 }
 0x1c6   : > { %v3374_v50 = vmax.f32 %v3217_v32, 0.0  ;;  %v13167_v32 = vunpack.c.l.bf16 %v13143_v6  ;;  %v754_v37 = vrot.slane %v13156_v8, 4  ;;  %v948_v24 = vrot.slane %v13156_v8, 6 }
 0x1c7   : > { %v3406_v41 = vpack.c.bf16 %v3373_v7, %v3370_v34  ;;  %v709_v34 = vsel %vm682_vm2, %v654_v18, %v655_v42  ;;  %v611_v18 = vsel %vm585_vm1, %v558_v4, %v559_v25 }
 0x1c8   : > { %v3407_v55 = vpack.c.bf16 %v3374_v50, %v3371_v63  ;;  %10754 = vrot.lane.b32.xlu0 %v10753_v15, %s16968_s25  ;;  %v755_v39 = vrot.slane %v13167_v32, 4  ;;  %10769 = vrot.lane.b32.xlu1 %v10733_v21, %s16864_s16  ;;  %v10778_v7 = vpack.i.bf16 %v708_v58, %v709_v34  ;;  %v949_v1 = vrot.slane %v13167_v32, 6 }
 0x1c9   : > { %v804_v21 = vsel %vm779_vm3, %v753_v16, %v754_v37  ;;  %v851_v50 = vrot.slane %v13156_v8, 5  ;;  %v998_v48 = vsel %vm973_vm5, %v947_v59, %v948_v24  ;;  %v852_v15 = vrot.slane %v13167_v32, 5 }
 0x1ca   : > { %3987 = vmatprep.mubr.bf16.mxu0 %v3407_v55  ;;  %4205 = vmatprep.mubr.bf16.mxu1 %v3407_v55  ;;  %v803_v63 = vsel %vm779_vm3, %v754_v37, %v755_v39  ;;  %v10773_v55 = vpack.i.bf16 %v611_v18, %v612_v38  ;;  %v997_v34 = vsel %vm973_vm5, %v948_v24, %v949_v1 }
 0x1cb   : > { %3988 = vmatmul.mubr.bf16.gmra.mrb[48].mxu0 %v3406_v41  ;;  %4206 = vmatmul.mubr.bf16.gmra.mrb[32].mxu1 %v3406_v41  ;;  %v13201_v58 = vpack.i.bf16 %v803_v63, %v804_v21  ;;  %v10798_v21 = vpack.i.bf16 %v997_v34, %v998_v48 }
 0x1cc   : > { %10764 = vrot.lane.b32.xlu0 %v10763_v46, %s16872_s26  ;;  %10779 = vrot.lane.b32.xlu1 %v10778_v7, %s16964_s21  ;;  %v901_v7 = vsel %vm876_vm4, %v850_v33, %v851_v50 }
 0x1d0   : > { %v3220_v42 = vpop.f32.mrb[20].mxu0  ;;  %v9892_v41 = vpop.f32.mrb[8].mxu1  ;;  %10774 = vrot.lane.b32.xlu0 %v10773_v55, %s16965_s24  ;;  %10789 = vrot.lane.b32.xlu1 %v13201_v58, %s16960_s29 }
 0x1d1   : > { %v3221_v4 = vadd.f32 %v3220_v42, %v12952_v9  ;;  %v3324_v62 = vadd.f32 %v9892_v41, %v12977_v10  ;;  %v3222_v40 = vpop.f32.mrb[21].mxu0  ;;  %v3315_v16 = vpop.f32.mrb[9].mxu1 }
 0x1d2   : > { %v3223_v37 = vadd.f32 %v3222_v40, %v12955_v36  ;;  %v3316_v59 = vadd.f32 %v3315_v16, %v12977_v10  ;;  %v3224_v46 = vpop.f32.mrb[22].mxu0  ;;  %v9893_v18 = vpop.f32.mrb[10].mxu1  ;;  %v900_v40 = vsel %vm876_vm4, %v851_v50, %v852_v15 }
 0x1d3   : > { %v3225_v38 = vadd.f32 %v3224_v46, %v12952_v9  ;;  %v3327_v42 = vadd.f32 %v9893_v18, %v12977_v10  ;;  %v3226_v41 = vpop.f32.mrb[23].mxu0  ;;  %v3318_v53 = vpop.f32.mrb[11].mxu1  ;;  %v3376_v16 = vmax.f32 %v3221_v4, 0.0  ;;  %v3378_v46 = vmax.f32 %v3324_v62, 0.0 }
 0x1d4   : > { %v3227_v63 = vadd.f32 %v3226_v41, %v12955_v36  ;;  %v3319_v24 = vadd.f32 %v3318_v53, %v12977_v10  ;;  %v3377_v33 = vmax.f32 %v3223_v37, 0.0  ;;  %v3372_v31 = vmax.f32 %v3316_v59, 0.0  ;;  %10784 = vrot.lane.b32.xlu0 %v13115_v19, %s16966_s14  ;;  %10799 = vrot.lane.b32.xlu1 %v10798_v21, %s16967_s28  ;;  %v13246_v59 = vld [vmem:[%s12002_s23 + $0x68] sm:$0xff]  }
 0x1d5   : > { %v3379_v18 = vmax.f32 %v3225_v38, 0.0  ;;  %v3381_v2 = vmax.f32 %v3327_v42, 0.0  ;;  %v10793_v50 = vpack.i.bf16 %v900_v40, %v901_v7  ;;  %v459_v4 = vrot.slane %v13069_v57, 1 }
 0x1d6   : > { %v3380_v41 = vmax.f32 %v3227_v63, 0.0  ;;  %v3375_v20 = vmax.f32 %v3319_v24, 0.0  ;;  %v460_v62 = vrot.slane %v13083_v35, 1  ;;  %v658_v19 = vrot.slane %v13167_v32, 3 }
 0x1d7   : > { %v3409_v53 = vpack.c.bf16 %v3379_v18, %v3376_v16  ;;  %v13224_v45 = vpack.c.bf16 %v3381_v2, %v3378_v46  ;;  %v657_v2 = vrot.slane %v13156_v8, 3  ;;  %v560_v42 = vrot.slane %v13156_v8, 2 }
 0x1d8   : > { %v3410_v48 = vpack.c.bf16 %v3380_v41, %v3377_v33  ;;  %v13226_v34 = vpack.c.bf16 %v3375_v20, %v3372_v31  ;;  %10794 = vrot.lane.b32.xlu0 %v10793_v50, %s16968_s25  ;;  %10809 = vrot.lane.b32.xlu1 %v10773_v55, %s16864_s16  ;;  %v514_v20 = vsel %vm488_vm0, %v459_v4, %v460_v62  ;;  %v13260_v24 = vunpack.c.h.bf16 %v13143_v6 }
 0x1d9   : > { %v515_v31 = vsel %vm488_vm0, %v458_v29, %v459_v4  ;;  %v706_v55 = vsel %vm682_vm2, %v657_v2, %v658_v19  ;;  %v707_v38 = vsel %vm682_vm2, %v656_v56, %v657_v2  ;;  %v561_v29 = vrot.slane %v13167_v32, 2 }
 0x1da   : > { %3997 = vmatprep.mubr.bf16.mxu0 %v3410_v48  ;;  %4213 = vmatprep.mubr.bf16.mxu1 %v3410_v48  ;;  %v10803_v37 = vpack.i.bf16 %v514_v20, %v515_v31  ;;  %v10818_v63 = vpack.i.bf16 %v706_v55, %v707_v38  ;;  %v13263_v21 = vunpack.c.l.bf16 %v13246_v59  ;;  %v610_v46 = vsel %vm585_vm1, %v559_v25, %v560_v42 }
 0x1db   : > { %3998 = vmatmul.mubr.bf16.gmra.mrb[52].mxu0 %v3409_v53  ;;  %4214 = vmatmul.mubr.bf16.gmra.mrb[36].mxu1 %v3409_v53  ;;  %v609_v56 = vsel %vm585_vm1, %v560_v42, %v561_v29  ;;  %v756_v41 = vrot.slane %v13260_v24, 4  ;;  %v950_v20 = vrot.slane %v13260_v24, 6 }
 0x1dc   : > { %10804 = vrot.lane.b32.xlu0 %v10803_v37, %s16872_s26  ;;  %10819 = vrot.lane.b32.xlu1 %v10818_v63, %s16964_s21  ;;  %v10813_v33 = vpack.i.bf16 %v609_v56, %v610_v46  ;;  %v757_v53 = vrot.slane %v13263_v21, 4  ;;  %v951_v38 = vrot.slane %v13263_v21, 6 }
 0x1dd   : > { %v802_v2 = vsel %vm779_vm3, %v755_v39, %v756_v41  ;;  %v996_v42 = vsel %vm973_vm5, %v949_v1, %v950_v20 }
 0x1de   : > { %v801_v25 = vsel %vm779_vm3, %v756_v41, %v757_v53  ;;  %v995_v39 = vsel %vm973_vm5, %v950_v20, %v951_v38  ;;  %v16852_v20 = vrot.slane %v13263_v21, 3 }
 0x1df   : > { %v13290_v55 = vpack.i.bf16 %v801_v25, %v802_v2  ;;  %v10838_v1 = vpack.i.bf16 %v995_v39, %v996_v42  ;;  %v13330_v25 = vld [vmem:[%s12002_s23 + $0x70] sm:$0xff]   ;;  %v562_v42 = vrot.slane %v13260_v24, 2 }
 0x1e0   : > { %v3230_v7 = vpop.f32.mrb[24].mxu0  ;;  %10814 = vrot.lane.b32.xlu0 %v10813_v33, %s16965_s24  ;;  %v13348_v39 = vunpack.c.l.bf16 %v13330_v25 }
 0x1e1   : > { %v3231_v40 = vadd.f32 %v3230_v7, %v12952_v9  ;;  %v3232_v16 = vpop.f32.mrb[25].mxu0  ;;  %10829 = vrot.lane.b32.xlu1 %v13290_v55, %s16960_s29 }
 0x1e2   : > { %v3233_v18 = vadd.f32 %v3232_v16, %v12955_v36  ;;  %v3234_v6 = vpop.f32.mrb[26].mxu0  ;;  %v854_v16 = vrot.slane %v13263_v21, 5 }
 0x1e3   : > { %v3382_v48 = vmax.f32 %v3231_v40, 0.0  ;;  %v3235_v50 = vadd.f32 %v3234_v6, %v12952_v9  ;;  %v3236_v4 = vpop.f32.mrb[27].mxu0  ;;  %v853_v40 = vrot.slane %v13260_v24, 5 }
 0x1e4   : > { %v3237_v31 = vadd.f32 %v3236_v4, %v12955_v36  ;;  %v3383_v7 = vmax.f32 %v3233_v18, 0.0  ;;  %10824 = vrot.lane.b32.xlu0 %v13201_v58, %s16966_s14  ;;  %v462_v58 = vrot.slane %v13167_v32, 1  ;;  %v659_v4 = vrot.slane %v13260_v24, 3 }
 0x1e5   : > { %v3385_v37 = vmax.f32 %v3235_v50, 0.0  ;;  %v898_v18 = vsel %vm876_vm4, %v853_v40, %v854_v16  ;;  %v899_v6 = vsel %vm876_vm4, %v852_v15, %v853_v40  ;;  %10839 = vrot.lane.b32.xlu1 %v10838_v1, %s16967_s28 }
 0x1e6   : > { %v3386_v63 = vmax.f32 %v3237_v31, 0.0  ;;  %v10833_v41 = vpack.i.bf16 %v898_v18, %v899_v6  ;;  %v704_v2 = vsel %vm682_vm2, %v659_v4, %v16852_v20 }
 0x1e7   : > { %v3412_v56 = vpack.c.bf16 %v3385_v37, %v3382_v48  ;;  %v461_v48 = vrot.slane %v13156_v8, 1  ;;  %v705_v37 = vsel %vm682_vm2, %v658_v19, %v659_v4 }
 0x1e8   : > { %v3413_v46 = vpack.c.bf16 %v3386_v63, %v3383_v7  ;;  %10834 = vrot.lane.b32.xlu0 %v10833_v41, %s16968_s25  ;;  %v10858_v40 = vpack.i.bf16 %v704_v2, %v705_v37 }
 0x1e9   : > { %v512_v50 = vsel %vm488_vm0, %v461_v48, %v462_v58  ;;  %v513_v15 = vsel %vm488_vm0, %v460_v62, %v461_v48  ;;  %v563_v62 = vrot.slane %v13263_v21, 2  ;;  %10849 = vrot.lane.b32.xlu1 %v10813_v33, %s16864_s16 }
 0x1ea   : > { %4007 = vmatprep.mubr.bf16.mxu0 %v3413_v46  ;;  %4221 = vmatprep.mubr.bf16.mxu1 %v3413_v46  ;;  %v10843_v31 = vpack.i.bf16 %v512_v50, %v513_v15 }
 0x1eb   : > { %4008 = vmatmul.mubr.bf16.gmra.mrb[56].mxu0 %v3412_v56  ;;  %4222 = vmatmul.mubr.bf16.gmra.mrb[40].mxu1 %v3412_v56  ;;  %v13345_v56 = vunpack.c.h.bf16 %v13246_v59  ;;  %v607_v33 = vsel %vm585_vm1, %v562_v42, %v563_v62  ;;  %v608_v59 = vsel %vm585_vm1, %v561_v29, %v562_v42 }
 0x1ec   : > { %10844 = vrot.lane.b32.xlu0 %v10843_v31, %s16872_s26  ;;  %v13362_v15 = vpack.i.bf16 %v607_v33, %v608_v59 }
 0x1ed   : > { %10859 = vrot.lane.b32.xlu1 %v10858_v40, %s16964_s21  ;;  %v952_v59 = vrot.slane %v13345_v56, 6 }
 0x1f0   : > { %v3240_v7 = vpop.f32.mrb[28].mxu0  ;;  %v9896_v63 = vpop.f32.mrb[12].mxu1  ;;  %10854 = vrot.lane.b32.xlu0 %v13362_v15, %s16965_s24 }
 0x1f1   : > { %v3241_v46 = vadd.f32 %v3240_v7, %v12952_v9  ;;  %v3340_v19 = vadd.f32 %v9896_v63, %v12977_v10  ;;  %v3242_v1 = vpop.f32.mrb[29].mxu0  ;;  %v3331_v18 = vpop.f32.mrb[13].mxu1 }
 0x1f2   : > { %v3243_v6 = vadd.f32 %v3242_v1, %v12955_v36  ;;  %v3332_v41 = vadd.f32 %v3331_v18, %v12977_v10  ;;  %v3244_v48 = vpop.f32.mrb[30].mxu0  ;;  %v9897_v50 = vpop.f32.mrb[14].mxu1 }
 0x1f3   : > { %v3388_v4 = vmax.f32 %v3241_v46, 0.0  ;;  %v3390_v31 = vmax.f32 %v3340_v19, 0.0  ;;  %v3245_v2 = vadd.f32 %v3244_v48, %v12952_v9  ;;  %v3343_v37 = vadd.f32 %v9897_v50, %v12977_v10  ;;  %v3246_v7 = vpop.f32.mrb[31].mxu0  ;;  %v3334_v63 = vpop.f32.mrb[15].mxu1 }
 0x1f4   : > { %v3389_v26 = vmax.f32 %v3243_v6, 0.0  ;;  %v3384_v20 = vmax.f32 %v3332_v41, 0.0  ;;  %v3247_v29 = vadd.f32 %v3246_v7, %v12955_v36  ;;  %v3335_v42 = vadd.f32 %v3334_v63, %v12977_v10  ;;  %10864 = vrot.lane.b32.xlu0 %v13290_v55, %s16966_s14 }
 0x1f5   : > { %v3391_v1 = vmax.f32 %v3245_v2, 0.0  ;;  %v3393_v46 = vmax.f32 %v3343_v37, 0.0  ;;  %v758_v19 = vrot.slane %v13345_v56, 4  ;;  %v759_v9 = vrot.slane %v13348_v39, 4 }
 0x1f6   : > { %v3392_v18 = vmax.f32 %v3247_v29, 0.0  ;;  %v3387_v33 = vmax.f32 %v3335_v42, 0.0  ;;  %v856_v2 = vrot.slane %v13348_v39, 5  ;;  %v463_v37 = vrot.slane %v13260_v24, 1 }
 0x1f7   : > { %v3415_v6 = vpack.c.bf16 %v3391_v1, %v3388_v4  ;;  %v13374_v41 = vpack.c.bf16 %v3393_v46, %v3390_v31  ;;  %v799_v36 = vsel %vm779_vm3, %v758_v19, %v759_v9  ;;  %v800_v10 = vsel %vm779_vm3, %v757_v53, %v758_v19  ;;  %v9354_v19 = vld [vmem:[%s12002_s23 + $0x78] sm:$0xff]  }
 0x1f8   : > { %v3416_v40 = vpack.c.bf16 %v3392_v18, %v3389_v26  ;;  %v13384_v48 = vpack.c.bf16 %v3387_v33, %v3384_v20  ;;  %v10868_v50 = vpack.i.bf16 %v799_v36, %v800_v10  ;;  %v953_v4 = vrot.slane %v13348_v39, 6 }
 0x1f9   : > { %v855_v31 = vrot.slane %v13345_v56, 5  ;;  %v994_v53 = vsel %vm973_vm5, %v951_v38, %v952_v59  ;;  %v464_v7 = vrot.slane %v13263_v21, 1  ;;  %v511_v29 = vsel %vm488_vm0, %v462_v58, %v463_v37 }
 0x1fa   : > { %4017 = vmatprep.mubr.bf16.mxu0 %v3416_v40  ;;  %4229 = vmatprep.mubr.bf16.mxu1 %v3416_v40  ;;  %v993_v26 = vsel %vm973_vm5, %v952_v59, %v953_v4  ;;  %v661_v42 = vrot.slane %v13345_v56, 3  ;;  %v13415_v1 = vunpack.c.h.bf16 %v13330_v25  ;;  %v564_v33 = vrot.slane %v13345_v56, 2 }
 0x1fb   : > { %4018 = vmatmul.mubr.bf16.gmra.mrb[60].mxu0 %v3415_v6  ;;  %4230 = vmatmul.mubr.bf16.gmra.mrb[44].mxu1 %v3415_v6  ;;  %v896_v55 = vsel %vm876_vm4, %v855_v31, %v856_v2  ;;  %v897_v20 = vsel %vm876_vm4, %v854_v16, %v855_v31  ;;  %v10878_v63 = vpack.i.bf16 %v993_v26, %v994_v53  ;;  %v662_v16 = vrot.slane %v13348_v39, 3 }
 0x1fc   : > { %9914 = vmatprep.mubr.bf16.mxu1 %v13013_v5  ;;  %4060 = vmatprep.mubr.bf16.mxu0 %v16853_v0  ;;  %v10873_v38 = vpack.i.bf16 %v896_v55, %v897_v20  ;;  %v510_v46 = vsel %vm488_vm0, %v463_v37, %v464_v7  ;;  %v565_v59 = vrot.slane %v13348_v39, 2  ;;  %v13423_v6 = vunpack.c.l.bf16 %v9354_v19 }
 0x1fd   : > { %10869 = vrot.lane.b32.xlu1 %v10868_v50, %s16960_s29  ;;  %v10883_v18 = vpack.i.bf16 %v510_v46, %v511_v29  ;;  %v702_v58 = vsel %vm682_vm2, %v661_v42, %v662_v16  ;;  %v606_v25 = vsel %vm585_vm1, %v563_v62, %v564_v33  ;;  %v16969_v36 = vrot.slane %v13263_v21, 3 }
 0x1fe   : > { %10874 = vrot.lane.b32.xlu0 %v10873_v38, %s16968_s25  ;;  %v605_v40 = vsel %vm585_vm1, %v564_v33, %v565_v59  ;;  %v760_v31 = vrot.slane %v13415_v1, 4  ;;  %v761_v53 = vrot.slane %v13423_v6, 4  ;;  %v857_v62 = vrot.slane %v13415_v1, 5 }
 0x1ff   : > { %v703_v10 = vsel %vm682_vm2, %v16969_v36, %v661_v42  ;;  %v10893_v26 = vpack.i.bf16 %v605_v40, %v606_v25  ;;  %v858_v55 = vrot.slane %v13423_v6, 5  ;;  %v954_v37 = vrot.slane %v13415_v1, 6 }
 0x200   : > { %v10898_v20 = vpack.i.bf16 %v702_v58, %v703_v10  ;;  %v955_v38 = vrot.slane %v13423_v6, 6  ;;  %v895_v29 = vsel %vm876_vm4, %v856_v2, %v857_v62  ;;  %v466_v2 = vrot.slane %v13348_v39, 1  ;;  %v9355_v10 = vld [vmem:[%s12002_s23 + $0x80] sm:$0xff]  }
 0x201   : > { %10879 = vrot.lane.b32.xlu1 %v10878_v63, %s16967_s28  ;;  %v798_v63 = vsel %vm779_vm3, %v759_v9, %v760_v31  ;;  %v465_v9 = vrot.slane %v13345_v56, 1  ;;  %v664_v25 = vrot.slane %v13423_v6, 3  ;;  %v566_v40 = vrot.slane %v13415_v1, 2 }
 0x202   : > { %10884 = vrot.lane.b32.xlu0 %v10883_v18, %s16872_s26  ;;  %v991_v46 = vsel %vm973_vm5, %v954_v37, %v955_v38  ;;  %v992_v18 = vsel %vm973_vm5, %v953_v4, %v954_v37 }
 0x203   : > { %4061 = vmatmul.mubr.bf16.vlgmr.msra.gmra.mrb[32].mxu0 %v13013_v5  ;;  %9915 = vmatmul.mubr.bf16.vlgmr.msra.gmra.mrb[48].mxu1 %v13011_v28  ;;  %v797_v5 = vsel %vm779_vm3, %v760_v31, %v761_v53  ;;  %v10918_v58 = vpack.i.bf16 %v991_v46, %v992_v18  ;;  %v509_v4 = vsel %vm488_vm0, %v464_v7, %v465_v9  ;;  %v567_v31 = vrot.slane %v13423_v6, 2 }
 0x204   : > { %9918 = vmatprep.mubr.bf16.mxu1 %v13059_v61  ;;  %4070 = vmatprep.mubr.bf16.mxu0 %v16853_v0  ;;  %v10908_v42 = vpack.i.bf16 %v797_v5, %v798_v63  ;;  %v604_v5 = vsel %vm585_vm1, %v565_v59, %v566_v40 }
 0x205   : > { %10889 = vrot.lane.b32.xlu1 %v13362_v15, %s16864_s16  ;;  %v894_v15 = vsel %vm876_vm4, %v857_v62, %v858_v55  ;;  %v13489_v62 = vunpack.c.h.bf16 %v9354_v19  ;;  %v603_v37 = vsel %vm585_vm1, %v566_v40, %v567_v31 }
 0x206   : > { %10894 = vrot.lane.b32.xlu0 %v10893_v26, %s16965_s24  ;;  %v10913_v33 = vpack.i.bf16 %v894_v15, %v895_v29  ;;  %v10933_v63 = vpack.i.bf16 %v603_v37, %v604_v5  ;;  %v9356_v5 = vld [vmem:[%s12002_s23 + $0x88] sm:$0xff]  }
 0x207   : > { %v762_v15 = vrot.slane %v13489_v62, 4  ;;  %v859_v46 = vrot.slane %v13489_v62, 5  ;;  %v956_v18 = vrot.slane %v13489_v62, 6 }
 0x209   : > { %10899 = vrot.lane.b32.xlu1 %v10898_v20, %s16964_s21  ;;  %v13491_v20 = vunpack.c.l.bf16 %v9355_v10 }
 0x20a   : > { %10904 = vrot.lane.b32.xlu0 %v10868_v50, %s16966_s14  ;;  %v508_v50 = vsel %vm488_vm0, %v465_v9, %v466_v2  ;;  %v796_v9 = vsel %vm779_vm3, %v761_v53, %v762_v15  ;;  %v467_v53 = vrot.slane %v13415_v1, 1 }
 0x20b   : > { %4071 = vmatmul.mubr.bf16.gmra.mrb[36].mxu0 %v13011_v28  ;;  %9919 = vmatmul.mubr.bf16.gmra.mrb[52].mxu1 %v13057_v54  ;;  %v663_v28 = vrot.slane %v13415_v1, 3  ;;  %v10923_v36 = vpack.i.bf16 %v508_v50, %v509_v4  ;;  %16970 = vst [vmem:[#allocation10_spill] sm:$0xff] %v13491_v20  ;;  %v763_v29 = vrot.slane %v13491_v20, 4  ;;  %v860_v59 = vrot.slane %v13491_v20, 5 }
 0x20c   : > { %9922 = vmatprep.mubr.bf16.mxu1 %v13226_v34  ;;  %4080 = vmatprep.mubr.bf16.mxu0 %v16853_v0 }
 0x20d   : > { %10909 = vrot.lane.b32.xlu1 %v10908_v42, %s16960_s29  ;;  %v700_v7 = vsel %vm682_vm2, %v663_v28, %v664_v25  ;;  %v701_v19 = vsel %vm682_vm2, %v662_v16, %v663_v28  ;;  %v990_v28 = vsel %vm973_vm5, %v955_v38, %v956_v18 }
 0x20e   : > { %10914 = vrot.lane.b32.xlu0 %v10913_v33, %s16968_s25  ;;  %v10938_v16 = vpack.i.bf16 %v700_v7, %v701_v19  ;;  %v957_v33 = vrot.slane %v13491_v20, 6  ;;  %v665_v7 = vrot.slane %v13489_v62, 3  ;;  %v568_v19 = vrot.slane %v13489_v62, 2 }
 0x210   : > { %v989_v4 = vsel %vm973_vm5, %v956_v18, %v957_v33 }
 0x211   : > { %10919 = vrot.lane.b32.xlu1 %v10918_v58, %s16967_s28  ;;  %v892_v58 = vsel %vm876_vm4, %v859_v46, %v860_v59  ;;  %v10958_v40 = vpack.i.bf16 %v989_v4, %v990_v28 }
 0x212   : > { %10924 = vrot.lane.b32.xlu0 %v10923_v36, %s16872_s26 }
 0x213   : > { %4081 = vmatmul.mubr.bf16.gmra.mrb[40].mxu0 %v13059_v61  ;;  %9923 = vmatmul.mubr.bf16.gmra.mrb[56].mxu1 %v13224_v45  ;;  %v795_v61 = vsel %vm779_vm3, %v762_v15, %v763_v29  ;;  %v569_v15 = vrot.slane %v13491_v20, 2 }
 0x214   : > { %9926 = vmatprep.mubr.bf16.mxu1 %v13384_v48  ;;  %4090 = vmatprep.mubr.bf16.mxu0 %v16853_v0  ;;  %v10948_v50 = vpack.i.bf16 %v795_v61, %v796_v9  ;;  %v602_v61 = vsel %vm585_vm1, %v567_v31, %v568_v19  ;;  %v699_v9 = vsel %vm682_vm2, %v664_v25, %v665_v7 }
 0x215   : > { %10929 = vrot.lane.b32.xlu1 %v10893_v26, %s16864_s16  ;;  %v893_v26 = vsel %vm876_vm4, %v858_v55, %v859_v46  ;;  %v468_v55 = vrot.slane %v13423_v6, 1  ;;  %v13549_v46 = vunpack.c.h.bf16 %v9355_v10  ;;  %v601_v18 = vsel %vm585_vm1, %v568_v19, %v569_v15 }
 0x216   : > { %10934 = vrot.lane.b32.xlu0 %v10933_v63, %s16965_s24  ;;  %v10953_v36 = vpack.i.bf16 %v892_v58, %v893_v26  ;;  %v10973_v10 = vpack.i.bf16 %v601_v18, %v602_v61  ;;  %v470_v19 = vrot.slane %v13491_v20, 1  ;;  %v9357_v61 = vld [vmem:[%s12002_s23 + $0x90] sm:$0xff]  }
 0x217   : > { %v506_v38 = vsel %vm488_vm0, %v467_v53, %v468_v55  ;;  %16971 = vst [vmem:[#allocation11_spill] sm:$0xff] %v13549_v46  ;;  %v764_v58 = vrot.slane %v13549_v46, 4  ;;  %v861_v4 = vrot.slane %v13549_v46, 5 }
 0x219   : > { %10939 = vrot.lane.b32.xlu1 %v10938_v16, %s16964_s21  ;;  %v13551_v16 = vunpack.c.l.bf16 %v9356_v5 }
 0x21a   : > { %10944 = vrot.lane.b32.xlu0 %v10908_v42, %s16966_s14  ;;  %v507_v42 = vsel %vm488_vm0, %v466_v2, %v467_v53 }
 0x21b   : > { %4091 = vmatmul.mubr.bf16.gmra.mrb[44].mxu0 %v13057_v54  ;;  %9927 = vmatmul.mubr.bf16.gmra.mrb[60].mxu1 %v13374_v41  ;;  %v666_v54 = vrot.slane %v13491_v20, 3  ;;  %v10963_v37 = vpack.i.bf16 %v506_v38, %v507_v42  ;;  %16972 = vst [vmem:[#allocation12_spill] sm:$0xff] %v13551_v16  ;;  %v765_v26 = vrot.slane %v13551_v16, 4  ;;  %v862_v28 = vrot.slane %v13551_v16, 5 }
 0x21c   : > { %4100 = vmatprep.mubr.bf16.mxu0 %v16853_v0  ;;  %v959_v25 = vrot.slane %v13551_v16, 6  ;;  %v891_v38 = vsel %vm876_vm4, %v860_v59, %v861_v4  ;;  %v668_v18 = vrot.slane %v13551_v16, 3 }
 0x21d   : > { %10949 = vrot.lane.b32.xlu1 %v10948_v50, %s16960_s29  ;;  %v698_v2 = vsel %vm682_vm2, %v665_v7, %v666_v54  ;;  %v793_v53 = vsel %vm779_vm3, %v764_v58, %v765_v26 }
 0x21e   : > { %10954 = vrot.lane.b32.xlu0 %v10953_v36, %s16968_s25  ;;  %v10978_v31 = vpack.i.bf16 %v698_v2, %v699_v9  ;;  %v958_v36 = vrot.slane %v13549_v46, 6  ;;  %v570_v9 = vrot.slane %v13549_v46, 2 }
 0x220   : > { %v987_v42 = vsel %vm973_vm5, %v958_v36, %v959_v25  ;;  %v988_v7 = vsel %vm973_vm5, %v957_v33, %v958_v36 }
 0x221   : > { %10959 = vrot.lane.b32.xlu1 %v10958_v40, %s16967_s28  ;;  %v890_v40 = vsel %vm876_vm4, %v861_v4, %v862_v28  ;;  %v10998_v59 = vpack.i.bf16 %v987_v42, %v988_v7  ;;  %v13602_v4 = vunpack.c.h.bf16 %v9356_v5 }
 0x222   : > { %10964 = vrot.lane.b32.xlu0 %v10963_v37, %s16872_s26  ;;  %v10993_v37 = vpack.i.bf16 %v890_v40, %v891_v38 }
 0x223   : > { %4101 = vmatmul.mubr.bf16.gmra.mrb[48].mxu0 %v13226_v34  ;;  %v794_v34 = vsel %vm779_vm3, %v763_v29, %v764_v58  ;;  %v469_v29 = vrot.slane %v13489_v62, 1  ;;  %v571_v58 = vrot.slane %v13551_v16, 2  ;;  %16973 = vst [vmem:[#allocation13_spill] sm:$0xff] %v13602_v4  ;;  %v766_v40 = vrot.slane %v13602_v4, 4 }
 0x224   : > { %4110 = vmatprep.mubr.bf16.mxu0 %v16853_v0  ;;  %v863_v42 = vrot.slane %v13602_v4, 5 }
 0x225   : > { %10969 = vrot.lane.b32.xlu1 %v10933_v63, %s16864_s16  ;;  %v10988_v63 = vpack.i.bf16 %v793_v53, %v794_v34  ;;  %v504_v2 = vsel %vm488_vm0, %v469_v29, %v470_v19  ;;  %v505_v33 = vsel %vm488_vm0, %v468_v55, %v469_v29  ;;  %v599_v36 = vsel %vm585_vm1, %v570_v9, %v571_v58 }
 0x226   : > { %10974 = vrot.lane.b32.xlu0 %v10973_v10, %s16965_s24  ;;  %v600_v53 = vsel %vm585_vm1, %v569_v15, %v570_v9  ;;  %v960_v29 = vrot.slane %v13602_v4, 6  ;;  %v472_v9 = vrot.slane %v13551_v16, 1 }
 0x227   : > { %v11013_v5 = vpack.i.bf16 %v599_v36, %v600_v53  ;;  %v669_v53 = vrot.slane %v13602_v4, 3 }
 0x229   : > { %10979 = vrot.lane.b32.xlu1 %v10978_v31, %s16964_s21  ;;  %v13604_v31 = vunpack.c.l.bf16 %v9357_v61 }
 0x22a   : > { %10984 = vrot.lane.b32.xlu0 %v10948_v50, %s16966_s14  ;;  %v667_v50 = vrot.slane %v13549_v46, 3 }
 0x22b   : > { %4111 = vmatmul.mubr.bf16.gmra.mrb[52].mxu0 %v13224_v45  ;;  %v11003_v45 = vpack.i.bf16 %v504_v2, %v505_v33  ;;  %16974 = vst [vmem:[#allocation14_spill] sm:$0xff] %v13604_v31  ;;  %v767_v38 = vrot.slane %v13604_v31, 4  ;;  %v864_v7 = vrot.slane %v13604_v31, 5  ;;  %v986_v33 = vsel %vm973_vm5, %v959_v25, %v960_v29 }
 0x22c   : > { %4120 = vmatprep.mubr.bf16.mxu0 %v16853_v0  ;;  %v696_v55 = vsel %vm682_vm2, %v667_v50, %v668_v18  ;;  %v697_v34 = vsel %vm682_vm2, %v666_v54, %v667_v50 }
 0x22d   : > { %10989 = vrot.lane.b32.xlu1 %v10988_v63, %s16960_s29  ;;  %v11018_v15 = vpack.i.bf16 %v696_v55, %v697_v34  ;;  %v791_v54 = vsel %vm779_vm3, %v766_v40, %v767_v38  ;;  %v670_v34 = vrot.slane %v13604_v31, 3 }
 0x22e   : > { %10994 = vrot.lane.b32.xlu0 %v10993_v37, %s16968_s25  ;;  %v792_v37 = vsel %vm779_vm3, %v765_v26, %v766_v40  ;;  %v10725_v36 = vpop.permute.xlu0 %10724 }
 0x22f   : > { %v11028_v2 = vpack.i.bf16 %v791_v54, %v792_v37  ;;  %v13663_v54 = vunpack.c.h.bf16 %v9357_v61  ;;  %v13666_v37 = vld [vmem:[%s12002_s23 + $0x98] sm:$0xff]  }
 0x231   : > { %10999 = vrot.lane.b32.xlu1 %v10998_v59, %s16967_s28  ;;  %v888_v59 = vsel %vm876_vm4, %v863_v42, %v864_v7  ;;  %16975 = vst [vmem:[#allocation15_spill] sm:$0xff] %v13663_v54 }
 0x232   : > { %11004 = vrot.lane.b32.xlu0 %v11003_v45, %s16872_s26  ;;  %v13644_v45 = vpop.permute.xlu1 %10729 }
 0x233   : > { %4121 = vmatmul.mubr.bf16.gmra.mrb[56].mxu0 %v13384_v48  ;;  %v961_v48 = vrot.slane %v13604_v31, 6 }
 0x234   : > { %4130 = vmatprep.mubr.bf16.mxu0 %v16853_v0 }
 0x235   : > { %11009 = vrot.lane.b32.xlu1 %v10973_v10, %s16864_s16  ;;  %v889_v10 = vsel %vm876_vm4, %v862_v28, %v863_v42  ;;  %v985_v26 = vsel %vm973_vm5, %v960_v29, %v961_v48  ;;  %v471_v28 = vrot.slane %v13549_v46, 1  ;;  %v572_v42 = vrot.slane %v13602_v4, 2 }
 0x236   : > { %11014 = vrot.lane.b32.xlu0 %v11013_v5, %s16965_s24  ;;  %v11033_v50 = vpack.i.bf16 %v888_v59, %v889_v10  ;;  %v13659_v40 = vpop.permute.xlu1 %10739  ;;  %v695_v29 = vsel %vm682_vm2, %v668_v18, %v669_v53  ;;  %v13676_v59 = vpop.permute.xlu0 %10734 }
 0x237   : > { %v502_v55 = vsel %vm488_vm0, %v471_v28, %v472_v9  ;;  %v503_v25 = vsel %vm488_vm0, %v470_v19, %v471_v28  ;;  %v694_v19 = vsel %vm682_vm2, %v669_v53, %v670_v34  ;;  %v598_v10 = vsel %vm585_vm1, %v571_v58, %v572_v42 }
 0x238   : > { %v768_v28 = vrot.slane %v13663_v54, 4  ;;  %v865_v58 = vrot.slane %v13663_v54, 5 }
 0x239   : > { %11019 = vrot.lane.b32.xlu1 %v11018_v15, %s16964_s21  ;;  %v16859_v15 = vrot.slane %v13604_v31, 2 }
 0x23a   : > { %11024 = vrot.lane.b32.xlu0 %v10988_v63, %s16966_s14  ;;  %v11038_v63 = vpack.i.bf16 %v985_v26, %v986_v33  ;;  %v11493_v26 = vld [vmem:[%s16830_s6] sm:$0xff]   ;;  %v13692_v18 = vpop.permute.xlu1 %10749  ;;  %v790_v53 = vsel %vm779_vm3, %v767_v38, %v768_v28  ;;  %v887_v0 = vsel %vm876_vm4, %v864_v7, %v865_v58 }
 0x23b   : > { %4131 = vmatmul.mubr.bf16.gmra.mrb[60].mxu0 %v13374_v41  ;;  %v11043_v41 = vpack.i.bf16 %v502_v55, %v503_v25  ;;  %v597_v61 = vsel %vm585_vm1, %v572_v42, %v16859_v15  ;;  %9930 = vmatprep.subr.bf16.mxu1 %v11493_v26  ;;  %v10726_v55 = vunpack.i.l.bf16 %v10725_v36  ;;  %v11058_v25 = vpack.i.bf16 %v694_v19, %v695_v29  ;;  %v13702_v42 = vpop.permute.xlu0 %10744 }
 0x23c   : > { %v13687_v33 = vpack.i.bf16 %v597_v61, %v598_v10  ;;  %9931 = vmatpush3.bf16.msra.mxu1 %v11493_v26  ;;  %v962_v61 = vrot.slane %v13663_v54, 6  ;;  %v10732_v10 = vunpack.i.h.bf16 %v13644_v45  ;;  %v10731_v26 = vunpack.i.l.bf16 %v13644_v45 }
 0x23d   : > { %11029 = vrot.lane.b32.xlu1 %v11028_v2, %s16960_s29 }
 0x23e   : > { %11034 = vrot.lane.b32.xlu0 %v11033_v50, %s16968_s25  ;;  %v13690_v50 = vunpack.c.l.bf16 %v13666_v37  ;;  %v13710_v19 = vpop.permute.xlu1 %10759 }
 0x240   : > { %16976 = vst [vmem:[#allocation16_spill] sm:$0xff] %v13690_v50  ;;  %v16858_v29 = vrot.slane %v13690_v50, 5 }
 0x241   : > { %11039 = vrot.lane.b32.xlu1 %v11038_v63, %s16967_s28  ;;  %v10727_v63 = vunpack.i.h.bf16 %v10725_v36 }
 0x242   : > { %11044 = vrot.lane.b32.xlu0 %v11043_v41, %s16872_s26  ;;  %v16855_v41 = vrot.slane %v13690_v50, 4 }
 0x244   : > { %v789_v36 = vsel %vm779_vm3, %v768_v28, %v16855_v41  ;;  %v2480_v28 = vsel %vm2462_vm6, %v12482_v22, %v10727_v63  ;;  %v2479_v41 = vsel %vm2462_vm6, %v12439_v47, %v10726_v55  ;;  %v886_v22 = vsel %vm876_vm4, %v865_v58, %v16858_v29 }
 0x245   : > { %11049 = vrot.lane.b32.xlu1 %v11013_v5, %s16864_s16  ;;  %v16856_v5 = vrot.slane %v13690_v50, 6  ;;  %v13716_v38 = vpack.i.bf16 %v789_v36, %v790_v53  ;;  %v13735_v53 = vpop.permute.xlu0 %10754  ;;  %v10736_v47 = vunpack.i.l.bf16 %v13676_v59  ;;  %v11073_v7 = vpack.i.bf16 %v886_v22, %v887_v0 }
 0x246   : > { %11054 = vrot.lane.b32.xlu0 %v13687_v33, %s16965_s24  ;;  %v473_v63 = vrot.slane %v13602_v4, 1  ;;  %v16857_v55 = vrot.slane %v13604_v31, 1  ;;  %v10737_v36 = vunpack.i.h.bf16 %v13676_v59  ;;  %v10742_v29 = vunpack.i.h.bf16 %v13659_v40 }
 0x247   : > { %v983_v45 = vsel %vm973_vm5, %v962_v61, %v16856_v5 }
 0x248   : > { %v500_v58 = vsel %vm488_vm0, %v473_v63, %v16857_v55  ;;  %v501_v59 = vsel %vm488_vm0, %v472_v9, %v473_v63  ;;  %v16860_v9 = vrot.slane %v13690_v50, 2  ;;  %v13772_v63 = vunpack.c.h.bf16 %v13666_v37  ;;  %v13775_v55 = vld [vmem:[%s12002_s23 + $0xa0] sm:$0xff]  }
 0x249   : > { %11059 = vrot.lane.b32.xlu1 %v11058_v25, %s16964_s21  ;;  %v984_v25 = vsel %vm973_vm5, %v961_v48, %v962_v61  ;;  %v2528_v48 = vsel %vm2511_vm7, %v2479_v41, %v10731_v26  ;;  %v2529_v61 = vsel %vm2511_vm7, %v2480_v28, %v10732_v10  ;;  %v10765_v0 = vpop.permute.xlu0 %10764  ;;  %v11494_v41 = vld [vmem:[%s16830_s6 + $0x8] sm:$0xff]   ;;  %v671_v10 = vrot.slane %v13663_v54, 3 }
 0x24a   : > { %11064 = vrot.lane.b32.xlu0 %v11028_v2, %s16966_s14  ;;  %v13742_v2 = vpop.permute.xlu1 %10769  ;;  %v11078_v5 = vpack.i.bf16 %v983_v45, %v984_v25  ;;  %v16861_v26 = vrot.slane %v13690_v50, 3  ;;  %v10741_v28 = vunpack.i.l.bf16 %v13659_v40  ;;  %v11083_v45 = vpack.i.bf16 %v500_v58, %v501_v59  ;;  %9932 = vmatprep.subr.bf16.mxu1 %v11494_v41  ;;  %16977 = vst [vmem:[#allocation17_spill] sm:$0xff] %v13772_v63 }
 0x24b   : > { %v574_v25 = vrot.slane %v13663_v54, 2  ;;  %v2577_v22 = vsel %vm2560_vm8, %v2528_v48, %v10736_v47  ;;  %v2578_v15 = vsel %vm2560_vm8, %v2529_v61, %v10737_v36  ;;  %v10767_v58 = vunpack.i.h.bf16 %v10765_v0  ;;  %9933 = vmatpush3.bf16.msra.mxu1 %v11494_v41  ;;  %v11495_v47 = vld [vmem:[%s16826_s2 + $0x8] ss:$12 sps:$4 sm:$0xff]  }
 0x24c   : > { %v10766_v48 = vunpack.i.l.bf16 %v10765_v0  ;;  %v692_v37 = vsel %vm682_vm2, %v671_v10, %v16861_v26  ;;  %v693_v40 = vsel %vm682_vm2, %v670_v34, %v671_v10  ;;  %v11496_v61 = vld [vmem:[%s16830_s6 + $0x10] sm:$0xff]   ;;  %v10751_v0 = vunpack.i.l.bf16 %v13692_v18  ;;  %9962 = vmatprep.subr.bf16.mxu0 %v11495_v47 }
 0x24d   : > { %11069 = vrot.lane.b32.xlu1 %v13716_v38, %s16960_s29  ;;  %v595_v36 = vsel %vm585_vm1, %v574_v25, %v16860_v9  ;;  %v2626_v59 = vsel %vm2609_vm9, %v2577_v22, %v10741_v28  ;;  %v16978_v41 = vrot.slane %v13604_v31, 2  ;;  %v13808_v10 = vunpack.c.l.bf16 %v13775_v55  ;;  %9934 = vmatprep.subr.bf16.mxu1 %v11496_v61 }
 0x24e   : > { %11074 = vrot.lane.b32.xlu0 %v11073_v7, %s16968_s25  ;;  %v13768_v7 = vpop.permute.xlu1 %10779  ;;  %v10746_v9 = vunpack.i.l.bf16 %v13702_v42  ;;  %9963 = vmatpush3.bf16.msra.mxu0 %v11495_v47  ;;  %v770_v28 = vrot.slane %v13772_v63, 4  ;;  %v10772_v22 = vunpack.i.h.bf16 %v13742_v2  ;;  %v10771_v4 = vunpack.i.l.bf16 %v13742_v2 }
 0x24f   : > { %v596_v34 = vsel %vm585_vm1, %v16978_v41, %v574_v25  ;;  %16979 = vst [vmem:[#allocation18_spill] sm:$0xff] %v13808_v10  ;;  %v2482_v25 = vsel %vm2462_vm6, %v12515_v30, %v10767_v58  ;;  %v11098_v41 = vpack.i.bf16 %v692_v37, %v693_v40  ;;  %9935 = vmatpush3.bf16.msra.mxu1 %v11496_v61  ;;  %v16869_v2 = vrot.slane %v13808_v10, 4  ;;  %v11498_v30 = vld [vmem:[%s16830_s6 + $0x18] sm:$0xff]  }
 0x250   : > { %v13812_v26 = vpack.i.bf16 %v595_v36, %v596_v34  ;;  %v2481_v47 = vsel %vm2462_vm6, %v12484_v27, %v10766_v48  ;;  %v16980_v36 = vrot.slane %v13690_v50, 4  ;;  %v964_v37 = vrot.slane %v13772_v63, 6  ;;  %9936 = vmatprep.subr.bf16.mxu1 %v11498_v30 }
 0x251   : > { %11079 = vrot.lane.b32.xlu1 %v11078_v5, %s16967_s28  ;;  %v13792_v5 = vpop.permute.xlu0 %10774  ;;  %v867_v48 = vrot.slane %v13772_v63, 5  ;;  %v2627_v61 = vsel %vm2609_vm9, %v2578_v15, %v10742_v29  ;;  %v2675_v34 = vsel %vm2658_vm10, %v2626_v59, %v10746_v9  ;;  %v2530_v20 = vsel %vm2511_vm7, %v2481_v47, %v10771_v4  ;;  %v11499_v29 = vld [vmem:[%s16826_s2 + $0x38] ss:$12 sps:$4 sm:$0xff]  }
 0x252   : > { %11084 = vrot.lane.b32.xlu0 %v11083_v45, %s16872_s26  ;;  %v10747_v45 = vunpack.i.h.bf16 %v13702_v42  ;;  %v13814_v16 = vpop.permute.xlu1 %10789  ;;  %v11497_v42 = vld [vmem:[%s16826_s2 + $0x20] ss:$12 sps:$4 sm:$0xff]   ;;  %v10777_v46 = vunpack.i.h.bf16 %v13792_v5  ;;  %v10776_v27 = vunpack.i.l.bf16 %v13792_v5  ;;  %v2531_v9 = vsel %vm2511_vm7, %v2482_v25, %v10772_v22 }
 0x253   : > { %9964 = vmatprep.subr.bf16.mxu0 %v11497_v42  ;;  %9937 = vmatpush3.bf16.msra.mxu1 %v11498_v30  ;;  %v16981_v59 = vrot.slane %v13808_v10, 6  ;;  %v16982_v4 = vrot.slane %v13690_v50, 6  ;;  %v11500_v22 = vld [vmem:[%s16830_s6 + $0x20] sm:$0xff]   ;;  %v2724_v47 = vsel %vm2707_vm11, %v2675_v34, %v10751_v0  ;;  %v16984_v30 = vrot.slane %v13690_v50, 5 }
 0x254   : > { %9965 = vmatpush3.bf16.msra.mxu0 %v11497_v42  ;;  %v2676_v25 = vsel %vm2658_vm10, %v2627_v61, %v10747_v45  ;;  %9938 = vmatprep.subr.bf16.mxu1 %v11500_v22  ;;  %v10782_v45 = vunpack.i.h.bf16 %v13768_v7  ;;  %v2579_v0 = vsel %vm2560_vm8, %v2530_v20, %v10776_v27  ;;  %v2580_v61 = vsel %vm2560_vm8, %v2531_v9, %v10777_v46  ;;  %v11502_v27 = vld [vmem:[%s16830_s6 + $0x28] sm:$0xff]  }
 0x255   : > { %11089 = vrot.lane.b32.xlu1 %v13687_v33, %s16864_s16  ;;  %v788_v33 = vsel %vm779_vm3, %v16980_v36, %v770_v28  ;;  %v13838_v58 = vpop.permute.xlu0 %10784  ;;  %v787_v36 = vsel %vm779_vm3, %v770_v28, %v16869_v2  ;;  %v981_v5 = vsel %vm973_vm5, %v964_v37, %v16981_v59  ;;  %v982_v28 = vsel %vm973_vm5, %v16982_v4, %v964_v37  ;;  %s16989_s16 = smov 16  }
 0x256   : > { %11094 = vrot.lane.b32.xlu0 %v13812_v26, %s16965_s24  ;;  %v13854_v40 = vpack.i.bf16 %v787_v36, %v788_v33  ;;  %v13856_v15 = vpop.permute.xlu1 %10799  ;;  %9966 = vmatprep.subr.bf16.mxu0 %v11499_v29  ;;  %v885_v37 = vsel %vm876_vm4, %v16984_v30, %v867_v48  ;;  %v10781_v36 = vunpack.i.l.bf16 %v13768_v7  ;;  %v475_v4 = vrot.slane %v13663_v54, 1 }
 0x257   : > { %v11118_v34 = vpack.i.bf16 %v981_v5, %v982_v28  ;;  %9939 = vmatpush3.bf16.msra.mxu1 %v11500_v22  ;;  %v16985_v46 = vrot.slane %v13604_v31, 1  ;;  %v673_v9 = vrot.slane %v13772_v63, 3  ;;  %v10756_v22 = vunpack.i.l.bf16 %v13735_v53 }
 0x258   : > { %9967 = vmatpush3.bf16.msra.mxu0 %v11499_v29  ;;  %v11501_v29 = vld [vmem:[%s16826_s2 + $0x50] ss:$12 sps:$4 sm:$0xff]   ;;  %v10786_v30 = vunpack.i.l.bf16 %v13838_v58  ;;  %v10787_v2 = vunpack.i.h.bf16 %v13838_v58  ;;  %v2628_v5 = vsel %vm2609_vm9, %v2579_v0, %v10781_v36  ;;  %9940 = vmatprep.subr.bf16.mxu1 %v11502_v27  ;;  %v2629_v54 = vsel %vm2609_vm9, %v2580_v61, %v10782_v45 }
 0x259   : > { %11099 = vrot.lane.b32.xlu1 %v11098_v41, %s16964_s21  ;;  %v16983_v41 = vrot.slane %v13808_v10, 5  ;;  %v13882_v33 = vpop.permute.xlu0 %10794  ;;  %v499_v7 = vsel %vm488_vm0, %v16985_v46, %v475_v4  ;;  %9968 = vmatprep.subr.bf16.mxu0 %v11501_v29  ;;  %v576_v58 = vrot.slane %v13772_v63, 2  ;;  %v10791_v36 = vunpack.i.l.bf16 %v13814_v16 }
 0x25a   : > { %11104 = vrot.lane.b32.xlu0 %v13716_v38, %s16966_s14  ;;  %v10752_v38 = vunpack.i.h.bf16 %v13692_v18  ;;  %v16868_v18 = vrot.slane %v13690_v50, 1  ;;  %v16987_v0 = vrot.slane %v13808_v10, 3  ;;  %v16988_v61 = vrot.slane %v13690_v50, 3 }
 0x25b   : > { %v884_v42 = vsel %vm876_vm4, %v867_v48, %v16983_v41  ;;  %v13896_v48 = vpop.permute.xlu1 %10809  ;;  %9941 = vmatpush3.bf16.msra.mxu1 %v11502_v27 }
 0x25c   : > { %v11113_v59 = vpack.i.bf16 %v884_v42, %v885_v37  ;;  %v498_v20 = vsel %vm488_vm0, %v475_v4, %v16868_v18  ;;  %v10757_v42 = vunpack.i.h.bf16 %v13735_v53  ;;  %v2725_v18 = vsel %vm2707_vm11, %v2676_v25, %v10752_v38  ;;  %9969 = vmatpush3.bf16.msra.mxu0 %v11501_v29  ;;  %v11503_v38 = vld [vmem:[%s16826_s2 + $0x68] ss:$12 sps:$4 sm:$0xff]  }
 0x25d   : > { %11109 = vrot.lane.b32.xlu1 %v13854_v40, %s16960_s29  ;;  %v13918_v37 = vpop.permute.xlu0 %10804  ;;  %v10761_v53 = vunpack.i.l.bf16 %v13710_v19  ;;  %v690_v45 = vsel %vm682_vm2, %v673_v9, %v16987_v0  ;;  %v11504_v29 = vld [vmem:[%s16830_s6 + $0x30] sm:$0xff]   ;;  %9970 = vmatprep.subr.bf16.mxu0 %v11503_v38  ;;  %v10797_v0 = vunpack.i.h.bf16 %v13882_v33 }
 0x25e   : > { %v9562_v41 = vpop.f32.mrb[16].mxu1  ;;  %11114 = vrot.lane.b32.xlu0 %v11113_v59, %s16968_s25  ;;  %v11123_v59 = vpack.i.bf16 %v498_v20, %v499_v7  ;;  %v2773_v7 = vsel %vm2756_vm12, %v2724_v47, %v10756_v22  ;;  %v2774_v27 = vsel %vm2756_vm12, %v2725_v18, %v10757_v42  ;;  %9942 = vmatprep.subr.bf16.mxu1 %v11504_v29  ;;  %v16990_v47 = vrot.slane %v13690_v50, 2 }
 0x25f   : > { %v9563_v28 = vpop.f32.mrb[17].mxu1  ;;  %v13928_v20 = vpop.permute.xlu1 %10819  ;;  %9943 = vmatpush3.bf16.msra.mxu1 %v11504_v29  ;;  %v2822_v22 = vsel %vm2805_vm14, %v2773_v7, %v10761_v53 }
 0x260   : > { %v13920_v4 = vadd.f32 %v9563_v28, %v9562_v41  ;;  %v9565_v46 = vpop.f32.mrb[18].mxu1  ;;  %v10762_v41 = vunpack.i.h.bf16 %v13710_v19  ;;  %v2677_v28 = vsel %vm2658_vm10, %v2628_v5, %v10786_v30  ;;  %9971 = vmatpush3.bf16.msra.mxu0 %v11503_v38  ;;  %v594_v18 = vsel %vm585_vm1, %v16990_v47, %v576_v58 }
 0x261   : > { %v9566_v31 = vpop.f32.mrb[19].mxu1  ;;  %11119 = vrot.lane.b32.xlu1 %v11118_v34, %s16967_s28  ;;  %v691_v34 = vsel %vm682_vm2, %v16988_v61, %v673_v9  ;;  %v2678_v9 = vsel %vm2658_vm10, %v2629_v54, %v10787_v2  ;;  %v16876_v61 = vrot.slane %v13808_v10, 2  ;;  %v10796_v2 = vunpack.i.l.bf16 %v13882_v33 }
 0x262   : > { %v13934_v25 = vadd.f32 %v9566_v31, %v9565_v46  ;;  %11124 = vrot.lane.b32.xlu0 %v11123_v59, %s16872_s26  ;;  %v13950_v31 = vld [vmem:[%s12002_s23 + $0xa8] sm:$0xff]   ;;  %v13956_v59 = vpop.permute.xlu0 %10814  ;;  %v10792_v46 = vunpack.i.h.bf16 %v13814_v16  ;;  %v11138_v19 = vpack.i.bf16 %v690_v45, %v691_v34  ;;  %v13969_v16 = vunpack.c.h.bf16 %v13775_v55  ;;  %s17003_s26 = smov 8  }
 0x263   : > { %v13972_v54 = vunpack.c.l.bf16 %v13950_v31  ;;  %v2726_v5 = vsel %vm2707_vm11, %v2677_v28, %v10791_v36  ;;  %v13980_v42 = vpop.permute.xlu1 %10829  ;;  %v11505_v55 = vld [vmem:[%s16826_s2 + $0x80] ss:$12 sps:$4 sm:$0xff]   ;;  %v2823_v36 = vsel %vm2805_vm14, %v2774_v27, %v10762_v41  ;;  %v10806_v28 = vunpack.i.l.bf16 %v13918_v37 }
 0x264   : > { %16986 = vst [vmem:[#allocation19_spill] sm:$0xff] %v13934_v25  ;;  %16991 = vst [vmem:[#allocation20_spill] sm:$0xff] %v13969_v16  ;;  %v772_v38 = vrot.slane %v13969_v16, 4  ;;  %v2727_v45 = vsel %vm2707_vm11, %v2678_v9, %v10792_v46  ;;  %v13995_v34 = vpack.c.bf16 %v2823_v36, %v2822_v22  ;;  %9972 = vmatprep.subr.bf16.mxu0 %v11505_v55  ;;  %v966_v29 = vrot.slane %v13969_v16, 6  ;;  %v11507_v22 = vld [vmem:[%s16826_s2 + $0x98] ss:$12 sps:$4 sm:$0xff]  }
 0x265   : > { %11129 = vrot.lane.b32.xlu1 %v13812_v26, %s16989_s16  ;;  %16992 = vst [vmem:[#allocation21_spill] sm:$0xff] %v13972_v54  ;;  %v593_v26 = vsel %vm585_vm1, %v576_v58, %v16876_v61  ;;  %v16875_v33 = vrot.slane %v13972_v54, 4  ;;  %v11506_v58 = vld [vmem:[%s16830_s6 + $0x38] sm:$0xff]   ;;  %v16874_v7 = vrot.slane %v13972_v54, 6  ;;  %v16994_v27 = vrot.slane %v13808_v10, 4  ;;  %9973 = vmatpush3.bf16.msra.mxu0 %v11505_v55 }
 0x266   : > { %v13986_v30 = vpack.i.bf16 %v593_v26, %v594_v18  ;;  %16993 = vst [vmem:[#allocation22_spill] sm:$0xff] %v13995_v34  ;;  %v13997_v53 = vpop.permute.xlu0 %10824  ;;  %v10802_v9 = vunpack.i.h.bf16 %v13856_v15  ;;  %v10801_v47 = vunpack.i.l.bf16 %v13856_v15  ;;  %v2775_v18 = vsel %vm2756_vm12, %v2726_v5, %v10796_v2  ;;  %9978 = vmatprep.mubr.msk.bf16.mxu0 %vm12627_vm15, %v13995_v34  ;;  %9944 = vmatprep.subr.bf16.mxu1 %v11506_v58 }
 0x267   : > { %v785_v41 = vsel %vm779_vm3, %v772_v38, %v16875_v33  ;;  %v786_v46 = vsel %vm779_vm3, %v16994_v27, %v772_v38  ;;  %v14020_v26 = vpop.permute.xlu1 %10839  ;;  %v2776_v38 = vsel %vm2756_vm12, %v2727_v45, %v10797_v0  ;;  %9945 = vmatpush3.bf16.msra.mxu1 %v11506_v58  ;;  %v869_v15 = vrot.slane %v13969_v16, 5  ;;  %9974 = vmatprep.subr.bf16.mxu0 %v11507_v22 }
 0x268   : > { %11134 = vrot.lane.b32.xlu0 %v13986_v30, %s16965_s24  ;;  %v14026_v36 = vpack.i.bf16 %v785_v41, %v786_v46  ;;  %v10811_v2 = vunpack.i.l.bf16 %v13896_v48  ;;  %v979_v5 = vsel %vm973_vm5, %v966_v29, %v16874_v7  ;;  %v10812_v0 = vunpack.i.h.bf16 %v13896_v48 }
 0x269   : > { %11139 = vrot.lane.b32.xlu1 %v11138_v19, %s16964_s21  ;;  %v10807_v19 = vunpack.i.h.bf16 %v13918_v37  ;;  %v16877_v37 = vrot.slane %v13972_v54, 5  ;;  %v2483_v55 = vsel %vm2462_vm6, %v12550_v52, %v10806_v28  ;;  %v16995_v58 = vrot.slane %v13808_v10, 6  ;;  %9975 = vmatpush3.bf16.msra.mxu0 %v11507_v22 }
 0x26a   : > { %v14035_v27 = vpop.permute.xlu0 %10834  ;;  %v2824_v46 = vsel %vm2805_vm14, %v2775_v18, %v10801_v47  ;;  %v2825_v7 = vsel %vm2805_vm14, %v2776_v38, %v10802_v9  ;;  %v10816_v52 = vunpack.i.l.bf16 %v13956_v59  ;;  %v16996_v9 = vrot.slane %v13808_v10, 5 }
 0x26b   : > { %v980_v45 = vsel %vm973_vm5, %v16995_v58, %v966_v29  ;;  %v2484_v48 = vsel %vm2462_vm6, %v13069_v57, %v10807_v19  ;;  %v14053_v28 = vpop.permute.xlu1 %10849  ;;  %v882_v29 = vsel %vm876_vm4, %v869_v15, %v16877_v37  ;;  %v477_v47 = vrot.slane %v13772_v63, 1 }
 0x26c   : > { %11144 = vrot.lane.b32.xlu0 %v13854_v40, %s16966_s14  ;;  %v11508_v40 = vld [vmem:[%s16826_s2 + $0xb0] ss:$12 sps:$4 sm:$0xff]   ;;  %v11158_v61 = vpack.i.bf16 %v979_v5, %v980_v45  ;;  %v883_v57 = vsel %vm876_vm4, %v16996_v9, %v869_v15  ;;  %v2532_v38 = vsel %vm2511_vm7, %v2483_v55, %v10811_v2  ;;  %v10817_v45 = vunpack.i.h.bf16 %v13956_v59 }
 0x26d   : > { %11149 = vrot.lane.b32.xlu1 %v14026_v36, %s16960_s29  ;;  %9976 = vmatprep.subr.bf16.mxu0 %v11508_v40  ;;  %v11153_v37 = vpack.i.bf16 %v882_v29, %v883_v57  ;;  %v14076_v15 = vpack.c.bf16 %v2825_v7, %v2824_v46  ;;  %v10821_v22 = vunpack.i.l.bf16 %v13928_v20  ;;  %v10822_v2 = vunpack.i.h.bf16 %v13928_v20 }
 0x26e   : > { %v9568_v41 = vpop.f32.mrb[20].mxu1  ;;  %v14070_v58 = vpop.permute.xlu0 %10844  ;;  %v2581_v55 = vsel %vm2560_vm8, %v2532_v38, %v10816_v52  ;;  %v16881_v59 = vrot.slane %v13808_v10, 1  ;;  %9977 = vmatpush3.bf16.msra.mxu0 %v11508_v40  ;;  %v10827_v46 = vunpack.i.h.bf16 %v13997_v53  ;;  %v578_v20 = vrot.slane %v13969_v16, 2 }
 0x26f   : > { %v9569_v33 = vpop.f32.mrb[21].mxu1  ;;  %16998 = vst [vmem:[#allocation24_spill] sm:$0xff] %v14076_v15  ;;  %v10826_v52 = vunpack.i.l.bf16 %v13997_v53  ;;  %v16879_v9 = vrot.slane %v13972_v54, 2  ;;  %v2630_v57 = vsel %vm2609_vm9, %v2581_v55, %v10821_v22  ;;  %v17001_v22 = vrot.slane %v13808_v10, 2 }
 0x270   : > { %v14067_v18 = vadd.f32 %v9569_v33, %v9568_v41  ;;  %v9571_v19 = vpop.f32.mrb[22].mxu1  ;;  %v2533_v33 = vsel %vm2511_vm7, %v2484_v48, %v10812_v0  ;;  %v14080_v41 = vpop.permute.xlu1 %10859  ;;  %11154 = vrot.lane.b32.xlu0 %v11153_v37, %s16968_s25  ;;  %v675_v0 = vrot.slane %v13969_v16, 3  ;;  %v16880_v48 = vrot.slane %v13972_v54, 3 }
 0x271   : > { %v9572_v5 = vpop.f32.mrb[23].mxu1  ;;  %11159 = vrot.lane.b32.xlu1 %v11158_v61, %s16967_s28  ;;  %v16999_v61 = vrot.slane %v13690_v50, 1  ;;  %v2582_v37 = vsel %vm2560_vm8, %v2533_v33, %v10817_v45  ;;  %v496_v40 = vsel %vm488_vm0, %v477_v47, %v16881_v59  ;;  %9979 = vmatmul.mubr.msk.bf16.vlgmr.msra.gmra.mrb[64].mxu0 %vm12627_vm15, %v14076_v15  ;;  %v591_v45 = vsel %vm585_vm1, %v578_v20, %v16879_v9 }
 0x272   : > { %v14074_v34 = vadd.f32 %v9572_v5, %v9571_v19  ;;  %v14093_v29 = vpop.permute.xlu0 %10854  ;;  %v10846_v19 = vunpack.i.l.bf16 %v14070_v58  ;;  %v688_v53 = vsel %vm682_vm2, %v675_v0, %v16880_v48  ;;  %v592_v33 = vsel %vm585_vm1, %v17001_v22, %v578_v20 }
 0x273   : > { %v497_v7 = vsel %vm488_vm0, %v16999_v61, %v477_v47  ;;  %v17000_v47 = vrot.slane %v13808_v10, 3  ;;  %v14129_v55 = vunpack.c.h.bf16 %v13950_v31  ;;  %v14132_v61 = vld [vmem:[%s12002_s23 + $0xb0] sm:$0xff]   ;;  %v10831_v9 = vunpack.i.l.bf16 %v13980_v42 }
 0x274   : > { %16997 = vst [vmem:[#allocation23_spill] sm:$0xff] %v14074_v34  ;;  %v11163_v38 = vpack.i.bf16 %v496_v40, %v497_v7  ;;  %v2631_v7 = vsel %vm2609_vm9, %v2582_v37, %v10822_v2  ;;  %v10847_v48 = vunpack.i.h.bf16 %v14070_v58  ;;  %v14141_v59 = vpack.i.bf16 %v591_v45, %v592_v33 }
 0x275   : > { %11169 = vrot.lane.b32.xlu1 %v13986_v30, %s16989_s16  ;;  %v14114_v30 = vpop.permute.xlu1 %10869  ;;  %v689_v5 = vsel %vm682_vm2, %v17000_v47, %v675_v0  ;;  %17002 = vst [vmem:[#allocation25_spill] sm:$0xff] %v14129_v55  ;;  %v10832_v47 = vunpack.i.h.bf16 %v13980_v42  ;;  %v2679_v31 = vsel %vm2658_vm10, %v2630_v57, %v10826_v52  ;;  %v10851_v20 = vunpack.i.l.bf16 %v14053_v28 }
 0x276   : > { %11164 = vrot.lane.b32.xlu0 %v11163_v38, %s17003_s26  ;;  %v11178_v0 = vpack.i.bf16 %v688_v53, %v689_v5  ;;  %v14136_v40 = vpop.permute.xlu0 %10864  ;;  %v14147_v2 = vunpack.c.l.bf16 %v14132_v61  ;;  %v774_v37 = vrot.slane %v14129_v55, 4  ;;  %v2680_v53 = vsel %vm2658_vm10, %v2631_v7, %v10827_v46 }
 0x277   : > { %v10852_v58 = vunpack.i.h.bf16 %v14053_v28  ;;  %v2485_v52 = vsel %vm2462_vm6, %v13083_v35, %v10846_v19  ;;  %v17005_v5 = vrot.slane %v13972_v54, 4  ;;  %v968_v22 = vrot.slane %v14129_v55, 6 }
 0x278   : > { %17004 = vst [vmem:[#allocation26_spill] sm:$0xff] %v14147_v2  ;;  %v16885_v57 = vrot.slane %v14147_v2, 4  ;;  %v2486_v28 = vsel %vm2462_vm6, %v13156_v8, %v10847_v48  ;;  %v10856_v33 = vunpack.i.l.bf16 %v14093_v29  ;;  %v871_v19 = vrot.slane %v14129_v55, 5 }
 0x279   : > { %11179 = vrot.lane.b32.xlu1 %v11178_v0, %s16964_s21  ;;  %v14150_v38 = vpop.permute.xlu1 %10879  ;;  %v784_v45 = vsel %vm779_vm3, %v17005_v5, %v774_v37  ;;  %v2534_v42 = vsel %vm2511_vm7, %v2485_v52, %v10851_v20  ;;  %v17006_v50 = vrot.slane %v13972_v54, 6  ;;  %v10857_v63 = vunpack.i.h.bf16 %v14093_v29 }
 0x27a   : > { %11174 = vrot.lane.b32.xlu0 %v14141_v59, %s16965_s24  ;;  %v14165_v46 = vpop.permute.xlu0 %10874  ;;  %v783_v5 = vsel %vm779_vm3, %v774_v37, %v16885_v57  ;;  %v17007_v0 = vrot.slane %v14147_v2, 6  ;;  %v16889_v52 = vrot.slane %v14147_v2, 5  ;;  %v10861_v25 = vunpack.i.l.bf16 %v14080_v41 }
 0x27b   : > { %v978_v8 = vsel %vm973_vm5, %v17006_v50, %v968_v22  ;;  %v14185_v15 = vpack.i.bf16 %v783_v5, %v784_v45  ;;  %v2535_v50 = vsel %vm2511_vm7, %v2486_v28, %v10852_v58  ;;  %v17009_v29 = vrot.slane %v13972_v54, 5 }
 0x27c   : > { %v977_v20 = vsel %vm973_vm5, %v968_v22, %v17007_v0  ;;  %v10837_v0 = vunpack.i.h.bf16 %v14035_v27  ;;  %v10836_v28 = vunpack.i.l.bf16 %v14035_v27 }
 0x27d   : > { %v14182_v48 = vpop.permute.xlu1 %10889  ;;  %v881_v45 = vsel %vm876_vm4, %v17009_v29, %v871_v19  ;;  %11189 = vrot.lane.b32.xlu1 %v14185_v15, %s16960_s29  ;;  %v2728_v29 = vsel %vm2707_vm11, %v2679_v31, %v10831_v9  ;;  %v479_v9 = vrot.slane %v13969_v16, 1 }
 0x27e   : > { %v9574_v7 = vpop.f32.mrb[24].mxu1  ;;  %11184 = vrot.lane.b32.xlu0 %v14026_v36, %s16966_s14  ;;  %v14202_v5 = vpop.permute.xlu0 %10884  ;;  %v880_v36 = vsel %vm876_vm4, %v871_v19, %v16889_v52  ;;  %v10866_v19 = vunpack.i.l.bf16 %v14136_v40  ;;  %v10876_v52 = vunpack.i.l.bf16 %v14165_v46 }
 0x27f   : > { %v9575_v35 = vpop.f32.mrb[25].mxu1 }
 0x280   : > { %v14192_v37 = vadd.f32 %v9575_v35, %v9574_v7  ;;  %v9577_v57 = vpop.f32.mrb[26].mxu1  ;;  %v2583_v35 = vsel %vm2560_vm8, %v2534_v42, %v10856_v33  ;;  %v11198_v7 = vpack.i.bf16 %v977_v20, %v978_v8  ;;  %v2729_v42 = vsel %vm2707_vm11, %v2680_v53, %v10832_v47 }
 0x281   : > { %v9578_v22 = vpop.f32.mrb[27].mxu1  ;;  %v14217_v34 = vpop.permute.xlu1 %10899  ;;  %v2584_v33 = vsel %vm2560_vm8, %v2535_v50, %v10857_v63  ;;  %v10867_v8 = vunpack.i.h.bf16 %v14136_v40  ;;  %v11193_v20 = vpack.i.bf16 %v880_v36, %v881_v45  ;;  %v2632_v27 = vsel %vm2609_vm9, %v2583_v35, %v10861_v25 }
 0x282   : > { %17008 = vst [vmem:[#allocation27_spill] sm:$0xff] %v14192_v37  ;;  %v14212_v58 = vadd.f32 %v9578_v22, %v9577_v57  ;;  %v10862_v37 = vunpack.i.h.bf16 %v14080_v41  ;;  %v11511_v57 = vld [vmem:[%s16826_s2 + $0x4] ss:$12 sps:$4 sm:$0xff]   ;;  %v16887_v41 = vrot.slane %v13972_v54, 1  ;;  %v14229_v31 = vpop.permute.xlu0 %10894  ;;  %11199 = vrot.lane.b32.xlu1 %v11198_v7, %s16967_s28  ;;  %v677_v63 = vrot.slane %v14129_v55, 3 }
 0x283   : > { %11194 = vrot.lane.b32.xlu0 %v11193_v20, %s16968_s25  ;;  %v16886_v47 = vrot.slane %v14147_v2, 3  ;;  %v580_v53 = vrot.slane %v14129_v55, 2  ;;  %v2777_v40 = vsel %vm2756_vm12, %v2728_v29, %v10836_v28  ;;  %v17010_v45 = vrot.slane %v13808_v10, 1  ;;  %4990 = vmatprep.subr.bf16.mxu1 %v11511_v57 }
 0x284   : > { %v2633_v25 = vsel %vm2609_vm9, %v2584_v33, %v10862_v37  ;;  %v494_v50 = vsel %vm488_vm0, %v479_v9, %v16887_v41  ;;  %v2778_v7 = vsel %vm2756_vm12, %v2729_v42, %v10837_v0  ;;  %v17011_v28 = vrot.slane %v13972_v54, 3  ;;  %v14262_v0 = vld [vmem:[%s12002_s23 + $0xb8] sm:$0xff]  }
 0x285   : > { %v495_v22 = vsel %vm488_vm0, %v17010_v45, %v479_v9  ;;  %v14246_v35 = vpop.permute.xlu1 %10909  ;;  %v686_v37 = vsel %vm682_vm2, %v677_v63, %v16886_v47  ;;  %v10872_v33 = vunpack.i.h.bf16 %v14114_v30  ;;  %v10871_v20 = vunpack.i.l.bf16 %v14114_v30 }
 0x286   : > { %v11203_v36 = vpack.i.bf16 %v494_v50, %v495_v22  ;;  %v687_v29 = vsel %vm682_vm2, %v17011_v28, %v677_v63  ;;  %v2681_v57 = vsel %vm2658_vm10, %v2632_v27, %v10866_v19  ;;  %v10887_v9 = vunpack.i.h.bf16 %v14202_v5  ;;  %v14264_v42 = vpop.permute.xlu0 %10904  ;;  %11209 = vrot.lane.b32.xlu1 %v14141_v59, %s16989_s16 }
 0x287   : > { %v2682_v50 = vsel %vm2658_vm10, %v2633_v25, %v10867_v8  ;;  %v11218_v63 = vpack.i.bf16 %v686_v37, %v687_v29  ;;  %v16888_v45 = vrot.slane %v14147_v2, 2  ;;  %v17012_v30 = vrot.slane %v13972_v54, 2 }
 0x288   : > { %11204 = vrot.lane.b32.xlu0 %v11203_v36, %s17003_s26  ;;  %v10892_v22 = vunpack.i.h.bf16 %v14182_v48  ;;  %v10886_v28 = vunpack.i.l.bf16 %v14202_v5  ;;  %v14279_v8 = vunpack.c.h.bf16 %v14132_v61  ;;  %v14288_v36 = vunpack.c.l.bf16 %v14262_v0 }
 0x289   : > { %v590_v19 = vsel %vm585_vm1, %v17012_v30, %v580_v53  ;;  %v14281_v59 = vpop.permute.xlu1 %10919  ;;  %v589_v25 = vsel %vm585_vm1, %v580_v53, %v16888_v45  ;;  %v17015_v37 = vunpack.i.l.bf16 %v14020_v26  ;;  %v17016_v30 = vunpack.i.h.bf16 %v14020_v26 }
 0x28a   : > { %17013 = vst [vmem:[#allocation28_spill] sm:$0xff] %v14279_v8  ;;  %17014 = vst [vmem:[#allocation29_spill] sm:$0xff] %v14288_v36  ;;  %v2488_v61 = vsel %vm2462_vm6, %v13260_v24, %v10887_v9  ;;  %v14298_v27 = vpack.i.bf16 %v589_v25, %v590_v19  ;;  %v776_v47 = vrot.slane %v14279_v8, 4  ;;  %v14303_v53 = vpop.permute.xlu0 %10914  ;;  %v10877_v45 = vunpack.i.h.bf16 %v14165_v46  ;;  %11219 = vrot.lane.b32.xlu1 %v11218_v63, %s16964_s21 }
 0x28b   : > { %v2826_v29 = vsel %vm2805_vm14, %v2777_v40, %v17015_v37  ;;  %v2827_v5 = vsel %vm2805_vm14, %v2778_v7, %v17016_v30  ;;  %v10891_v40 = vunpack.i.l.bf16 %v14182_v48  ;;  %v777_v26 = vrot.slane %v14288_v36, 4 }
 0x28c   : > { %v14301_v41 = vpack.c.bf16 %v2827_v5, %v2826_v29  ;;  %v2487_v24 = vsel %vm2462_vm6, %v13167_v32, %v10886_v28  ;;  %v10897_v9 = vunpack.i.h.bf16 %v14229_v31  ;;  %11214 = vrot.lane.b32.xlu0 %v14298_v27, %s16965_s24  ;;  %v17017_v19 = vrot.slane %v14147_v2, 4 }
 0x28d   : > { %v14322_v48 = vpop.permute.xlu1 %10929  ;;  %v2730_v25 = vsel %vm2707_vm11, %v2681_v57, %v10871_v20  ;;  %v2537_v32 = vsel %vm2511_vm7, %v2488_v61, %v10892_v22  ;;  %v781_v28 = vsel %vm779_vm3, %v776_v47, %v777_v26  ;;  %v970_v37 = vrot.slane %v14279_v8, 6 }
 0x28e   : > { %v9580_v7 = vpop.f32.mrb[28].mxu1  ;;  %v782_v46 = vsel %vm779_vm3, %v17017_v19, %v776_v47  ;;  %9982 = vmatprep.mubr.msk.bf16.mxu0 %vm12627_vm15, %v14301_v41  ;;  %v10896_v5 = vunpack.i.l.bf16 %v14229_v31  ;;  %v16892_v16 = vrot.slane %v14288_v36, 6  ;;  %v14337_v10 = vpop.permute.xlu0 %10924  ;;  %v2731_v57 = vsel %vm2707_vm11, %v2682_v50, %v10872_v33 }
 0x28f   : > { %v9581_v63 = vpop.f32.mrb[29].mxu1  ;;  %v14334_v19 = vpack.i.bf16 %v781_v28, %v782_v46  ;;  %v10902_v22 = vunpack.i.h.bf16 %v14217_v34  ;;  %v2536_v47 = vsel %vm2511_vm7, %v2487_v24, %v10891_v40  ;;  %v17018_v61 = vrot.slane %v14147_v2, 6 }
 0x290   : > { %v14331_v29 = vadd.f32 %v9581_v63, %v9580_v7  ;;  %v9583_v30 = vpop.f32.mrb[30].mxu1  ;;  %v2586_v31 = vsel %vm2560_vm8, %v2537_v32, %v10897_v9  ;;  %11224 = vrot.lane.b32.xlu0 %v14185_v15, %s16966_s14  ;;  %v975_v33 = vsel %vm973_vm5, %v970_v37, %v16892_v16  ;;  %v873_v50 = vrot.slane %v14279_v8, 5 }
 0x291   : > { %v9584_v20 = vpop.f32.mrb[31].mxu1  ;;  %v976_v7 = vsel %vm973_vm5, %v17018_v61, %v970_v37  ;;  %11229 = vrot.lane.b32.xlu1 %v14334_v19, %s16960_s29  ;;  %v14358_v40 = vpop.permute.xlu1 %10939  ;;  %v10881_v24 = vunpack.i.l.bf16 %v14150_v38  ;;  %v10901_v46 = vunpack.i.l.bf16 %v14217_v34  ;;  %v16893_v32 = vrot.slane %v14288_v36, 5 }
 0x292   : > { %v14346_v63 = vadd.f32 %v9584_v20, %v9583_v30  ;;  %v11238_v9 = vpack.i.bf16 %v975_v33, %v976_v7  ;;  %v2779_v28 = vsel %vm2756_vm12, %v2730_v25, %v10876_v52  ;;  %v2780_v15 = vsel %vm2756_vm12, %v2731_v57, %v10877_v45  ;;  %v14370_v61 = vpop.permute.xlu0 %10934 }
 0x293   : > { %v2585_v30 = vsel %vm2560_vm8, %v2536_v47, %v10896_v5  ;;  %v17019_v20 = vrot.slane %v14147_v2, 5  ;;  %v10907_v16 = vunpack.i.h.bf16 %v14264_v42  ;;  %v10906_v34 = vunpack.i.l.bf16 %v14264_v42 }
 0x294   : > { %v2635_v7 = vsel %vm2609_vm9, %v2586_v31, %v10902_v22  ;;  %v878_v52 = vsel %vm876_vm4, %v873_v50, %v16893_v32  ;;  %v481_v25 = vrot.slane %v14129_v55, 1  ;;  %v16894_v5 = vrot.slane %v14147_v2, 1 }
 0x295   : > { %v879_v37 = vsel %vm876_vm4, %v17019_v20, %v873_v50  ;;  %11239 = vrot.lane.b32.xlu1 %v11238_v9, %s16967_s28  ;;  %v14382_v57 = vpop.permute.xlu1 %10949  ;;  %v10911_v42 = vunpack.i.l.bf16 %v14246_v35  ;;  %v2634_v22 = vsel %vm2609_vm9, %v2585_v30, %v10901_v46  ;;  %v679_v31 = vrot.slane %v14279_v8, 3 }
 0x296   : > { %v11233_v45 = vpack.i.bf16 %v878_v52, %v879_v37  ;;  %v10926_v33 = vunpack.i.l.bf16 %v14337_v10  ;;  %v492_v50 = vsel %vm488_vm0, %v481_v25, %v16894_v5  ;;  %v17020_v9 = vrot.slane %v13972_v54, 1  ;;  %v14399_v52 = vpop.permute.xlu0 %10944 }
 0x297   : > { %v16896_v37 = vrot.slane %v14288_v36, 3  ;;  %v2684_v46 = vsel %vm2658_vm10, %v2635_v7, %v10907_v16  ;;  %v10927_v30 = vunpack.i.h.bf16 %v14337_v10  ;;  %v17021_v32 = vrot.slane %v14147_v2, 3 }
 0x298   : > { %11234 = vrot.lane.b32.xlu0 %v11233_v45, %s16968_s25  ;;  %v493_v20 = vsel %vm488_vm0, %v17020_v9, %v481_v25  ;;  %v2683_v5 = vsel %vm2658_vm10, %v2634_v22, %v10906_v34  ;;  %v2828_v16 = vsel %vm2805_vm14, %v2779_v28, %v10881_v24  ;;  %v17022_v10 = vunpack.i.h.bf16 %v14150_v38 }
 0x299   : > { %v11243_v45 = vpack.i.bf16 %v492_v50, %v493_v20  ;;  %v685_v47 = vsel %vm682_vm2, %v17021_v32, %v679_v31  ;;  %11249 = vrot.lane.b32.xlu1 %v14298_v27, %s16989_s16  ;;  %v684_v25 = vsel %vm682_vm2, %v679_v31, %v16896_v37  ;;  %v14418_v50 = vpop.permute.xlu1 %10959  ;;  %v10917_v32 = vunpack.i.h.bf16 %v14303_v53 }
 0x29a   : > { %v2829_v7 = vsel %vm2805_vm14, %v2780_v15, %v17022_v10  ;;  %v10931_v34 = vunpack.i.l.bf16 %v14322_v48  ;;  %v11258_v22 = vpack.i.bf16 %v684_v25, %v685_v47  ;;  %v10932_v27 = vunpack.i.h.bf16 %v14322_v48  ;;  %v14430_v28 = vpop.permute.xlu0 %10954 }
 0x29b   : > { %v14422_v9 = vpack.c.bf16 %v2829_v7, %v2828_v16  ;;  %v2489_v31 = vsel %vm2462_vm6, %v13263_v21, %v10926_v33  ;;  %v582_v38 = vrot.slane %v14279_v8, 2  ;;  %v16895_v24 = vrot.slane %v14288_v36, 2 }
 0x29c   : > { %11244 = vrot.lane.b32.xlu0 %v11243_v45, %s17003_s26  ;;  %v10916_v15 = vunpack.i.l.bf16 %v14303_v53  ;;  %v2490_v47 = vsel %vm2462_vm6, %v13345_v56, %v10927_v30  ;;  %v14439_v48 = vunpack.c.h.bf16 %v14262_v0  ;;  %v2732_v20 = vsel %vm2707_vm11, %v2683_v5, %v10911_v42 }
 0x29d   : > { %9983 = vmatmul.mubr.msk.bf16.gmra.mrb[68].mxu0 %vm12627_vm15, %v14422_v9  ;;  %11259 = vrot.lane.b32.xlu1 %v11258_v22, %s16964_s21  ;;  %v10936_v45 = vunpack.i.l.bf16 %v14370_v61  ;;  %v587_v56 = vsel %vm585_vm1, %v582_v38, %v16895_v24  ;;  %v17024_v53 = vrot.slane %v14147_v2, 2  ;;  %v14453_v30 = vpop.permute.xlu1 %10969  ;;  %v10937_v16 = vunpack.i.h.bf16 %v14370_v61 }
 0x29e   : > { %17023 = vst [vmem:[#allocation30_spill] sm:$0xff] %v14439_v48  ;;  %v9586_v33 = vpop.f32.mrb[32].mxu1  ;;  %v2538_v5 = vsel %vm2511_vm7, %v2489_v31, %v10931_v34  ;;  %v778_v10 = vrot.slane %v14439_v48, 4  ;;  %v10941_v24 = vunpack.i.l.bf16 %v14358_v40  ;;  %v2539_v37 = vsel %vm2511_vm7, %v2490_v47, %v10932_v27  ;;  %v14462_v21 = vpop.permute.xlu0 %10964 }
 0x29f   : > { %v588_v0 = vsel %vm585_vm1, %v17024_v53, %v582_v38  ;;  %v9587_v25 = vpop.f32.mrb[33].mxu1  ;;  %v17025_v34 = vrot.slane %v12014_v11, 4  ;;  %v10942_v47 = vunpack.i.h.bf16 %v14358_v40  ;;  %v2587_v53 = vsel %vm2560_vm8, %v2538_v5, %v10936_v45 }
 0x2a0   : > { %v11253_v42 = vpack.i.bf16 %v587_v56, %v588_v0  ;;  %v14458_v7 = vadd.f32 %v9587_v25, %v9586_v33  ;;  %v9589_v22 = vpop.f32.mrb[34].mxu1  ;;  %v780_v61 = vsel %vm779_vm3, %v777_v26, %v778_v10  ;;  %v16900_v33 = vrot.slane %v12014_v11, 6 }
 0x2a1   : > { %v9590_v38 = vpop.f32.mrb[35].mxu1  ;;  %v827_v31 = vsel %vm779_vm3, %v778_v10, %v17025_v34  ;;  %v972_v56 = vrot.slane %v14439_v48, 6  ;;  %v17026_v25 = vunpack.i.h.bf16 %v14246_v35  ;;  %v2588_v54 = vsel %vm2560_vm8, %v2539_v37, %v10937_v16  ;;  %v14498_v16 = vpop.permute.xlu1 %10979 }
 0x2a2   : > { %11254 = vrot.lane.b32.xlu0 %v11253_v42, %s16965_s24  ;;  %v14475_v27 = vadd.f32 %v9590_v38, %v9589_v22  ;;  %v14479_v0 = vpack.i.bf16 %v827_v31, %v780_v61  ;;  %v17027_v10 = vrot.slane %v14288_v36, 6  ;;  %v10922_v45 = vunpack.i.h.bf16 %v14281_v59  ;;  %v14500_v5 = vpop.permute.xlu0 %10974 }
 0x2a3   : > { %v2733_v26 = vsel %vm2707_vm11, %v2684_v46, %v17026_v25  ;;  %v1021_v40 = vsel %vm973_vm5, %v972_v56, %v16900_v33  ;;  %v10946_v35 = vunpack.i.l.bf16 %v14399_v52  ;;  %v16899_v37 = vrot.slane %v12014_v11, 5 }
 0x2a4   : > { %v974_v34 = vsel %vm973_vm5, %v17027_v10, %v972_v56  ;;  %11269 = vrot.lane.b32.xlu1 %v14479_v0, %s16960_s29  ;;  %v10921_v22 = vunpack.i.l.bf16 %v14281_v59  ;;  %v2781_v38 = vsel %vm2756_vm12, %v2732_v20, %v10916_v15  ;;  %v2636_v61 = vsel %vm2609_vm9, %v2587_v53, %v10941_v24 }
 0x2a5   : > { %v11278_v46 = vpack.i.bf16 %v1021_v40, %v974_v34  ;;  %v875_v31 = vrot.slane %v14439_v48, 5  ;;  %v2782_v56 = vsel %vm2756_vm12, %v2733_v26, %v10917_v32  ;;  %v10952_v25 = vunpack.i.h.bf16 %v14382_v57 }
 0x2a6   : > { %11264 = vrot.lane.b32.xlu0 %v14334_v19, %s16966_s14  ;;  %v10947_v10 = vunpack.i.h.bf16 %v14399_v52  ;;  %v2637_v34 = vsel %vm2609_vm9, %v2588_v54, %v10942_v47  ;;  %v17028_v40 = vrot.slane %v14288_v36, 5  ;;  %v483_v24 = vrot.slane %v14279_v8, 1  ;;  %v14525_v20 = vpop.permute.xlu0 %10984 }
 0x2a7   : > { %v924_v19 = vsel %vm876_vm4, %v875_v31, %v16899_v37  ;;  %v16898_v32 = vrot.slane %v14288_v36, 1  ;;  %v10951_v15 = vunpack.i.l.bf16 %v14382_v57  ;;  %v2685_v52 = vsel %vm2658_vm10, %v2636_v61, %v10946_v35 }
 0x2a8   : > { %v877_v59 = vsel %vm876_vm4, %v17028_v40, %v875_v31  ;;  %11279 = vrot.lane.b32.xlu1 %v11278_v46, %s16967_s28  ;;  %v10966_v47 = vunpack.i.l.bf16 %v14462_v21  ;;  %v17029_v26 = vrot.slane %v14147_v2, 1  ;;  %v16901_v57 = vrot.slane %v12014_v11, 3  ;;  %v11585_v2 = vld [vmem:[%s16828_s4 + $0x140] ss:$12 sps:$4 sm:$0xff]  }
 0x2a9   : > { %v11273_v54 = vpack.i.bf16 %v924_v19, %v877_v59  ;;  %v490_v53 = vsel %vm488_vm0, %v483_v24, %v16898_v32  ;;  %v2686_v35 = vsel %vm2658_vm10, %v2637_v34, %v10947_v10  ;;  %v681_v40 = vrot.slane %v14439_v48, 3  ;;  %v14541_v59 = vpop.permute.xlu1 %10989 }
 0x2aa   : > { %v491_v31 = vsel %vm488_vm0, %v17029_v26, %v483_v24  ;;  %v10957_v19 = vunpack.i.h.bf16 %v14430_v28  ;;  %v10956_v32 = vunpack.i.l.bf16 %v14430_v28  ;;  %v10967_v37 = vunpack.i.h.bf16 %v14462_v21 }
 0x2ab   : > { %11274 = vrot.lane.b32.xlu0 %v11273_v54, %s16968_s25  ;;  %v11283_v61 = vpack.i.bf16 %v490_v53, %v491_v31  ;;  %v584_v24 = vrot.slane %v14439_v48, 2  ;;  %v10972_v26 = vunpack.i.h.bf16 %v14453_v30  ;;  %v10971_v10 = vunpack.i.l.bf16 %v14453_v30 }
 0x2ac   : > { %11289 = vrot.lane.b32.xlu1 %v11253_v42, %s16989_s16  ;;  %v17030_v34 = vrot.slane %v14288_v36, 3  ;;  %v730_v28 = vsel %vm682_vm2, %v681_v40, %v16901_v57  ;;  %v2491_v21 = vsel %vm2462_vm6, %v13348_v39, %v10966_v47  ;;  %v17031_v31 = vrot.slane %v14288_v36, 2 }
 0x2ad   : > { %v17032_v42 = vrot.slane %v12014_v11, 2  ;;  %v732_v39 = vrot.slane %v12016_v12, 4  ;;  %v2830_v47 = vsel %vm2805_vm14, %v2781_v38, %v10921_v22  ;;  %v2735_v57 = vsel %vm2707_vm11, %v2686_v35, %v10952_v25 }
 0x2ae   : > { %v683_v54 = vsel %vm682_vm2, %v17030_v34, %v681_v40  ;;  %v586_v30 = vsel %vm585_vm1, %v17031_v31, %v584_v24  ;;  %v14568_v34 = vpop.permute.xlu0 %10994  ;;  %v9592_v33 = vpop.f32.mrb[36].mxu1  ;;  %v2734_v31 = vsel %vm2707_vm11, %v2685_v52, %v10951_v15  ;;  %v17033_v22 = vrot.slane %v12018_v13, 4 }
 0x2af   : > { %v11298_v53 = vpack.i.bf16 %v730_v28, %v683_v54  ;;  %v633_v46 = vsel %vm585_vm1, %v584_v24, %v17032_v42  ;;  %11284 = vrot.lane.b32.xlu0 %v11283_v61, %s17003_s26  ;;  %v2831_v54 = vsel %vm2805_vm14, %v2782_v56, %v10922_v45  ;;  %v9593_v28 = vpop.f32.mrb[37].mxu1  ;;  %v2492_v24 = vsel %vm2462_vm6, %v13415_v1, %v10967_v37  ;;  %v14594_v1 = vpop.permute.xlu1 %10999 }
 0x2b0   : > { %v14571_v40 = vpack.i.bf16 %v633_v46, %v586_v30  ;;  %v14580_v42 = vpack.c.bf16 %v2831_v54, %v2830_v47  ;;  %v14582_v8 = vadd.f32 %v9593_v28, %v9592_v33  ;;  %v9595_v46 = vpop.f32.mrb[38].mxu1  ;;  %v10976_v61 = vunpack.i.l.bf16 %v14500_v5 }
 0x2b1   : > { %11299 = vrot.lane.b32.xlu1 %v11298_v53, %s16964_s21  ;;  %v825_v45 = vsel %vm779_vm3, %v732_v39, %v17033_v22  ;;  %v17034_v38 = vrot.slane %v12014_v11, 4  ;;  %v9596_v37 = vpop.f32.mrb[39].mxu1  ;;  %v10961_v33 = vunpack.i.l.bf16 %v14418_v50  ;;  %v10977_v25 = vunpack.i.h.bf16 %v14500_v5 }
 0x2b2   : > { %v2540_v15 = vsel %vm2511_vm7, %v2491_v21, %v10971_v10  ;;  %9986 = vmatprep.mubr.msk.bf16.mxu0 %vm12627_vm15, %v14580_v42  ;;  %v14604_v35 = vadd.f32 %v9596_v37, %v9595_v46  ;;  %v2783_v53 = vsel %vm2756_vm12, %v2734_v31, %v10956_v32  ;;  %v2541_v30 = vsel %vm2511_vm7, %v2492_v24, %v10972_v26  ;;  %v11005_v47 = vpop.permute.xlu0 %11004 }
 0x2b3   : > { %v826_v56 = vsel %vm779_vm3, %v17034_v38, %v732_v39  ;;  %11294 = vrot.lane.b32.xlu0 %v14571_v40, %s16965_s24  ;;  %v2784_v39 = vsel %vm2756_vm12, %v2735_v57, %v10957_v19  ;;  %v10981_v5 = vunpack.i.l.bf16 %v14498_v16  ;;  %v926_v10 = vrot.slane %v12016_v12, 6 }
 0x2b4   : > { %v14599_v52 = vpack.i.bf16 %v825_v45, %v826_v56  ;;  %v927_v21 = vrot.slane %v12018_v13, 6  ;;  %v10982_v54 = vunpack.i.h.bf16 %v14498_v16  ;;  %v2589_v28 = vsel %vm2560_vm8, %v2540_v15, %v10976_v61  ;;  %v11010_v56 = vpop.permute.xlu1 %11009 }
 0x2b5   : > { %v10992_v32 = vunpack.i.h.bf16 %v14541_v59  ;;  %v829_v26 = vrot.slane %v12016_v12, 5  ;;  %v2590_v57 = vsel %vm2560_vm8, %v2541_v30, %v10977_v25  ;;  %v10987_v19 = vunpack.i.h.bf16 %v14525_v20 }
 0x2b6   : > { %11309 = vrot.lane.b32.xlu1 %v14599_v52, %s16960_s29  ;;  %v1019_v31 = vsel %vm973_vm5, %v926_v10, %v927_v21  ;;  %v17035_v16 = vrot.slane %v12014_v11, 6  ;;  %v10986_v46 = vunpack.i.l.bf16 %v14525_v20  ;;  %v830_v22 = vrot.slane %v12018_v13, 5 }
 0x2b7   : > { %11304 = vrot.lane.b32.xlu0 %v14479_v0, %s16966_s14  ;;  %v17036_v45 = vrot.slane %v12014_v11, 5  ;;  %v2638_v37 = vsel %vm2609_vm9, %v2589_v28, %v10981_v5  ;;  %v11011_v25 = vunpack.i.l.bf16 %v11010_v56  ;;  %v11007_v15 = vunpack.i.h.bf16 %v11005_v47 }
 0x2b8   : > { %v1020_v24 = vsel %vm973_vm5, %v17035_v16, %v926_v10  ;;  %v11006_v30 = vunpack.i.l.bf16 %v11005_v47  ;;  %v922_v0 = vsel %vm876_vm4, %v829_v26, %v830_v22  ;;  %v11012_v20 = vunpack.i.h.bf16 %v11010_v56  ;;  %v11015_v47 = vpop.permute.xlu0 %11014 }
 0x2b9   : > { %v11318_v61 = vpack.i.bf16 %v1019_v31, %v1020_v24  ;;  %v923_v38 = vsel %vm876_vm4, %v17036_v45, %v829_v26  ;;  %v485_v10 = vrot.slane %v14439_v48, 1  ;;  %v2494_v16 = vsel %vm2462_vm6, %v13489_v62, %v11007_v15  ;;  %v11584_v48 = vld [vmem:[%s16828_s4 + $0x13c] ss:$12 sps:$4 sm:$0xff]  }
 0x2ba   : > { %v11313_v31 = vpack.i.bf16 %v922_v0, %v923_v38  ;;  %v2493_v5 = vsel %vm2462_vm6, %v13423_v6, %v11006_v30  ;;  %v635_v28 = vrot.slane %v12016_v12, 3  ;;  %v17037_v24 = vrot.slane %v14288_v36, 1 }
 0x2bb   : > { %11319 = vrot.lane.b32.xlu1 %v11318_v61, %s16967_s28  ;;  %v17038_v26 = vrot.slane %v12014_v11, 1  ;;  %v11017_v38 = vunpack.i.h.bf16 %v11015_v47  ;;  %v11016_v56 = vunpack.i.l.bf16 %v11015_v47  ;;  %v17039_v6 = vrot.slane %v12018_v13, 3 }
 0x2bc   : > { %v489_v61 = vsel %vm488_vm0, %v17037_v24, %v485_v10  ;;  %11314 = vrot.lane.b32.xlu0 %v11313_v31, %s16968_s25  ;;  %v17040_v15 = vrot.slane %v12014_v11, 3  ;;  %v2542_v0 = vsel %vm2511_vm7, %v2493_v5, %v11011_v25  ;;  %v2639_v24 = vsel %vm2609_vm9, %v2590_v57, %v10982_v54 }
 0x2bd   : > { %v536_v45 = vsel %vm488_vm0, %v485_v10, %v17038_v26  ;;  %v728_v12 = vsel %vm682_vm2, %v635_v28, %v17039_v6  ;;  %v11020_v10 = vpop.permute.xlu1 %11019  ;;  %v2543_v47 = vsel %vm2511_vm7, %v2494_v16, %v11012_v20  ;;  %v10991_v26 = vunpack.i.l.bf16 %v14541_v59  ;;  %v11025_v16 = vpop.permute.xlu0 %11024 }
 0x2be   : > { %v11323_v62 = vpack.i.bf16 %v536_v45, %v489_v61  ;;  %v729_v30 = vsel %vm682_vm2, %v17040_v15, %v635_v28  ;;  %v2832_v61 = vsel %vm2805_vm14, %v2783_v53, %v10961_v33  ;;  %v11022_v45 = vunpack.i.h.bf16 %v11020_v10  ;;  %v9598_v25 = vpop.f32.mrb[40].mxu1 }
 0x2bf   : > { %11329 = vrot.lane.b32.xlu1 %v14571_v40, %s16989_s16  ;;  %v11338_v31 = vpack.i.bf16 %v728_v12, %v729_v30  ;;  %v11021_v11 = vunpack.i.l.bf16 %v11020_v10  ;;  %v17041_v6 = vunpack.i.h.bf16 %v14418_v50  ;;  %v2687_v54 = vsel %vm2658_vm10, %v2638_v37, %v10986_v46  ;;  %v9599_v20 = vpop.f32.mrb[41].mxu1 }
 0x2c0   : > { %v2591_v57 = vsel %vm2560_vm8, %v2542_v0, %v11016_v56  ;;  %v2592_v40 = vsel %vm2560_vm8, %v2543_v47, %v11017_v38  ;;  %v2688_v33 = vsel %vm2658_vm10, %v2639_v24, %v10987_v19  ;;  %v10997_v53 = vunpack.i.h.bf16 %v14568_v34  ;;  %11324 = vrot.lane.b32.xlu0 %v11323_v62, %s17003_s26  ;;  %s10348_s26 = smul.u32 3072, %s11953_s13 }
 0x2c1   : > { %v2833_v28 = vsel %vm2805_vm14, %v2784_v39, %v17041_v6  ;;  %v14685_v50 = vadd.f32 %v9599_v20, %v9598_v25  ;;  %v9601_v39 = vpop.f32.mrb[42].mxu1  ;;  %v11027_v46 = vunpack.i.h.bf16 %v11025_v16  ;;  %v11026_v37 = vunpack.i.l.bf16 %v11025_v16  ;;  %v11030_v24 = vpop.permute.xlu1 %11029 }
 0x2c2   : > { %v14680_v5 = vpack.c.bf16 %v2833_v28, %v2832_v61  ;;  %v928_v38 = vrot.slane %v12020_v14, 6  ;;  %v9602_v56 = vpop.f32.mrb[43].mxu1  ;;  %v10996_v19 = vunpack.i.l.bf16 %v14568_v34  ;;  %v2736_v12 = vsel %vm2707_vm11, %v2687_v54, %v10991_v26  ;;  %v11035_v28 = vpop.permute.xlu0 %11034  ;;  %s16743_s0 = scalar_lea.hbm %s16832_s8, %s10348_s26 }
 0x2c3   : > { %11339 = vrot.lane.b32.xlu1 %v11338_v31, %s16964_s21  ;;  %v2640_v62 = vsel %vm2609_vm9, %v2591_v57, %v11021_v11  ;;  %v2641_v15 = vsel %vm2609_vm9, %v2592_v40, %v11022_v45  ;;  %v14696_v30 = vadd.f32 %v9602_v56, %v9601_v39  ;;  %v2737_v0 = vsel %vm2707_vm11, %v2688_v33, %v10992_v32 }
 0x2c4   : > { %9987 = vmatmul.mubr.msk.bf16.gmra.mrb[72].mxu0 %vm12627_vm15, %v14680_v5  ;;  %v17042_v10 = vrot.slane %v12028_v17, 6  ;;  %v1018_v34 = vsel %vm973_vm5, %v927_v21, %v928_v38  ;;  %11334 = vrot.lane.b32.xlu0 %v12083_v43, %s16965_s24  ;;  %v11032_v47 = vunpack.i.h.bf16 %v11030_v24  ;;  %v11031_v61 = vunpack.i.l.bf16 %v11030_v24 }
 0x2c5   : > { %v831_v59 = vrot.slane %v12020_v14, 5  ;;  %v11001_v32 = vunpack.i.l.bf16 %v14594_v1  ;;  %v2689_v26 = vsel %vm2658_vm10, %v2640_v62, %v11026_v37  ;;  %v2690_v45 = vsel %vm2658_vm10, %v2641_v15, %v11027_v46  ;;  %v11040_v20 = vpop.permute.xlu1 %11039  ;;  %v4671_v46 = vld [vmem:[%s16825_s1] sm:$0xff]  ;;  %v4673_v37 = vld [vmem:[%s16825_s1 + $0x10] sm:$0xff] }
 0x2c6   : > { %v1017_v31 = vsel %vm973_vm5, %v928_v38, %v17042_v10  ;;  %v11002_v6 = vunpack.i.h.bf16 %v14594_v1  ;;  %v2785_v21 = vsel %vm2756_vm12, %v2736_v12, %v10996_v19  ;;  %v17043_v43 = vrot.slane %v12028_v17, 5  ;;  %v3514_v15 = vld [vmem:[%s16829_s5] sm:$0x7]  ;;  %v4674_v10 = vld [vmem:[%s16825_s1 + $0x18] sm:$0xff] }
 0x2c7   : > { %11349 = vrot.lane.b32.xlu1 %v12119_v60, %s16960_s29  ;;  %v11358_v11 = vpack.i.bf16 %v1017_v31, %v1018_v34  ;;  %v921_v60 = vsel %vm876_vm4, %v830_v22, %v831_v59  ;;  %v2786_v25 = vsel %vm2756_vm12, %v2737_v0, %v10997_v53  ;;  %v11037_v54 = vunpack.i.h.bf16 %v11035_v28  ;;  %v4672_v22 = vld [vmem:[%s16825_s1 + $0x8] sm:$0xff]  ;;  %v4675_v34 = vld [vmem:[%s16825_s1 + $0x20] sm:$0xff]  ;;  %s15320_s29 = sand.u32 1, %s11860_s10  }
 0x2c8   : > { %v920_v14 = vsel %vm876_vm4, %v831_v59, %v17043_v43  ;;  %v11036_v57 = vunpack.i.l.bf16 %v11035_v28  ;;  %11344 = vrot.lane.b32.xlu0 %v14599_v52, %s16966_s14  ;;  %v2738_v1 = vsel %vm2707_vm11, %v2689_v26, %v11031_v61  ;;  %v2739_v40 = vsel %vm2707_vm11, %v2690_v45, %v11032_v47  ;;  %v4676_v26 = vld [vmem:[%s16825_s1 + $0x28] sm:$0xff]  ;;  %s10346_s14 = smul.u32 192, %s15320_s29  ;;  %s8520_s21 = scalar_lea.sflag [#allocation4], %s15320_s29 }
 0x2c9   : > { %v11353_v17 = vpack.i.bf16 %v920_v14, %v921_v60  ;;  %v2834_v13 = vsel %vm2805_vm14, %v2785_v21, %v11001_v32  ;;  %v11042_v33 = vunpack.i.h.bf16 %v11040_v20  ;;  %v11041_v3 = vunpack.i.l.bf16 %v11040_v20  ;;  %v17045_v20 = vld [vmem:[#allocation19_spill] sm:$0xff] }
 0x2ca   : > { %v2835_v53 = vsel %vm2805_vm14, %v2786_v25, %v11002_v6  ;;  %v2787_v52 = vsel %vm2756_vm12, %v2738_v1, %v11036_v57  ;;  %v2788_v16 = vsel %vm2756_vm12, %v2739_v40, %v11037_v54  ;;  %v14773_v61 = vrot.slane %v3514_v15, %v12965_v49  ;;  %v17044_v54 = vld [vmem:[#allocation23_spill] sm:$0xff]  ;;  %s15332_s16 = scalar_lea.vmem [#allocation3], %s10346_s14  ;;  %s11879_s14 = smov [#allocation3]  }
 0x2cb   : > { %11359 = vrot.lane.b32.xlu1 %v11358_v11, %s16967_s28  ;;  %v14740_v39 = vpack.c.bf16 %v2835_v53, %v2834_v13  ;;  %v2836_v38 = vsel %vm2805_vm14, %v2787_v52, %v11041_v3  ;;  %v2837_v56 = vsel %vm2805_vm14, %v2788_v16, %v11042_v33  ;;  %v14776_v59 = vrot.slane %v3514_v15, %v12943_v44  ;;  %v4677_v11 = vld [vmem:[%s16825_s1 + $0x30] sm:$0xff]  ;;  %s8537_s17 = sshll.u32 %s15332_s16, 4  ;;  %s16737_s17 = int_to_ptr.vmem [resolvable:$true] %s8537_s17 }
 0x2cc   : > { %11354 = vrot.lane.b32.xlu0 %v11353_v17, %s16968_s25  ;;  %v14754_v12 = vpack.c.bf16 %v2837_v56, %v2836_v38  ;;  %v14779_v32 = vrot.slane %v3514_v15, %v12949_v23  ;;  %v4184_v45 = vadd.f32 %v14067_v18, %v14773_v61  ;;  %v4176_v28 = vadd.f32 %v13920_v4, %v14773_v61  ;;  %v4678_v4 = vld [vmem:[%s16825_s1 + $0x38] sm:$0xff]  ;;  %v4679_v15 = vld [vmem:[%s16825_s1 + $0x40] sm:$0xff]  ;;  %s11774_s24 = scalar_lea.vmem %s16737_s17, 3072  ;;  %s11778_s25 = sshll.u32 %s11879_s14, 4  ;;  %s11779_s25 = int_to_ptr.vmem [resolvable:$false] %s11778_s25 }
 0x2cd   : > { %9990 = vmatprep.mubr.msk.bf16.mxu0 %vm12627_vm15, %v14740_v39  ;;  %v4187_v57 = vadd.f32 %v17044_v54, %v14773_v61  ;;  %v4179_v13 = vadd.f32 %v17045_v20, %v14773_v61  ;;  %v4195_v20 = vadd.f32 %v14212_v58, %v14773_v61  ;;  %v4683_v58 = vld [vmem:[%s16825_s1 + $0x60] sm:$0xff]  ;;  %p11775_p11 = scmp.ne.s32.totalorder %s16737_s17, %s11774_s24  ;;  %s11780_s27 = scalar_lea.vmem %s11779_s25, 6144 }
 0x2ce   : > { %v9604_v19 = vpop.f32.mrb[44].mxu1  ;;  %9991 = vmatmul.mubr.msk.bf16.gmra.mrb[76].mxu0 %vm12627_vm15, %v14754_v12  ;;  %p11781_p0 = scmp.lt.s32.totalorder %s16737_s17, %s11779_s25  ;;  %p11782_p1 = scmp.lt.s32.totalorder %s11780_s27, %s11774_s24 }
 0x2cf   : > { %4694 = vperm.xlu1 %11364, %v4672_v22   ;;  %v9605_v62 = vpop.f32.mrb[45].mxu1  ;;  %p11776_p12 = pnand %p11775_p11, %p11970_p5 }
 0x2d0   : > { %4689 = vperm.xlu0 %11363, %v4671_v46   ;;  %v14759_v0 = vadd.f32 %v9605_v62, %v9604_v19  ;;  %v9607_v24 = vpop.f32.mrb[46].mxu1  ;;  %p11783_p2 = por %p11782_p1, %p11781_p0 }
 0x2d1   : > { %v9608_v31 = vpop.f32.mrb[47].mxu1  ;;  %p11777_p13 = pneg %p11776_p12 }
 0x2d2   : > { %v14770_v47 = vadd.f32 %v9608_v31, %v9607_v24  ;;  %v4680_v24 = vld [vmem:[%s16825_s1 + $0x48] sm:$0xff] }
 0x2d3   : > { %4699 = vperm.xlu1 %11364, %v4673_v37   ;;  %p11784_p3 = pnand %p11783_p2, %p11777_p13 }
 0x2d4   : > { %4704 = vperm.xlu0 %11363, %v4674_v10   ;;  %v4200_v10 = vadd.f32 %v14331_v29, %v14773_v61  ;;  %v4203_v29 = vadd.f32 %v14346_v63, %v14773_v61 }
 0x2d6   : > { %v4062_v6 = vpop.f32.mrb[32].mxu0  ;;  %v9916_v21 = vpop.f32.mrb[48].mxu1 }
 0x2d7   : > { %4709 = vperm.xlu1 %11364, %v4675_v34   ;;  %v10154_v43 = vadd.f32 %v4062_v6, %v14776_v59  ;;  %v14792_v14 = vadd.f32 %v9916_v21, %v4184_v45  ;;  %v4064_v60 = vpop.f32.mrb[33].mxu0  ;;  %v4272_v25 = vpop.f32.mrb[49].mxu1  ;;  %v17046_v6 = vld [vmem:[#allocation27_spill] sm:$0xff] }
 0x2d8   : > { %4714 = vperm.xlu0 %11363, %v4676_v26   ;;  %v10155_v18 = vadd.f32 %v4064_v60, %v14779_v32  ;;  %v4273_v1 = vadd.f32 %v4272_v25, %v4176_v28  ;;  %v4066_v40 = vpop.f32.mrb[34].mxu0  ;;  %v9917_v17 = vpop.f32.mrb[50].mxu1  ;;  %v4192_v21 = vadd.f32 %v17046_v6, %v14773_v61  ;;  %v4681_v28 = vld [vmem:[%s16825_s1 + $0x50] sm:$0xff] }
 0x2d9   : > { %v4335_v33 = vmax.f32 %v10154_v43, 0.0  ;;  %v10156_v3 = vadd.f32 %v4066_v40, %v14776_v59  ;;  %v14803_v22 = vadd.f32 %v9917_v17, %v4187_v57  ;;  %v4068_v53 = vpop.f32.mrb[35].mxu0  ;;  %v4275_v52 = vpop.f32.mrb[51].mxu1 }
 0x2da   : > { %v4336_v16 = vmax.f32 %v10155_v18, 0.0  ;;  %v10157_v46 = vadd.f32 %v4068_v53, %v14779_v32  ;;  %v4276_v37 = vadd.f32 %v4275_v52, %v4179_v13  ;;  %v4337_v19 = vmax.f32 %v4273_v1, 0.0  ;;  %v4682_v13 = vld [vmem:[%s16825_s1 + $0x58] sm:$0xff] }
 0x2db   : > { %4719 = vperm.xlu1 %11364, %v4677_v11   ;;  %v4338_v38 = vmax.f32 %v10156_v3, 0.0 }
 0x2dc   : > { %4724 = vperm.xlu0 %11363, %v4678_v4   ;;  %v4383_v56 = vmax.f32 %v4335_v33, %v4336_v16  ;;  %v4339_v62 = vmax.f32 %v10157_v46, 0.0  ;;  %v4340_v26 = vmax.f32 %v4276_v37, 0.0 }
 0x2de   : > { %v4399_v31 = vmax.f32 %v4383_v56, %v4337_v19  ;;  %v4384_v34 = vmax.f32 %v4338_v38, %v4339_v62  ;;  %v4072_v45 = vpop.f32.mrb[36].mxu0  ;;  %v9920_v11 = vpop.f32.mrb[52].mxu1  ;;  %v4343_v56 = vmax.f32 %v14792_v14, 0.0  ;;  %v4208_v14 = vadd.f32 %v14458_v7, %v14773_v61 }
 0x2df   : > { %4729 = vperm.xlu1 %11364, %v4679_v15   ;;  %v10158_v43 = vadd.f32 %v4072_v45, %v14776_v59  ;;  %v14820_v60 = vadd.f32 %v9920_v11, %v4200_v10  ;;  %v4074_v25 = vpop.f32.mrb[37].mxu0  ;;  %v4288_v54 = vpop.f32.mrb[53].mxu1  ;;  %v4684_v15 = vld [vmem:[%s16825_s1 + $0x68] sm:$0xff]  ;;  %v4346_v10 = vmax.f32 %v14803_v22, 0.0  ;;  %v4685_v11 = vld [vmem:[%s16825_s1 + $0x70] sm:$0xff]  ;;  %v4219_v22 = vadd.f32 %v14604_v35, %v14773_v61 }
 0x2e0   : > { %4734 = vperm.xlu0 %11363, %v4680_v24   ;;  %v4400_v57 = vmax.f32 %v4384_v34, %v4340_v26  ;;  %v10159_v18 = vadd.f32 %v4074_v25, %v14779_v32  ;;  %v14825_v1 = vadd.f32 %v4288_v54, %v4192_v21  ;;  %v4076_v40 = vpop.f32.mrb[38].mxu0  ;;  %v9921_v17 = vpop.f32.mrb[54].mxu1  ;;  %v4216_v24 = vadd.f32 %v14582_v8, %v14773_v61 }
 0x2e1   : > { %v4341_v4 = vmax.f32 %v10158_v43, 0.0  ;;  %v10160_v33 = vadd.f32 %v4076_v40, %v14776_v59  ;;  %v14833_v3 = vadd.f32 %v9921_v17, %v4203_v29  ;;  %v4078_v63 = vpop.f32.mrb[39].mxu0  ;;  %v4291_v53 = vpop.f32.mrb[55].mxu1  ;;  %v4211_v35 = vadd.f32 %v14475_v27, %v14773_v61 }
 0x2e2   : > { %v4342_v52 = vmax.f32 %v10159_v18, 0.0  ;;  %v10161_v16 = vadd.f32 %v4078_v63, %v14779_v32  ;;  %v14836_v46 = vadd.f32 %v4291_v53, %v4195_v20  ;;  %v4415_v38 = vpack.c.bf16 %v4400_v57, %v4399_v31  ;;  %v4686_v57 = vld [vmem:[%s16825_s1 + $0x78] sm:$0xff] }
 0x2e3   : > { %4739 = vperm.xlu1 %11364, %v4681_v28   ;;  %v4344_v37 = vmax.f32 %v10160_v33, 0.0  ;;  %v4349_v27 = vmax.f32 %v14825_v1, 0.0  ;;  %v4224_v1 = vadd.f32 %v14685_v50, %v14773_v61 }
 0x2e4   : > { %4744 = vperm.xlu0 %11363, %v4682_v13   ;;  %v4385_v19 = vmax.f32 %v4341_v4, %v4342_v52  ;;  %v4345_v62 = vmax.f32 %v10161_v16, 0.0  ;;  %9946 = vmatprep.mubr.bf16.mxu1 %v4415_v38  ;;  %v11509_v4 = vld [vmem:[%s16826_s2] ss:$12 sps:$4 sm:$0xff]   ;;  %v11514_v52 = vld [vmem:[%s16826_s2 + $0x1c] ss:$12 sps:$4 sm:$0xff]  }
 0x2e6   : > { %v4401_v34 = vmax.f32 %v4385_v19, %v4343_v56  ;;  %v4386_v26 = vmax.f32 %v4344_v37, %v4345_v62  ;;  %v4082_v45 = vpop.f32.mrb[40].mxu0  ;;  %v9924_v31 = vpop.f32.mrb[56].mxu1  ;;  %v4232_v56 = vadd.f32 %v14759_v0, %v14773_v61  ;;  %v11512_v19 = vld [vmem:[%s16826_s2 + $0x18] ss:$12 sps:$4 sm:$0xff]   ;;  %v4352_v62 = vmax.f32 %v14836_v46, 0.0 }
 0x2e7   : > { %4749 = vperm.xlu1 %11364, %v4683_v58   ;;  %v10162_v6 = vadd.f32 %v4082_v45, %v14776_v59  ;;  %v14854_v21 = vadd.f32 %v9924_v31, %v4216_v24  ;;  %v4084_v28 = vpop.f32.mrb[41].mxu0  ;;  %v4304_v8 = vpop.f32.mrb[57].mxu1  ;;  %v4235_v46 = vadd.f32 %v14770_v47, %v14773_v61  ;;  %v11515_v47 = vld [vmem:[%s16826_s2 + $0x30] ss:$12 sps:$4 sm:$0xff]  }
 0x2e8   : > { %4754 = vperm.xlu0 %11363, %v4684_v15   ;;  %v4402_v43 = vmax.f32 %v4386_v26, %v4346_v10  ;;  %v10163_v25 = vadd.f32 %v4084_v28, %v14779_v32  ;;  %v14859_v54 = vadd.f32 %v4304_v8, %v4208_v14  ;;  %v4086_v7 = vpop.f32.mrb[42].mxu0  ;;  %v9925_v29 = vpop.f32.mrb[58].mxu1  ;;  %v11517_v26 = vld [vmem:[%s16826_s2 + $0x34] ss:$12 sps:$4 sm:$0xff]  }
 0x2e9   : > { %v4347_v18 = vmax.f32 %v10162_v6, 0.0  ;;  %v10164_v40 = vadd.f32 %v4086_v7, %v14776_v59  ;;  %v14865_v17 = vadd.f32 %v9925_v29, %v4219_v22  ;;  %v4088_v20 = vpop.f32.mrb[43].mxu0  ;;  %v4307_v13 = vpop.f32.mrb[59].mxu1  ;;  %v4227_v22 = vadd.f32 %v14696_v30, %v14773_v61  ;;  %v11520_v30 = vld [vmem:[%s16826_s2 + $0x4c] ss:$12 sps:$4 sm:$0xff]  }
 0x2ea   : > { %v4416_v33 = vpack.c.bf16 %v4402_v43, %v4401_v34  ;;  %v4348_v63 = vmax.f32 %v10163_v25, 0.0  ;;  %v10165_v53 = vadd.f32 %v4088_v20, %v14779_v32  ;;  %v14876_v58 = vadd.f32 %v4307_v13, %v4211_v35 }
 0x2eb   : > { %4759 = vperm.xlu1 %11364, %v4685_v11   ;;  %v4350_v16 = vmax.f32 %v10164_v40, 0.0  ;;  %v4355_v13 = vmax.f32 %v14820_v60, 0.0 }
 0x2ec   : > { %4764 = vperm.xlu0 %11363, %v4686_v57   ;;  %v4387_v37 = vmax.f32 %v4347_v18, %v4348_v63  ;;  %v4351_v38 = vmax.f32 %v10165_v53, 0.0  ;;  %9947 = vmatmul.mubr.bf16.vlgmr.msra.gmra.mrb[64].mxu1 %v4416_v33  ;;  %v11518_v63 = vld [vmem:[%s16826_s2 + $0x48] ss:$12 sps:$4 sm:$0xff]   ;;  %v4358_v53 = vmax.f32 %v14833_v3, 0.0  ;;  %v11521_v3 = vld [vmem:[%s16826_s2 + $0x60] ss:$12 sps:$4 sm:$0xff]  }
 0x2ed   : > { %4991 = vmatpush1.bf16.msra.mxu1 %v11509_v4 }
 0x2ee   : > { %v4403_v15 = vmax.f32 %v4387_v37, %v4349_v27  ;;  %v4388_v24 = vmax.f32 %v4350_v16, %v4351_v38  ;;  %v4092_v10 = vpop.f32.mrb[44].mxu0  ;;  %v9928_v34 = vpop.f32.mrb[60].mxu1  ;;  %4992 = vmatprep.subr.bf16.mxu1 %v11514_v52  ;;  %v11523_v37 = vld [vmem:[%s16826_s2 + $0x64] ss:$12 sps:$4 sm:$0xff]  }
 0x2ef   : > { %v10166_v0 = vadd.f32 %v4092_v10, %v14776_v59  ;;  %v14891_v45 = vadd.f32 %v9928_v34, %v4232_v56  ;;  %v4094_v31 = vpop.f32.mrb[45].mxu0  ;;  %v4320_v14 = vpop.f32.mrb[61].mxu1 }
 0x2f0   : > { %v4404_v11 = vmax.f32 %v4388_v24, %v4352_v62  ;;  %v10167_v6 = vadd.f32 %v4094_v31, %v14779_v32  ;;  %v14896_v28 = vadd.f32 %v4320_v14, %v4224_v1  ;;  %v4096_v50 = vpop.f32.mrb[46].mxu0  ;;  %v9929_v8 = vpop.f32.mrb[62].mxu1  ;;  %v4361_v14 = vmax.f32 %v14859_v54, 0.0 }
 0x2f1   : > { %v4353_v43 = vmax.f32 %v10166_v0, 0.0  ;;  %v10168_v25 = vadd.f32 %v4096_v50, %v14776_v59  ;;  %v14901_v7 = vadd.f32 %v9929_v8, %v4235_v46  ;;  %v4098_v29 = vpop.f32.mrb[47].mxu0  ;;  %v4323_v57 = vpop.f32.mrb[63].mxu1  ;;  %4993 = vmatpush1.bf16.msra.mxu1 %v11512_v19  ;;  %v11526_v0 = vld [vmem:[%s16826_s2 + $0x7c] ss:$12 sps:$4 sm:$0xff]   ;;  %v4364_v50 = vmax.f32 %v14876_v58, 0.0 }
 0x2f2   : > { %v4354_v18 = vmax.f32 %v10167_v6, 0.0  ;;  %v10169_v40 = vadd.f32 %v4098_v29, %v14779_v32  ;;  %v14907_v20 = vadd.f32 %v4323_v57, %v4227_v22  ;;  %4994 = vmatprep.subr.bf16.mxu1 %v11517_v26  ;;  %v4417_v35 = vpack.c.bf16 %v4404_v11, %v4403_v15  ;;  %v11524_v6 = vld [vmem:[%s16826_s2 + $0x78] ss:$12 sps:$4 sm:$0xff]   ;;  %v14939_v57 = vpop.permute.xlu1 %11049 }
 0x2f3   : > { %v4356_v61 = vmax.f32 %v10168_v25, 0.0  ;;  %v11529_v25 = vld [vmem:[%s16826_s2 + $0x94] ss:$12 sps:$4 sm:$0xff]  }
 0x2f4   : > { %v4389_v4 = vmax.f32 %v4353_v43, %v4354_v18  ;;  %v4357_v33 = vmax.f32 %v10169_v40, 0.0  ;;  %9950 = vmatprep.mubr.bf16.mxu1 %v4417_v35  ;;  %v11527_v35 = vld [vmem:[%s16826_s2 + $0x90] ss:$12 sps:$4 sm:$0xff]  }
 0x2f5   : > { %4995 = vmatpush1.bf16.msra.mxu1 %v11515_v47 }
 0x2f6   : > { %v4405_v52 = vmax.f32 %v4389_v4, %v4355_v13  ;;  %v4390_v16 = vmax.f32 %v4356_v61, %v4357_v33  ;;  %v4102_v27 = vpop.f32.mrb[48].mxu0  ;;  %4996 = vmatprep.subr.bf16.mxu1 %v11520_v30  ;;  %v14946_v13 = vpop.permute.xlu0 %11044 }
 0x2f7   : > { %v10170_v60 = vadd.f32 %v4102_v27, %v14776_v59  ;;  %v4104_v38 = vpop.f32.mrb[49].mxu0 }
 0x2f8   : > { %v4406_v56 = vmax.f32 %v4390_v16, %v4358_v53  ;;  %v10171_v19 = vadd.f32 %v4104_v38, %v14779_v32  ;;  %v4106_v62 = vpop.f32.mrb[50].mxu0  ;;  %v11532_v53 = vld [vmem:[%s16826_s2 + $0xac] ss:$12 sps:$4 sm:$0xff]   ;;  %v4367_v16 = vmax.f32 %v14854_v21, 0.0  ;;  %v14956_v38 = vpop.permute.xlu1 %11059 }
 0x2f9   : > { %v4359_v15 = vmax.f32 %v10170_v60, 0.0  ;;  %v10172_v24 = vadd.f32 %v4106_v62, %v14776_v59  ;;  %v4108_v10 = vpop.f32.mrb[51].mxu0  ;;  %4997 = vmatpush1.bf16.msra.mxu1 %v11518_v63  ;;  %v11530_v60 = vld [vmem:[%s16826_s2 + $0xa8] ss:$12 sps:$4 sm:$0xff]  }
 0x2fa   : > { %v4360_v34 = vmax.f32 %v10171_v19, 0.0  ;;  %v10173_v1 = vadd.f32 %v4108_v10, %v14779_v32  ;;  %v4418_v26 = vpack.c.bf16 %v4406_v56, %v4405_v52  ;;  %4998 = vmatprep.subr.bf16.mxu1 %v11523_v37  ;;  %v4370_v56 = vmax.f32 %v14865_v17, 0.0  ;;  %v14960_v21 = vpop.permute.xlu0 %11054 }
 0x2fb   : > { %v4362_v31 = vmax.f32 %v10172_v24, 0.0 }
 0x2fc   : > { %v4391_v46 = vmax.f32 %v4359_v15, %v4360_v34  ;;  %v4363_v11 = vmax.f32 %v10173_v1, 0.0  ;;  %9951 = vmatmul.mubr.bf16.gmra.mrb[68].mxu1 %v4418_v26 }
 0x2fd   : > { %4999 = vmatpush1.bf16.msra.mxu1 %v11521_v3 }
 0x2fe   : > { %v4407_v8 = vmax.f32 %v4391_v46, %v4361_v14  ;;  %v4392_v22 = vmax.f32 %v4362_v31, %v4363_v11  ;;  %v4112_v43 = vpop.f32.mrb[52].mxu0  ;;  %5000 = vmatprep.subr.bf16.mxu1 %v11526_v0 }
 0x2ff   : > { %v10174_v54 = vadd.f32 %v4112_v43, %v14776_v59  ;;  %v4114_v29 = vpop.f32.mrb[53].mxu0  ;;  %v14968_v43 = vpop.permute.xlu0 %11064 }
 0x300   : > { %v4408_v47 = vmax.f32 %v4392_v22, %v4364_v50  ;;  %v10175_v18 = vadd.f32 %v4114_v29, %v14779_v32  ;;  %v4116_v40 = vpop.f32.mrb[54].mxu0  ;;  %v4373_v50 = vmax.f32 %v14896_v28, 0.0 }
 0x301   : > { %v4365_v30 = vmax.f32 %v10174_v54, 0.0  ;;  %v10176_v58 = vadd.f32 %v4116_v40, %v14776_v59  ;;  %v4118_v61 = vpop.f32.mrb[55].mxu0  ;;  %5001 = vmatpush1.bf16.msra.mxu1 %v11524_v6  ;;  %v14965_v6 = vpop.permute.xlu1 %11069 }
 0x302   : > { %v4366_v4 = vmax.f32 %v10175_v18, 0.0  ;;  %v10177_v33 = vadd.f32 %v4118_v61, %v14779_v32  ;;  %v4419_v63 = vpack.c.bf16 %v4408_v47, %v4407_v8  ;;  %5002 = vmatprep.subr.bf16.mxu1 %v11529_v25  ;;  %v4376_v25 = vmax.f32 %v14907_v20, 0.0 }
 0x303   : > { %v4368_v52 = vmax.f32 %v10176_v58, 0.0 }
 0x304   : > { %v4393_v27 = vmax.f32 %v4365_v30, %v4366_v4  ;;  %v4369_v37 = vmax.f32 %v10177_v33, 0.0  ;;  %9954 = vmatprep.mubr.bf16.mxu1 %v4419_v63 }
 0x305   : > { %5003 = vmatpush1.bf16.msra.mxu1 %v11527_v35  ;;  %v14974_v33 = vpop.permute.xlu1 %11079 }
 0x306   : > { %v4409_v19 = vmax.f32 %v4393_v27, %v4367_v16  ;;  %v4394_v62 = vmax.f32 %v4368_v52, %v4369_v37  ;;  %v4122_v15 = vpop.f32.mrb[56].mxu0  ;;  %5004 = vmatprep.subr.bf16.mxu1 %v11532_v53  ;;  %v14977_v16 = vpop.permute.xlu0 %11074  ;;  %v4379_v27 = vmax.f32 %v14891_v45, 0.0 }
 0x307   : > { %v10178_v24 = vadd.f32 %v4122_v15, %v14776_v59  ;;  %v4124_v10 = vpop.f32.mrb[57].mxu0 }
 0x308   : > { %v4410_v3 = vmax.f32 %v4394_v62, %v4370_v56  ;;  %v10179_v34 = vadd.f32 %v4124_v10, %v14779_v32  ;;  %v4126_v1 = vpop.f32.mrb[58].mxu0  ;;  %v4382_v56 = vmax.f32 %v14901_v7, 0.0 }
 0x309   : > { %v4371_v26 = vmax.f32 %v10178_v24, 0.0  ;;  %v10180_v0 = vadd.f32 %v4126_v1, %v14776_v59  ;;  %v4128_v31 = vpop.f32.mrb[59].mxu0  ;;  %5005 = vmatpush1.bf16.msra.mxu1 %v11530_v60  ;;  %v17048_v1 = vld [vmem:[#allocation22_spill] sm:$0xff] }
 0x30a   : > { %v4372_v14 = vmax.f32 %v10179_v34, 0.0  ;;  %v10181_v17 = vadd.f32 %v4128_v31, %v14779_v32  ;;  %v4420_v46 = vpack.c.bf16 %v4410_v3, %v4409_v19  ;;  %v14983_v24 = vpop.permute.xlu0 %11084  ;;  %v17049_v31 = vld [vmem:[#allocation24_spill] sm:$0xff] }
 0x30b   : > { %v4374_v11 = vmax.f32 %v10180_v0, 0.0 }
 0x30c   : > { %v4395_v8 = vmax.f32 %v4371_v26, %v4372_v14  ;;  %v4375_v22 = vmax.f32 %v10181_v17, 0.0  ;;  %9955 = vmatmul.mubr.bf16.gmra.mrb[72].mxu1 %v4420_v46 }
 0x30e   : > { %v4411_v54 = vmax.f32 %v4395_v8, %v4373_v50  ;;  %v4396_v29 = vmax.f32 %v4374_v11, %v4375_v22  ;;  %v4132_v47 = vpop.f32.mrb[60].mxu0  ;;  %v14988_v34 = vpop.permute.xlu0 %11094 }
 0x30f   : > { %v10182_v18 = vadd.f32 %v4132_v47, %v14776_v59  ;;  %v4134_v40 = vpop.f32.mrb[61].mxu0 }
 0x310   : > { %v4412_v30 = vmax.f32 %v4396_v29, %v4376_v25  ;;  %v10183_v58 = vadd.f32 %v4134_v40, %v14779_v32  ;;  %v4136_v61 = vpop.f32.mrb[62].mxu0  ;;  %v11533_v25 = vld [vmem:[%s16828_s4] ss:$12 sps:$4 sm:$0xff]   ;;  %v11536_v29 = vld [vmem:[%s16828_s4 + $0x18] ss:$12 sps:$4 sm:$0xff]  }
 0x311   : > { %v4377_v35 = vmax.f32 %v10182_v18, 0.0  ;;  %v10184_v28 = vadd.f32 %v4136_v61, %v14776_v59  ;;  %v4138_v4 = vpop.f32.mrb[63].mxu0  ;;  %v14981_v59 = vpop.permute.xlu1 %11089  ;;  %v15051_v18 = vld [vmem:[%s16827_s3] sm:$0x7]  ;;  %v11539_v61 = vld [vmem:[%s16828_s4 + $0x30] ss:$12 sps:$4 sm:$0xff]  }
 0x312   : > { %v4378_v63 = vmax.f32 %v10183_v58, 0.0  ;;  %v10185_v53 = vadd.f32 %v4138_v4, %v14779_v32  ;;  %v4421_v20 = vpack.c.bf16 %v4412_v30, %v4411_v54  ;;  %v17047_v32 = vmov 0   ;;  %v14996_v7 = vpop.permute.xlu0 %11104  ;;  %v11544_v4 = vld [vmem:[%s16828_s4 + $0x4c] ss:$12 sps:$4 sm:$0xff]  }
 0x313   : > { %v4380_v52 = vmax.f32 %v10184_v28, 0.0  ;;  %v15058_v40 = vrot.slane %v15051_v18, %v12965_v49 }
 0x314   : > { %v4397_v37 = vmax.f32 %v4377_v35, %v4378_v63  ;;  %v4381_v60 = vmax.f32 %v10185_v53, 0.0  ;;  %9958 = vmatprep.mubr.bf16.mxu1 %v4421_v20 }
 0x315   : > { %v14986_v3 = vpop.permute.xlu1 %11099 }
 0x316   : > { %v4413_v19 = vmax.f32 %v4397_v37, %v4379_v27  ;;  %v4398_v62 = vmax.f32 %v4380_v52, %v4381_v60  ;;  %v15000_v0 = vpop.permute.xlu0 %11114 }
 0x318   : > { %v4414_v15 = vmax.f32 %v4398_v62, %v4382_v56  ;;  %v11542_v56 = vld [vmem:[%s16828_s4 + $0x48] ss:$12 sps:$4 sm:$0xff]  }
 0x319   : > { %v14990_v45 = vpop.permute.xlu1 %11109 }
 0x31a   : > { %v4422_v10 = vpack.c.bf16 %v4414_v15, %v4413_v19  ;;  %v15008_v17 = vpop.permute.xlu0 %11124 }
 0x31c   : > { %9959 = vmatmul.mubr.bf16.gmra.mrb[76].mxu1 %v4422_v10 }
 0x31d   : > { %5022 = vmatprep.mubr.bf16.mxu1 %v17047_v32  ;;  %v14998_v26 = vpop.permute.xlu1 %11119 }
 0x31e   : > { %v15016_v11 = vpop.permute.xlu0 %11134 }
 0x31f   : > { %17052 = vst [vmem:[#allocation27_spill] sm:$0xff] %v15016_v11 }
 0x321   : > { %v15006_v14 = vpop.permute.xlu1 %11129 }
 0x322   : > { %17050 = vst [vmem:[#allocation23_spill] sm:$0xff] %v15006_v14  ;;  %v15024_v8 = vpop.permute.xlu0 %11144 }
 0x323   : > { %17054 = vst [vmem:[#allocation24_spill] sm:$0xff] %v15024_v8 }
 0x324   : > { %9436 = vmatmul.mubr.msk.bf16.vlgmr.msra.gmra.mrb[80].mxu1 %vm12627_vm15, %v17048_v1 }
 0x325   : > { %5032 = vmatprep.mubr.bf16.mxu1 %v17047_v32  ;;  %v15014_v46 = vpop.permute.xlu1 %11139 }
 0x326   : > { %17051 = vst [vmem:[#allocation19_spill] sm:$0xff] %v15014_v46  ;;  %v15034_v54 = vpop.permute.xlu0 %11154 }
 0x327   : > { %17056 = vst [vmem:[#allocation32_spill] sm:$0xff] %v15034_v54 }
 0x329   : > { %v15018_v50 = vpop.permute.xlu1 %11149 }
 0x32a   : > { %17053 = vst [vmem:[#allocation22_spill] sm:$0xff] %v15018_v50  ;;  %v15060_v30 = vpop.permute.xlu0 %11164 }
 0x32b   : > { %17058 = vst [vmem:[#allocation34_spill] sm:$0xff] %v15060_v30 }
 0x32c   : > { %9439 = vmatmul.mubr.msk.bf16.gmra.mrb[84].mxu1 %vm12627_vm15, %v17049_v31  ;;  %v11547_v31 = vld [vmem:[%s16828_s4 + $0x64] ss:$12 sps:$4 sm:$0xff]  }
 0x32d   : > { %5042 = vmatprep.mubr.bf16.mxu1 %v17047_v32  ;;  %v15026_v22 = vpop.permute.xlu1 %11159 }
 0x32e   : > { %17055 = vst [vmem:[#allocation31_spill] sm:$0xff] %v15026_v22 }
 0x331   : > { %v15046_v47 = vpop.permute.xlu1 %11169 }
 0x332   : > { %17057 = vst [vmem:[#allocation33_spill] sm:$0xff] %v15046_v47 }
 0x334   : > { %9442 = vmatmul.mubr.msk.bf16.gmra.mrb[88].mxu1 %vm12627_vm15, %v14301_v41  ;;  %v11535_v41 = vld [vmem:[%s16828_s4 + $0x4] ss:$12 sps:$4 sm:$0xff]  }
 0x335   : > { %5052 = vmatprep.mubr.bf16.mxu1 %v17047_v32  ;;  %5769 = vmatprep.subr.bf16.mxu1 %v11535_v41  ;;  %v15074_v52 = vpop.permute.xlu1 %11179  ;;  %v11545_v41 = vld [vmem:[%s16828_s4 + $0x60] ss:$12 sps:$4 sm:$0xff]  }
 0x336   : > { %5770 = vmatpush1.bf16.msra.mxu1 %v11533_v25  ;;  %17059 = vst [vmem:[#allocation35_spill] sm:$0xff] %v15074_v52 }
 0x339   : > { %v15093_v25 = vpop.permute.xlu1 %11189 }
 0x33a   : > { %17061 = vst [vmem:[#allocation37_spill] sm:$0xff] %v15093_v25 }
 0x33c   : > { %9445 = vmatmul.mubr.msk.bf16.gmra.mrb[92].mxu1 %vm12627_vm15, %v14422_v9  ;;  %v11538_v9 = vld [vmem:[%s16828_s4 + $0x1c] ss:$12 sps:$4 sm:$0xff]  }
 0x33d   : > { %5062 = vmatprep.mubr.bf16.mxu1 %v17047_v32  ;;  %5771 = vmatprep.subr.bf16.mxu1 %v11538_v9 }
 0x33e   : > { %5772 = vmatpush1.bf16.msra.mxu1 %v11536_v29  ;;  %v11550_v29 = vld [vmem:[%s16828_s4 + $0x7c] ss:$12 sps:$4 sm:$0xff]  }
 0x344   : > { %9448 = vmatmul.mubr.msk.bf16.gmra.mrb[96].mxu1 %vm12627_vm15, %v14580_v42  ;;  %v11541_v42 = vld [vmem:[%s16828_s4 + $0x34] ss:$12 sps:$4 sm:$0xff]   ;;  %v9980_v58 = vpop.f32.mrb[64].mxu0 }
 0x345   : > { %5072 = vmatprep.mubr.bf16.mxu1 %v17047_v32  ;;  %v5146_v35 = vadd.f32 %v9980_v58, %v15058_v40  ;;  %v5137_v28 = vpop.f32.mrb[65].mxu0  ;;  %5773 = vmatprep.subr.bf16.mxu1 %v11541_v42  ;;  %v11548_v42 = vld [vmem:[%s16828_s4 + $0x78] ss:$12 sps:$4 sm:$0xff]   ;;  %v11553_v58 = vld [vmem:[%s16828_s4 + $0x94] ss:$12 sps:$4 sm:$0xff]  }
 0x346   : > { %v9981_v63 = vpop.f32.mrb[66].mxu0  ;;  %v5138_v53 = vadd.f32 %v5137_v28, %v15058_v40  ;;  %5774 = vmatpush1.bf16.msra.mxu1 %v11539_v61  ;;  %v15110_v61 = vpop.permute.xlu1 %11199 }
 0x347   : > { %v5140_v20 = vpop.f32.mrb[67].mxu0  ;;  %v5208_v27 = vmax.f32 %v5146_v35, 0.0  ;;  %v5149_v37 = vadd.f32 %v9981_v63, %v15058_v40  ;;  %5775 = vmatprep.subr.bf16.mxu1 %v11544_v4  ;;  %17063 = vst [vmem:[#allocation39_spill] sm:$0xff] %v15110_v61  ;;  %v11556_v35 = vld [vmem:[%s16828_s4 + $0xac] ss:$12 sps:$4 sm:$0xff]  }
 0x348   : > { %v5141_v60 = vadd.f32 %v5140_v20, %v15058_v40  ;;  %v5202_v19 = vmax.f32 %v5138_v53, 0.0  ;;  %v11554_v4 = vld [vmem:[%s16828_s4 + $0xa8] ss:$12 sps:$4 sm:$0xff]   ;;  %v11559_v20 = vld [vmem:[%s16828_s4 + $0xc4] ss:$12 sps:$4 sm:$0xff]  }
 0x349   : > { %v5211_v62 = vmax.f32 %v5149_v37, 0.0  ;;  %v11561_v37 = vld [vmem:[%s16828_s4 + $0x8] ss:$12 sps:$4 sm:$0xff]  }
 0x34a   : > { %v5205_v15 = vmax.f32 %v5141_v60, 0.0  ;;  %5776 = vmatpush1.bf16.msra.mxu1 %v11542_v56  ;;  %v15126_v63 = vpop.permute.xlu1 %11209  ;;  %v11564_v56 = vld [vmem:[%s16828_s4 + $0xdc] ss:$12 sps:$4 sm:$0xff]  }
 0x34b   : > { %v15083_v10 = vpack.c.bf16 %v5211_v62, %v5208_v27  ;;  %5777 = vmatprep.subr.bf16.mxu1 %v11547_v31  ;;  %17065 = vst [vmem:[#allocation41_spill] sm:$0xff] %v15126_v63  ;;  %v11560_v27 = vld [vmem:[%s16828_s4 + $0xc8] ss:$12 sps:$4 sm:$0xff]   ;;  %v11562_v62 = vld [vmem:[%s16828_s4 + $0xd8] ss:$12 sps:$4 sm:$0xff]  }
 0x34c   : > { %9451 = vmatmul.mubr.msk.bf16.gmra.mrb[100].mxu1 %vm12627_vm15, %v14680_v5  ;;  %v15081_v5 = vpop.permute.xlu0 %11174  ;;  %v15085_v1 = vpack.c.bf16 %v5205_v15, %v5202_v19  ;;  %9658 = vmatprep.subr.bf16.mxu0 %v11560_v27  ;;  %v11565_v19 = vld [vmem:[%s16828_s4 + $0xe0] ss:$12 sps:$4 sm:$0xff]   ;;  %v11572_v27 = vld [vmem:[%s16828_s4 + $0x108] ss:$12 sps:$4 sm:$0xff]  }
 0x34d   : > { %5082 = vmatprep.mubr.bf16.mxu1 %v17047_v32  ;;  %17060 = vst [vmem:[#allocation36_spill] sm:$0xff] %v15081_v5  ;;  %9659 = vmatpush3.bf16.msra.mxu0 %v11561_v37  ;;  %v11566_v15 = vld [vmem:[%s16828_s4 + $0x20] ss:$12 sps:$4 sm:$0xff]  }
 0x34e   : > { %5778 = vmatpush1.bf16.msra.mxu1 %v11545_v41  ;;  %v15142_v60 = vpop.permute.xlu1 %11219  ;;  %9660 = vmatprep.subr.bf16.mxu0 %v11565_v19  ;;  %v11569_v41 = vld [vmem:[%s16828_s4 + $0xf4] ss:$12 sps:$4 sm:$0xff]  }
 0x34f   : > { %5779 = vmatprep.subr.bf16.mxu1 %v11550_v29  ;;  %17067 = vst [vmem:[#allocation43_spill] sm:$0xff] %v15142_v60  ;;  %v11570_v29 = vld [vmem:[%s16828_s4 + $0xf8] ss:$12 sps:$4 sm:$0xff]  }
 0x350   : > { %v15099_v9 = vpop.permute.xlu0 %11184 }
 0x351   : > { %17062 = vst [vmem:[#allocation38_spill] sm:$0xff] %v15099_v9  ;;  %9661 = vmatpush3.bf16.msra.mxu0 %v11566_v15  ;;  %v11579_v15 = vld [vmem:[%s16828_s4 + $0x124] ss:$12 sps:$4 sm:$0xff]  }
 0x352   : > { %5780 = vmatpush1.bf16.msra.mxu1 %v11548_v42  ;;  %v11571_v42 = vld [vmem:[%s16828_s4 + $0x38] ss:$12 sps:$4 sm:$0xff]   ;;  %9662 = vmatprep.subr.bf16.mxu0 %v11570_v29 }
 0x353   : > { %5781 = vmatprep.subr.bf16.mxu1 %v11553_v58  ;;  %v11567_v58 = vld [vmem:[%s16828_s4 + $0xf0] ss:$12 sps:$4 sm:$0xff]  }
 0x354   : > { %9454 = vmatmul.mubr.msk.bf16.gmra.mrb[104].mxu1 %vm12627_vm15, %v14740_v39  ;;  %v11551_v39 = vld [vmem:[%s16828_s4 + $0x90] ss:$12 sps:$4 sm:$0xff]   ;;  %v15118_v28 = vpop.permute.xlu0 %11194 }
 0x355   : > { %5092 = vmatprep.mubr.bf16.mxu1 %v17047_v32  ;;  %17064 = vst [vmem:[#allocation40_spill] sm:$0xff] %v15118_v28  ;;  %9663 = vmatpush3.bf16.msra.mxu0 %v11571_v42 }
 0x356   : > { %5782 = vmatpush1.bf16.msra.mxu1 %v11551_v39  ;;  %v11575_v39 = vld [vmem:[%s16828_s4 + $0x110] ss:$12 sps:$4 sm:$0xff]  }
 0x357   : > { %5783 = vmatprep.subr.bf16.mxu1 %v11556_v35  ;;  %v11574_v35 = vld [vmem:[%s16828_s4 + $0x10c] ss:$12 sps:$4 sm:$0xff]   ;;  %9664 = vmatprep.subr.bf16.mxu0 %v11575_v39  ;;  %v11581_v39 = vld [vmem:[%s16828_s4 + $0x68] ss:$12 sps:$4 sm:$0xff]  }
 0x358   : > { %v15128_v53 = vpop.permute.xlu0 %11204 }
 0x359   : > { %17066 = vst [vmem:[#allocation42_spill] sm:$0xff] %v15128_v53 }
 0x35a   : > { %5784 = vmatpush1.bf16.msra.mxu1 %v11554_v4  ;;  %v15176_v4 = vpop.permute.xlu1 %11229 }
 0x35b   : > { %5785 = vmatprep.subr.bf16.mxu1 %v11559_v20  ;;  %17069 = vst [vmem:[#allocation45_spill] sm:$0xff] %v15176_v4 }
 0x35c   : > { %9457 = vmatmul.mubr.msk.bf16.gmra.mrb[108].mxu1 %vm12627_vm15, %v14754_v12  ;;  %v11557_v12 = vld [vmem:[%s16828_s4 + $0xc0] ss:$12 sps:$4 sm:$0xff]   ;;  %v15156_v31 = vpop.permute.xlu0 %11214 }
 0x35d   : > { %17068 = vst [vmem:[#allocation44_spill] sm:$0xff] %v15156_v31 }
 0x35e   : > { %5786 = vmatpush1.bf16.msra.mxu1 %v11557_v12  ;;  %v11576_v12 = vld [vmem:[%s16828_s4 + $0x50] ss:$12 sps:$4 sm:$0xff]  }
 0x35f   : > { %5787 = vmatprep.subr.bf16.mxu1 %v11564_v56  ;;  %9665 = vmatpush3.bf16.msra.mxu0 %v11576_v12  ;;  %v15186_v56 = vpop.permute.xlu1 %11239 }
 0x360   : > { %v15178_v20 = vpop.permute.xlu0 %11224  ;;  %17071 = vst [vmem:[#allocation47_spill] sm:$0xff] %v15186_v56 }
 0x361   : > { %17070 = vst [vmem:[#allocation46_spill] sm:$0xff] %v15178_v20 }
 0x362   : > { %5788 = vmatpush1.bf16.msra.mxu1 %v11562_v62 }
 0x363   : > { %5789 = vmatprep.subr.bf16.mxu1 %v11569_v41  ;;  %v11580_v41 = vld [vmem:[%s16828_s4 + $0x128] ss:$12 sps:$4 sm:$0xff]  }
 0x364   : > { %9666 = vmatprep.subr.bf16.mxu0 %v11580_v41  ;;  %v11586_v41 = vld [vmem:[%s16828_s4 + $0x80] ss:$12 sps:$4 sm:$0xff]  }
 0x365   : > { %9667 = vmatpush3.bf16.msra.mxu0 %v11581_v39 }
 0x366   : > { %5790 = vmatpush1.bf16.msra.mxu1 %v11567_v58  ;;  %v11577_v58 = vld [vmem:[%s16828_s4 + $0x120] ss:$12 sps:$4 sm:$0xff]   ;;  %9668 = vmatprep.subr.bf16.mxu0 %v11585_v2 }
 0x367   : > { %5791 = vmatprep.subr.bf16.mxu1 %v11574_v35  ;;  %v15202_v35 = vpop.permute.xlu0 %11234 }
 0x368   : > { %17072 = vst [vmem:[#allocation48_spill] sm:$0xff] %v15202_v35 }
 0x369   : > { %9669 = vmatpush3.bf16.msra.mxu0 %v11586_v41 }
 0x36a   : > { %5792 = vmatpush1.bf16.msra.mxu1 %v11572_v27 }
 0x36b   : > { %5793 = vmatprep.subr.bf16.mxu1 %v11579_v15  ;;  %v11582_v15 = vld [vmem:[%s16828_s4 + $0x138] ss:$12 sps:$4 sm:$0xff]   ;;  %v15224_v39 = vpop.permute.xlu0 %11244 }
 0x36c   : > { %17074 = vst [vmem:[#allocation50_spill] sm:$0xff] %v15224_v39 }
 0x36e   : > { %5794 = vmatpush1.bf16.msra.mxu1 %v11577_v58 }
 0x36f   : > { %5795 = vmatprep.subr.bf16.mxu1 %v11584_v48  ;;  %v11594_v48 = vld [vmem:[%s16828_s4 + $0x16c] ss:$12 sps:$4 sm:$0xff]  }
 0x370   : > { %v9984_v37 = vpop.f32.mrb[68].mxu0 }
 0x371   : > { %v5162_v19 = vadd.f32 %v9984_v37, %v15058_v40  ;;  %v5153_v62 = vpop.f32.mrb[69].mxu0 }
 0x372   : > { %v5154_v29 = vadd.f32 %v5153_v62, %v15058_v40  ;;  %v9985_v42 = vpop.f32.mrb[70].mxu0  ;;  %5796 = vmatpush1.bf16.msra.mxu1 %v11582_v15  ;;  %v15252_v15 = vpop.permute.xlu0 %11254 }
 0x373   : > { %v5220_v27 = vmax.f32 %v5162_v19, 0.0  ;;  %v5165_v12 = vadd.f32 %v9985_v42, %v15058_v40  ;;  %v5156_v37 = vpop.f32.mrb[71].mxu0  ;;  %17076 = vst [vmem:[#allocation52_spill] sm:$0xff] %v15252_v15 }
 0x374   : > { %v5214_v49 = vmax.f32 %v5154_v29, 0.0  ;;  %v5157_v62 = vadd.f32 %v5156_v37, %v15058_v40  ;;  %v15218_v29 = vpop.permute.xlu1 %11249  ;;  %v11590_v37 = vld [vmem:[%s16828_s4 + $0x158] ss:$12 sps:$4 sm:$0xff]  }
 0x375   : > { %v5223_v36 = vmax.f32 %v5165_v12, 0.0  ;;  %17073 = vst [vmem:[#allocation49_spill] sm:$0xff] %v15218_v29  ;;  %v11589_v12 = vld [vmem:[%s16828_s4 + $0x154] ss:$12 sps:$4 sm:$0xff]   ;;  %9670 = vmatprep.subr.bf16.mxu0 %v11590_v37  ;;  %v11599_v37 = vld [vmem:[%s16828_s4 + $0x184] ss:$12 sps:$4 sm:$0xff]  }
 0x376   : > { %v5217_v19 = vmax.f32 %v5157_v62, 0.0  ;;  %5797 = vmatprep.subr.bf16.mxu1 %v11589_v12  ;;  %v11592_v62 = vld [vmem:[%s16828_s4 + $0x168] ss:$12 sps:$4 sm:$0xff]   ;;  %v15256_v12 = vpop.permute.xlu0 %11264 }
 0x377   : > { %v15220_v42 = vpack.c.bf16 %v5223_v36, %v5220_v27  ;;  %v11587_v36 = vld [vmem:[%s16828_s4 + $0x150] ss:$12 sps:$4 sm:$0xff]   ;;  %17078 = vst [vmem:[#allocation54_spill] sm:$0xff] %v15256_v12 }
 0x378   : > { %v15222_v58 = vpack.c.bf16 %v5217_v19, %v5214_v49  ;;  %v11591_v49 = vld [vmem:[%s16828_s4 + $0x98] ss:$12 sps:$4 sm:$0xff]   ;;  %v15238_v2 = vpop.permute.xlu1 %11259  ;;  %5798 = vmatpush1.bf16.msra.mxu1 %v11587_v36  ;;  %v11595_v27 = vld [vmem:[%s16828_s4 + $0x170] ss:$12 sps:$4 sm:$0xff]  }
 0x379   : > { %9671 = vmatpush3.bf16.msra.mxu0 %v11591_v49  ;;  %17075 = vst [vmem:[#allocation51_spill] sm:$0xff] %v15238_v2  ;;  %v11596_v19 = vld [vmem:[%s16828_s4 + $0xb0] ss:$12 sps:$4 sm:$0xff]   ;;  %5799 = vmatprep.subr.bf16.mxu1 %v11594_v48 }
 0x37a   : > { %9672 = vmatprep.subr.bf16.mxu0 %v11595_v27  ;;  %v15263_v49 = vpop.permute.xlu0 %11274 }
 0x37b   : > { %17080 = vst [vmem:[#allocation56_spill] sm:$0xff] %v15263_v49 }
 0x37c   : > { %5800 = vmatpush1.bf16.msra.mxu1 %v11592_v62  ;;  %v15254_v41 = vpop.permute.xlu1 %11269 }
 0x37d   : > { %9673 = vmatpush3.bf16.msra.mxu0 %v11596_v19  ;;  %17077 = vst [vmem:[#allocation53_spill] sm:$0xff] %v15254_v41  ;;  %5882 = vmatprep.subr.bf16.mxu1 %v11599_v37 }
 0x37e   : > { %v15267_v2 = vpop.permute.xlu0 %11284 }
 0x37f   : > { %17082 = vst [vmem:[#allocation58_spill] sm:$0xff] %v15267_v2 }
 0x380   : > { %v15261_v36 = vpop.permute.xlu1 %11279 }
 0x381   : > { %17079 = vst [vmem:[#allocation55_spill] sm:$0xff] %v15261_v36 }
 0x382   : > { %v15274_v36 = vpop.permute.xlu0 %11294 }
 0x383   : > { %17084 = vst [vmem:[#allocation60_spill] sm:$0xff] %v15274_v36 }
 0x384   : > { %v15265_v56 = vpop.permute.xlu1 %11289 }
 0x385   : > { %17081 = vst [vmem:[#allocation57_spill] sm:$0xff] %v15265_v56 }
 0x388   : > { %v15270_v19 = vpop.permute.xlu1 %11299 }
 0x389   : > { %17083 = vst [vmem:[#allocation59_spill] sm:$0xff] %v15270_v19  ;;  %v15283_v19 = vpop.permute.xlu0 %11304 }
 0x38a   : > { %17086 = vst [vmem:[#allocation62_spill] sm:$0xff] %v15283_v19 }
 0x397   : > { %v9988_v48 = vpop.f32.mrb[72].mxu0 }
 0x398   : > { %v5178_v27 = vadd.f32 %v9988_v48, %v15058_v40  ;;  %v5169_v62 = vpop.f32.mrb[73].mxu0  ;;  %v15279_v48 = vpop.permute.xlu1 %11309 }
 0x399   : > { %v5170_v41 = vadd.f32 %v5169_v62, %v15058_v40  ;;  %v9989_v12 = vpop.f32.mrb[74].mxu0  ;;  %17085 = vst [vmem:[#allocation61_spill] sm:$0xff] %v15279_v48 }
 0x39a   : > { %v5232_v35 = vmax.f32 %v5178_v27, 0.0  ;;  %v5181_v37 = vadd.f32 %v9989_v12, %v15058_v40  ;;  %v5172_v15 = vpop.f32.mrb[75].mxu0  ;;  %v15290_v12 = vld [vmem:[%s16828_s4 + $0x188] ss:$12 sps:$4 sm:$0xff]  }
 0x39b   : > { %v5226_v49 = vmax.f32 %v5170_v41, 0.0  ;;  %v5173_v56 = vadd.f32 %v5172_v15, %v15058_v40  ;;  %v15292_v41 = vpop.permute.xlu0 %11314  ;;  %9994 = vmatprep.subr.bf16.mxu0 %v15290_v12 }
 0x39c   : > { %v5235_v4 = vmax.f32 %v5181_v37, 0.0  ;;  %v15285_v62 = vpop.permute.xlu1 %11319  ;;  %17088 = vst [vmem:[#allocation64_spill] sm:$0xff] %v15292_v41 }
 0x39d   : > { %v5229_v2 = vmax.f32 %v5173_v56, 0.0  ;;  %17087 = vst [vmem:[#allocation63_spill] sm:$0xff] %v15285_v62 }
 0x39e   : > { %v15277_v55 = vpack.c.bf16 %v5235_v4, %v5232_v35 }
 0x39f   : > { %v15281_v29 = vpack.c.bf16 %v5229_v2, %v5226_v49  ;;  %v15298_v15 = vpop.permute.xlu0 %11324 }
 0x3a0   : > { %v15295_v56 = vpop.permute.xlu1 %11329  ;;  %17090 = vst [vmem:[#allocation66_spill] sm:$0xff] %v15298_v15 }
 0x3a1   : > { %17089 = vst [vmem:[#allocation65_spill] sm:$0xff] %v15295_v56  ;;  %v9992_v4 = vpop.f32.mrb[76].mxu0 }
 0x3a2   : > { %v5194_v35 = vadd.f32 %v9992_v4, %v15058_v40  ;;  %v5185_v2 = vpop.f32.mrb[77].mxu0 }
 0x3a3   : > { %v9993_v49 = vpop.f32.mrb[78].mxu0  ;;  %v5186_v27 = vadd.f32 %v5185_v2, %v15058_v40  ;;  %v15305_v39 = vpop.permute.xlu0 %11334 }
 0x3a4   : > { %v5188_v37 = vpop.f32.mrb[79].mxu0  ;;  %v5244_v62 = vmax.f32 %v5194_v35, 0.0  ;;  %v5197_v48 = vadd.f32 %v9993_v49, %v15058_v40  ;;  %v15303_v36 = vpop.permute.xlu1 %11339  ;;  %17092 = vst [vmem:[#allocation68_spill] sm:$0xff] %v15305_v39 }
 0x3a5   : > { %v5189_v41 = vadd.f32 %v5188_v37, %v15058_v40  ;;  %v5238_v19 = vmax.f32 %v5186_v27, 0.0  ;;  %17091 = vst [vmem:[#allocation67_spill] sm:$0xff] %v15303_v36 }
 0x3a6   : > { %v5247_v56 = vmax.f32 %v5197_v48, 0.0 }
 0x3a7   : > { %v5241_v20 = vmax.f32 %v5189_v41, 0.0  ;;  %v15313_v2 = vpop.permute.xlu0 %11344 }
 0x3a8   : > { %v15307_v4 = vpack.c.bf16 %v5247_v56, %v5244_v62  ;;  %v15311_v60 = vpop.permute.xlu1 %11349  ;;  %17094 = vst [vmem:[#allocation70_spill] sm:$0xff] %v15313_v2  ;;  %v15325_v62 = vld [vmem:[%s16831_s7] ss:$0 sm:$0xff] }
 0x3a9   : > { %v15309_v15 = vpack.c.bf16 %v5241_v20, %v5238_v19  ;;  %17093 = vst [vmem:[#allocation69_spill] sm:$0xff] %v15311_v60 }
 0x3ab   : > { %v15317_v49 = vpop.permute.xlu0 %11354 }
 0x3ac   : > { %v15315_v35 = vpop.permute.xlu1 %11359  ;;  %17096 = vst [vmem:[#allocation72_spill] sm:$0xff] %v15317_v49 }
 0x3ad   : > { %17095 = vst [vmem:[#allocation71_spill] sm:$0xff] %v15315_v35 }
 0x3af   : > { %v4690_v19 = vpop.permute.xlu0 %4689 }
 0x3b0   : > { %v4695_v40 = vpop.permute.xlu1 %4694 }
 0x3b3   : > { %v4705_v39 = vpop.permute.xlu0 %4704 }
 0x3b4   : > { %v4700_v2 = vpop.permute.xlu1 %4699 }
 0x3b7   : > { %v4715_v61 = vpop.permute.xlu0 %4714 }
 0x3b8   : > { %v4710_v31 = vpop.permute.xlu1 %4709 }
 0x3bb   : > { %v4725_v53 = vpop.permute.xlu0 %4724 }
 0x3bc   : > { %v4720_v63 = vpop.permute.xlu1 %4719 }
 0x3bf   : > { %v9948_v48 = vpop.f32.mrb[64].mxu1 }
 0x3c0   : > { %v4528_v20 = vpop.f32.mrb[65].mxu1  ;;  %v4537_v56 = vadd.f32 %v9948_v48, %v15325_v62 }
 0x3c1   : > { %v9949_v41 = vpop.f32.mrb[66].mxu1  ;;  %v4529_v35 = vadd.f32 %v15325_v62, %v4528_v20 }
 0x3c2   : > { %v4540_v27 = vadd.f32 %v9949_v41, %v15325_v62  ;;  %v4531_v37 = vpop.f32.mrb[67].mxu1  ;;  %v4769_v25 = vadd.f32 %v4700_v2, %v4537_v56  ;;  %v4730_v2 = vpop.permute.xlu1 %4729 }
 0x3c3   : > { %v4532_v49 = vadd.f32 %v15325_v62, %v4531_v37 }
 0x3c4   : > { %v9228_v60 = vpack.c.bf16 %v4540_v27, %v4537_v56  ;;  %v4770_v54 = vadd.f32 %v4705_v39, %v4540_v27  ;;  %v4735_v56 = vpop.permute.xlu0 %4734 }
 0x3c5   : > { %v9223_v36 = vpack.c.bf16 %v4532_v49, %v4529_v35  ;;  %v4768_v30 = vadd.f32 %v4695_v40, %v4532_v49 }
 0x3c6   : > { %9363 = vst [vmem:[%s15332_s16 + $0x8] sm:$0xff] %v9228_v60   ;;  %v4740_v14 = vpop.permute.xlu1 %4739 }
 0x3c7   : > { %9224 = vst [vmem:[%s15332_s16] sm:$0xff] %v9223_v36   ;;  %v4767_v36 = vadd.f32 %v4690_v19, %v4529_v35 }
 0x3cf   : > { %v9952_v48 = vpop.f32.mrb[68].mxu1 }
 0x3d0   : > { %v4553_v41 = vadd.f32 %v9952_v48, %v15325_v62  ;;  %v4544_v28 = vpop.f32.mrb[69].mxu1 }
 0x3d1   : > { %v4545_v20 = vadd.f32 %v15325_v62, %v4544_v28  ;;  %v9953_v37 = vpop.f32.mrb[70].mxu1 }
 0x3d2   : > { %v4773_v9 = vadd.f32 %v4720_v63, %v4553_v41  ;;  %v4556_v52 = vadd.f32 %v9953_v37, %v15325_v62  ;;  %v4547_v60 = vpop.f32.mrb[71].mxu1 }
 0x3d3   : > { %v4771_v22 = vadd.f32 %v4710_v31, %v4545_v20  ;;  %v4548_v5 = vadd.f32 %v15325_v62, %v4547_v60 }
 0x3d4   : > { %v4785_v47 = vmax.f32 %v4769_v25, %v4773_v9  ;;  %v9238_v50 = vpack.c.bf16 %v4556_v52, %v4553_v41  ;;  %v4774_v48 = vadd.f32 %v4725_v53, %v4556_v52  ;;  %v4745_v9 = vpop.permute.xlu0 %4744  ;;  %v4750_v41 = vpop.permute.xlu1 %4749 }
 0x3d5   : > { %v4783_v8 = vmax.f32 %v4767_v36, %v4771_v22  ;;  %v9233_v28 = vpack.c.bf16 %v4548_v5, %v4545_v20  ;;  %v4772_v46 = vadd.f32 %v4715_v61, %v4548_v5 }
 0x3d6   : > { %9365 = vst [vmem:[%s15332_s16 + $0x18] sm:$0xff] %v9238_v50   ;;  %v4786_v11 = vmax.f32 %v4770_v54, %v4774_v48 }
 0x3d7   : > { %9364 = vst [vmem:[%s15332_s16 + $0x10] sm:$0xff] %v9233_v28   ;;  %v4784_v63 = vmax.f32 %v4768_v30, %v4772_v46 }
 0x3d8   : > { %v4755_v20 = vpop.permute.xlu0 %4754 }
 0x3df   : > { %v9956_v37 = vpop.f32.mrb[72].mxu1 }
 0x3e0   : > { %v4569_v31 = vadd.f32 %v9956_v37, %v15325_v62  ;;  %v4560_v35 = vpop.f32.mrb[73].mxu1 }
 0x3e1   : > { %v4561_v25 = vadd.f32 %v15325_v62, %v4560_v35  ;;  %v9957_v52 = vpop.f32.mrb[74].mxu1 }
 0x3e2   : > { %v4777_v22 = vadd.f32 %v4740_v14, %v4569_v31  ;;  %v4572_v5 = vadd.f32 %v9957_v52, %v15325_v62  ;;  %v4563_v50 = vpop.f32.mrb[75].mxu1  ;;  %v4760_v14 = vpop.permute.xlu1 %4759  ;;  %v15354_v52 = vrot.slane %v15051_v18, %v12943_v44 }
 0x3e3   : > { %v4775_v54 = vadd.f32 %v4730_v2, %v4561_v25  ;;  %v4564_v46 = vadd.f32 %v15325_v62, %v4563_v50  ;;  %v4765_v2 = vpop.permute.xlu0 %4764  ;;  %v15358_v50 = vrot.slane %v15051_v18, %v12949_v23 }
 0x3e4   : > { %v4789_v30 = vmax.f32 %v4785_v47, %v4777_v22  ;;  %v9248_v61 = vpack.c.bf16 %v4572_v5, %v4569_v31  ;;  %v4778_v53 = vadd.f32 %v4745_v9, %v4572_v5 }
 0x3e5   : > { %v4787_v39 = vmax.f32 %v4783_v8, %v4775_v54  ;;  %v9243_v49 = vpack.c.bf16 %v4564_v46, %v4561_v25  ;;  %v4776_v40 = vadd.f32 %v4735_v56, %v4564_v46 }
 0x3e6   : > { %9367 = vst [vmem:[%s15332_s16 + $0x28] sm:$0xff] %v9248_v61   ;;  %v4790_v19 = vmax.f32 %v4786_v11, %v4778_v53 }
 0x3e7   : > { %9366 = vst [vmem:[%s15332_s16 + $0x20] sm:$0xff] %v9243_v49   ;;  %v4788_v27 = vmax.f32 %v4784_v63, %v4776_v40 }
 0x3ef   : > { %v9960_v60 = vpop.f32.mrb[76].mxu1 }
 0x3f0   : > { %v4585_v36 = vadd.f32 %v9960_v60, %v15325_v62  ;;  %v4576_v48 = vpop.f32.mrb[77].mxu1 }
 0x3f1   : > { %v4577_v28 = vadd.f32 %v15325_v62, %v4576_v48  ;;  %v9961_v47 = vpop.f32.mrb[78].mxu1 }
 0x3f2   : > { %v4781_v8 = vadd.f32 %v4760_v14, %v4585_v36  ;;  %v4588_v56 = vadd.f32 %v9961_v47, %v15325_v62  ;;  %v4579_v37 = vpop.f32.mrb[79].mxu1 }
 0x3f3   : > { %v4779_v11 = vadd.f32 %v4750_v41, %v4577_v28  ;;  %v4580_v63 = vadd.f32 %v15325_v62, %v4579_v37  ;;  %v11602_v37 = vld [vmem:[%s16828_s4 + $0x19c] ss:$12 sps:$4 sm:$0xff]  }
 0x3f4   : > { %v4793_v31 = vmax.f32 %v4789_v30, %v4781_v8  ;;  %v9258_v35 = vpack.c.bf16 %v4588_v56, %v4585_v36  ;;  %v4782_v25 = vadd.f32 %v4765_v2, %v4588_v56  ;;  %v11597_v2 = vld [vmem:[%s16828_s4 + $0x180] ss:$12 sps:$4 sm:$0xff]  }
 0x3f5   : > { %v4791_v9 = vmax.f32 %v4787_v39, %v4779_v11  ;;  %v9253_v22 = vpack.c.bf16 %v4580_v63, %v4577_v28  ;;  %v4780_v5 = vadd.f32 %v4755_v20, %v4580_v63  ;;  %v11613_v11 = vld [vmem:[%s16828_s4 + $0x1a0] ss:$12 sps:$4 sm:$0xff]  }
 0x3f6   : > { %9369 = vst [vmem:[%s15332_s16 + $0x38] sm:$0xff] %v9258_v35   ;;  %v4794_v54 = vmax.f32 %v4790_v19, %v4782_v25 }
 0x3f7   : > { %9368 = vst [vmem:[%s15332_s16 + $0x30] sm:$0xff] %v9253_v22   ;;  %v4792_v46 = vmax.f32 %v4788_v27, %v4780_v5  ;;  %v5024_v61 = vpop.f32.mrb[80].mxu1  ;;  %v11600_v22 = vld [vmem:[%s16828_s4 + $0x198] ss:$12 sps:$4 sm:$0xff]  }
 0x3f8   : > { %v4796_v62 = vmax.f32 %v4793_v31, %v4794_v54  ;;  %v5025_v30 = vadd.f32 %v5024_v61, %v15354_v52  ;;  %v5026_v53 = vpop.f32.mrb[81].mxu1  ;;  %v11617_v61 = vld [vmem:[%s16828_s4 + $0x1b8] ss:$12 sps:$4 sm:$0xff]  }
 0x3f9   : > { %v4795_v49 = vmax.f32 %v4791_v9, %v4792_v46  ;;  %v5027_v40 = vadd.f32 %v5026_v53, %v15358_v50  ;;  %v5028_v41 = vpop.f32.mrb[82].mxu1  ;;  %v11605_v46 = vld [vmem:[%s16828_s4 + $0x1b4] ss:$12 sps:$4 sm:$0xff]  }
 0x3fa   : > { %v5029_v39 = vadd.f32 %v5028_v41, %v15354_v52  ;;  %v5030_v20 = vpop.f32.mrb[83].mxu1  ;;  %v5200_v14 = vmax.f32 %v5025_v30, 0.0 }
 0x3fb   : > { %v15365_v60 = vmax.f32 %v4795_v49, %v4796_v62  ;;  %v5031_v18 = vadd.f32 %v5030_v20, %v15358_v50  ;;  %v5201_v36 = vmax.f32 %v5027_v40, 0.0  ;;  %v11608_v20 = vld [vmem:[%s16828_s4 + $0x1cc] ss:$12 sps:$4 sm:$0xff]  }
 0x3fc   : > { %v5203_v19 = vmax.f32 %v5029_v39, 0.0 }
 0x3fd   : > { %v5204_v27 = vmax.f32 %v5031_v18, 0.0  ;;  %v11618_v18 = vld [vmem:[%s16828_s4 + $0x1d0] ss:$12 sps:$4 sm:$0xff]  }
 0x3fe   : > { %v5248_v48 = vpack.c.bf16 %v5203_v19, %v5200_v14 }
 0x3ff   : > { %v5249_v28 = vpack.c.bf16 %v5204_v27, %v5201_v36  ;;  %v5034_v47 = vpop.f32.mrb[84].mxu1 }
 0x400   : > { %v5035_v8 = vadd.f32 %v5034_v47, %v15354_v52  ;;  %v5036_v56 = vpop.f32.mrb[85].mxu1 }
 0x401   : > { %v5037_v63 = vadd.f32 %v5036_v56, %v15358_v50  ;;  %v5038_v31 = vpop.f32.mrb[86].mxu1  ;;  %5801 = vmatprep.mubr.bf16.mxu1 %v5249_v28  ;;  %6027 = vmatprep.mubr.bf16.mxu0 %v5249_v28  ;;  %v11606_v28 = vld [vmem:[%s16828_s4 + $0x1c8] ss:$12 sps:$4 sm:$0xff]  }
 0x402   : > { %v5039_v35 = vadd.f32 %v5038_v31, %v15354_v52  ;;  %v5040_v25 = vpop.f32.mrb[87].mxu1  ;;  %5802 = vmatmul.mubr.bf16.vlgmr.msra.gmra.mrb[112].mxu1 %v5248_v48  ;;  %6028 = vmatmul.mubr.bf16.vlgmr.msra.gmra.mrb[80].mxu0 %v5248_v48  ;;  %v5206_v5 = vmax.f32 %v5035_v8, 0.0  ;;  %v11611_v8 = vld [vmem:[%s16828_s4 + $0x1e4] ss:$12 sps:$4 sm:$0xff]   ;;  %v11622_v56 = vld [vmem:[%s16828_s4 + $0x1e8] ss:$12 sps:$4 sm:$0xff]  }
 0x403   : > { %v5041_v9 = vadd.f32 %v5040_v25, %v15358_v50  ;;  %5883 = vmatpush1.bf16.msra.mxu1 %v11597_v2  ;;  %9995 = vmatpush3.bf16.msra.mxu0 %v15290_v12  ;;  %v5207_v62 = vmax.f32 %v5037_v63, 0.0  ;;  %v11603_v12 = vld [vmem:[%s16828_s4 + $0x1b0] ss:$12 sps:$4 sm:$0xff]   ;;  %v11609_v25 = vld [vmem:[%s16828_s4 + $0x1e0] ss:$12 sps:$4 sm:$0xff]  }
 0x404   : > { %v5209_v54 = vmax.f32 %v5039_v35, 0.0  ;;  %5884 = vmatprep.subr.bf16.mxu1 %v11602_v37  ;;  %9996 = vmatprep.subr.bf16.mxu0 %v11613_v11 }
 0x405   : > { %v5210_v30 = vmax.f32 %v5041_v9, 0.0 }
 0x406   : > { %v5251_v53 = vpack.c.bf16 %v5209_v54, %v5206_v5  ;;  %v11616_v5 = vld [vmem:[%s16828_s4 + $0x1fc] ss:$12 sps:$4 sm:$0xff]   ;;  %v11623_v54 = vld [vmem:[%s16828_s4 + $0x200] ss:$12 sps:$4 sm:$0xff]  }
 0x407   : > { %v5252_v49 = vpack.c.bf16 %v5210_v30, %v5207_v62  ;;  %v5044_v40 = vpop.f32.mrb[88].mxu1  ;;  %5885 = vmatpush1.bf16.msra.mxu1 %v11600_v22  ;;  %9997 = vmatpush3.bf16.msra.mxu0 %v11613_v11 }
 0x408   : > { %v5045_v41 = vadd.f32 %v5044_v40, %v15354_v52  ;;  %v5046_v39 = vpop.f32.mrb[89].mxu1  ;;  %5886 = vmatprep.subr.bf16.mxu1 %v11605_v46  ;;  %9998 = vmatprep.subr.bf16.mxu0 %v11617_v61 }
 0x409   : > { %v5047_v14 = vadd.f32 %v5046_v39, %v15358_v50  ;;  %v5048_v19 = vpop.f32.mrb[90].mxu1  ;;  %5811 = vmatprep.mubr.bf16.mxu1 %v5252_v49  ;;  %6035 = vmatprep.mubr.bf16.mxu0 %v5252_v49  ;;  %v11614_v49 = vld [vmem:[%s16828_s4 + $0x1f8] ss:$12 sps:$4 sm:$0xff]  }
 0x40a   : > { %v5049_v36 = vadd.f32 %v5048_v19, %v15354_v52  ;;  %v5050_v27 = vpop.f32.mrb[91].mxu1  ;;  %5812 = vmatmul.mubr.bf16.gmra.mrb[116].mxu1 %v5251_v53  ;;  %6036 = vmatmul.mubr.bf16.gmra.mrb[84].mxu0 %v5251_v53  ;;  %v5212_v47 = vmax.f32 %v5045_v41, 0.0  ;;  %v11621_v41 = vld [vmem:[%s16828_s4 + $0x214] ss:$12 sps:$4 sm:$0xff]   ;;  %v11627_v39 = vld [vmem:[%s16828_s4 + $0x218] ss:$12 sps:$4 sm:$0xff]  }
 0x40b   : > { %v5051_v48 = vadd.f32 %v5050_v27, %v15358_v50  ;;  %5887 = vmatpush1.bf16.msra.mxu1 %v11603_v12  ;;  %9999 = vmatpush3.bf16.msra.mxu0 %v11617_v61  ;;  %v5213_v37 = vmax.f32 %v5047_v14, 0.0  ;;  %v11619_v27 = vld [vmem:[%s16828_s4 + $0x210] ss:$12 sps:$4 sm:$0xff]  }
 0x40c   : > { %v5215_v2 = vmax.f32 %v5049_v36, 0.0  ;;  %5888 = vmatprep.subr.bf16.mxu1 %v11608_v20  ;;  %10000 = vmatprep.subr.bf16.mxu0 %v11618_v18 }
 0x40d   : > { %v5216_v11 = vmax.f32 %v5051_v48, 0.0 }
 0x40e   : > { %v5254_v63 = vpack.c.bf16 %v5215_v2, %v5212_v47  ;;  %v11626_v47 = vld [vmem:[%s16828_s4 + $0x22c] ss:$12 sps:$4 sm:$0xff]   ;;  %v11628_v2 = vld [vmem:[%s16828_s4 + $0x230] ss:$12 sps:$4 sm:$0xff]  }
 0x40f   : > { %v5255_v31 = vpack.c.bf16 %v5216_v11, %v5213_v37  ;;  %v5054_v35 = vpop.f32.mrb[92].mxu1  ;;  %5889 = vmatpush1.bf16.msra.mxu1 %v11606_v28  ;;  %10001 = vmatpush3.bf16.msra.mxu0 %v11618_v18 }
 0x410   : > { %v5055_v9 = vadd.f32 %v5054_v35, %v15354_v52  ;;  %v5056_v22 = vpop.f32.mrb[93].mxu1  ;;  %5890 = vmatprep.subr.bf16.mxu1 %v11611_v8  ;;  %10002 = vmatprep.subr.bf16.mxu0 %v11622_v56 }
 0x411   : > { %v5057_v46 = vadd.f32 %v5056_v22, %v15358_v50  ;;  %v5058_v61 = vpop.f32.mrb[94].mxu1  ;;  %5821 = vmatprep.mubr.bf16.mxu1 %v5255_v31  ;;  %6043 = vmatprep.mubr.bf16.mxu0 %v5255_v31  ;;  %v11624_v31 = vld [vmem:[%s16828_s4 + $0x228] ss:$12 sps:$4 sm:$0xff]  }
 0x412   : > { %v5059_v62 = vadd.f32 %v5058_v61, %v15354_v52  ;;  %v5060_v30 = vpop.f32.mrb[95].mxu1  ;;  %5822 = vmatmul.mubr.bf16.gmra.mrb[120].mxu1 %v5254_v63  ;;  %6044 = vmatmul.mubr.bf16.gmra.mrb[88].mxu0 %v5254_v63  ;;  %v5218_v40 = vmax.f32 %v5055_v9, 0.0 }
 0x413   : > { %v5061_v53 = vadd.f32 %v5060_v30, %v15358_v50  ;;  %5891 = vmatpush1.bf16.msra.mxu1 %v11609_v25  ;;  %10003 = vmatpush3.bf16.msra.mxu0 %v11622_v56  ;;  %v5219_v20 = vmax.f32 %v5057_v46, 0.0 }
 0x414   : > { %v5221_v12 = vmax.f32 %v5059_v62, 0.0  ;;  %5892 = vmatprep.subr.bf16.mxu1 %v11616_v5  ;;  %10004 = vmatprep.subr.bf16.mxu0 %v11623_v54 }
 0x415   : > { %v5222_v18 = vmax.f32 %v5061_v53, 0.0 }
 0x416   : > { %v5257_v14 = vpack.c.bf16 %v5221_v12, %v5218_v40 }
 0x417   : > { %v5258_v19 = vpack.c.bf16 %v5222_v18, %v5219_v20  ;;  %v5064_v36 = vpop.f32.mrb[96].mxu1  ;;  %5893 = vmatpush1.bf16.msra.mxu1 %v11614_v49  ;;  %10005 = vmatpush3.bf16.msra.mxu0 %v11623_v54 }
 0x418   : > { %v5065_v48 = vadd.f32 %v5064_v36, %v15354_v52  ;;  %v5066_v28 = vpop.f32.mrb[97].mxu1  ;;  %5894 = vmatprep.subr.bf16.mxu1 %v11621_v41  ;;  %10006 = vmatprep.subr.bf16.mxu0 %v11627_v39 }
 0x419   : > { %v5067_v8 = vadd.f32 %v5066_v28, %v15358_v50  ;;  %v5068_v56 = vpop.f32.mrb[98].mxu1  ;;  %5831 = vmatprep.mubr.bf16.mxu1 %v5258_v19  ;;  %6051 = vmatprep.mubr.bf16.mxu0 %v5258_v19 }
 0x41a   : > { %v5069_v37 = vadd.f32 %v5068_v56, %v15354_v52  ;;  %v5070_v11 = vpop.f32.mrb[99].mxu1  ;;  %5832 = vmatmul.mubr.bf16.gmra.mrb[124].mxu1 %v5257_v14  ;;  %6052 = vmatmul.mubr.bf16.gmra.mrb[92].mxu0 %v5257_v14  ;;  %v5224_v35 = vmax.f32 %v5065_v48, 0.0 }
 0x41b   : > { %v5071_v63 = vadd.f32 %v5070_v11, %v15358_v50  ;;  %5895 = vmatpush1.bf16.msra.mxu1 %v11619_v27  ;;  %10007 = vmatpush3.bf16.msra.mxu0 %v11627_v39  ;;  %v5225_v9 = vmax.f32 %v5067_v8, 0.0 }
 0x41c   : > { %v5227_v25 = vmax.f32 %v5069_v37, 0.0  ;;  %5896 = vmatprep.subr.bf16.mxu1 %v11626_v47  ;;  %10008 = vmatprep.subr.bf16.mxu0 %v11628_v2 }
 0x41d   : > { %v5228_v22 = vmax.f32 %v5071_v63, 0.0 }
 0x41e   : > { %v5260_v5 = vpack.c.bf16 %v5227_v25, %v5224_v35 }
 0x41f   : > { %v5261_v54 = vpack.c.bf16 %v5228_v22, %v5225_v9  ;;  %v5074_v46 = vpop.f32.mrb[100].mxu1  ;;  %5897 = vmatpush1.bf16.msra.mxu1 %v11624_v31  ;;  %10009 = vmatpush3.bf16.msra.mxu0 %v11628_v2 }
 0x420   : > { %v5075_v61 = vadd.f32 %v5074_v46, %v15354_v52  ;;  %v5076_v62 = vpop.f32.mrb[101].mxu1 }
 0x421   : > { %v5077_v30 = vadd.f32 %v5076_v62, %v15358_v50  ;;  %v5078_v53 = vpop.f32.mrb[102].mxu1  ;;  %5841 = vmatprep.mubr.bf16.mxu1 %v5261_v54  ;;  %6059 = vmatprep.mubr.bf16.mxu0 %v5261_v54 }
 0x422   : > { %v5079_v49 = vadd.f32 %v5078_v53, %v15354_v52  ;;  %v5080_v40 = vpop.f32.mrb[103].mxu1  ;;  %5842 = vmatmul.mubr.bf16.gmra.mrb[128].mxu1 %v5260_v5  ;;  %6060 = vmatmul.mubr.bf16.gmra.mrb[96].mxu0 %v5260_v5  ;;  %v5230_v41 = vmax.f32 %v5075_v61, 0.0 }
 0x423   : > { %v5081_v12 = vadd.f32 %v5080_v40, %v15358_v50  ;;  %v5231_v20 = vmax.f32 %v5077_v30, 0.0 }
 0x424   : > { %v5233_v39 = vmax.f32 %v5079_v49, 0.0 }
 0x425   : > { %v5234_v18 = vmax.f32 %v5081_v12, 0.0 }
 0x426   : > { %v5263_v14 = vpack.c.bf16 %v5233_v39, %v5230_v41 }
 0x427   : > { %v5264_v19 = vpack.c.bf16 %v5234_v18, %v5231_v20  ;;  %v5084_v36 = vpop.f32.mrb[104].mxu1  ;;  %v11056_v20 = vunpack.i.l.bf16 %v14960_v21 }
 0x428   : > { %v5085_v27 = vadd.f32 %v5084_v36, %v15354_v52  ;;  %v5086_v48 = vpop.f32.mrb[105].mxu1  ;;  %v11061_v36 = vunpack.i.l.bf16 %v14956_v38 }
 0x429   : > { %v5087_v28 = vadd.f32 %v5086_v48, %v15358_v50  ;;  %v5088_v47 = vpop.f32.mrb[106].mxu1  ;;  %5851 = vmatprep.mubr.bf16.mxu1 %v5264_v19  ;;  %6067 = vmatprep.mubr.bf16.mxu0 %v5264_v19  ;;  %v11632_v19 = vld [vmem:[%s16830_s6 + $0x10] sm:$0xff]   ;;  %v11087_v48 = vunpack.i.h.bf16 %v14983_v24 }
 0x42a   : > { %v5089_v2 = vadd.f32 %v5088_v47, %v15354_v52  ;;  %v5090_v8 = vpop.f32.mrb[107].mxu1  ;;  %5852 = vmatmul.mubr.bf16.gmra.mrb[132].mxu1 %v5263_v14  ;;  %6068 = vmatmul.mubr.bf16.gmra.mrb[100].mxu0 %v5263_v14  ;;  %v5236_v37 = vmax.f32 %v5085_v27, 0.0  ;;  %v11062_v27 = vunpack.i.h.bf16 %v14956_v38  ;;  %v11067_v38 = vunpack.i.h.bf16 %v14968_v43 }
 0x42b   : > { %v5091_v56 = vadd.f32 %v5090_v8, %v15358_v50  ;;  %v5237_v63 = vmax.f32 %v5087_v28, 0.0  ;;  %v11086_v28 = vunpack.i.l.bf16 %v14983_v24  ;;  %v11633_v8 = vld [vmem:[%s16826_s2 + $0x20] ss:$12 sps:$4 sm:$0xff]   ;;  %v11091_v24 = vunpack.i.l.bf16 %v14981_v59 }
 0x42c   : > { %v5239_v11 = vmax.f32 %v5089_v2, 0.0  ;;  %v11066_v2 = vunpack.i.l.bf16 %v14968_v43  ;;  %v11071_v43 = vunpack.i.l.bf16 %v14965_v6 }
 0x42d   : > { %v5240_v31 = vmax.f32 %v5091_v56, 0.0 }
 0x42e   : > { %v5266_v35 = vpack.c.bf16 %v5239_v11, %v5236_v37  ;;  %v11092_v37 = vunpack.i.h.bf16 %v14981_v59  ;;  %v11634_v11 = vld [vmem:[%s16830_s6 + $0x18] sm:$0xff]  }
 0x42f   : > { %v5267_v25 = vpack.c.bf16 %v5240_v31, %v5237_v63  ;;  %v5094_v9 = vpop.f32.mrb[108].mxu1  ;;  %v17099_v31 = vld [vmem:[#allocation13_spill] sm:$0xff] }
 0x430   : > { %v5095_v22 = vadd.f32 %v5094_v9, %v15354_v52  ;;  %v5096_v5 = vpop.f32.mrb[109].mxu1 }
 0x431   : > { %v5097_v54 = vadd.f32 %v5096_v5, %v15358_v50  ;;  %v5098_v46 = vpop.f32.mrb[110].mxu1  ;;  %5861 = vmatprep.mubr.bf16.mxu1 %v5267_v25  ;;  %6075 = vmatprep.mubr.bf16.mxu0 %v5267_v25  ;;  %v17100_v25 = vld [vmem:[#allocation12_spill] sm:$0xff]  ;;  %v11097_v5 = vunpack.i.h.bf16 %v14988_v34 }
 0x432   : > { %v5099_v61 = vadd.f32 %v5098_v46, %v15354_v52  ;;  %v5100_v62 = vpop.f32.mrb[111].mxu1  ;;  %5862 = vmatmul.mubr.bf16.gmra.mrb[136].mxu1 %v5266_v35  ;;  %6076 = vmatmul.mubr.bf16.gmra.mrb[104].mxu0 %v5266_v35  ;;  %v5242_v53 = vmax.f32 %v5095_v22, 0.0  ;;  %v17098_v52 = vld [vmem:[#allocation11_spill] sm:$0xff]  ;;  %v2498_v35 = vsel %vm2462_vm6, %v17099_v31, %v11087_v48  ;;  %v2497_v9 = vsel %vm2462_vm6, %v17100_v25, %v11086_v28 }
 0x433   : > { %v5101_v30 = vadd.f32 %v5100_v62, %v15358_v50  ;;  %v5243_v40 = vmax.f32 %v5097_v54, 0.0  ;;  %v11630_v50 = vld [vmem:[%s16830_s6 + $0x8] sm:$0xff]   ;;  %v11072_v22 = vunpack.i.h.bf16 %v14965_v6  ;;  %v11096_v54 = vunpack.i.l.bf16 %v14988_v34  ;;  %v11635_v46 = vld [vmem:[%s16826_s2 + $0x38] ss:$12 sps:$4 sm:$0xff]  }
 0x434   : > { %v5245_v49 = vmax.f32 %v5099_v61, 0.0  ;;  %v2546_v62 = vsel %vm2511_vm7, %v2497_v9, %v11091_v24  ;;  %v11636_v6 = vld [vmem:[%s16830_s6 + $0x20] sm:$0xff]   ;;  %v11077_v34 = vunpack.i.h.bf16 %v14977_v16  ;;  %v11642_v28 = vld [vmem:[%s16830_s6 + $0x38] sm:$0xff]  }
 0x435   : > { %v5246_v12 = vmax.f32 %v5101_v30, 0.0  ;;  %v2547_v30 = vsel %vm2511_vm7, %v2498_v35, %v11092_v37  ;;  %v11126_v37 = vunpack.i.l.bf16 %v15008_v17  ;;  %v11644_v35 = vld [vmem:[%s16826_s2 + $0xb0] ss:$12 sps:$4 sm:$0xff]  }
 0x436   : > { %v5269_v41 = vpack.c.bf16 %v5245_v49, %v5242_v53  ;;  %v11076_v53 = vunpack.i.l.bf16 %v14977_v16  ;;  %v11082_v16 = vunpack.i.h.bf16 %v14974_v33  ;;  %v17102_v25 = vld [vmem:[#allocation15_spill] sm:$0xff] }
 0x437   : > { %v5270_v39 = vpack.c.bf16 %v5246_v12, %v5243_v40  ;;  %v11102_v40 = vunpack.i.h.bf16 %v14986_v3  ;;  %v11101_v12 = vunpack.i.l.bf16 %v14986_v3  ;;  %v11081_v3 = vunpack.i.l.bf16 %v14974_v33  ;;  %v11639_v33 = vld [vmem:[%s16826_s2 + $0x68] ss:$12 sps:$4 sm:$0xff]  }
 0x439   : > { %5871 = vmatprep.mubr.bf16.mxu1 %v5270_v39  ;;  %6083 = vmatprep.mubr.bf16.mxu0 %v5270_v39  ;;  %v2595_v39 = vsel %vm2560_vm8, %v2546_v62, %v11096_v54  ;;  %v17105_v62 = vld [vmem:[#allocation19_spill] sm:$0xff] }
 0x43a   : > { %5872 = vmatmul.mubr.bf16.gmra.mrb[140].mxu1 %v5269_v41  ;;  %6084 = vmatmul.mubr.bf16.gmra.mrb[108].mxu0 %v5269_v41 }
 0x43b   : > { %10010 = vmatprep.mubr.bf16.mxu0 %v15085_v1  ;;  %5914 = vmatprep.mubr.bf16.mxu1 %v17047_v32 }
 0x442   : > { %5915 = vmatmul.mubr.bf16.vlgmr.msra.gmra.mrb[112].mxu1 %v15085_v1  ;;  %10011 = vmatmul.mubr.bf16.vlgmr.msra.gmra.mrb[112].mxu0 %v15083_v10  ;;  %v11629_v1 = vld [vmem:[%s16830_s6] sm:$0xff]  }
 0x443   : > { %10014 = vmatprep.mubr.bf16.mxu0 %v15222_v58  ;;  %5924 = vmatprep.mubr.bf16.mxu1 %v17047_v32 }
 0x444   : > { %10026 = vmatprep.subr.bf16.mxu0 %v11629_v1 }
 0x445   : > { %10027 = vmatpush3.bf16.msra.mxu0 %v11629_v1  ;;  %v11637_v1 = vld [vmem:[%s16826_s2 + $0x50] ss:$12 sps:$4 sm:$0xff]  }
 0x446   : > { %10028 = vmatprep.subr.bf16.mxu0 %v11630_v50 }
 0x449   : > { %10029 = vmatpush3.bf16.msra.mxu0 %v11630_v50  ;;  %v11112_v50 = vunpack.i.h.bf16 %v14990_v45 }
 0x44a   : > { %5925 = vmatmul.mubr.bf16.gmra.mrb[116].mxu1 %v15083_v10  ;;  %10015 = vmatmul.mubr.bf16.gmra.mrb[116].mxu0 %v15220_v42  ;;  %v11046_v10 = vunpack.i.l.bf16 %v14946_v13 }
 0x44b   : > { %10018 = vmatprep.mubr.bf16.mxu0 %v15281_v29  ;;  %5934 = vmatprep.mubr.bf16.mxu1 %v17047_v32 }
 0x44c   : > { %10030 = vmatprep.subr.bf16.mxu0 %v11632_v19 }
 0x44d   : > { %10031 = vmatpush3.bf16.msra.mxu0 %v11632_v19 }
 0x44e   : > { %10032 = vmatprep.subr.bf16.mxu0 %v11634_v11 }
 0x451   : > { %10033 = vmatpush3.bf16.msra.mxu0 %v11634_v11  ;;  %v17101_v11 = vld [vmem:[#allocation23_spill] sm:$0xff] }
 0x452   : > { %5935 = vmatmul.mubr.bf16.gmra.mrb[120].mxu1 %v15222_v58  ;;  %10019 = vmatmul.mubr.bf16.gmra.mrb[120].mxu0 %v15277_v55  ;;  %v17097_v58 = vld [vmem:[#allocation10_spill] sm:$0xff]  ;;  %v11131_v31 = vunpack.i.l.bf16 %v17101_v11 }
 0x453   : > { %10022 = vmatprep.mubr.bf16.mxu0 %v15309_v15  ;;  %5944 = vmatprep.mubr.bf16.mxu1 %v17047_v32 }
 0x454   : > { %10034 = vmatprep.subr.bf16.mxu0 %v11636_v6 }
 0x455   : > { %10035 = vmatpush3.bf16.msra.mxu0 %v11636_v6  ;;  %v11141_v6 = vunpack.i.l.bf16 %v17105_v62 }
 0x45a   : > { %5945 = vmatmul.mubr.bf16.gmra.mrb[124].mxu1 %v15220_v42  ;;  %10023 = vmatmul.mubr.bf16.gmra.mrb[124].mxu0 %v15307_v4  ;;  %v11051_v42 = vunpack.i.l.bf16 %v14939_v57 }
 0x45b   : > { %5954 = vmatprep.mubr.bf16.mxu1 %v17047_v32 }
 0x462   : > { %5955 = vmatmul.mubr.bf16.gmra.mrb[128].mxu1 %v15281_v29  ;;  %v11047_v29 = vunpack.i.h.bf16 %v14946_v13  ;;  %v11057_v13 = vunpack.i.h.bf16 %v14960_v21 }
 0x463   : > { %5964 = vmatprep.mubr.bf16.mxu1 %v17047_v32 }
 0x46a   : > { %5965 = vmatmul.mubr.bf16.gmra.mrb[132].mxu1 %v15277_v55  ;;  %v11052_v55 = vunpack.i.h.bf16 %v14939_v57  ;;  %v11631_v57 = vld [vmem:[%s16826_s2 + $0x8] ss:$12 sps:$4 sm:$0xff]  }
 0x46b   : > { %5974 = vmatprep.mubr.bf16.mxu1 %v17047_v32  ;;  %10058 = vmatprep.subr.bf16.mxu1 %v11631_v57 }
 0x46c   : > { %10059 = vmatpush3.bf16.msra.mxu1 %v11631_v57 }
 0x46d   : > { %10060 = vmatprep.subr.bf16.mxu1 %v11633_v8 }
 0x470   : > { %10061 = vmatpush3.bf16.msra.mxu1 %v11633_v8 }
 0x471   : > { %10062 = vmatprep.subr.bf16.mxu1 %v11635_v46 }
 0x472   : > { %5975 = vmatmul.mubr.bf16.gmra.mrb[136].mxu1 %v15309_v15  ;;  %v2495_v15 = vsel %vm2462_vm6, %v17097_v58, %v11046_v10  ;;  %v2596_v10 = vsel %vm2560_vm8, %v2547_v30, %v11097_v5  ;;  %v11106_v58 = vunpack.i.l.bf16 %v14996_v7  ;;  %v11142_v30 = vunpack.i.h.bf16 %v17105_v62 }
 0x473   : > { %5984 = vmatprep.mubr.bf16.mxu1 %v17047_v32  ;;  %v2544_v18 = vsel %vm2511_vm7, %v2495_v15, %v11051_v42 }
 0x474   : > { %v2593_v21 = vsel %vm2560_vm8, %v2544_v18, %v11056_v20  ;;  %10063 = vmatpush3.bf16.msra.mxu1 %v11635_v46  ;;  %v11111_v20 = vunpack.i.l.bf16 %v14990_v45  ;;  %v11116_v45 = vunpack.i.l.bf16 %v15000_v0 }
 0x475   : > { %v2642_v56 = vsel %vm2609_vm9, %v2593_v21, %v11061_v36  ;;  %10064 = vmatprep.subr.bf16.mxu1 %v11637_v1  ;;  %v11117_v36 = vunpack.i.h.bf16 %v15000_v0  ;;  %v11122_v0 = vunpack.i.h.bf16 %v14998_v26 }
 0x476   : > { %v2691_v59 = vsel %vm2658_vm10, %v2642_v56, %v11066_v2  ;;  %v11127_v56 = vunpack.i.h.bf16 %v15008_v17 }
 0x477   : > { %v2740_v49 = vsel %vm2707_vm11, %v2691_v59, %v11071_v43  ;;  %v17103_v43 = vld [vmem:[#allocation14_spill] sm:$0xff]  ;;  %v17104_v59 = vld [vmem:[#allocation27_spill] sm:$0xff] }
 0x478   : > { %v2789_v42 = vsel %vm2756_vm12, %v2740_v49, %v11076_v53  ;;  %10065 = vmatpush3.bf16.msra.mxu1 %v11637_v1  ;;  %v2500_v9 = vsel %vm2462_vm6, %v17102_v25, %v11127_v56  ;;  %v2499_v17 = vsel %vm2462_vm6, %v17103_v43, %v11126_v37  ;;  %v11137_v5 = vunpack.i.h.bf16 %v17104_v59  ;;  %v17106_v49 = vld [vmem:[#allocation24_spill] sm:$0xff]  ;;  %v17115_v56 = vld [vmem:[#allocation35_spill] sm:$0xff] }
 0x479   : > { %10066 = vmatprep.subr.bf16.mxu1 %v11639_v33  ;;  %v11136_v54 = vunpack.i.l.bf16 %v17104_v59  ;;  %v2548_v46 = vsel %vm2511_vm7, %v2499_v17, %v11131_v31  ;;  %v11182_v37 = vunpack.i.h.bf16 %v17115_v56  ;;  %v17116_v31 = vld [vmem:[#allocation38_spill] sm:$0xff] }
 0x47a   : > { %5985 = vmatmul.mubr.bf16.gmra.mrb[140].mxu1 %v15307_v4  ;;  %v2496_v4 = vsel %vm2462_vm6, %v17098_v52, %v11047_v29  ;;  %v11638_v29 = vld [vmem:[%s16830_s6 + $0x28] sm:$0xff]   ;;  %v2644_v52 = vsel %vm2609_vm9, %v2595_v39, %v11101_v12  ;;  %v11146_v12 = vunpack.i.l.bf16 %v17106_v49  ;;  %v11186_v25 = vunpack.i.l.bf16 %v17116_v31 }
 0x47b   : > { %v2545_v14 = vsel %vm2511_vm7, %v2496_v4, %v11052_v55  ;;  %v11107_v55 = vunpack.i.h.bf16 %v14996_v7  ;;  %v2645_v4 = vsel %vm2609_vm9, %v2596_v10, %v11102_v40  ;;  %10036 = vmatprep.subr.bf16.mxu0 %v11638_v29  ;;  %v11640_v7 = vld [vmem:[%s16830_s6 + $0x30] sm:$0xff]   ;;  %v2597_v53 = vsel %vm2560_vm8, %v2548_v46, %v11136_v54  ;;  %v17117_v54 = vld [vmem:[#allocation37_spill] sm:$0xff] }
 0x47c   : > { %v2594_v47 = vsel %vm2560_vm8, %v2545_v14, %v11057_v13  ;;  %10037 = vmatpush3.bf16.msra.mxu0 %v11638_v29  ;;  %v2693_v13 = vsel %vm2658_vm10, %v2644_v52, %v11106_v58  ;;  %v2838_v14 = vsel %vm2805_vm14, %v2789_v42, %v11081_v3  ;;  %10067 = vmatpush3.bf16.msra.mxu1 %v11639_v33  ;;  %v11147_v40 = vunpack.i.h.bf16 %v17106_v49  ;;  %v17107_v10 = vld [vmem:[#allocation34_spill] sm:$0xff]  ;;  %v17110_v33 = vld [vmem:[#allocation17_spill] sm:$0xff] }
 0x47d   : > { %v2643_v63 = vsel %vm2609_vm9, %v2594_v47, %v11062_v27  ;;  %v2694_v18 = vsel %vm2658_vm10, %v2645_v4, %v11107_v55  ;;  %10038 = vmatprep.subr.bf16.mxu0 %v11640_v7  ;;  %v11641_v27 = vld [vmem:[%s16826_s2 + $0x80] ss:$12 sps:$4 sm:$0xff]   ;;  %v2742_v21 = vsel %vm2707_vm11, %v2693_v13, %v11111_v20  ;;  %v11121_v47 = vunpack.i.l.bf16 %v14998_v26 }
 0x47e   : > { %v2692_v61 = vsel %vm2658_vm10, %v2643_v63, %v11067_v38  ;;  %v2743_v48 = vsel %vm2707_vm11, %v2694_v18, %v11112_v50  ;;  %10068 = vmatprep.subr.bf16.mxu1 %v11641_v27  ;;  %v2791_v2 = vsel %vm2756_vm12, %v2742_v21, %v11116_v45  ;;  %v11643_v38 = vld [vmem:[%s16826_s2 + $0x98] ss:$12 sps:$4 sm:$0xff]   ;;  %v11132_v63 = vunpack.i.h.bf16 %v17101_v11  ;;  %v17108_v29 = vld [vmem:[#allocation22_spill] sm:$0xff] }
 0x47f   : > { %v2741_v41 = vsel %vm2707_vm11, %v2692_v61, %v11072_v22  ;;  %v2792_v8 = vsel %vm2756_vm12, %v2743_v48, %v11117_v36  ;;  %v2840_v24 = vsel %vm2805_vm14, %v2791_v2, %v11121_v47  ;;  %v11167_v1 = vunpack.i.h.bf16 %v17107_v10  ;;  %v17111_v20 = vld [vmem:[#allocation16_spill] sm:$0xff] }
 0x480   : > { %v2790_v15 = vsel %vm2756_vm12, %v2741_v41, %v11077_v34  ;;  %10039 = vmatpush3.bf16.msra.mxu0 %v11640_v7  ;;  %10069 = vmatpush3.bf16.msra.mxu1 %v11641_v27  ;;  %v2841_v26 = vsel %vm2805_vm14, %v2792_v8, %v11122_v0  ;;  %v2549_v61 = vsel %vm2511_vm7, %v2500_v9, %v11132_v63  ;;  %v11152_v3 = vunpack.i.h.bf16 %v17108_v29  ;;  %v17112_v13 = vld [vmem:[#allocation32_spill] sm:$0xff]  ;;  %v17114_v0 = vld [vmem:[#allocation31_spill] sm:$0xff] }
 0x481   : > { %v2839_v57 = vsel %vm2805_vm14, %v2790_v15, %v11082_v16  ;;  %10040 = vmatprep.subr.bf16.mxu0 %v11642_v28  ;;  %10070 = vmatprep.subr.bf16.mxu1 %v11643_v38  ;;  %v15616_v22 = vpack.c.bf16 %v2841_v26, %v2840_v24  ;;  %v2598_v34 = vsel %vm2560_vm8, %v2549_v61, %v11137_v5  ;;  %v11166_v16 = vunpack.i.l.bf16 %v17107_v10  ;;  %v17109_v15 = vld [vmem:[#allocation33_spill] sm:$0xff]  ;;  %v17113_v45 = vld [vmem:[#allocation36_spill] sm:$0xff] }
 0x482   : > { %v15581_v19 = vpack.c.bf16 %v2839_v57, %v2838_v14  ;;  %v2646_v41 = vsel %vm2609_vm9, %v2597_v53, %v11141_v6  ;;  %v2647_v39 = vsel %vm2609_vm9, %v2598_v34, %v11142_v30  ;;  %v11151_v42 = vunpack.i.l.bf16 %v17108_v29  ;;  %v11647_v63 = vld [vmem:[%s16826_s2 + $0x4] ss:$12 sps:$4 sm:$0xff]   ;;  %v17119_v34 = vld [vmem:[#allocation40_spill] sm:$0xff] }
 0x483   : > { %v2695_v55 = vsel %vm2658_vm10, %v2646_v41, %v11146_v12  ;;  %v2696_v58 = vsel %vm2658_vm10, %v2647_v39, %v11147_v40  ;;  %v11172_v52 = vunpack.i.h.bf16 %v17109_v15  ;;  %v11171_v4 = vunpack.i.l.bf16 %v17109_v15  ;;  %v17118_v6 = vld [vmem:[#allocation42_spill] sm:$0xff]  ;;  %v17120_v10 = vld [vmem:[#allocation41_spill] sm:$0xff] }
 0x484   : > { %10074 = vmatprep.mubr.msk.bf16.mxu1 %vm12627_vm15, %v15581_v19  ;;  %10041 = vmatpush3.bf16.msra.mxu0 %v11642_v28  ;;  %v2502_v50 = vsel %vm2462_vm6, %v17110_v33, %v11167_v1  ;;  %v2501_v7 = vsel %vm2462_vm6, %v17111_v20, %v11166_v16  ;;  %v11157_v18 = vunpack.i.h.bf16 %v17112_v13  ;;  %v11156_v14 = vunpack.i.l.bf16 %v17112_v13  ;;  %v17121_v16 = vld [vmem:[#allocation39_spill] sm:$0xff] }
 0x485   : > { %10071 = vmatpush3.bf16.msra.mxu1 %v11643_v38  ;;  %v2744_v57 = vsel %vm2707_vm11, %v2695_v55, %v11151_v42  ;;  %v2745_v36 = vsel %vm2707_vm11, %v2696_v58, %v11152_v3  ;;  %v11177_v27 = vunpack.i.h.bf16 %v17113_v45  ;;  %v11176_v21 = vunpack.i.l.bf16 %v17113_v45  ;;  %6847 = vmatprep.subr.bf16.mxu0 %v11647_v63  ;;  %v17122_v42 = vld [vmem:[#allocation18_spill] sm:$0xff] }
 0x486   : > { %10072 = vmatprep.subr.bf16.mxu1 %v11644_v35  ;;  %v2550_v48 = vsel %vm2511_vm7, %v2501_v7, %v11171_v4  ;;  %v2551_v28 = vsel %vm2511_vm7, %v2502_v50, %v11172_v52  ;;  %v11162_v47 = vunpack.i.h.bf16 %v17114_v0  ;;  %v11161_v2 = vunpack.i.l.bf16 %v17114_v0  ;;  %v17123_v4 = vld [vmem:[#allocation20_spill] sm:$0xff] }
 0x487   : > { %v2793_v8 = vsel %vm2756_vm12, %v2744_v57, %v11156_v14  ;;  %v2794_v38 = vsel %vm2756_vm12, %v2745_v36, %v11157_v18  ;;  %v11181_v24 = vunpack.i.l.bf16 %v17115_v56  ;;  %v2599_v26 = vsel %vm2560_vm8, %v2550_v48, %v11176_v21  ;;  %v17124_v50 = vld [vmem:[#allocation44_spill] sm:$0xff]  ;;  %v17125_v57 = vld [vmem:[#allocation43_spill] sm:$0xff]  ;;  %v17127_v56 = vld [vmem:[#allocation46_spill] sm:$0xff] }
 0x488   : > { %v2600_v11 = vsel %vm2560_vm8, %v2551_v28, %v11177_v27  ;;  %v2842_v9 = vsel %vm2805_vm14, %v2793_v8, %v11161_v2  ;;  %v2843_v43 = vsel %vm2805_vm14, %v2794_v38, %v11162_v47  ;;  %v11192_v46 = vunpack.i.h.bf16 %v17117_v54  ;;  %v17126_v28 = vld [vmem:[#allocation50_spill] sm:$0xff] }
 0x489   : > { %10073 = vmatpush3.bf16.msra.mxu1 %v11644_v35  ;;  %v11187_v35 = vunpack.i.h.bf16 %v17116_v31  ;;  %v2648_v17 = vsel %vm2609_vm9, %v2599_v26, %v11181_v24  ;;  %v2649_v59 = vsel %vm2609_vm9, %v2600_v11, %v11182_v37  ;;  %v15670_v5 = vpack.c.bf16 %v2843_v43, %v2842_v9  ;;  %v17128_v26 = vld [vmem:[#allocation49_spill] sm:$0xff] }
 0x48a   : > { %v11191_v61 = vunpack.i.l.bf16 %v17117_v54  ;;  %v2697_v62 = vsel %vm2658_vm10, %v2648_v17, %v11186_v25  ;;  %v11206_v53 = vunpack.i.l.bf16 %v17118_v6  ;;  %v11197_v49 = vunpack.i.h.bf16 %v17119_v34  ;;  %v17129_v25 = vld [vmem:[#allocation25_spill] sm:$0xff] }
 0x48b   : > { %v2698_v30 = vsel %vm2658_vm10, %v2649_v59, %v11187_v35  ;;  %v11196_v40 = vunpack.i.l.bf16 %v17119_v34  ;;  %v11207_v39 = vunpack.i.h.bf16 %v17118_v6  ;;  %v11211_v1 = vunpack.i.l.bf16 %v17120_v10  ;;  %v17130_v43 = vld [vmem:[#allocation21_spill] sm:$0xff]  ;;  %v17132_v6 = vld [vmem:[#allocation52_spill] sm:$0xff] }
 0x48c   : > { %10075 = vmatmul.mubr.msk.bf16.vlgmr.msra.gmra.mrb[144].mxu1 %vm12627_vm15, %v15616_v22  ;;  %v2746_v12 = vsel %vm2707_vm11, %v2697_v62, %v11191_v61  ;;  %v2747_v41 = vsel %vm2707_vm11, %v2698_v30, %v11192_v46  ;;  %v11202_v29 = vunpack.i.h.bf16 %v17121_v16  ;;  %v11201_v3 = vunpack.i.l.bf16 %v17121_v16  ;;  %v17131_v46 = vld [vmem:[#allocation45_spill] sm:$0xff] }
 0x48d   : > { %10078 = vmatprep.mubr.msk.bf16.mxu1 %vm12627_vm15, %v15670_v5  ;;  %v2503_v55 = vsel %vm2462_vm6, %v17122_v42, %v11206_v53  ;;  %v2795_v58 = vsel %vm2756_vm12, %v2746_v12, %v11196_v40  ;;  %v2796_v15 = vsel %vm2756_vm12, %v2747_v41, %v11197_v49  ;;  %v11212_v52 = vunpack.i.h.bf16 %v17120_v10  ;;  %v17133_v10 = vld [vmem:[#allocation48_spill] sm:$0xff] }
 0x48e   : > { %v2504_v33 = vsel %vm2462_vm6, %v17123_v4, %v11207_v39  ;;  %v11216_v20 = vunpack.i.l.bf16 %v17124_v50  ;;  %v2552_v7 = vsel %vm2511_vm7, %v2503_v55, %v11211_v1  ;;  %v11217_v13 = vunpack.i.h.bf16 %v17124_v50 }
 0x48f   : > { %v2844_v18 = vsel %vm2805_vm14, %v2795_v58, %v11201_v3  ;;  %v2845_v14 = vsel %vm2805_vm14, %v2796_v15, %v11202_v29  ;;  %v11221_v36 = vunpack.i.l.bf16 %v17125_v57  ;;  %v2553_v45 = vsel %vm2511_vm7, %v2504_v33, %v11212_v52  ;;  %v17134_v29 = vld [vmem:[#allocation51_spill] sm:$0xff] }
 0x490   : > { %v15702_v27 = vpack.c.bf16 %v2845_v14, %v2844_v18  ;;  %v2601_v21 = vsel %vm2560_vm8, %v2552_v7, %v11216_v20  ;;  %v11222_v48 = vunpack.i.h.bf16 %v17125_v57  ;;  %v11247_v0 = vunpack.i.h.bf16 %v17126_v28  ;;  %v17135_v33 = vld [vmem:[#allocation47_spill] sm:$0xff] }
 0x491   : > { %v11246_v47 = vunpack.i.l.bf16 %v17126_v28  ;;  %v2602_v2 = vsel %vm2560_vm8, %v2553_v45, %v11217_v13  ;;  %v2650_v8 = vsel %vm2609_vm9, %v2601_v21, %v11221_v36  ;;  %v11227_v37 = vunpack.i.h.bf16 %v17127_v56  ;;  %v17136_v13 = vld [vmem:[#allocation54_spill] sm:$0xff] }
 0x492   : > { %v11226_v24 = vunpack.i.l.bf16 %v17127_v56  ;;  %v11252_v11 = vunpack.i.h.bf16 %v17128_v26  ;;  %v11251_v63 = vunpack.i.l.bf16 %v17128_v26  ;;  %v2651_v35 = vsel %vm2609_vm9, %v2602_v2, %v11222_v48  ;;  %v17137_v2 = vld [vmem:[#allocation53_spill] sm:$0xff] }
 0x493   : > { %v2506_v9 = vsel %vm2462_vm6, %v17129_v25, %v11247_v0  ;;  %v2505_v17 = vsel %vm2462_vm6, %v17130_v43, %v11246_v47  ;;  %v11232_v61 = vunpack.i.h.bf16 %v17131_v46  ;;  %v11231_v30 = vunpack.i.l.bf16 %v17131_v46 }
 0x494   : > { %10079 = vmatmul.mubr.msk.bf16.gmra.mrb[148].mxu1 %vm12627_vm15, %v15702_v27  ;;  %v11257_v53 = vunpack.i.h.bf16 %v17132_v6  ;;  %v11256_v34 = vunpack.i.l.bf16 %v17132_v6  ;;  %v2699_v40 = vsel %vm2658_vm10, %v2650_v8, %v11226_v24  ;;  %v2700_v12 = vsel %vm2658_vm10, %v2651_v35, %v11227_v37 }
 0x495   : > { %v2554_v41 = vsel %vm2511_vm7, %v2505_v17, %v11251_v63  ;;  %v2555_v39 = vsel %vm2511_vm7, %v2506_v9, %v11252_v11  ;;  %v11237_v1 = vunpack.i.h.bf16 %v17133_v10  ;;  %v11236_v16 = vunpack.i.l.bf16 %v17133_v10  ;;  %v17138_v63 = vld [vmem:[#allocation56_spill] sm:$0xff]  ;;  %v17141_v10 = vld [vmem:[#allocation57_spill] sm:$0xff] }
 0x496   : > { %v11262_v3 = vunpack.i.h.bf16 %v17134_v29  ;;  %v11261_v42 = vunpack.i.l.bf16 %v17134_v29  ;;  %v2748_v55 = vsel %vm2707_vm11, %v2699_v40, %v11231_v30  ;;  %v2749_v58 = vsel %vm2707_vm11, %v2700_v12, %v11232_v61  ;;  %v17139_v61 = vld [vmem:[#allocation55_spill] sm:$0xff]  ;;  %v17140_v40 = vld [vmem:[#allocation58_spill] sm:$0xff] }
 0x497   : > { %v2603_v15 = vsel %vm2560_vm8, %v2554_v41, %v11256_v34  ;;  %v2604_v52 = vsel %vm2560_vm8, %v2555_v39, %v11257_v53  ;;  %v11242_v50 = vunpack.i.h.bf16 %v17135_v33  ;;  %v11241_v7 = vunpack.i.l.bf16 %v17135_v33 }
 0x498   : > { %v11267_v18 = vunpack.i.h.bf16 %v17136_v13  ;;  %v11266_v14 = vunpack.i.l.bf16 %v17136_v13  ;;  %v2797_v45 = vsel %vm2756_vm12, %v2748_v55, %v11236_v16  ;;  %v2798_v21 = vsel %vm2756_vm12, %v2749_v58, %v11237_v1 }
 0x499   : > { %v2652_v48 = vsel %vm2609_vm9, %v2603_v15, %v11261_v42  ;;  %v2653_v28 = vsel %vm2609_vm9, %v2604_v52, %v11262_v3  ;;  %v11272_v8 = vunpack.i.h.bf16 %v17137_v2  ;;  %v2846_v24 = vsel %vm2805_vm14, %v2797_v45, %v11241_v7  ;;  %v17142_v42 = vld [vmem:[#allocation26_spill] sm:$0xff]  ;;  %v17143_v52 = vld [vmem:[#allocation28_spill] sm:$0xff] }
 0x49a   : > { %v2701_v56 = vsel %vm2658_vm10, %v2652_v48, %v11266_v14  ;;  %v2702_v37 = vsel %vm2658_vm10, %v2653_v28, %v11267_v18  ;;  %v2847_v26 = vsel %vm2805_vm14, %v2798_v21, %v11242_v50  ;;  %v11276_v35 = vunpack.i.l.bf16 %v17138_v63  ;;  %v17144_v50 = vld [vmem:[#allocation60_spill] sm:$0xff]  ;;  %v17145_v48 = vld [vmem:[#allocation59_spill] sm:$0xff] }
 0x49b   : > { %v15760_v11 = vpack.c.bf16 %v2847_v26, %v2846_v24  ;;  %v2751_v43 = vsel %vm2707_vm11, %v2702_v37, %v11272_v8  ;;  %v11281_v30 = vunpack.i.l.bf16 %v17139_v61  ;;  %v11286_v12 = vunpack.i.l.bf16 %v17140_v40  ;;  %v17146_v8 = vld [vmem:[#allocation66_spill] sm:$0xff] }
 0x49c   : > { %v11287_v39 = vunpack.i.h.bf16 %v17140_v40  ;;  %v11291_v1 = vunpack.i.l.bf16 %v17141_v10  ;;  %v11292_v3 = vunpack.i.h.bf16 %v17141_v10  ;;  %v11297_v18 = vunpack.i.h.bf16 %v17144_v50  ;;  %v17147_v24 = vld [vmem:[#allocation62_spill] sm:$0xff]  ;;  %v17151_v40 = vld [vmem:[#allocation61_spill] sm:$0xff] }
 0x49d   : > { %10082 = vmatprep.mubr.msk.bf16.mxu1 %vm12627_vm15, %v15760_v11  ;;  %v2507_v55 = vsel %vm2462_vm6, %v17142_v42, %v11286_v12  ;;  %v11301_v28 = vunpack.i.l.bf16 %v17145_v48  ;;  %v11306_v26 = vunpack.i.l.bf16 %v17147_v24  ;;  %v11312_v12 = vunpack.i.h.bf16 %v17151_v40 }
 0x49e   : > { %v2556_v14 = vsel %vm2511_vm7, %v2507_v55, %v11291_v1 }
 0x4d5   : > { %v9674_v38 = vpop.f32.mrb[80].mxu0 }
 0x4d6   : > { %v9675_v31 = vpop.f32.mrb[81].mxu0 }
 0x4d7   : > { %v15722_v59 = vadd.f32 %v9675_v31, %v9674_v38  ;;  %v9677_v54 = vpop.f32.mrb[82].mxu0  ;;  %v11271_v38 = vunpack.i.l.bf16 %v17137_v2  ;;  %v11277_v31 = vunpack.i.h.bf16 %v17138_v63 }
 0x4d8   : > { %v9678_v62 = vpop.f32.mrb[83].mxu0 }
 0x4d9   : > { %v15728_v49 = vadd.f32 %v9678_v62, %v9677_v54  ;;  %v2750_v9 = vsel %vm2707_vm11, %v2701_v56, %v11271_v38  ;;  %v11282_v62 = vunpack.i.h.bf16 %v17139_v61  ;;  %v2800_v34 = vsel %vm2756_vm12, %v2751_v43, %v11277_v31  ;;  %v17149_v61 = vld [vmem:[#allocation30_spill] sm:$0xff] }
 0x4da   : > { %v2799_v53 = vsel %vm2756_vm12, %v2750_v9, %v11276_v35  ;;  %v11327_v38 = vunpack.i.h.bf16 %v17146_v8  ;;  %v11326_v56 = vunpack.i.l.bf16 %v17146_v8  ;;  %v11307_v31 = vunpack.i.h.bf16 %v17147_v24  ;;  %v8905_v8 = vld [vmem:[%s16825_s1 + $0x90] sm:$0xff] }
 0x4db   : > { %v2848_v16 = vsel %vm2805_vm14, %v2799_v53, %v11281_v30  ;;  %v2849_v29 = vsel %vm2805_vm14, %v2800_v34, %v11282_v62  ;;  %v17150_v30 = vld [vmem:[#allocation29_spill] sm:$0xff] }
 0x4dc   : > { %v15785_v15 = vpack.c.bf16 %v2849_v29, %v2848_v16  ;;  %v2510_v62 = vsel %vm2462_vm6, %v17149_v61, %v11327_v38  ;;  %v17152_v16 = vld [vmem:[#allocation68_spill] sm:$0xff] }
 0x4dd   : > { %v9680_v4 = vpop.f32.mrb[84].mxu0  ;;  %v11337_v29 = vunpack.i.h.bf16 %v17152_v16  ;;  %v8906_v38 = vld [vmem:[%s16825_s1 + $0x98] sm:$0xff] }
 0x4de   : > { %v9681_v20 = vpop.f32.mrb[85].mxu0  ;;  %10083 = vmatmul.mubr.msk.bf16.gmra.mrb[152].mxu1 %vm12627_vm15, %v15785_v15 }
 0x4df   : > { %v15746_v57 = vadd.f32 %v9681_v20, %v9680_v4  ;;  %v9683_v36 = vpop.f32.mrb[86].mxu0  ;;  %v2508_v4 = vsel %vm2462_vm6, %v17143_v52, %v11287_v39  ;;  %v11296_v20 = vunpack.i.l.bf16 %v17144_v50  ;;  %v11311_v39 = vunpack.i.l.bf16 %v17151_v40  ;;  %v8903_v50 = vld [vmem:[%s16825_s1 + $0x80] sm:$0xff] }
 0x4e0   : > { %v9684_v0 = vpop.f32.mrb[87].mxu0  ;;  %v2557_v45 = vsel %vm2511_vm7, %v2508_v4, %v11292_v3  ;;  %v11336_v3 = vunpack.i.l.bf16 %v17152_v16  ;;  %v17153_v4 = vld [vmem:[#allocation64_spill] sm:$0xff]  ;;  %6545 = vperm.xlu1 %11364, %v8903_v50  }
 0x4e1   : > { %v15752_v47 = vadd.f32 %v9684_v0, %v9683_v36  ;;  %v11302_v0 = vunpack.i.h.bf16 %v17145_v48  ;;  %v2605_v2 = vsel %vm2560_vm8, %v2556_v14, %v11296_v20  ;;  %v2606_v37 = vsel %vm2560_vm8, %v2557_v45, %v11297_v18  ;;  %v8904_v20 = vld [vmem:[%s16825_s1 + $0x88] sm:$0xff]  ;;  %v17154_v14 = vld [vmem:[#allocation67_spill] sm:$0xff] }
 0x4e2   : > { %v2654_v35 = vsel %vm2609_vm9, %v2605_v2, %v11301_v28  ;;  %v11341_v45 = vunpack.i.l.bf16 %v17154_v14  ;;  %6550 = vperm.xlu0 %11363, %v8904_v20  }
 0x4e3   : > { %v2703_v1 = vsel %vm2658_vm10, %v2654_v35, %v11306_v26 }
 0x4e4   : > { %v2752_v18 = vsel %vm2707_vm11, %v2703_v1, %v11311_v39  ;;  %6555 = vperm.xlu1 %11364, %v8905_v8  }
 0x4e5   : > { %v9686_v25 = vpop.f32.mrb[88].mxu0 }
 0x4e6   : > { %v9687_v17 = vpop.f32.mrb[89].mxu0  ;;  %6560 = vperm.xlu0 %11363, %v8906_v38  }
 0x4e7   : > { %v15769_v54 = vadd.f32 %v9687_v17, %v9686_v25  ;;  %v9689_v46 = vpop.f32.mrb[90].mxu0  ;;  %v17148_v25 = vld [vmem:[#allocation65_spill] sm:$0xff] }
 0x4e8   : > { %v9690_v6 = vpop.f32.mrb[91].mxu0  ;;  %v11332_v9 = vunpack.i.h.bf16 %v17148_v25  ;;  %v11331_v43 = vunpack.i.l.bf16 %v17148_v25 }
 0x4e9   : > { %v15776_v41 = vadd.f32 %v9690_v6, %v9689_v46  ;;  %v2655_v46 = vsel %vm2609_vm9, %v2606_v37, %v11302_v0  ;;  %v2509_v6 = vsel %vm2462_vm6, %v17150_v30, %v11326_v56  ;;  %v17155_v56 = vld [vmem:[#allocation63_spill] sm:$0xff] }
 0x4ea   : > { %v2704_v55 = vsel %vm2658_vm10, %v2655_v46, %v11307_v31  ;;  %v2559_v52 = vsel %vm2511_vm7, %v2510_v62, %v11332_v9  ;;  %v11322_v37 = vunpack.i.h.bf16 %v17155_v56  ;;  %v11321_v24 = vunpack.i.l.bf16 %v17155_v56  ;;  %v17156_v31 = vld [vmem:[#allocation70_spill] sm:$0xff] }
 0x4eb   : > { %v2753_v48 = vsel %vm2707_vm11, %v2704_v55, %v11312_v12  ;;  %v2608_v0 = vsel %vm2560_vm8, %v2559_v52, %v11337_v29  ;;  %v11347_v35 = vunpack.i.h.bf16 %v17156_v31  ;;  %v11346_v25 = vunpack.i.l.bf16 %v17156_v31  ;;  %v17158_v29 = vld [vmem:[#allocation72_spill] sm:$0xff] }
 0x4ec   : > { %v11356_v55 = vunpack.i.l.bf16 %v17158_v29  ;;  %v5368_v31 = vld [vmem:[%s16829_s5] sm:$0x7] }
 0x4ed   : > { %v9692_v58 = vpop.f32.mrb[92].mxu0 }
 0x4ee   : > { %v9693_v33 = vpop.f32.mrb[93].mxu0 }
 0x4ef   : > { %v15790_v7 = vadd.f32 %v9693_v33, %v9692_v58  ;;  %v9695_v13 = vpop.f32.mrb[94].mxu0  ;;  %v2558_v58 = vsel %vm2511_vm7, %v2509_v6, %v11331_v43  ;;  %v11316_v33 = vunpack.i.l.bf16 %v17153_v4  ;;  %v17157_v6 = vld [vmem:[#allocation69_spill] sm:$0xff] }
 0x4f0   : > { %v9696_v36 = vpop.f32.mrb[95].mxu0  ;;  %v2607_v28 = vsel %vm2560_vm8, %v2558_v58, %v11336_v3  ;;  %v11351_v40 = vunpack.i.l.bf16 %v17157_v6  ;;  %v11357_v3 = vunpack.i.h.bf16 %v17158_v29  ;;  %v8913_v29 = vld [vmem:[%s16825_s1 + $0xd0] sm:$0xff] }
 0x4f1   : > { %v15798_v21 = vadd.f32 %v9696_v36, %v9695_v13  ;;  %v11317_v13 = vunpack.i.h.bf16 %v17153_v4  ;;  %v11342_v36 = vunpack.i.h.bf16 %v17154_v14  ;;  %v2656_v46 = vsel %vm2609_vm9, %v2607_v28, %v11341_v45 }
 0x4f2   : > { %v2705_v12 = vsel %vm2658_vm10, %v2656_v46, %v11346_v25  ;;  %v17160_v46 = vld [vmem:[#allocation9_spill] sm:$0xff] }
 0x4f3   : > { %v2657_v61 = vsel %vm2609_vm9, %v2608_v0, %v11342_v36  ;;  %v2754_v52 = vsel %vm2707_vm11, %v2705_v12, %v11351_v40  ;;  %v8907_v0 = vld [vmem:[%s16825_s1 + $0xa0] sm:$0xff]  ;;  %v8912_v40 = vld [vmem:[%s16825_s1 + $0xc8] sm:$0xff] }
 0x4f4   : > { %v2706_v39 = vsel %vm2658_vm10, %v2657_v61, %v11347_v35  ;;  %v2803_v45 = vsel %vm2756_vm12, %v2754_v52, %v11356_v55  ;;  %6565 = vperm.xlu1 %11364, %v8907_v0   ;;  %v15910_v61 = vrot.slane %v5368_v31, %v17160_v46 }
 0x4f5   : > { %v9698_v63 = vpop.f32.mrb[96].mxu0 }
 0x4f6   : > { %v9699_v17 = vpop.f32.mrb[97].mxu0  ;;  %v6038_v12 = vadd.f32 %v15746_v57, %v15910_v61 }
 0x4f7   : > { %v15816_v53 = vadd.f32 %v9699_v17, %v9698_v63  ;;  %v9701_v34 = vpop.f32.mrb[98].mxu0  ;;  %v2801_v63 = vsel %vm2756_vm12, %v2752_v18, %v11316_v33  ;;  %v2802_v17 = vsel %vm2756_vm12, %v2753_v48, %v11317_v13  ;;  %v17159_v13 = vld [vmem:[#allocation71_spill] sm:$0xff] }
 0x4f8   : > { %v9702_v10 = vpop.f32.mrb[99].mxu0  ;;  %v2851_v1 = vsel %vm2805_vm14, %v2802_v17, %v11322_v37  ;;  %v11362_v18 = vunpack.i.h.bf16 %v17159_v13  ;;  %v11361_v14 = vunpack.i.l.bf16 %v17159_v13  ;;  %v8909_v37 = vld [vmem:[%s16825_s1 + $0xb0] sm:$0xff] }
 0x4f9   : > { %v15823_v42 = vadd.f32 %v9702_v10, %v9701_v34  ;;  %v11352_v34 = vunpack.i.h.bf16 %v17157_v6  ;;  %v2850_v10 = vsel %vm2805_vm14, %v2801_v63, %v11321_v24  ;;  %6575 = vperm.xlu1 %11364, %v8909_v37   ;;  %v15916_v6 = vrot.slane %v5368_v31, %v12949_v23 }
 0x4fa   : > { %v15866_v16 = vpack.c.bf16 %v2851_v1, %v2850_v10  ;;  %v2852_v8 = vsel %vm2805_vm14, %v2803_v45, %v11361_v14  ;;  %v6030_v1 = vadd.f32 %v15722_v59, %v15910_v61 }
 0x4fb   : > { %v2755_v4 = vsel %vm2707_vm11, %v2706_v39, %v11352_v34  ;;  %v8911_v34 = vld [vmem:[%s16825_s1 + $0xc0] sm:$0xff] }
 0x4fc   : > { %10086 = vmatprep.mubr.msk.bf16.mxu1 %vm12627_vm15, %v15866_v16  ;;  %v2804_v48 = vsel %vm2756_vm12, %v2755_v4, %v11357_v3  ;;  %v8914_v3 = vld [vmem:[%s16825_s1 + $0xd8] sm:$0xff]  ;;  %v6041_v4 = vadd.f32 %v15752_v47, %v15910_v61 }
 0x4fd   : > { %v9704_v2 = vpop.f32.mrb[100].mxu0  ;;  %v2853_v38 = vsel %vm2805_vm14, %v2804_v48, %v11362_v18  ;;  %6585 = vperm.xlu1 %11364, %v8911_v34   ;;  %v6033_v18 = vadd.f32 %v15728_v49, %v15910_v61  ;;  %v9056_v49 = vld [vmem:[%s16825_s1 + $0x100] sm:$0xff] }
 0x4fe   : > { %v9705_v26 = vpop.f32.mrb[101].mxu0  ;;  %v15894_v24 = vpack.c.bf16 %v2853_v38, %v2852_v8 }
 0x4ff   : > { %v15853_v9 = vadd.f32 %v9705_v26, %v9704_v2  ;;  %v9707_v43 = vpop.f32.mrb[102].mxu0  ;;  %v8908_v2 = vld [vmem:[%s16825_s1 + $0xa8] sm:$0xff]  ;;  %v8910_v26 = vld [vmem:[%s16825_s1 + $0xb8] sm:$0xff] }
 0x500   : > { %v9708_v62 = vpop.f32.mrb[103].mxu0  ;;  %6570 = vperm.xlu0 %11363, %v8908_v2   ;;  %10087 = vmatmul.mubr.msk.bf16.gmra.mrb[156].mxu1 %vm12627_vm15, %v15894_v24 }
 0x501   : > { %v15858_v30 = vadd.f32 %v9708_v62, %v9707_v43  ;;  %v15913_v62 = vrot.slane %v5368_v31, %v12943_v44  ;;  %6595 = vperm.xlu1 %11364, %v8913_v29   ;;  %v6054_v31 = vadd.f32 %v15790_v7, %v15910_v61 }
 0x504   : > { %6580 = vperm.xlu0 %11363, %v8910_v26  }
 0x505   : > { %v9710_v58 = vpop.f32.mrb[104].mxu0  ;;  %8402 = vperm.xlu1 %11364, %v9056_v49   ;;  %v6070_v49 = vadd.f32 %v15853_v9, %v15910_v61 }
 0x506   : > { %v9711_v33 = vpop.f32.mrb[105].mxu0 }
 0x507   : > { %v15875_v50 = vadd.f32 %v9711_v33, %v9710_v58  ;;  %v9713_v20 = vpop.f32.mrb[106].mxu0 }
 0x508   : > { %v9714_v36 = vpop.f32.mrb[107].mxu0  ;;  %6590 = vperm.xlu0 %11363, %v8912_v40  }
 0x509   : > { %v15881_v28 = vadd.f32 %v9714_v36, %v9713_v20 }
 0x50c   : > { %6600 = vperm.xlu0 %11363, %v8914_v3  }
 0x50d   : > { %v9716_v56 = vpop.f32.mrb[108].mxu0 }
 0x50e   : > { %v9717_v63 = vpop.f32.mrb[109].mxu0 }
 0x50f   : > { %v15902_v35 = vadd.f32 %v9717_v63, %v9716_v56  ;;  %v9719_v25 = vpop.f32.mrb[110].mxu0  ;;  %v9057_v63 = vld [vmem:[%s16825_s1 + $0x108] sm:$0xff] }
 0x510   : > { %v9720_v43 = vpop.f32.mrb[111].mxu0  ;;  %8407 = vperm.xlu0 %11363, %v9057_v63  }
 0x511   : > { %v15907_v17 = vadd.f32 %v9720_v43, %v9719_v25 }
 0x515   : > { %v5916_v39 = vpop.f32.mrb[112].mxu1  ;;  %v10012_v10 = vpop.f32.mrb[112].mxu0 }
 0x516   : > { %v10186_v55 = vadd.f32 %v5916_v39, %v15913_v62  ;;  %v15935_v58 = vadd.f32 %v10012_v10, %v6038_v12  ;;  %v5918_v57 = vpop.f32.mrb[113].mxu1  ;;  %v6126_v52 = vpop.f32.mrb[113].mxu0  ;;  %v6046_v39 = vadd.f32 %v15769_v54, %v15910_v61  ;;  %v9058_v10 = vld [vmem:[%s16825_s1 + $0x110] sm:$0xff] }
 0x517   : > { %v10187_v33 = vadd.f32 %v5918_v57, %v15916_v6  ;;  %v6127_v59 = vadd.f32 %v6126_v52, %v6030_v1  ;;  %v5920_v20 = vpop.f32.mrb[114].mxu1  ;;  %v10013_v13 = vpop.f32.mrb[114].mxu0  ;;  %v9059_v1 = vld [vmem:[%s16825_s1 + $0x118] sm:$0xff]  ;;  %v6057_v57 = vadd.f32 %v15798_v21, %v15910_v61  ;;  %8412 = vperm.xlu1 %11364, %v9058_v10  }
 0x518   : > { %v6189_v14 = vmax.f32 %v10186_v55, 0.0  ;;  %v10188_v36 = vadd.f32 %v5920_v20, %v15913_v62  ;;  %v15943_v45 = vadd.f32 %v10013_v13, %v6041_v4  ;;  %v5922_v48 = vpop.f32.mrb[115].mxu1  ;;  %v6129_v0 = vpop.f32.mrb[115].mxu0  ;;  %v6049_v20 = vadd.f32 %v15776_v41, %v15910_v61  ;;  %8417 = vperm.xlu0 %11363, %v9059_v1   ;;  %v9063_v1 = vld [vmem:[%s16825_s1 + $0x138] sm:$0xff] }
 0x519   : > { %v6190_v2 = vmax.f32 %v10187_v33, 0.0  ;;  %v10189_v47 = vadd.f32 %v5922_v48, %v15916_v6  ;;  %v6130_v8 = vadd.f32 %v6129_v0, %v6033_v18  ;;  %v6191_v37 = vmax.f32 %v6127_v59, 0.0 }
 0x51a   : > { %v6192_v38 = vmax.f32 %v10188_v36, 0.0  ;;  %v6200_v63 = vmax.f32 %v15943_v45, 0.0  ;;  %v6073_v45 = vadd.f32 %v15858_v30, %v15910_v61  ;;  %v6065_v30 = vadd.f32 %v15823_v42, %v15910_v61 }
 0x51b   : > { %v6237_v56 = vmax.f32 %v6189_v14, %v6190_v2  ;;  %v6193_v26 = vmax.f32 %v10189_v47, 0.0  ;;  %v6194_v34 = vmax.f32 %v6130_v8, 0.0  ;;  %v9060_v47 = vld [vmem:[%s16825_s1 + $0x120] sm:$0xff] }
 0x51c   : > { %8422 = vperm.xlu1 %11364, %v9060_v47  }
 0x51d   : > { %v6253_v25 = vmax.f32 %v6237_v56, %v6191_v37  ;;  %v6238_v43 = vmax.f32 %v6192_v38, %v6193_v26  ;;  %v5926_v40 = vpop.f32.mrb[116].mxu1  ;;  %v10016_v12 = vpop.f32.mrb[116].mxu0  ;;  %v9061_v38 = vld [vmem:[%s16825_s1 + $0x128] sm:$0xff]  ;;  %v6197_v56 = vmax.f32 %v15935_v58, 0.0  ;;  %v9062_v58 = vld [vmem:[%s16825_s1 + $0x130] sm:$0xff] }
 0x51e   : > { %v10190_v7 = vadd.f32 %v5926_v40, %v15913_v62  ;;  %v15963_v29 = vadd.f32 %v10016_v12, %v6054_v31  ;;  %v5928_v3 = vpop.f32.mrb[117].mxu1  ;;  %v6142_v55 = vpop.f32.mrb[117].mxu0  ;;  %8427 = vperm.xlu0 %11363, %v9061_v38  }
 0x51f   : > { %v6254_v52 = vmax.f32 %v6238_v43, %v6194_v34  ;;  %v10191_v54 = vadd.f32 %v5928_v3, %v15916_v6  ;;  %v15968_v4 = vadd.f32 %v6142_v55, %v6046_v39  ;;  %v5930_v33 = vpop.f32.mrb[118].mxu1  ;;  %v10017_v59 = vpop.f32.mrb[118].mxu0 }
 0x520   : > { %v6195_v13 = vmax.f32 %v10190_v7, 0.0  ;;  %v10192_v18 = vadd.f32 %v5930_v33, %v15913_v62  ;;  %v15973_v14 = vadd.f32 %v10017_v59, %v6057_v57  ;;  %v5932_v36 = vpop.f32.mrb[119].mxu1  ;;  %v6145_v48 = vpop.f32.mrb[119].mxu0  ;;  %8432 = vperm.xlu1 %11364, %v9062_v58  }
 0x521   : > { %v6196_v21 = vmax.f32 %v10191_v54, 0.0  ;;  %v10193_v0 = vadd.f32 %v5932_v36, %v15916_v6  ;;  %v15976_v2 = vadd.f32 %v6145_v48, %v6049_v20  ;;  %v6269_v41 = vpack.c.bf16 %v6254_v52, %v6253_v25 }
 0x522   : > { %v6198_v8 = vmax.f32 %v10192_v18, 0.0  ;;  %v6062_v25 = vadd.f32 %v15816_v53, %v15910_v61  ;;  %8437 = vperm.xlu0 %11363, %v9063_v1  }
 0x523   : > { %v6239_v37 = vmax.f32 %v6195_v13, %v6196_v21  ;;  %v6199_v26 = vmax.f32 %v10193_v0, 0.0  ;;  %10042 = vmatprep.mubr.bf16.mxu0 %v6269_v41  ;;  %v11645_v13 = vld [vmem:[%s16826_s2] ss:$12 sps:$4 sm:$0xff]   ;;  %v11650_v21 = vld [vmem:[%s16826_s2 + $0x1c] ss:$12 sps:$4 sm:$0xff]   ;;  %v6203_v41 = vmax.f32 %v15968_v4, 0.0  ;;  %v6078_v4 = vadd.f32 %v15875_v50, %v15910_v61 }
 0x524   : > { %v8915_v0 = vld [vmem:[%s16825_s1 + $0xe0] sm:$0xff]  ;;  %v8918_v50 = vld [vmem:[%s16825_s1 + $0xf8] sm:$0xff] }
 0x525   : > { %v6255_v31 = vmax.f32 %v6239_v37, %v6197_v56  ;;  %v6240_v43 = vmax.f32 %v6198_v8, %v6199_v26  ;;  %v5936_v34 = vpop.f32.mrb[120].mxu1  ;;  %v10020_v40 = vpop.f32.mrb[120].mxu0  ;;  %v8916_v8 = vld [vmem:[%s16825_s1 + $0xe8] sm:$0xff]  ;;  %v6086_v37 = vadd.f32 %v15902_v35, %v15910_v61  ;;  %v11648_v26 = vld [vmem:[%s16826_s2 + $0x18] ss:$12 sps:$4 sm:$0xff]   ;;  %6605 = vperm.xlu1 %11364, %v8915_v0  }
 0x526   : > { %v10194_v12 = vadd.f32 %v5936_v34, %v15913_v62  ;;  %v15994_v39 = vadd.f32 %v10020_v40, %v6070_v49  ;;  %v5938_v9 = vpop.f32.mrb[121].mxu1  ;;  %v6158_v10 = vpop.f32.mrb[121].mxu0  ;;  %v6206_v49 = vmax.f32 %v15976_v2, 0.0  ;;  %v11653_v35 = vld [vmem:[%s16826_s2 + $0x34] ss:$12 sps:$4 sm:$0xff]   ;;  %6610 = vperm.xlu0 %11363, %v8916_v8   ;;  %v6212_v8 = vmax.f32 %v15973_v14, 0.0 }
 0x527   : > { %v6256_v7 = vmax.f32 %v6240_v43, %v6200_v63  ;;  %v10195_v53 = vadd.f32 %v5938_v9, %v15916_v6  ;;  %v16002_v3 = vadd.f32 %v6158_v10, %v6062_v25  ;;  %v5940_v55 = vpop.f32.mrb[122].mxu1  ;;  %v10021_v57 = vpop.f32.mrb[122].mxu0  ;;  %v8917_v40 = vld [vmem:[%s16825_s1 + $0xf0] sm:$0xff]  ;;  %v6089_v9 = vadd.f32 %v15907_v17, %v15910_v61  ;;  %v11657_v14 = vld [vmem:[%s16826_s2 + $0x60] ss:$12 sps:$4 sm:$0xff]  }
 0x528   : > { %v6201_v52 = vmax.f32 %v10194_v12, 0.0  ;;  %v10196_v54 = vadd.f32 %v5940_v55, %v15913_v62  ;;  %v16005_v33 = vadd.f32 %v10021_v57, %v6073_v45  ;;  %v5942_v59 = vpop.f32.mrb[123].mxu1  ;;  %v6161_v20 = vpop.f32.mrb[123].mxu0  ;;  %v6081_v55 = vadd.f32 %v15881_v28, %v15910_v61  ;;  %v11656_v28 = vld [vmem:[%s16826_s2 + $0x4c] ss:$12 sps:$4 sm:$0xff]  }
 0x529   : > { %v6270_v18 = vpack.c.bf16 %v6256_v7, %v6255_v31  ;;  %v6202_v36 = vmax.f32 %v10195_v53, 0.0  ;;  %v10197_v48 = vadd.f32 %v5942_v59, %v15916_v6  ;;  %v16019_v47 = vadd.f32 %v6161_v20, %v6065_v30  ;;  %v11651_v30 = vld [vmem:[%s16826_s2 + $0x30] ss:$12 sps:$4 sm:$0xff]   ;;  %6615 = vperm.xlu1 %11364, %v8917_v40  }
 0x52a   : > { %v6204_v42 = vmax.f32 %v10196_v54, 0.0  ;;  %6620 = vperm.xlu0 %11363, %v8918_v50  }
 0x52b   : > { %v6241_v38 = vmax.f32 %v6201_v52, %v6202_v36  ;;  %v6205_v56 = vmax.f32 %v10197_v48, 0.0  ;;  %10043 = vmatmul.mubr.bf16.vlgmr.msra.gmra.mrb[128].mxu0 %v6270_v18  ;;  %v6209_v48 = vmax.f32 %v15963_v29, 0.0 }
 0x52c   : > { %6848 = vmatpush1.bf16.msra.mxu0 %v11645_v13 }
 0x52d   : > { %v6257_v63 = vmax.f32 %v6241_v38, %v6203_v41  ;;  %v6242_v31 = vmax.f32 %v6204_v42, %v6205_v56  ;;  %v5946_v43 = vpop.f32.mrb[124].mxu1  ;;  %v10024_v34 = vpop.f32.mrb[124].mxu0  ;;  %6849 = vmatprep.subr.bf16.mxu0 %v11650_v21  ;;  %v11654_v42 = vld [vmem:[%s16826_s2 + $0x48] ss:$12 sps:$4 sm:$0xff]  }
 0x52e   : > { %v10198_v25 = vadd.f32 %v5946_v43, %v15913_v62  ;;  %v16040_v2 = vadd.f32 %v10024_v34, %v6086_v37  ;;  %v5948_v58 = vpop.f32.mrb[125].mxu1  ;;  %v6174_v12 = vpop.f32.mrb[125].mxu0  ;;  %v11659_v37 = vld [vmem:[%s16826_s2 + $0x64] ss:$12 sps:$4 sm:$0xff]  }
 0x52f   : > { %v6258_v10 = vmax.f32 %v6242_v31, %v6206_v49  ;;  %v10199_v45 = vadd.f32 %v5948_v58, %v15916_v6  ;;  %v16048_v1 = vadd.f32 %v6174_v12, %v6078_v4  ;;  %v5950_v7 = vpop.f32.mrb[126].mxu1  ;;  %v10025_v53 = vpop.f32.mrb[126].mxu0  ;;  %v11662_v58 = vld [vmem:[%s16826_s2 + $0x7c] ss:$12 sps:$4 sm:$0xff]  }
 0x530   : > { %v6207_v57 = vmax.f32 %v10198_v25, 0.0  ;;  %v10200_v52 = vadd.f32 %v5950_v7, %v15913_v62  ;;  %v16053_v54 = vadd.f32 %v10025_v53, %v6089_v9  ;;  %v5952_v17 = vpop.f32.mrb[127].mxu1  ;;  %v6177_v59 = vpop.f32.mrb[127].mxu0  ;;  %6850 = vmatpush1.bf16.msra.mxu0 %v11648_v26  ;;  %v6215_v9 = vmax.f32 %v16002_v3, 0.0 }
 0x531   : > { %v6208_v20 = vmax.f32 %v10199_v45, 0.0  ;;  %v10201_v13 = vadd.f32 %v5952_v17, %v15916_v6  ;;  %v16059_v18 = vadd.f32 %v6177_v59, %v6081_v55  ;;  %6851 = vmatprep.subr.bf16.mxu0 %v11653_v35  ;;  %v6271_v36 = vpack.c.bf16 %v6258_v10, %v6257_v63  ;;  %v11660_v45 = vld [vmem:[%s16826_s2 + $0x78] ss:$12 sps:$4 sm:$0xff]  }
 0x532   : > { %v6210_v61 = vmax.f32 %v10200_v52, 0.0  ;;  %v6218_v7 = vmax.f32 %v16019_v47, 0.0  ;;  %v11665_v52 = vld [vmem:[%s16826_s2 + $0x94] ss:$12 sps:$4 sm:$0xff]   ;;  %v11663_v47 = vld [vmem:[%s16826_s2 + $0x90] ss:$12 sps:$4 sm:$0xff]  }
 0x533   : > { %v6243_v21 = vmax.f32 %v6207_v57, %v6208_v20  ;;  %v6211_v0 = vmax.f32 %v10201_v13, 0.0  ;;  %10046 = vmatprep.mubr.bf16.mxu0 %v6271_v36 }
 0x534   : > { %6852 = vmatpush1.bf16.msra.mxu0 %v11651_v30 }
 0x535   : > { %v6259_v41 = vmax.f32 %v6243_v21, %v6209_v48  ;;  %v6244_v38 = vmax.f32 %v6210_v61, %v6211_v0  ;;  %v5956_v56 = vpop.f32.mrb[128].mxu1  ;;  %6853 = vmatprep.subr.bf16.mxu0 %v11656_v28  ;;  %v11668_v0 = vld [vmem:[%s16826_s2 + $0xac] ss:$12 sps:$4 sm:$0xff]  }
 0x536   : > { %v10202_v29 = vadd.f32 %v5956_v56, %v15913_v62  ;;  %v5958_v26 = vpop.f32.mrb[129].mxu1  ;;  %v11666_v56 = vld [vmem:[%s16826_s2 + $0xa8] ss:$12 sps:$4 sm:$0xff]  }
 0x537   : > { %v6260_v49 = vmax.f32 %v6244_v38, %v6212_v8  ;;  %v10203_v63 = vadd.f32 %v5958_v26, %v15916_v6  ;;  %v5960_v31 = vpop.f32.mrb[130].mxu1  ;;  %v6221_v8 = vmax.f32 %v15994_v39, 0.0 }
 0x538   : > { %v6213_v43 = vmax.f32 %v10202_v29, 0.0  ;;  %v10204_v34 = vadd.f32 %v5960_v31, %v15913_v62  ;;  %v5962_v4 = vpop.f32.mrb[131].mxu1  ;;  %6854 = vmatpush1.bf16.msra.mxu0 %v11654_v42 }
 0x539   : > { %v6214_v35 = vmax.f32 %v10203_v63, 0.0  ;;  %v10205_v40 = vadd.f32 %v5962_v4, %v15916_v6  ;;  %v6272_v25 = vpack.c.bf16 %v6260_v49, %v6259_v41  ;;  %6855 = vmatprep.subr.bf16.mxu0 %v11659_v37  ;;  %v6224_v37 = vmax.f32 %v16005_v33, 0.0 }
 0x53a   : > { %v6216_v12 = vmax.f32 %v10204_v34, 0.0 }
 0x53b   : > { %v6245_v50 = vmax.f32 %v6213_v43, %v6214_v35  ;;  %v6217_v10 = vmax.f32 %v10205_v40, 0.0  ;;  %10047 = vmatmul.mubr.bf16.gmra.mrb[132].mxu0 %v6272_v25 }
 0x53c   : > { %6856 = vmatpush1.bf16.msra.mxu0 %v11657_v14 }
 0x53d   : > { %v6261_v53 = vmax.f32 %v6245_v50, %v6215_v9  ;;  %v6246_v55 = vmax.f32 %v6216_v12, %v6217_v10  ;;  %v5966_v57 = vpop.f32.mrb[132].mxu1  ;;  %6857 = vmatprep.subr.bf16.mxu0 %v11662_v58  ;;  %v6227_v12 = vmax.f32 %v16048_v1, 0.0  ;;  %v6230_v10 = vmax.f32 %v16059_v18, 0.0 }
 0x53e   : > { %v10206_v3 = vadd.f32 %v5966_v57, %v15913_v62  ;;  %v5968_v17 = vpop.f32.mrb[133].mxu1  ;;  %v6233_v18 = vmax.f32 %v16040_v2, 0.0 }
 0x53f   : > { %v6262_v59 = vmax.f32 %v6246_v55, %v6218_v7  ;;  %v10207_v30 = vadd.f32 %v5968_v17, %v15916_v6  ;;  %v5970_v20 = vpop.f32.mrb[134].mxu1 }
 0x540   : > { %v6219_v13 = vmax.f32 %v10206_v3, 0.0  ;;  %v10208_v28 = vadd.f32 %v5970_v20, %v15913_v62  ;;  %v5972_v61 = vpop.f32.mrb[135].mxu1  ;;  %6858 = vmatpush1.bf16.msra.mxu0 %v11660_v45 }
 0x541   : > { %v6220_v36 = vmax.f32 %v10207_v30, 0.0  ;;  %v10209_v48 = vadd.f32 %v5972_v61, %v15916_v6  ;;  %v6273_v21 = vpack.c.bf16 %v6262_v59, %v6261_v53  ;;  %6859 = vmatprep.subr.bf16.mxu0 %v11665_v52 }
 0x542   : > { %v6222_v42 = vmax.f32 %v10208_v28, 0.0 }
 0x543   : > { %v6247_v41 = vmax.f32 %v6219_v13, %v6220_v36  ;;  %v6223_v38 = vmax.f32 %v10209_v48, 0.0  ;;  %10050 = vmatprep.mubr.bf16.mxu0 %v6273_v21  ;;  %v6236_v48 = vmax.f32 %v16053_v54, 0.0  ;;  %v11677_v54 = vld [vmem:[%s16828_s4 + $0x34] ss:$12 sps:$4 sm:$0xff]  }
 0x544   : > { %6860 = vmatpush1.bf16.msra.mxu0 %v11663_v47 }
 0x545   : > { %v6263_v29 = vmax.f32 %v6247_v41, %v6221_v8  ;;  %v6248_v26 = vmax.f32 %v6222_v42, %v6223_v38  ;;  %v5976_v49 = vpop.f32.mrb[136].mxu1  ;;  %6861 = vmatprep.subr.bf16.mxu0 %v11668_v0  ;;  %v11675_v38 = vld [vmem:[%s16828_s4 + $0x30] ss:$12 sps:$4 sm:$0xff]  }
 0x546   : > { %v10210_v63 = vadd.f32 %v5976_v49, %v15913_v62  ;;  %v5978_v31 = vpop.f32.mrb[137].mxu1  ;;  %v11680_v49 = vld [vmem:[%s16828_s4 + $0x4c] ss:$12 sps:$4 sm:$0xff]  }
 0x547   : > { %v6264_v43 = vmax.f32 %v6248_v26, %v6224_v37  ;;  %v10211_v39 = vadd.f32 %v5978_v31, %v15916_v6  ;;  %v5980_v34 = vpop.f32.mrb[138].mxu1 }
 0x548   : > { %v6225_v4 = vmax.f32 %v10210_v63, 0.0  ;;  %v10212_v14 = vadd.f32 %v5980_v34, %v15913_v62  ;;  %v5982_v35 = vpop.f32.mrb[139].mxu1  ;;  %6862 = vmatpush1.bf16.msra.mxu0 %v11666_v56 }
 0x549   : > { %v6226_v40 = vmax.f32 %v10211_v39, 0.0  ;;  %v10213_v25 = vadd.f32 %v5982_v35, %v15916_v6  ;;  %v6274_v33 = vpack.c.bf16 %v6264_v43, %v6263_v29 }
 0x54a   : > { %v6228_v58 = vmax.f32 %v10212_v14, 0.0 }
 0x54b   : > { %v6249_v9 = vmax.f32 %v6225_v4, %v6226_v40  ;;  %v6229_v50 = vmax.f32 %v10213_v25, 0.0  ;;  %10051 = vmatmul.mubr.bf16.gmra.mrb[136].mxu0 %v6274_v33  ;;  %v11678_v4 = vld [vmem:[%s16828_s4 + $0x48] ss:$12 sps:$4 sm:$0xff]   ;;  %v11681_v40 = vld [vmem:[%s16828_s4 + $0x60] ss:$12 sps:$4 sm:$0xff]  }
 0x54c   : > { %v11686_v25 = vld [vmem:[%s16828_s4 + $0x7c] ss:$12 sps:$4 sm:$0xff]   ;;  %v11684_v33 = vld [vmem:[%s16828_s4 + $0x78] ss:$12 sps:$4 sm:$0xff]  }
 0x54d   : > { %v6265_v45 = vmax.f32 %v6249_v9, %v6227_v12  ;;  %v6250_v7 = vmax.f32 %v6228_v58, %v6229_v50  ;;  %v5986_v53 = vpop.f32.mrb[140].mxu1  ;;  %v11689_v58 = vld [vmem:[%s16828_s4 + $0x94] ss:$12 sps:$4 sm:$0xff]   ;;  %v11692_v12 = vld [vmem:[%s16828_s4 + $0xac] ss:$12 sps:$4 sm:$0xff]  }
 0x54e   : > { %v10214_v55 = vadd.f32 %v5986_v53, %v15913_v62  ;;  %v5988_v57 = vpop.f32.mrb[141].mxu1  ;;  %v11690_v9 = vld [vmem:[%s16828_s4 + $0xa8] ss:$12 sps:$4 sm:$0xff]   ;;  %v11695_v50 = vld [vmem:[%s16828_s4 + $0xc4] ss:$12 sps:$4 sm:$0xff]  }
 0x54f   : > { %v6266_v52 = vmax.f32 %v6250_v7, %v6230_v10  ;;  %v10215_v3 = vadd.f32 %v5988_v57, %v15916_v6  ;;  %v5990_v17 = vpop.f32.mrb[142].mxu1  ;;  %v11696_v10 = vld [vmem:[%s16828_s4 + $0xc8] ss:$12 sps:$4 sm:$0xff]   ;;  %v11701_v7 = vld [vmem:[%s16828_s4 + $0xe0] ss:$12 sps:$4 sm:$0xff]  }
 0x550   : > { %v6231_v59 = vmax.f32 %v10214_v55, 0.0  ;;  %v10216_v30 = vadd.f32 %v5990_v17, %v15913_v62  ;;  %v5992_v20 = vpop.f32.mrb[143].mxu1  ;;  %v16153_v62 = vld [vmem:[%s16827_s3] sm:$0x7]  ;;  %9770 = vmatprep.subr.bf16.mxu1 %v11696_v10  ;;  %v11698_v53 = vld [vmem:[%s16828_s4 + $0xd8] ss:$12 sps:$4 sm:$0xff]  }
 0x551   : > { %v6232_v1 = vmax.f32 %v10215_v3, 0.0  ;;  %v10217_v13 = vadd.f32 %v5992_v20, %v15916_v6  ;;  %v6275_v28 = vpack.c.bf16 %v6266_v52, %v6265_v45  ;;  %v11700_v45 = vld [vmem:[%s16828_s4 + $0xdc] ss:$12 sps:$4 sm:$0xff]   ;;  %v11702_v55 = vld [vmem:[%s16828_s4 + $0x20] ss:$12 sps:$4 sm:$0xff]  }
 0x552   : > { %v6234_v61 = vmax.f32 %v10216_v30, 0.0  ;;  %v11705_v52 = vld [vmem:[%s16828_s4 + $0xf4] ss:$12 sps:$4 sm:$0xff]   ;;  %v11707_v30 = vld [vmem:[%s16828_s4 + $0x38] ss:$12 sps:$4 sm:$0xff]  }
 0x553   : > { %v6251_v47 = vmax.f32 %v6231_v59, %v6232_v1  ;;  %v6235_v36 = vmax.f32 %v10217_v13, 0.0  ;;  %10054 = vmatprep.mubr.bf16.mxu0 %v6275_v28  ;;  %v11706_v59 = vld [vmem:[%s16828_s4 + $0xf8] ss:$12 sps:$4 sm:$0xff]   ;;  %v11703_v13 = vld [vmem:[%s16828_s4 + $0xf0] ss:$12 sps:$4 sm:$0xff]  }
 0x555   : > { %v6267_v21 = vmax.f32 %v6251_v47, %v6233_v18  ;;  %v6252_v0 = vmax.f32 %v6234_v61, %v6235_v36  ;;  %v11710_v47 = vld [vmem:[%s16828_s4 + $0x10c] ss:$12 sps:$4 sm:$0xff]   ;;  %v11711_v36 = vld [vmem:[%s16828_s4 + $0x110] ss:$12 sps:$4 sm:$0xff]  }
 0x557   : > { %v6268_v42 = vmax.f32 %v6252_v0, %v6236_v48 }
 0x559   : > { %v6276_v8 = vpack.c.bf16 %v6268_v42, %v6267_v21 }
 0x55b   : > { %10055 = vmatmul.mubr.bf16.gmra.mrb[140].mxu0 %v6276_v8  ;;  %v11708_v8 = vld [vmem:[%s16828_s4 + $0x108] ss:$12 sps:$4 sm:$0xff]  }
 0x55c   : > { %6879 = vmatprep.mubr.bf16.mxu0 %v17047_v32 }
 0x55f   : > { %v10076_v6 = vpop.f32.mrb[144].mxu1 }
 0x560   : > { %v6994_v2 = vpop.f32.mrb[145].mxu1 }
 0x561   : > { %v10077_v41 = vpop.f32.mrb[146].mxu1 }
 0x562   : > { %v6997_v26 = vpop.f32.mrb[147].mxu1 }
 0x563   : > { %9484 = vmatmul.mubr.msk.bf16.vlgmr.msra.gmra.mrb[144].mxu0 %vm12627_vm15, %v15581_v19  ;;  %v11671_v19 = vld [vmem:[%s16828_s4 + $0x4] ss:$12 sps:$4 sm:$0xff]  }
 0x564   : > { %6889 = vmatprep.mubr.bf16.mxu0 %v17047_v32  ;;  %7626 = vmatprep.subr.bf16.mxu0 %v11671_v19 }
 0x567   : > { %v10080_v57 = vpop.f32.mrb[148].mxu1 }
 0x568   : > { %v7010_v17 = vpop.f32.mrb[149].mxu1 }
 0x569   : > { %v10081_v1 = vpop.f32.mrb[150].mxu1 }
 0x56a   : > { %v7013_v18 = vpop.f32.mrb[151].mxu1 }
 0x56b   : > { %9487 = vmatmul.mubr.msk.bf16.gmra.mrb[148].mxu0 %vm12627_vm15, %v15616_v22  ;;  %v11669_v22 = vld [vmem:[%s16828_s4] ss:$12 sps:$4 sm:$0xff]  }
 0x56c   : > { %6899 = vmatprep.mubr.bf16.mxu0 %v17047_v32  ;;  %7627 = vmatpush1.bf16.msra.mxu0 %v11669_v22  ;;  %v11712_v22 = vld [vmem:[%s16828_s4 + $0x50] ss:$12 sps:$4 sm:$0xff]  }
 0x573   : > { %9490 = vmatmul.mubr.msk.bf16.gmra.mrb[152].mxu0 %vm12627_vm15, %v15670_v5  ;;  %v11674_v5 = vld [vmem:[%s16828_s4 + $0x1c] ss:$12 sps:$4 sm:$0xff]  }
 0x574   : > { %6909 = vmatprep.mubr.bf16.mxu0 %v17047_v32  ;;  %7628 = vmatprep.subr.bf16.mxu0 %v11674_v5 }
 0x57b   : > { %9493 = vmatmul.mubr.msk.bf16.gmra.mrb[156].mxu0 %vm12627_vm15, %v15702_v27  ;;  %v11672_v27 = vld [vmem:[%s16828_s4 + $0x18] ss:$12 sps:$4 sm:$0xff]  }
 0x57c   : > { %6919 = vmatprep.mubr.bf16.mxu0 %v17047_v32  ;;  %7629 = vmatpush1.bf16.msra.mxu0 %v11672_v27  ;;  %v11715_v27 = vld [vmem:[%s16828_s4 + $0x124] ss:$12 sps:$4 sm:$0xff]  }
 0x57d   : > { %7630 = vmatprep.subr.bf16.mxu0 %v11677_v54  ;;  %v11717_v54 = vld [vmem:[%s16828_s4 + $0x68] ss:$12 sps:$4 sm:$0xff]  }
 0x580   : > { %7631 = vmatpush1.bf16.msra.mxu0 %v11675_v38  ;;  %v11721_v38 = vld [vmem:[%s16828_s4 + $0x140] ss:$12 sps:$4 sm:$0xff]  }
 0x581   : > { %7632 = vmatprep.subr.bf16.mxu0 %v11680_v49  ;;  %v11723_v49 = vld [vmem:[%s16828_s4 + $0x150] ss:$12 sps:$4 sm:$0xff]  }
 0x583   : > { %9496 = vmatmul.mubr.msk.bf16.gmra.mrb[160].mxu0 %vm12627_vm15, %v15760_v11  ;;  %v16157_v11 = vrot.slane %v16153_v62, %v17160_v46 }
 0x584   : > { %6929 = vmatprep.mubr.bf16.mxu0 %v17047_v32  ;;  %7633 = vmatpush1.bf16.msra.mxu0 %v11678_v4  ;;  %v11735_v4 = vld [vmem:[%s16828_s4 + $0x184] ss:$12 sps:$4 sm:$0xff]  }
 0x585   : > { %v7003_v56 = vadd.f32 %v10076_v6, %v16157_v11  ;;  %v6995_v37 = vadd.f32 %v6994_v2, %v16157_v11  ;;  %v7006_v29 = vadd.f32 %v10077_v41, %v16157_v11  ;;  %v6998_v63 = vadd.f32 %v6997_v26, %v16157_v11  ;;  %v11716_v6 = vld [vmem:[%s16828_s4 + $0x128] ss:$12 sps:$4 sm:$0xff]   ;;  %v11713_v2 = vld [vmem:[%s16828_s4 + $0x120] ss:$12 sps:$4 sm:$0xff]   ;;  %v11726_v26 = vld [vmem:[%s16828_s4 + $0x158] ss:$12 sps:$4 sm:$0xff]  }
 0x586   : > { %v7019_v3 = vadd.f32 %v10080_v57, %v16157_v11  ;;  %v7011_v20 = vadd.f32 %v7010_v17, %v16157_v11  ;;  %v7022_v61 = vadd.f32 %v10081_v1, %v16157_v11  ;;  %v7014_v21 = vadd.f32 %v7013_v18, %v16157_v11  ;;  %v11720_v41 = vld [vmem:[%s16828_s4 + $0x13c] ss:$12 sps:$4 sm:$0xff]   ;;  %v6546_v18 = vpop.permute.xlu1 %6545 }
 0x587   : > { %v7065_v31 = vmax.f32 %v7003_v56, 0.0  ;;  %v7059_v43 = vmax.f32 %v6995_v37, 0.0  ;;  %v7068_v39 = vmax.f32 %v7006_v29, 0.0  ;;  %v7062_v34 = vmax.f32 %v6998_v63, 0.0  ;;  %v11718_v56 = vld [vmem:[%s16828_s4 + $0x138] ss:$12 sps:$4 sm:$0xff]  }
 0x588   : > { %v7077_v28 = vmax.f32 %v7019_v3, 0.0  ;;  %v7071_v48 = vmax.f32 %v7011_v20, 0.0  ;;  %v7080_v0 = vmax.f32 %v7022_v61, 0.0  ;;  %v7074_v42 = vmax.f32 %v7014_v21, 0.0  ;;  %v11722_v37 = vld [vmem:[%s16828_s4 + $0x80] ss:$12 sps:$4 sm:$0xff]  }
 0x589   : > { %v16179_v14 = vpack.c.bf16 %v7068_v39, %v7065_v31  ;;  %v16181_v35 = vpack.c.bf16 %v7062_v34, %v7059_v43  ;;  %v11725_v29 = vld [vmem:[%s16828_s4 + $0x154] ss:$12 sps:$4 sm:$0xff]   ;;  %v11727_v63 = vld [vmem:[%s16828_s4 + $0x98] ss:$12 sps:$4 sm:$0xff]   ;;  %v11731_v43 = vld [vmem:[%s16828_s4 + $0x170] ss:$12 sps:$4 sm:$0xff]  }
 0x58a   : > { %v16263_v19 = vpack.c.bf16 %v7080_v0, %v7077_v28  ;;  %v16268_v5 = vpack.c.bf16 %v7074_v42, %v7071_v48  ;;  %v11730_v31 = vld [vmem:[%s16828_s4 + $0x16c] ss:$12 sps:$4 sm:$0xff]   ;;  %v11728_v39 = vld [vmem:[%s16828_s4 + $0x168] ss:$12 sps:$4 sm:$0xff]   ;;  %v11732_v34 = vld [vmem:[%s16828_s4 + $0xb0] ss:$12 sps:$4 sm:$0xff]   ;;  %v6551_v48 = vpop.permute.xlu0 %6550  ;;  %v6556_v21 = vpop.permute.xlu1 %6555 }
 0x58b   : > { %9499 = vmatmul.mubr.msk.bf16.gmra.mrb[164].mxu0 %vm12627_vm15, %v15785_v15  ;;  %v11683_v15 = vld [vmem:[%s16828_s4 + $0x64] ss:$12 sps:$4 sm:$0xff]  }
 0x58c   : > { %6939 = vmatprep.mubr.bf16.mxu0 %v17047_v32  ;;  %7634 = vmatprep.subr.bf16.mxu0 %v11683_v15 }
 0x58d   : > { %7635 = vmatpush1.bf16.msra.mxu0 %v11681_v40 }
 0x58e   : > { %7636 = vmatprep.subr.bf16.mxu0 %v11686_v25  ;;  %v6561_v0 = vpop.permute.xlu0 %6560  ;;  %v6566_v42 = vpop.permute.xlu1 %6565 }
 0x591   : > { %7637 = vmatpush1.bf16.msra.mxu0 %v11684_v33 }
 0x592   : > { %7638 = vmatprep.subr.bf16.mxu0 %v11689_v58 }
 0x593   : > { %9502 = vmatmul.mubr.msk.bf16.gmra.mrb[168].mxu0 %vm12627_vm15, %v15866_v16  ;;  %v11687_v16 = vld [vmem:[%s16828_s4 + $0x90] ss:$12 sps:$4 sm:$0xff]  }
 0x594   : > { %6949 = vmatprep.mubr.bf16.mxu0 %v17047_v32 }
 0x595   : > { %7639 = vmatpush1.bf16.msra.mxu0 %v11687_v16 }
 0x596   : > { %7640 = vmatprep.subr.bf16.mxu0 %v11692_v12 }
 0x599   : > { %7641 = vmatpush1.bf16.msra.mxu0 %v11690_v9 }
 0x59a   : > { %7642 = vmatprep.subr.bf16.mxu0 %v11695_v50 }
 0x59b   : > { %9505 = vmatmul.mubr.msk.bf16.gmra.mrb[172].mxu0 %vm12627_vm15, %v15894_v24  ;;  %v11697_v24 = vld [vmem:[%s16828_s4 + $0x8] ss:$12 sps:$4 sm:$0xff]  }
 0x59c   : > { %9771 = vmatpush3.bf16.msra.mxu1 %v11697_v24 }
 0x59d   : > { %7643 = vmatpush1.bf16.msra.mxu0 %v11693_v51  ;;  %9772 = vmatprep.subr.bf16.mxu1 %v11701_v7 }
 0x59e   : > { %7644 = vmatprep.subr.bf16.mxu0 %v11700_v45 }
 0x5a0   : > { %9773 = vmatpush3.bf16.msra.mxu1 %v11702_v55 }
 0x5a1   : > { %7645 = vmatpush1.bf16.msra.mxu0 %v11698_v53  ;;  %9774 = vmatprep.subr.bf16.mxu1 %v11706_v59  ;;  %v16332_v53 = vld [vmem:[%s16828_s4 + $0x188] ss:$12 sps:$4 sm:$0xff]  }
 0x5a2   : > { %7646 = vmatprep.subr.bf16.mxu0 %v11705_v52 }
 0x5a4   : > { %9775 = vmatpush3.bf16.msra.mxu1 %v11707_v30 }
 0x5a5   : > { %7647 = vmatpush1.bf16.msra.mxu0 %v11703_v13  ;;  %9776 = vmatprep.subr.bf16.mxu1 %v11711_v36 }
 0x5a6   : > { %7648 = vmatprep.subr.bf16.mxu0 %v11710_v47 }
 0x5a8   : > { %9777 = vmatpush3.bf16.msra.mxu1 %v11712_v22 }
 0x5a9   : > { %7649 = vmatpush1.bf16.msra.mxu0 %v11708_v8  ;;  %9778 = vmatprep.subr.bf16.mxu1 %v11716_v6  ;;  %v6571_v8 = vpop.permute.xlu0 %6570 }
 0x5aa   : > { %7650 = vmatprep.subr.bf16.mxu0 %v11715_v27  ;;  %v6576_v27 = vpop.permute.xlu1 %6575 }
 0x5ac   : > { %9779 = vmatpush3.bf16.msra.mxu1 %v11717_v54 }
 0x5ad   : > { %7651 = vmatpush1.bf16.msra.mxu0 %v11713_v2  ;;  %9780 = vmatprep.subr.bf16.mxu1 %v11721_v38  ;;  %v6581_v54 = vpop.permute.xlu0 %6580 }
 0x5ae   : > { %7652 = vmatprep.subr.bf16.mxu0 %v11720_v41 }
 0x5b0   : > { %9781 = vmatpush3.bf16.msra.mxu1 %v11722_v37 }
 0x5b1   : > { %7653 = vmatpush1.bf16.msra.mxu0 %v11718_v56  ;;  %9782 = vmatprep.subr.bf16.mxu1 %v11726_v26  ;;  %v10084_v15 = vpop.f32.mrb[152].mxu1 }
 0x5b2   : > { %7654 = vmatprep.subr.bf16.mxu0 %v11725_v29  ;;  %v7035_v40 = vadd.f32 %v10084_v15, %v16157_v11  ;;  %v7026_v25 = vpop.f32.mrb[153].mxu1 }
 0x5b3   : > { %v10085_v33 = vpop.f32.mrb[154].mxu1  ;;  %v7027_v58 = vadd.f32 %v7026_v25, %v16157_v11 }
 0x5b4   : > { %9783 = vmatpush3.bf16.msra.mxu1 %v11727_v63  ;;  %v7029_v16 = vpop.f32.mrb[155].mxu1  ;;  %v7089_v12 = vmax.f32 %v7035_v40, 0.0  ;;  %v7038_v9 = vadd.f32 %v10085_v33, %v16157_v11  ;;  %v6586_v63 = vpop.permute.xlu1 %6585 }
 0x5b5   : > { %7655 = vmatpush1.bf16.msra.mxu0 %v11723_v49  ;;  %9784 = vmatprep.subr.bf16.mxu1 %v11731_v43  ;;  %v7030_v50 = vadd.f32 %v7029_v16, %v16157_v11  ;;  %v7083_v10 = vmax.f32 %v7027_v58, 0.0 }
 0x5b6   : > { %7656 = vmatprep.subr.bf16.mxu0 %v11730_v31  ;;  %v7092_v51 = vmax.f32 %v7038_v9, 0.0  ;;  %v6591_v31 = vpop.permute.xlu0 %6590 }
 0x5b7   : > { %v7086_v24 = vmax.f32 %v7030_v50, 0.0 }
 0x5b8   : > { %9785 = vmatpush3.bf16.msra.mxu1 %v11732_v34  ;;  %v16325_v45 = vpack.c.bf16 %v7092_v51, %v7089_v12  ;;  %v6596_v43 = vpop.permute.xlu1 %6595 }
 0x5b9   : > { %7657 = vmatpush1.bf16.msra.mxu0 %v11728_v39  ;;  %v16327_v7 = vpack.c.bf16 %v7086_v24, %v7083_v10  ;;  %10090 = vmatprep.subr.bf16.mxu1 %v16332_v53 }
 0x5ba   : > { %7739 = vmatprep.subr.bf16.mxu0 %v11735_v4  ;;  %v6601_v39 = vpop.permute.xlu0 %6600 }
 0x5bc   : > { %v16356_v33 = vpop.permute.xlu1 %8402 }
 0x5be   : > { %v16360_v24 = vpop.permute.xlu0 %8407 }
 0x5d3   : > { %v10088_v55 = vpop.f32.mrb[156].mxu1 }
 0x5d4   : > { %v7051_v57 = vadd.f32 %v10088_v55, %v16157_v11  ;;  %v7042_v52 = vpop.f32.mrb[157].mxu1 }
 0x5d5   : > { %v10089_v3 = vpop.f32.mrb[158].mxu1  ;;  %v7043_v17 = vadd.f32 %v7042_v52, %v16157_v11 }
 0x5d6   : > { %v7045_v59 = vpop.f32.mrb[159].mxu1  ;;  %v7101_v30 = vmax.f32 %v7051_v57, 0.0  ;;  %v7054_v20 = vadd.f32 %v10089_v3, %v16157_v11 }
 0x5d7   : > { %v7046_v1 = vadd.f32 %v7045_v59, %v16157_v11  ;;  %v7095_v13 = vmax.f32 %v7043_v17, 0.0  ;;  %v16346_v11 = vld [vmem:[%s16831_s7] ss:$0 sm:$0xff] }
 0x5d8   : > { %v7104_v28 = vmax.f32 %v7054_v20, 0.0 }
 0x5d9   : > { %v7098_v61 = vmax.f32 %v7046_v1, 0.0 }
 0x5da   : > { %v16339_v47 = vpack.c.bf16 %v7104_v28, %v7101_v30  ;;  %v16364_v28 = vpop.permute.xlu1 %8412 }
 0x5db   : > { %v16341_v36 = vpack.c.bf16 %v7098_v61, %v7095_v13  ;;  %v16366_v61 = vpop.permute.xlu0 %8417 }
 0x5fe   : > { %v10044_v22 = vpop.f32.mrb[128].mxu0 }
 0x5ff   : > { %v6382_v6 = vpop.f32.mrb[129].mxu0  ;;  %v6391_v41 = vadd.f32 %v10044_v22, %v16346_v11 }
 0x600   : > { %v10045_v2 = vpop.f32.mrb[130].mxu0  ;;  %v6383_v37 = vadd.f32 %v16346_v11, %v6382_v6 }
 0x601   : > { %v6394_v38 = vadd.f32 %v10045_v2, %v16346_v11  ;;  %v6385_v56 = vpop.f32.mrb[131].mxu0  ;;  %v6625_v58 = vadd.f32 %v6556_v21, %v6391_v41 }
 0x602   : > { %v6386_v29 = vadd.f32 %v16346_v11, %v6385_v56  ;;  %v6623_v50 = vadd.f32 %v6546_v18, %v6383_v37  ;;  %v16368_v18 = vpop.permute.xlu1 %8422 }
 0x603   : > { %v9268_v26 = vpack.c.bf16 %v6394_v38, %v6391_v41  ;;  %v6626_v55 = vadd.f32 %v6561_v0, %v6394_v38 }
 0x604   : > { %v9263_v49 = vpack.c.bf16 %v6386_v29, %v6383_v37  ;;  %v6624_v17 = vadd.f32 %v6551_v48, %v6386_v29 }
 0x605   : > { %9371 = vst [vmem:[%s15332_s16 + $0x48] sm:$0xff] %v9268_v26  }
 0x606   : > { %9370 = vst [vmem:[%s15332_s16 + $0x40] sm:$0xff] %v9263_v49   ;;  %v16376_v38 = vpop.permute.xlu1 %8432 }
 0x60e   : > { %v10048_v34 = vpop.f32.mrb[132].mxu0 }
 0x60f   : > { %v6407_v4 = vadd.f32 %v10048_v34, %v16346_v11  ;;  %v6398_v15 = vpop.f32.mrb[133].mxu0 }
 0x610   : > { %v6399_v40 = vadd.f32 %v16346_v11, %v6398_v15  ;;  %v10049_v25 = vpop.f32.mrb[134].mxu0 }
 0x611   : > { %v6629_v16 = vadd.f32 %v6576_v27, %v6407_v4  ;;  %v6410_v12 = vadd.f32 %v10049_v25, %v16346_v11  ;;  %v6401_v9 = vpop.f32.mrb[135].mxu0 }
 0x612   : > { %v6627_v10 = vadd.f32 %v6566_v42, %v6399_v40  ;;  %v6402_v51 = vadd.f32 %v16346_v11, %v6401_v9  ;;  %v16370_v42 = vpop.permute.xlu0 %8427 }
 0x613   : > { %v6641_v57 = vmax.f32 %v6625_v58, %v6629_v16  ;;  %v9278_v52 = vpack.c.bf16 %v6410_v12, %v6407_v4  ;;  %v6630_v3 = vadd.f32 %v6581_v54, %v6410_v12 }
 0x614   : > { %v6639_v59 = vmax.f32 %v6623_v50, %v6627_v10  ;;  %v9273_v30 = vpack.c.bf16 %v6402_v51, %v6399_v40  ;;  %v6628_v20 = vadd.f32 %v6571_v8, %v6402_v51  ;;  %v6606_v40 = vpop.permute.xlu1 %6605 }
 0x615   : > { %9373 = vst [vmem:[%s15332_s16 + $0x58] sm:$0xff] %v9278_v52   ;;  %v6642_v1 = vmax.f32 %v6626_v55, %v6630_v3  ;;  %v4798_v55 = vrot.slane %v15365_v60, 4 }
 0x616   : > { %9372 = vst [vmem:[%s15332_s16 + $0x50] sm:$0xff] %v9273_v30   ;;  %v6640_v13 = vmax.f32 %v6624_v17, %v6628_v20  ;;  %v16378_v4 = vpop.permute.xlu0 %8437  ;;  %v16389_v30 = vrot.slane %v16153_v62, %v12943_v44 }
 0x61a   : > { %v6611_v25 = vpop.permute.xlu0 %6610 }
 0x61e   : > { %v10052_v21 = vpop.f32.mrb[136].mxu0  ;;  %v6621_v50 = vpop.permute.xlu0 %6620 }
 0x61f   : > { %v6423_v0 = vadd.f32 %v10052_v21, %v16346_v11  ;;  %v6414_v22 = vpop.f32.mrb[137].mxu0  ;;  %v16393_v21 = vrot.slane %v16153_v62, %v12949_v23 }
 0x620   : > { %v6415_v48 = vadd.f32 %v16346_v11, %v6414_v22  ;;  %v10053_v8 = vpop.f32.mrb[138].mxu0  ;;  %v4799_v22 = vmax.f32 %v15365_v60, %v4798_v55 }
 0x621   : > { %v6633_v27 = vadd.f32 %v6596_v43, %v6423_v0  ;;  %v6426_v6 = vadd.f32 %v10053_v8, %v16346_v11  ;;  %v6417_v2 = vpop.f32.mrb[139].mxu0 }
 0x622   : > { %v6631_v54 = vadd.f32 %v6586_v63, %v6415_v48  ;;  %v6418_v41 = vadd.f32 %v16346_v11, %v6417_v2  ;;  %v6616_v63 = vpop.permute.xlu1 %6615  ;;  %v4800_v62 = vrot.slane %v4799_v22, 2 }
 0x623   : > { %v9288_v56 = vpack.c.bf16 %v6426_v6, %v6423_v0  ;;  %v6634_v37 = vadd.f32 %v6601_v39, %v6426_v6  ;;  %v6645_v29 = vmax.f32 %v6641_v57, %v6633_v27 }
 0x624   : > { %v6643_v26 = vmax.f32 %v6639_v59, %v6631_v54  ;;  %v9283_v49 = vpack.c.bf16 %v6418_v41, %v6415_v48  ;;  %v6632_v34 = vadd.f32 %v6591_v31, %v6418_v41 }
 0x625   : > { %9375 = vst [vmem:[%s15332_s16 + $0x68] sm:$0xff] %v9288_v56   ;;  %v6646_v15 = vmax.f32 %v6642_v1, %v6634_v37 }
 0x626   : > { %9374 = vst [vmem:[%s15332_s16 + $0x60] sm:$0xff] %v9283_v49   ;;  %v6644_v43 = vmax.f32 %v6640_v13, %v6632_v34 }
 0x62e   : > { %v10056_v58 = vpop.f32.mrb[140].mxu0 }
 0x62f   : > { %v6439_v16 = vadd.f32 %v10056_v58, %v16346_v11  ;;  %v6430_v12 = vpop.f32.mrb[141].mxu0 }
 0x630   : > { %v6431_v9 = vadd.f32 %v16346_v11, %v6430_v12  ;;  %v10057_v39 = vpop.f32.mrb[142].mxu0  ;;  %v11733_v12 = vld [vmem:[%s16828_s4 + $0x180] ss:$12 sps:$4 sm:$0xff]  }
 0x631   : > { %v6637_v10 = vadd.f32 %v6616_v63, %v6439_v16  ;;  %v6442_v31 = vadd.f32 %v10057_v39, %v16346_v11  ;;  %v6433_v51 = vpop.f32.mrb[143].mxu0 }
 0x632   : > { %v6635_v57 = vadd.f32 %v6606_v40, %v6431_v9  ;;  %v6434_v52 = vadd.f32 %v16346_v11, %v6433_v51 }
 0x633   : > { %v6649_v3 = vmax.f32 %v6645_v29, %v6637_v10  ;;  %v9298_v17 = vpack.c.bf16 %v6442_v31, %v6439_v16  ;;  %v6638_v59 = vadd.f32 %v6621_v50, %v6442_v31  ;;  %v11738_v50 = vld [vmem:[%s16828_s4 + $0x19c] ss:$12 sps:$4 sm:$0xff]   ;;  %v11749_v10 = vld [vmem:[%s16828_s4 + $0x1a0] ss:$12 sps:$4 sm:$0xff]  }
 0x634   : > { %v6647_v20 = vmax.f32 %v6643_v26, %v6635_v57  ;;  %v9293_v1 = vpack.c.bf16 %v6434_v52, %v6431_v9  ;;  %v6636_v13 = vadd.f32 %v6611_v25, %v6434_v52  ;;  %v4801_v25 = vmax.f32 %v4799_v22, %v4800_v62  ;;  %v11753_v22 = vld [vmem:[%s16828_s4 + $0x1b8] ss:$12 sps:$4 sm:$0xff]  }
 0x635   : > { %9377 = vst [vmem:[%s15332_s16 + $0x78] sm:$0xff] %v9298_v17   ;;  %v6650_v0 = vmax.f32 %v6646_v15, %v6638_v59  ;;  %v11736_v59 = vld [vmem:[%s16828_s4 + $0x198] ss:$12 sps:$4 sm:$0xff]  }
 0x636   : > { %9376 = vst [vmem:[%s15332_s16 + $0x70] sm:$0xff] %v9293_v1   ;;  %v6648_v11 = vmax.f32 %v6644_v43, %v6636_v13  ;;  %v6881_v48 = vpop.f32.mrb[144].mxu0  ;;  %v11744_v62 = vld [vmem:[%s16828_s4 + $0x1cc] ss:$12 sps:$4 sm:$0xff]  }
 0x637   : > { %v6652_v8 = vmax.f32 %v6649_v3, %v6650_v0  ;;  %v6882_v27 = vadd.f32 %v6881_v48, %v16389_v30  ;;  %v6883_v6 = vpop.f32.mrb[145].mxu0  ;;  %v11741_v0 = vld [vmem:[%s16828_s4 + $0x1b4] ss:$12 sps:$4 sm:$0xff]  }
 0x638   : > { %v6651_v2 = vmax.f32 %v6647_v20, %v6648_v11  ;;  %v6884_v54 = vadd.f32 %v6883_v6, %v16393_v21  ;;  %v6885_v41 = vpop.f32.mrb[146].mxu0  ;;  %v4802_v20 = vrot.slane %v4801_v25, 1 }
 0x639   : > { %v6886_v56 = vadd.f32 %v6885_v41, %v16389_v30  ;;  %v6887_v37 = vpop.f32.mrb[147].mxu0  ;;  %v7057_v49 = vmax.f32 %v6882_v27, 0.0 }
 0x63a   : > { %v6653_v29 = vmax.f32 %v6651_v2, %v6652_v8  ;;  %v6888_v26 = vadd.f32 %v6887_v37, %v16393_v21  ;;  %v7058_v15 = vmax.f32 %v6884_v54, 0.0  ;;  %v16428_v54 = vmax.f32 %v4801_v25, %v4802_v20 }
 0x63b   : > { %v7060_v60 = vmax.f32 %v6886_v56, 0.0 }
 0x63c   : > { %v6654_v34 = vrot.slane %v6653_v29, 4  ;;  %v7061_v43 = vmax.f32 %v6888_v26, 0.0 }
 0x63d   : > { %v7105_v40 = vpack.c.bf16 %v7060_v60, %v7057_v49 }
 0x63e   : > { %v6655_v58 = vmax.f32 %v6653_v29, %v6654_v34  ;;  %v7106_v63 = vpack.c.bf16 %v7061_v43, %v7058_v15  ;;  %v6891_v16 = vpop.f32.mrb[148].mxu0  ;;  %v11754_v29 = vld [vmem:[%s16828_s4 + $0x1d0] ss:$12 sps:$4 sm:$0xff]  }
 0x63f   : > { %v6892_v9 = vadd.f32 %v6891_v16, %v16389_v30  ;;  %v6893_v39 = vpop.f32.mrb[149].mxu0  ;;  %v11758_v16 = vld [vmem:[%s16828_s4 + $0x1e8] ss:$12 sps:$4 sm:$0xff]  }
 0x640   : > { %v6656_v31 = vrot.slane %v6655_v58, 2  ;;  %v6894_v51 = vadd.f32 %v6893_v39, %v16393_v21  ;;  %v6895_v55 = vpop.f32.mrb[150].mxu0  ;;  %7658 = vmatprep.mubr.bf16.mxu0 %v7106_v63  ;;  %7884 = vmatprep.mubr.bf16.mxu1 %v7106_v63  ;;  %v11747_v63 = vld [vmem:[%s16828_s4 + $0x1e4] ss:$12 sps:$4 sm:$0xff]  }
 0x641   : > { %v6896_v57 = vadd.f32 %v6895_v55, %v16389_v30  ;;  %v6897_v52 = vpop.f32.mrb[151].mxu0  ;;  %7659 = vmatmul.mubr.bf16.vlgmr.msra.gmra.mrb[176].mxu0 %v7105_v40  ;;  %7885 = vmatmul.mubr.bf16.vlgmr.msra.gmra.mrb[160].mxu1 %v7105_v40  ;;  %v7063_v1 = vmax.f32 %v6892_v9, 0.0  ;;  %v11742_v40 = vld [vmem:[%s16828_s4 + $0x1c8] ss:$12 sps:$4 sm:$0xff]  }
 0x642   : > { %v6657_v3 = vmax.f32 %v6655_v58, %v6656_v31  ;;  %v6898_v17 = vadd.f32 %v6897_v52, %v16393_v21  ;;  %7740 = vmatpush1.bf16.msra.mxu0 %v11733_v12  ;;  %10091 = vmatpush3.bf16.msra.mxu1 %v16332_v53  ;;  %v7064_v11 = vmax.f32 %v6894_v51, 0.0  ;;  %v11739_v53 = vld [vmem:[%s16828_s4 + $0x1b0] ss:$12 sps:$4 sm:$0xff]   ;;  %v11745_v31 = vld [vmem:[%s16828_s4 + $0x1e0] ss:$12 sps:$4 sm:$0xff]  }
 0x643   : > { %v7066_v13 = vmax.f32 %v6896_v57, 0.0  ;;  %7741 = vmatprep.subr.bf16.mxu0 %v11738_v50  ;;  %10092 = vmatprep.subr.bf16.mxu1 %v11749_v10  ;;  %v11752_v57 = vld [vmem:[%s16828_s4 + $0x1fc] ss:$12 sps:$4 sm:$0xff]   ;;  %v11759_v52 = vld [vmem:[%s16828_s4 + $0x200] ss:$12 sps:$4 sm:$0xff]  }
 0x644   : > { %v7067_v48 = vmax.f32 %v6898_v17, 0.0  ;;  %v6658_v8 = vrot.slane %v6657_v3, 1 }
 0x645   : > { %v7108_v27 = vpack.c.bf16 %v7066_v13, %v7063_v1  ;;  %v11750_v13 = vld [vmem:[%s16828_s4 + $0x1f8] ss:$12 sps:$4 sm:$0xff]  }
 0x646   : > { %v7109_v6 = vpack.c.bf16 %v7067_v48, %v7064_v11  ;;  %v6901_v2 = vpop.f32.mrb[152].mxu0  ;;  %7742 = vmatpush1.bf16.msra.mxu0 %v11736_v59  ;;  %10093 = vmatpush3.bf16.msra.mxu1 %v11749_v10  ;;  %v16430_v41 = vmax.f32 %v6657_v3, %v6658_v8  ;;  %v11757_v11 = vld [vmem:[%s16828_s4 + $0x214] ss:$12 sps:$4 sm:$0xff]   ;;  %v11763_v48 = vld [vmem:[%s16828_s4 + $0x218] ss:$12 sps:$4 sm:$0xff]  }
 0x647   : > { %v6902_v56 = vadd.f32 %v6901_v2, %v16389_v30  ;;  %v6903_v37 = vpop.f32.mrb[153].mxu0  ;;  %7743 = vmatprep.subr.bf16.mxu0 %v11741_v0  ;;  %10094 = vmatprep.subr.bf16.mxu1 %v11753_v22 }
 0x648   : > { %v6904_v26 = vadd.f32 %v6903_v37, %v16393_v21  ;;  %v6905_v49 = vpop.f32.mrb[154].mxu0  ;;  %7668 = vmatprep.mubr.bf16.mxu0 %v7109_v6  ;;  %7892 = vmatprep.mubr.bf16.mxu1 %v7109_v6  ;;  %v6660_v60 = vmax.f32 %v16428_v54, %v16430_v41 }
 0x649   : > { %v6906_v34 = vadd.f32 %v6905_v49, %v16389_v30  ;;  %v6907_v15 = vpop.f32.mrb[155].mxu0  ;;  %7669 = vmatmul.mubr.bf16.gmra.mrb[180].mxu0 %v7108_v27  ;;  %7893 = vmatmul.mubr.bf16.gmra.mrb[164].mxu1 %v7108_v27  ;;  %v7069_v25 = vmax.f32 %v6902_v56, 0.0  ;;  %v11755_v56 = vld [vmem:[%s16828_s4 + $0x210] ss:$12 sps:$4 sm:$0xff]  }
 0x64a   : > { %v6908_v43 = vadd.f32 %v6907_v15, %v16393_v21  ;;  %7744 = vmatpush1.bf16.msra.mxu0 %v11739_v53  ;;  %10095 = vmatpush3.bf16.msra.mxu1 %v11753_v22  ;;  %v7070_v12 = vmax.f32 %v6904_v26, 0.0  ;;  %v11764_v26 = vld [vmem:[%s16828_s4 + $0x230] ss:$12 sps:$4 sm:$0xff]  }
 0x64b   : > { %v7072_v58 = vmax.f32 %v6906_v34, 0.0  ;;  %7745 = vmatprep.subr.bf16.mxu0 %v11744_v62  ;;  %10096 = vmatprep.subr.bf16.mxu1 %v11754_v29 }
 0x64c   : > { %v7073_v9 = vmax.f32 %v6908_v43, 0.0 }
 0x64d   : > { %v7111_v39 = vpack.c.bf16 %v7072_v58, %v7069_v25  ;;  %v11760_v25 = vld [vmem:[%s16828_s4 + $0x228] ss:$12 sps:$4 sm:$0xff]  }
 0x64e   : > { %v7112_v50 = vpack.c.bf16 %v7073_v9, %v7070_v12  ;;  %v6911_v10 = vpop.f32.mrb[156].mxu0  ;;  %7746 = vmatpush1.bf16.msra.mxu0 %v11742_v40  ;;  %10097 = vmatpush3.bf16.msra.mxu1 %v11754_v29  ;;  %v11762_v29 = vld [vmem:[%s16828_s4 + $0x22c] ss:$12 sps:$4 sm:$0xff]  }
 0x64f   : > { %v6912_v51 = vadd.f32 %v6911_v10, %v16389_v30  ;;  %v6913_v55 = vpop.f32.mrb[157].mxu0  ;;  %7747 = vmatprep.subr.bf16.mxu0 %v11747_v63  ;;  %10098 = vmatprep.subr.bf16.mxu1 %v11758_v16 }
 0x650   : > { %v6914_v3 = vadd.f32 %v6913_v55, %v16393_v21  ;;  %v6915_v17 = vpop.f32.mrb[158].mxu0  ;;  %7678 = vmatprep.mubr.bf16.mxu0 %v7112_v50  ;;  %7900 = vmatprep.mubr.bf16.mxu1 %v7112_v50 }
 0x651   : > { %v6916_v59 = vadd.f32 %v6915_v17, %v16389_v30  ;;  %v6917_v20 = vpop.f32.mrb[159].mxu0  ;;  %7679 = vmatmul.mubr.bf16.gmra.mrb[184].mxu0 %v7111_v39  ;;  %7901 = vmatmul.mubr.bf16.gmra.mrb[168].mxu1 %v7111_v39  ;;  %v7075_v0 = vmax.f32 %v6912_v51, 0.0 }
 0x652   : > { %v6918_v1 = vadd.f32 %v6917_v20, %v16393_v21  ;;  %7748 = vmatpush1.bf16.msra.mxu0 %v11745_v31  ;;  %10099 = vmatpush3.bf16.msra.mxu1 %v11758_v16  ;;  %v7076_v8 = vmax.f32 %v6914_v3, 0.0 }
 0x653   : > { %v7078_v22 = vmax.f32 %v6916_v59, 0.0  ;;  %7749 = vmatprep.subr.bf16.mxu0 %v11752_v57  ;;  %10100 = vmatprep.subr.bf16.mxu1 %v11759_v52 }
 0x654   : > { %v7079_v27 = vmax.f32 %v6918_v1, 0.0 }
 0x655   : > { %v7114_v6 = vpack.c.bf16 %v7078_v22, %v7075_v0 }
 0x656   : > { %v7115_v2 = vpack.c.bf16 %v7079_v27, %v7076_v8  ;;  %v6921_v53 = vpop.f32.mrb[160].mxu0  ;;  %7750 = vmatpush1.bf16.msra.mxu0 %v11750_v13  ;;  %10101 = vmatpush3.bf16.msra.mxu1 %v11759_v52 }
 0x657   : > { %v6922_v37 = vadd.f32 %v6921_v53, %v16389_v30  ;;  %v6923_v62 = vpop.f32.mrb[161].mxu0  ;;  %7751 = vmatprep.subr.bf16.mxu0 %v11757_v11  ;;  %10102 = vmatprep.subr.bf16.mxu1 %v11763_v48 }
 0x658   : > { %v6924_v49 = vadd.f32 %v6923_v62, %v16393_v21  ;;  %v6925_v34 = vpop.f32.mrb[162].mxu0  ;;  %7688 = vmatprep.mubr.bf16.mxu0 %v7115_v2  ;;  %7908 = vmatprep.mubr.bf16.mxu1 %v7115_v2 }
 0x659   : > { %v6926_v15 = vadd.f32 %v6925_v34, %v16389_v30  ;;  %v6927_v43 = vpop.f32.mrb[163].mxu0  ;;  %7689 = vmatmul.mubr.bf16.gmra.mrb[188].mxu0 %v7114_v6  ;;  %7909 = vmatmul.mubr.bf16.gmra.mrb[172].mxu1 %v7114_v6  ;;  %v7081_v58 = vmax.f32 %v6922_v37, 0.0 }
 0x65a   : > { %v6928_v40 = vadd.f32 %v6927_v43, %v16393_v21  ;;  %7752 = vmatpush1.bf16.msra.mxu0 %v11755_v56  ;;  %10103 = vmatpush3.bf16.msra.mxu1 %v11763_v48  ;;  %v7082_v16 = vmax.f32 %v6924_v49, 0.0 }
 0x65b   : > { %v7084_v63 = vmax.f32 %v6926_v15, 0.0  ;;  %7753 = vmatprep.subr.bf16.mxu0 %v11762_v29  ;;  %10104 = vmatprep.subr.bf16.mxu1 %v11764_v26 }
 0x65c   : > { %v7085_v12 = vmax.f32 %v6928_v40, 0.0 }
 0x65d   : > { %v7117_v9 = vpack.c.bf16 %v7084_v63, %v7081_v58 }
 0x65e   : > { %v7118_v39 = vpack.c.bf16 %v7085_v12, %v7082_v16  ;;  %v6931_v50 = vpop.f32.mrb[164].mxu0  ;;  %7754 = vmatpush1.bf16.msra.mxu0 %v11760_v25  ;;  %10105 = vmatpush3.bf16.msra.mxu1 %v11764_v26 }
 0x65f   : > { %v6932_v10 = vadd.f32 %v6931_v50, %v16389_v30  ;;  %v6933_v31 = vpop.f32.mrb[165].mxu0 }
 0x660   : > { %v6934_v51 = vadd.f32 %v6933_v31, %v16393_v21  ;;  %v6935_v55 = vpop.f32.mrb[166].mxu0  ;;  %7698 = vmatprep.mubr.bf16.mxu0 %v7118_v39  ;;  %7916 = vmatprep.mubr.bf16.mxu1 %v7118_v39 }
 0x661   : > { %v6936_v57 = vadd.f32 %v6935_v55, %v16389_v30  ;;  %v6937_v52 = vpop.f32.mrb[167].mxu0  ;;  %7699 = vmatmul.mubr.bf16.gmra.mrb[192].mxu0 %v7117_v9  ;;  %7917 = vmatmul.mubr.bf16.gmra.mrb[176].mxu1 %v7117_v9  ;;  %v7087_v17 = vmax.f32 %v6932_v10, 0.0  ;;  %v9068_v55 = vld [vmem:[%s16825_s1 + $0x160] sm:$0xff] }
 0x662   : > { %v6938_v3 = vadd.f32 %v6937_v52, %v16393_v21  ;;  %v7088_v20 = vmax.f32 %v6934_v51, 0.0  ;;  %v9067_v51 = vld [vmem:[%s16825_s1 + $0x158] sm:$0xff] }
 0x663   : > { %v7090_v59 = vmax.f32 %v6936_v57, 0.0  ;;  %v9069_v57 = vld [vmem:[%s16825_s1 + $0x168] sm:$0xff] }
 0x664   : > { %v7091_v1 = vmax.f32 %v6938_v3, 0.0 }
 0x665   : > { %v7120_v13 = vpack.c.bf16 %v7090_v59, %v7087_v17 }
 0x666   : > { %v7121_v0 = vpack.c.bf16 %v7091_v1, %v7088_v20  ;;  %v6941_v22 = vpop.f32.mrb[168].mxu0  ;;  %v9070_v20 = vld [vmem:[%s16825_s1 + $0x170] sm:$0xff]  ;;  %v9071_v1 = vld [vmem:[%s16825_s1 + $0x178] sm:$0xff] }
 0x667   : > { %v6942_v11 = vadd.f32 %v6941_v22, %v16389_v30  ;;  %v6943_v48 = vpop.f32.mrb[169].mxu0 }
 0x668   : > { %v6944_v8 = vadd.f32 %v6943_v48, %v16393_v21  ;;  %v6945_v27 = vpop.f32.mrb[170].mxu0  ;;  %7708 = vmatprep.mubr.bf16.mxu0 %v7121_v0  ;;  %7924 = vmatprep.mubr.bf16.mxu1 %v7121_v0 }
 0x669   : > { %v6946_v6 = vadd.f32 %v6945_v27, %v16389_v30  ;;  %v6947_v2 = vpop.f32.mrb[171].mxu0  ;;  %7709 = vmatmul.mubr.bf16.gmra.mrb[196].mxu0 %v7120_v13  ;;  %7925 = vmatmul.mubr.bf16.gmra.mrb[180].mxu1 %v7120_v13  ;;  %v7093_v56 = vmax.f32 %v6942_v11, 0.0 }
 0x66a   : > { %v6948_v53 = vadd.f32 %v6947_v2, %v16393_v21  ;;  %v7094_v62 = vmax.f32 %v6944_v8, 0.0 }
 0x66b   : > { %v7096_v37 = vmax.f32 %v6946_v6, 0.0 }
 0x66c   : > { %v7097_v29 = vmax.f32 %v6948_v53, 0.0 }
 0x66d   : > { %v7123_v26 = vpack.c.bf16 %v7096_v37, %v7093_v56 }
 0x66e   : > { %v7124_v49 = vpack.c.bf16 %v7097_v29, %v7094_v62  ;;  %v6951_v34 = vpop.f32.mrb[172].mxu0 }
 0x66f   : > { %v6952_v15 = vadd.f32 %v6951_v34, %v16389_v30  ;;  %v6953_v43 = vpop.f32.mrb[173].mxu0 }
 0x670   : > { %v6954_v40 = vadd.f32 %v6953_v43, %v16393_v21  ;;  %v6955_v25 = vpop.f32.mrb[174].mxu0  ;;  %7718 = vmatprep.mubr.bf16.mxu0 %v7124_v49  ;;  %7932 = vmatprep.mubr.bf16.mxu1 %v7124_v49 }
 0x671   : > { %v6956_v58 = vadd.f32 %v6955_v25, %v16389_v30  ;;  %v6957_v63 = vpop.f32.mrb[175].mxu0  ;;  %7719 = vmatmul.mubr.bf16.gmra.mrb[200].mxu0 %v7123_v26  ;;  %7933 = vmatmul.mubr.bf16.gmra.mrb[184].mxu1 %v7123_v26  ;;  %v7099_v12 = vmax.f32 %v6952_v15, 0.0  ;;  %v9065_v30 = vld [vmem:[%s16825_s1 + $0x148] sm:$0xff] }
 0x672   : > { %v6958_v16 = vadd.f32 %v6957_v63, %v16393_v21  ;;  %v7100_v39 = vmax.f32 %v6954_v40, 0.0  ;;  %8447 = vperm.xlu0 %11363, %v9065_v30   ;;  %v9066_v21 = vld [vmem:[%s16825_s1 + $0x150] sm:$0xff] }
 0x673   : > { %v7102_v9 = vmax.f32 %v6956_v58, 0.0 }
 0x674   : > { %v7103_v50 = vmax.f32 %v6958_v16, 0.0 }
 0x675   : > { %v7126_v10 = vpack.c.bf16 %v7102_v9, %v7099_v12 }
 0x676   : > { %v7127_v31 = vpack.c.bf16 %v7103_v50, %v7100_v39  ;;  %8457 = vperm.xlu0 %11363, %v9067_v51  }
 0x678   : > { %7728 = vmatprep.mubr.bf16.mxu0 %v7127_v31  ;;  %7940 = vmatprep.mubr.bf16.mxu1 %v7127_v31 }
 0x679   : > { %7729 = vmatmul.mubr.bf16.gmra.mrb[204].mxu0 %v7126_v10  ;;  %7941 = vmatmul.mubr.bf16.gmra.mrb[188].mxu1 %v7126_v10 }
 0x67a   : > { %10106 = vmatprep.mubr.bf16.mxu1 %v16181_v35  ;;  %7771 = vmatprep.mubr.bf16.mxu0 %v17047_v32 }
 0x67b   : > { %8467 = vperm.xlu0 %11363, %v9069_v57  }
 0x67f   : > { %8477 = vperm.xlu0 %11363, %v9071_v1  }
 0x681   : > { %7772 = vmatmul.mubr.bf16.vlgmr.msra.gmra.mrb[176].mxu0 %v16181_v35  ;;  %10107 = vmatmul.mubr.bf16.vlgmr.msra.gmra.mrb[192].mxu1 %v16179_v14  ;;  %v11766_v35 = vld [vmem:[%s16830_s6 + $0x8] sm:$0xff]  }
 0x682   : > { %10110 = vmatprep.mubr.bf16.mxu1 %v16268_v5  ;;  %7781 = vmatprep.mubr.bf16.mxu0 %v17047_v32 }
 0x689   : > { %7782 = vmatmul.mubr.bf16.gmra.mrb[180].mxu0 %v16179_v14  ;;  %10111 = vmatmul.mubr.bf16.gmra.mrb[196].mxu1 %v16263_v19  ;;  %v11765_v14 = vld [vmem:[%s16830_s6] sm:$0xff]  }
 0x68a   : > { %10114 = vmatprep.mubr.bf16.mxu1 %v16327_v7  ;;  %7791 = vmatprep.mubr.bf16.mxu0 %v17047_v32 }
 0x68b   : > { %10122 = vmatprep.subr.bf16.mxu1 %v11765_v14 }
 0x68c   : > { %10123 = vmatpush3.bf16.msra.mxu1 %v11765_v14 }
 0x68d   : > { %10124 = vmatprep.subr.bf16.mxu1 %v11766_v35 }
 0x690   : > { %10125 = vmatpush3.bf16.msra.mxu1 %v11766_v35 }
 0x691   : > { %7792 = vmatmul.mubr.bf16.gmra.mrb[184].mxu0 %v16268_v5  ;;  %10115 = vmatmul.mubr.bf16.gmra.mrb[200].mxu1 %v16325_v45  ;;  %v11769_v5 = vld [vmem:[%s16830_s6 + $0x20] sm:$0xff]  }
 0x692   : > { %10118 = vmatprep.mubr.bf16.mxu1 %v16341_v36  ;;  %7801 = vmatprep.mubr.bf16.mxu0 %v17047_v32 }
 0x699   : > { %7802 = vmatmul.mubr.bf16.gmra.mrb[188].mxu0 %v16263_v19  ;;  %10119 = vmatmul.mubr.bf16.gmra.mrb[204].mxu1 %v16339_v47  ;;  %v11767_v19 = vld [vmem:[%s16830_s6 + $0x10] sm:$0xff]  }
 0x69a   : > { %7811 = vmatprep.mubr.bf16.mxu0 %v17047_v32  ;;  %10126 = vmatprep.subr.bf16.mxu1 %v11767_v19 }
 0x69b   : > { %10127 = vmatpush3.bf16.msra.mxu1 %v11767_v19 }
 0x6a1   : > { %7812 = vmatmul.mubr.bf16.gmra.mrb[192].mxu0 %v16327_v7  ;;  %v11771_v7 = vld [vmem:[%s16830_s6 + $0x30] sm:$0xff]  }
 0x6a2   : > { %7821 = vmatprep.mubr.bf16.mxu0 %v17047_v32 }
 0x6a9   : > { %7822 = vmatmul.mubr.bf16.gmra.mrb[196].mxu0 %v16325_v45  ;;  %v11770_v45 = vld [vmem:[%s16830_s6 + $0x28] sm:$0xff]  }
 0x6aa   : > { %7831 = vmatprep.mubr.bf16.mxu0 %v17047_v32 }
 0x6b1   : > { %7832 = vmatmul.mubr.bf16.gmra.mrb[200].mxu0 %v16341_v36  ;;  %v9064_v36 = vld [vmem:[%s16825_s1 + $0x140] sm:$0xff] }
 0x6b2   : > { %7841 = vmatprep.mubr.bf16.mxu0 %v17047_v32  ;;  %v11768_v32 = vld [vmem:[%s16830_s6 + $0x18] sm:$0xff]   ;;  %8442 = vperm.xlu1 %11364, %v9064_v36  }
 0x6b3   : > { %10128 = vmatprep.subr.bf16.mxu1 %v11768_v32 }
 0x6b4   : > { %10129 = vmatpush3.bf16.msra.mxu1 %v11768_v32 }
 0x6b5   : > { %10130 = vmatprep.subr.bf16.mxu1 %v11769_v5 }
 0x6b6   : > { %8452 = vperm.xlu1 %11364, %v9066_v21   ;;  %v7225_v21 = vld [vmem:[%s16829_s5] sm:$0x7] }
 0x6b8   : > { %10131 = vmatpush3.bf16.msra.mxu1 %v11769_v5 }
 0x6b9   : > { %7842 = vmatmul.mubr.bf16.gmra.mrb[204].mxu0 %v16339_v47  ;;  %10132 = vmatprep.subr.bf16.mxu1 %v11770_v45  ;;  %v11772_v47 = vld [vmem:[%s16830_s6 + $0x38] sm:$0xff]  }
 0x6ba   : > { %8462 = vperm.xlu1 %11364, %v9068_v55  }
 0x6bc   : > { %10133 = vmatpush3.bf16.msra.mxu1 %v11770_v45 }
 0x6bd   : > { %10134 = vmatprep.subr.bf16.mxu1 %v11771_v7 }
 0x6be   : > { %8472 = vperm.xlu1 %11364, %v9070_v20   ;;  %v16607_v20 = vrot.slane %v7225_v21, %v12949_v23 }
 0x6c0   : > { %10135 = vmatpush3.bf16.msra.mxu1 %v11771_v7 }
 0x6c1   : > { %10136 = vmatprep.subr.bf16.mxu1 %v11772_v47 }
 0x6c4   : > { %10137 = vmatpush3.bf16.msra.mxu1 %v11772_v47 }
 0x714   : > { %v9786_v52 = vpop.f32.mrb[160].mxu1 }
 0x715   : > { %v9787_v3 = vpop.f32.mrb[161].mxu1 }
 0x716   : > { %v9788_v17 = vadd.f32 %v9787_v3, %v9786_v52  ;;  %v9789_v59 = vpop.f32.mrb[162].mxu1  ;;  %v16601_v3 = vrot.slane %v7225_v21, %v17160_v46 }
 0x717   : > { %v9790_v13 = vpop.f32.mrb[163].mxu1 }
 0x718   : > { %v9791_v0 = vadd.f32 %v9790_v13, %v9789_v59  ;;  %v16604_v59 = vrot.slane %v7225_v21, %v12943_v44 }
 0x71a   : > { %v7890_v23 = vadd.f32 %v9791_v0, %v16601_v3 }
 0x71c   : > { %v9792_v22 = vpop.f32.mrb[164].mxu1 }
 0x71d   : > { %v9793_v11 = vpop.f32.mrb[165].mxu1 }
 0x71e   : > { %v9794_v48 = vadd.f32 %v9793_v11, %v9792_v22  ;;  %v9795_v8 = vpop.f32.mrb[166].mxu1  ;;  %v7887_v11 = vadd.f32 %v9788_v17, %v16601_v3 }
 0x71f   : > { %v9796_v27 = vpop.f32.mrb[167].mxu1 }
 0x720   : > { %v9797_v6 = vadd.f32 %v9796_v27, %v9795_v8  ;;  %v7895_v1 = vadd.f32 %v9794_v48, %v16601_v3 }
 0x722   : > { %v7898_v46 = vadd.f32 %v9797_v6, %v16601_v3 }
 0x724   : > { %v9798_v2 = vpop.f32.mrb[168].mxu1 }
 0x725   : > { %v9799_v53 = vpop.f32.mrb[169].mxu1 }
 0x726   : > { %v16575_v56 = vadd.f32 %v9799_v53, %v9798_v2  ;;  %v9801_v37 = vpop.f32.mrb[170].mxu1 }
 0x727   : > { %v9802_v62 = vpop.f32.mrb[171].mxu1 }
 0x728   : > { %v16577_v29 = vadd.f32 %v9802_v62, %v9801_v37 }
 0x72c   : > { %v9804_v26 = vpop.f32.mrb[172].mxu1 }
 0x72d   : > { %v9805_v49 = vpop.f32.mrb[173].mxu1 }
 0x72e   : > { %v9806_v34 = vadd.f32 %v9805_v49, %v9804_v26  ;;  %v9807_v15 = vpop.f32.mrb[174].mxu1 }
 0x72f   : > { %v9808_v43 = vpop.f32.mrb[175].mxu1 }
 0x730   : > { %v16579_v40 = vadd.f32 %v9808_v43, %v9807_v15 }
 0x734   : > { %v9810_v25 = vpop.f32.mrb[176].mxu1 }
 0x735   : > { %v9811_v58 = vpop.f32.mrb[177].mxu1 }
 0x736   : > { %v16581_v63 = vadd.f32 %v9811_v58, %v9810_v25  ;;  %v9813_v16 = vpop.f32.mrb[178].mxu1 }
 0x737   : > { %v9814_v12 = vpop.f32.mrb[179].mxu1 }
 0x738   : > { %v16583_v9 = vadd.f32 %v9814_v12, %v9813_v16 }
 0x73c   : > { %v9816_v39 = vpop.f32.mrb[180].mxu1 }
 0x73d   : > { %v9817_v50 = vpop.f32.mrb[181].mxu1 }
 0x73e   : > { %v16585_v10 = vadd.f32 %v9817_v50, %v9816_v39  ;;  %v9819_v31 = vpop.f32.mrb[182].mxu1 }
 0x73f   : > { %v9820_v14 = vpop.f32.mrb[183].mxu1 }
 0x740   : > { %v16587_v35 = vadd.f32 %v9820_v14, %v9819_v31  ;;  %v7911_v31 = vadd.f32 %v9806_v34, %v16601_v3 }
 0x744   : > { %v9822_v19 = vpop.f32.mrb[184].mxu1 }
 0x745   : > { %v9823_v32 = vpop.f32.mrb[185].mxu1 }
 0x746   : > { %v16589_v5 = vadd.f32 %v9823_v32, %v9822_v19  ;;  %v9825_v45 = vpop.f32.mrb[186].mxu1 }
 0x747   : > { %v9826_v7 = vpop.f32.mrb[187].mxu1 }
 0x748   : > { %v16591_v47 = vadd.f32 %v9826_v7, %v9825_v45  ;;  %v7903_v7 = vadd.f32 %v16575_v56, %v16601_v3 }
 0x74c   : > { %v9828_v36 = vpop.f32.mrb[188].mxu1 }
 0x74d   : > { %v9829_v30 = vpop.f32.mrb[189].mxu1 }
 0x74e   : > { %v16596_v51 = vadd.f32 %v9829_v30, %v9828_v36  ;;  %v9831_v55 = vpop.f32.mrb[190].mxu1 }
 0x74f   : > { %v9832_v57 = vpop.f32.mrb[191].mxu1 }
 0x750   : > { %v16598_v52 = vadd.f32 %v9832_v57, %v9831_v55  ;;  %v7914_v57 = vadd.f32 %v16579_v40, %v16601_v3 }
 0x754   : > { %v7773_v13 = vpop.f32.mrb[176].mxu0  ;;  %v10108_v22 = vpop.f32.mrb[192].mxu1 }
 0x755   : > { %v10218_v8 = vadd.f32 %v7773_v13, %v16604_v59  ;;  %v7992_v27 = vadd.f32 %v10108_v22, %v7895_v1  ;;  %v7775_v2 = vpop.f32.mrb[177].mxu0  ;;  %v7983_v53 = vpop.f32.mrb[193].mxu1 }
 0x756   : > { %v10219_v37 = vadd.f32 %v7775_v2, %v16607_v20  ;;  %v7984_v44 = vadd.f32 %v7983_v53, %v7887_v11  ;;  %v7777_v62 = vpop.f32.mrb[178].mxu0  ;;  %v10109_v26 = vpop.f32.mrb[194].mxu1 }
 0x757   : > { %v8046_v49 = vmax.f32 %v10218_v8, 0.0  ;;  %v10220_v48 = vadd.f32 %v7777_v62, %v16604_v59  ;;  %v7995_v15 = vadd.f32 %v10109_v26, %v7898_v46  ;;  %v7779_v43 = vpop.f32.mrb[179].mxu0  ;;  %v7986_v17 = vpop.f32.mrb[195].mxu1  ;;  %v7906_v8 = vadd.f32 %v16577_v29, %v16601_v3 }
 0x758   : > { %v8047_v25 = vmax.f32 %v10219_v37, 0.0  ;;  %v10221_v58 = vadd.f32 %v7779_v43, %v16607_v20  ;;  %v7987_v16 = vadd.f32 %v7986_v17, %v7890_v23  ;;  %v8048_v6 = vmax.f32 %v7984_v44, 0.0 }
 0x759   : > { %v8049_v12 = vmax.f32 %v10220_v48, 0.0  ;;  %v7927_v29 = vadd.f32 %v16585_v10, %v16601_v3  ;;  %v8057_v17 = vmax.f32 %v7995_v15, 0.0 }
 0x75a   : > { %v8094_v39 = vmax.f32 %v8046_v49, %v8047_v25  ;;  %v8050_v50 = vmax.f32 %v10221_v58, 0.0  ;;  %v8051_v32 = vmax.f32 %v7987_v16, 0.0  ;;  %v8054_v49 = vmax.f32 %v7992_v27, 0.0 }
 0x75c   : > { %v8110_v14 = vmax.f32 %v8094_v39, %v8048_v6  ;;  %v8095_v19 = vmax.f32 %v8049_v12, %v8050_v50  ;;  %v7783_v0 = vpop.f32.mrb[180].mxu0  ;;  %v10112_v45 = vpop.f32.mrb[196].mxu1  ;;  %v7919_v39 = vadd.f32 %v16581_v63, %v16601_v3 }
 0x75d   : > { %v10222_v36 = vadd.f32 %v7783_v0, %v16604_v59  ;;  %v16621_v30 = vadd.f32 %v10112_v45, %v7911_v31  ;;  %v7785_v21 = vpop.f32.mrb[181].mxu0  ;;  %v7999_v55 = vpop.f32.mrb[197].mxu1 }
 0x75e   : > { %v8111_v1 = vmax.f32 %v8095_v19, %v8051_v32  ;;  %v10223_v34 = vadd.f32 %v7785_v21, %v16607_v20  ;;  %v8000_v13 = vadd.f32 %v7999_v55, %v7903_v7  ;;  %v7787_v22 = vpop.f32.mrb[182].mxu0  ;;  %v10113_v11 = vpop.f32.mrb[198].mxu1  ;;  %v7922_v21 = vadd.f32 %v16583_v9, %v16601_v3 }
 0x75f   : > { %v8052_v2 = vmax.f32 %v10222_v36, 0.0  ;;  %v10224_v56 = vadd.f32 %v7787_v22, %v16604_v59  ;;  %v16629_v53 = vadd.f32 %v10113_v11, %v7914_v57  ;;  %v7789_v46 = vpop.f32.mrb[183].mxu0  ;;  %v8002_v37 = vpop.f32.mrb[199].mxu1 }
 0x760   : > { %v8053_v44 = vmax.f32 %v10223_v34, 0.0  ;;  %v10225_v62 = vadd.f32 %v7789_v46, %v16607_v20  ;;  %v8003_v40 = vadd.f32 %v8002_v37, %v7906_v8  ;;  %v8126_v23 = vpack.c.bf16 %v8111_v1, %v8110_v14 }
 0x761   : > { %v8055_v26 = vmax.f32 %v10224_v56, 0.0  ;;  %v7930_v14 = vadd.f32 %v16587_v35, %v16601_v3  ;;  %v8060_v11 = vmax.f32 %v8000_v13, 0.0  ;;  %v7943_v56 = vadd.f32 %v16596_v51, %v16601_v3 }
 0x762   : > { %v8096_v48 = vmax.f32 %v8052_v2, %v8053_v44  ;;  %v8056_v43 = vmax.f32 %v10225_v62, 0.0  ;;  %10138 = vmatprep.mubr.bf16.mxu1 %v8126_v23  ;;  %v8063_v46 = vmax.f32 %v8003_v40, 0.0 }
 0x764   : > { %v8112_v25 = vmax.f32 %v8096_v48, %v8054_v49  ;;  %v8097_v58 = vmax.f32 %v8055_v26, %v8056_v43  ;;  %v7793_v16 = vpop.f32.mrb[184].mxu0  ;;  %v10116_v12 = vpop.f32.mrb[200].mxu1  ;;  %v7935_v26 = vadd.f32 %v16589_v5, %v16601_v3  ;;  %v7946_v43 = vadd.f32 %v16598_v52, %v16601_v3 }
 0x765   : > { %v10226_v6 = vadd.f32 %v7793_v16, %v16604_v59  ;;  %v16637_v50 = vadd.f32 %v10116_v12, %v7927_v29  ;;  %v7795_v31 = vpop.f32.mrb[185].mxu0  ;;  %v8015_v27 = vpop.f32.mrb[201].mxu1 }
 0x766   : > { %v8113_v19 = vmax.f32 %v8097_v58, %v8057_v17  ;;  %v10227_v10 = vadd.f32 %v7795_v31, %v16607_v20  ;;  %v16642_v15 = vadd.f32 %v8015_v27, %v7919_v39  ;;  %v7797_v32 = vpop.f32.mrb[186].mxu0  ;;  %v10117_v0 = vpop.f32.mrb[202].mxu1  ;;  %v7938_v58 = vadd.f32 %v16591_v47, %v16601_v3 }
 0x767   : > { %v8058_v45 = vmax.f32 %v10226_v6, 0.0  ;;  %v10228_v7 = vadd.f32 %v7797_v32, %v16604_v59  ;;  %v16645_v63 = vadd.f32 %v10117_v0, %v7930_v14  ;;  %v7799_v36 = vpop.f32.mrb[187].mxu0  ;;  %v8018_v55 = vpop.f32.mrb[203].mxu1  ;;  %v8069_v47 = vmax.f32 %v16629_v53, 0.0 }
 0x768   : > { %v8127_v57 = vpack.c.bf16 %v8113_v19, %v8112_v25  ;;  %v8059_v1 = vmax.f32 %v10227_v10, 0.0  ;;  %v10229_v35 = vadd.f32 %v7799_v36, %v16607_v20  ;;  %v16650_v22 = vadd.f32 %v8018_v55, %v7922_v21 }
 0x769   : > { %v8061_v34 = vmax.f32 %v10228_v7, 0.0  ;;  %v8066_v10 = vmax.f32 %v16621_v30, 0.0  ;;  %v8072_v53 = vmax.f32 %v16642_v15, 0.0 }
 0x76a   : > { %v8098_v8 = vmax.f32 %v8058_v45, %v8059_v1  ;;  %v8062_v2 = vmax.f32 %v10229_v35, 0.0  ;;  %10139 = vmatmul.mubr.bf16.vlgmr.msra.gmra.mrb[208].mxu1 %v8127_v57 }
 0x76c   : > { %v8114_v37 = vmax.f32 %v8098_v8, %v8060_v11  ;;  %v8099_v44 = vmax.f32 %v8061_v34, %v8062_v2  ;;  %v7803_v62 = vpop.f32.mrb[188].mxu0  ;;  %v10120_v9 = vpop.f32.mrb[204].mxu1 }
 0x76d   : > { %v10230_v23 = vadd.f32 %v7803_v62, %v16604_v59  ;;  %v16657_v49 = vadd.f32 %v10120_v9, %v7943_v56  ;;  %v7805_v48 = vpop.f32.mrb[189].mxu0  ;;  %v8031_v13 = vpop.f32.mrb[205].mxu1 }
 0x76e   : > { %v8115_v29 = vmax.f32 %v8099_v44, %v8063_v46  ;;  %v10231_v51 = vadd.f32 %v7805_v48, %v16607_v20  ;;  %v16662_v40 = vadd.f32 %v8031_v13, %v7935_v26  ;;  %v7807_v17 = vpop.f32.mrb[190].mxu0  ;;  %v10121_v25 = vpop.f32.mrb[206].mxu1  ;;  %v8075_v44 = vmax.f32 %v16650_v22, 0.0 }
 0x76f   : > { %v8064_v5 = vmax.f32 %v10230_v23, 0.0  ;;  %v10232_v16 = vadd.f32 %v7807_v17, %v16604_v59  ;;  %v16667_v12 = vadd.f32 %v10121_v25, %v7946_v43  ;;  %v7809_v39 = vpop.f32.mrb[191].mxu0  ;;  %v8034_v6 = vpop.f32.mrb[207].mxu1  ;;  %v8078_v22 = vmax.f32 %v16637_v50, 0.0 }
 0x770   : > { %v8065_v31 = vmax.f32 %v10231_v51, 0.0  ;;  %v10233_v52 = vadd.f32 %v7809_v39, %v16607_v20  ;;  %v16670_v27 = vadd.f32 %v8034_v6, %v7938_v58  ;;  %v8128_v19 = vpack.c.bf16 %v8115_v29, %v8114_v37 }
 0x771   : > { %v8067_v14 = vmax.f32 %v10232_v16, 0.0 }
 0x772   : > { %v8100_v32 = vmax.f32 %v8064_v5, %v8065_v31  ;;  %v8068_v0 = vmax.f32 %v10233_v52, 0.0  ;;  %10142 = vmatprep.mubr.bf16.mxu1 %v8128_v19  ;;  %v8081_v31 = vmax.f32 %v16645_v63, 0.0  ;;  %v8084_v63 = vmax.f32 %v16662_v40, 0.0 }
 0x774   : > { %v8116_v3 = vmax.f32 %v8100_v32, %v8066_v10  ;;  %v8101_v45 = vmax.f32 %v8067_v14, %v8068_v0  ;;  %v7813_v7 = vpop.f32.mrb[192].mxu0 }
 0x775   : > { %v10234_v36 = vadd.f32 %v7813_v7, %v16604_v59  ;;  %v7815_v21 = vpop.f32.mrb[193].mxu0 }
 0x776   : > { %v8117_v55 = vmax.f32 %v8101_v45, %v8069_v47  ;;  %v10235_v57 = vadd.f32 %v7815_v21, %v16607_v20  ;;  %v7817_v1 = vpop.f32.mrb[194].mxu0 }
 0x777   : > { %v8070_v35 = vmax.f32 %v10234_v36, 0.0  ;;  %v10236_v34 = vadd.f32 %v7817_v1, %v16604_v59  ;;  %v7819_v11 = vpop.f32.mrb[195].mxu0 }
 0x778   : > { %v8071_v30 = vmax.f32 %v10235_v57, 0.0  ;;  %v10237_v8 = vadd.f32 %v7819_v11, %v16607_v20  ;;  %v8129_v2 = vpack.c.bf16 %v8117_v55, %v8116_v3 }
 0x779   : > { %v8073_v56 = vmax.f32 %v10236_v34, 0.0  ;;  %v8087_v34 = vmax.f32 %v16670_v27, 0.0  ;;  %v8090_v27 = vmax.f32 %v16657_v49, 0.0 }
 0x77a   : > { %v8102_v46 = vmax.f32 %v8070_v35, %v8071_v30  ;;  %v8074_v37 = vmax.f32 %v10237_v8, 0.0  ;;  %10143 = vmatmul.mubr.bf16.gmra.mrb[212].mxu1 %v8129_v2 }
 0x77c   : > { %v8118_v62 = vmax.f32 %v8102_v46, %v8072_v53  ;;  %v8103_v9 = vmax.f32 %v8073_v56, %v8074_v37  ;;  %v7823_v26 = vpop.f32.mrb[196].mxu0 }
 0x77d   : > { %v10238_v23 = vadd.f32 %v7823_v26, %v16604_v59  ;;  %v7825_v48 = vpop.f32.mrb[197].mxu0 }
 0x77e   : > { %v8119_v13 = vmax.f32 %v8103_v9, %v8075_v44  ;;  %v10239_v43 = vadd.f32 %v7825_v48, %v16607_v20  ;;  %v7827_v29 = vpop.f32.mrb[198].mxu0 }
 0x77f   : > { %v8076_v51 = vmax.f32 %v10238_v23, 0.0  ;;  %v10240_v17 = vadd.f32 %v7827_v29, %v16604_v59  ;;  %v7829_v25 = vpop.f32.mrb[199].mxu0  ;;  %v8093_v29 = vmax.f32 %v16667_v12, 0.0 }
 0x780   : > { %v8077_v15 = vmax.f32 %v10239_v43, 0.0  ;;  %v10241_v58 = vadd.f32 %v7829_v25, %v16607_v20  ;;  %v8130_v5 = vpack.c.bf16 %v8119_v13, %v8118_v62 }
 0x781   : > { %v8079_v16 = vmax.f32 %v10240_v17, 0.0 }
 0x782   : > { %v8104_v39 = vmax.f32 %v8076_v51, %v8077_v15  ;;  %v8080_v6 = vmax.f32 %v10241_v58, 0.0  ;;  %10146 = vmatprep.mubr.bf16.mxu1 %v8130_v5 }
 0x784   : > { %v8120_v52 = vmax.f32 %v8104_v39, %v8078_v22  ;;  %v8105_v14 = vmax.f32 %v8079_v16, %v8080_v6  ;;  %v7833_v19 = vpop.f32.mrb[200].mxu0 }
 0x785   : > { %v10242_v10 = vadd.f32 %v7833_v19, %v16604_v59  ;;  %v7835_v32 = vpop.f32.mrb[201].mxu0 }
 0x786   : > { %v8121_v0 = vmax.f32 %v8105_v14, %v8081_v31  ;;  %v10243_v47 = vadd.f32 %v7835_v32, %v16607_v20  ;;  %v7837_v3 = vpop.f32.mrb[202].mxu0 }
 0x787   : > { %v8082_v45 = vmax.f32 %v10242_v10, 0.0  ;;  %v10244_v7 = vadd.f32 %v7837_v3, %v16604_v59  ;;  %v7839_v36 = vpop.f32.mrb[203].mxu0 }
 0x788   : > { %v8083_v50 = vmax.f32 %v10243_v47, 0.0  ;;  %v10245_v21 = vadd.f32 %v7839_v36, %v16607_v20  ;;  %v8131_v55 = vpack.c.bf16 %v8121_v0, %v8120_v52 }
 0x789   : > { %v8085_v57 = vmax.f32 %v10244_v7, 0.0 }
 0x78a   : > { %v8106_v1 = vmax.f32 %v8082_v45, %v8083_v50  ;;  %v8086_v35 = vmax.f32 %v10245_v21, 0.0  ;;  %10147 = vmatmul.mubr.bf16.gmra.mrb[216].mxu1 %v8131_v55 }
 0x78c   : > { %v8122_v11 = vmax.f32 %v8106_v1, %v8084_v63  ;;  %v8107_v30 = vmax.f32 %v8085_v57, %v8086_v35  ;;  %v7843_v8 = vpop.f32.mrb[204].mxu0 }
 0x78d   : > { %v10246_v2 = vadd.f32 %v7843_v8, %v16604_v59  ;;  %v7845_v56 = vpop.f32.mrb[205].mxu0 }
 0x78e   : > { %v8123_v53 = vmax.f32 %v8107_v30, %v8087_v34  ;;  %v10247_v46 = vadd.f32 %v7845_v56, %v16607_v20  ;;  %v7847_v37 = vpop.f32.mrb[206].mxu0 }
 0x78f   : > { %v8088_v44 = vmax.f32 %v10246_v2, 0.0  ;;  %v10248_v62 = vadd.f32 %v7847_v37, %v16604_v59  ;;  %v7849_v9 = vpop.f32.mrb[207].mxu0 }
 0x790   : > { %v8089_v40 = vmax.f32 %v10247_v46, 0.0  ;;  %v10249_v26 = vadd.f32 %v7849_v9, %v16607_v20  ;;  %v8132_v23 = vpack.c.bf16 %v8123_v53, %v8122_v11  ;;  %v16701_v20 = vld [vmem:[%s16831_s7] ss:$0 sm:$0xff]  ;;  %v8443_v11 = vpop.permute.xlu1 %8442 }
 0x791   : > { %v8091_v48 = vmax.f32 %v10248_v62, 0.0 }
 0x792   : > { %v8108_v13 = vmax.f32 %v8088_v44, %v8089_v40  ;;  %v8092_v43 = vmax.f32 %v10249_v26, 0.0  ;;  %10150 = vmatprep.mubr.bf16.mxu1 %v8132_v23 }
 0x794   : > { %v8124_v51 = vmax.f32 %v8108_v13, %v8090_v27  ;;  %v8109_v17 = vmax.f32 %v8091_v48, %v8092_v43  ;;  %v8453_v2 = vpop.permute.xlu1 %8452 }
 0x796   : > { %v8125_v25 = vmax.f32 %v8109_v17, %v8093_v29 }
 0x798   : > { %v8133_v15 = vpack.c.bf16 %v8125_v25, %v8124_v51  ;;  %v8463_v43 = vpop.permute.xlu1 %8462 }
 0x79a   : > { %10151 = vmatmul.mubr.bf16.gmra.mrb[220].mxu1 %v8133_v15 }
 0x79c   : > { %v8473_v15 = vpop.permute.xlu1 %8472 }
 0x83d   : > { %v10140_v59 = vpop.f32.mrb[208].mxu1 }
 0x83e   : > { %v8239_v58 = vpop.f32.mrb[209].mxu1  ;;  %v8248_v5 = vadd.f32 %v10140_v59, %v16701_v20 }
 0x83f   : > { %v10141_v49 = vpop.f32.mrb[210].mxu1  ;;  %v8240_v22 = vadd.f32 %v16701_v20, %v8239_v58 }
 0x840   : > { %v8251_v16 = vadd.f32 %v10141_v49, %v16701_v20  ;;  %v8242_v12 = vpop.f32.mrb[211].mxu1  ;;  %v8482_v0 = vadd.f32 %v16364_v28, %v8248_v5 }
 0x841   : > { %v8243_v39 = vadd.f32 %v16701_v20, %v8242_v12  ;;  %v8480_v7 = vadd.f32 %v16356_v33, %v8240_v22 }
 0x842   : > { %v9308_v6 = vpack.c.bf16 %v8251_v16, %v8248_v5  ;;  %v8483_v21 = vadd.f32 %v16366_v61, %v8251_v16 }
 0x843   : > { %v9303_v31 = vpack.c.bf16 %v8243_v39, %v8240_v22  ;;  %v8481_v28 = vadd.f32 %v16360_v24, %v8243_v39 }
 0x844   : > { %9379 = vst [vmem:[%s15332_s16 + $0x88] sm:$0xff] %v9308_v6  }
 0x845   : > { %9378 = vst [vmem:[%s15332_s16 + $0x80] sm:$0xff] %v9303_v31  }
 0x84d   : > { %v10144_v52 = vpop.f32.mrb[212].mxu1 }
 0x84e   : > { %v8264_v14 = vadd.f32 %v10144_v52, %v16701_v20  ;;  %v8255_v19 = vpop.f32.mrb[213].mxu1 }
 0x84f   : > { %v8256_v10 = vadd.f32 %v16701_v20, %v8255_v19  ;;  %v10145_v32 = vpop.f32.mrb[214].mxu1 }
 0x850   : > { %v8486_v47 = vadd.f32 %v16376_v38, %v8264_v14  ;;  %v8267_v3 = vadd.f32 %v10145_v32, %v16701_v20  ;;  %v8258_v45 = vpop.f32.mrb[215].mxu1 }
 0x851   : > { %v8484_v36 = vadd.f32 %v16368_v18, %v8256_v10  ;;  %v8259_v50 = vadd.f32 %v16701_v20, %v8258_v45  ;;  %v8448_v18 = vpop.permute.xlu0 %8447 }
 0x852   : > { %v8498_v55 = vmax.f32 %v8482_v0, %v8486_v47  ;;  %v9318_v57 = vpack.c.bf16 %v8267_v3, %v8264_v14  ;;  %v8487_v63 = vadd.f32 %v16378_v4, %v8267_v3 }
 0x853   : > { %v8496_v1 = vmax.f32 %v8480_v7, %v8484_v36  ;;  %v9313_v38 = vpack.c.bf16 %v8259_v50, %v8256_v10  ;;  %v8485_v35 = vadd.f32 %v16370_v42, %v8259_v50 }
 0x854   : > { %9381 = vst [vmem:[%s15332_s16 + $0x98] sm:$0xff] %v9318_v57   ;;  %v8499_v34 = vmax.f32 %v8483_v21, %v8487_v63 }
 0x855   : > { %9380 = vst [vmem:[%s15332_s16 + $0x90] sm:$0xff] %v9313_v38   ;;  %v8497_v33 = vmax.f32 %v8481_v28, %v8485_v35  ;;  %v8458_v46 = vpop.permute.xlu0 %8457 }
 0x859   : > { %v8468_v29 = vpop.permute.xlu0 %8467 }
 0x85d   : > { %v10148_v30 = vpop.f32.mrb[216].mxu1  ;;  %v8478_v12 = vpop.permute.xlu0 %8477 }
 0x85e   : > { %v8280_v8 = vadd.f32 %v10148_v30, %v16701_v20  ;;  %v8271_v61 = vpop.f32.mrb[217].mxu1 }
 0x85f   : > { %v8272_v4 = vadd.f32 %v16701_v20, %v8271_v61  ;;  %v10149_v24 = vpop.f32.mrb[218].mxu1 }
 0x860   : > { %v8490_v56 = vadd.f32 %v8453_v2, %v8280_v8  ;;  %v8283_v53 = vadd.f32 %v10149_v24, %v16701_v20  ;;  %v8274_v42 = vpop.f32.mrb[219].mxu1 }
 0x861   : > { %v8488_v37 = vadd.f32 %v8443_v11, %v8272_v4  ;;  %v8275_v44 = vadd.f32 %v16701_v20, %v8274_v42 }
 0x862   : > { %v8502_v62 = vmax.f32 %v8498_v55, %v8490_v56  ;;  %v9328_v9 = vpack.c.bf16 %v8283_v53, %v8280_v8  ;;  %v8491_v40 = vadd.f32 %v8458_v46, %v8283_v53 }
 0x863   : > { %v16727_v26 = vmax.f32 %v8496_v1, %v8488_v37  ;;  %v9323_v23 = vpack.c.bf16 %v8275_v44, %v8272_v4  ;;  %v8489_v48 = vadd.f32 %v8448_v18, %v8275_v44 }
 0x864   : > { %9383 = vst [vmem:[%s15332_s16 + $0xa8] sm:$0xff] %v9328_v9   ;;  %v8503_v27 = vmax.f32 %v8499_v34, %v8491_v40 }
 0x865   : > { %9382 = vst [vmem:[%s15332_s16 + $0xa0] sm:$0xff] %v9323_v23   ;;  %v8501_v13 = vmax.f32 %v8497_v33, %v8489_v48 }
 0x86d   : > { %v10152_v51 = vpop.f32.mrb[220].mxu1 }
 0x86e   : > { %v8296_v17 = vadd.f32 %v10152_v51, %v16701_v20  ;;  %v8287_v25 = vpop.f32.mrb[221].mxu1 }
 0x86f   : > { %v8288_v59 = vadd.f32 %v16701_v20, %v8287_v25  ;;  %v10153_v58 = vpop.f32.mrb[222].mxu1 }
 0x870   : > { %v8494_v49 = vadd.f32 %v8473_v15, %v8296_v17  ;;  %v8299_v5 = vadd.f32 %v10153_v58, %v16701_v20  ;;  %v8290_v16 = vpop.f32.mrb[223].mxu1 }
 0x871   : > { %v8492_v22 = vadd.f32 %v8463_v43, %v8288_v59  ;;  %v8291_v39 = vadd.f32 %v16701_v20, %v8290_v16 }
 0x872   : > { %v8506_v6 = vmax.f32 %v8502_v62, %v8494_v49  ;;  %v9338_v31 = vpack.c.bf16 %v8299_v5, %v8296_v17  ;;  %v8495_v52 = vadd.f32 %v8478_v12, %v8299_v5 }
 0x873   : > { %v8504_v14 = vmax.f32 %v16727_v26, %v8492_v22  ;;  %v9333_v19 = vpack.c.bf16 %v8291_v39, %v8288_v59  ;;  %v8493_v10 = vadd.f32 %v8468_v29, %v8291_v39 }
 0x874   : > { %9385 = vst [vmem:[%s15332_s16 + $0xb8] sm:$0xff] %v9338_v31   ;;  %v8507_v20 = vmax.f32 %v8503_v27, %v8495_v52 }
 0x875   : > { %9384 = vst [vmem:[%s15332_s16 + $0xb0] sm:$0xff] %v9333_v19   ;;  %v8505_v32 = vmax.f32 %v8501_v13, %v8493_v10 }
 0x876   : > { %v8509_v0 = vmax.f32 %v8506_v6, %v8507_v20 }
 0x877   : > { %11787 = shalt.err (!%p11784_p3)
}
 0x878   : > { %s11788_s16 = scalar_lea.hbm %s16743_s0, 3072  ;;  %s11792_s23 = scalar_lea.hbm %s16832_s8, 12288 }
 0x879   : > { %p11789_p4 = scmp.ne.s32.totalorder %s16743_s0, %s11788_s16  ;;  %p11793_p9 = scmp.lt.u32.totalorder %s16743_s0, %s16832_s8 }
 0x87a   : > { %p11794_p10 = scmp.lt.u32.totalorder %s11792_s23, %s11788_s16  ;;  %p11796_p12 = scmp.lt.u32.totalorder %s11788_s16, %s16743_s0 }
 0x87b   : > { %p11790_p7 = pnand %p11789_p4, %p11970_p5 }
 0x87c   : > { %p11795_p11 = por %p11794_p10, %p11793_p9 }
 0x87d   : > { %p11791_p8 = pneg %p11790_p7 }
 0x87e   : > { %p11797_p13 = por %p11796_p12, %p11795_p11 }
 0x880   : > { %p11798_p0 = pnand %p11797_p13, %p11791_p8 }
 0x882   : > { %11801 = shalt.err (!%p11798_p0)
}
 0x883   : > { %s11880_s24 = smov 4   ;;  %v8508_v47 = vmax.f32 %v8504_v14, %v8505_v32  ;;  %s9073_s27 = sshll.u32 %s11953_s13, 4 }
 0x884   : > { %10349 = dma.vmem_to_hbm [thread:$0]  (%p11970_p5), %s16737_s17, 3072, %s16743_s0, %s8520_s21, %s16967_s28, %s16967_s28, %s11880_s24  }
 0x885   : > { %v8510_v3 = vmax.f32 %v8508_v47, %v8509_v0  ;;  %s335_s16 = scalar_lea.vmem [#allocation5], %s15320_s29  ;;  %s16781_s28 = scalar_lea.hbm %s16833_s9, %s9073_s27 }
 0x886   : > { %s8553_s26 = sshll.u32 %s335_s16, 4  ;;  %s8525_s17 = scalar_lea.sflag [#allocation6], %s15320_s29  ;;  %s16783_s26 = int_to_ptr.vmem [resolvable:$true] %s8553_s26 }
 0x887   : > { %v8511_v45 = vrot.slane %v8510_v3, 4  ;;  %s11802_s13 = scalar_lea.vmem %s16783_s26, 16  ;;  %s11881_s0 = smov [#allocation5]  }
 0x888   : > { %p11803_p1 = scmp.ne.s32.totalorder %s16783_s26, %s11802_s13  ;;  %s11806_s21 = sshll.u32 %s11881_s0, 4  ;;  %s11807_s21 = int_to_ptr.vmem [resolvable:$false] %s11806_s21 }
 0x889   : > { %v8512_v7 = vmax.f32 %v8510_v3, %v8511_v45  ;;  %s11808_s14 = scalar_lea.vmem %s11807_s21, 32  ;;  %p11809_p4 = scmp.lt.s32.totalorder %s16783_s26, %s11807_s21 }
 0x88a   : > { %p11804_p2 = pnand %p11803_p1, %p11970_p5  ;;  %p11810_p7 = scmp.lt.s32.totalorder %s11808_s14, %s11802_s13 }
 0x88b   : > { %v8513_v36 = vrot.slane %v8512_v7, 2 }
 0x88c   : > { %p11805_p3 = pneg %p11804_p2  ;;  %p11811_p8 = por %p11810_p7, %p11809_p4 }
 0x88d   : > { %v8514_v50 = vmax.f32 %v8512_v7, %v8513_v36 }
 0x88e   : > { %p11812_p9 = pnand %p11811_p8, %p11805_p3 }
 0x88f   : > { %v8515_v21 = vrot.slane %v8514_v50, 1 }
 0x891   : > { %v8516_v55 = vmax.f32 %v8514_v50, %v8515_v21 }
 0x893   : > { %v8517_v57 = vmax.f32 %v6660_v60, %v8516_v55 }
 0x895   : > { %8518 = vst [vmem:[%s335_s16] sm:$0x1] %v8517_v57 }
 0x896   : > { %11815 = shalt.err (!%p11812_p9)
}
 0x897   : > { %s11816_s29 = scalar_lea.hbm %s16781_s28, 16  ;;  %s11820_s27 = scalar_lea.hbm %s16833_s9, 64 }
 0x898   : > { %p11817_p10 = scmp.ne.s32.totalorder %s16781_s28, %s11816_s29  ;;  %p11821_p13 = scmp.lt.u32.totalorder %s16781_s28, %s16833_s9 }
 0x899   : > { %p11822_p0 = scmp.lt.u32.totalorder %s11820_s27, %s11816_s29  ;;  %p11824_p2 = scmp.lt.u32.totalorder %s11816_s29, %s16781_s28 }
 0x89a   : > { %p11818_p11 = pnand %p11817_p10, %p11970_p5 }
 0x89b   : > { %p11823_p1 = por %p11822_p0, %p11821_p13 }
 0x89c   : > { %p11819_p12 = pneg %p11818_p11 }
 0x89d   : > { %p11825_p3 = por %p11824_p2, %p11823_p1 }
 0x89f   : > { %p11826_p4 = pnand %p11825_p3, %p11819_p12 }
 0x8a1   : > { %11829 = shalt.err (!%p11826_p4)
}
 0x8a2   : > { %10350 = dma.vmem_to_hbm [thread:$0]  (%p11970_p5), %s16783_s26, 16, %s16781_s28, %s8525_s17  }
 0x8a3 PF: > { %p10360_p7 = scmp.ge.s32.totalorder %s11868_s12, 2  ;;  %s8565_s23 = sand.u32 1, %s11856_s30  }
 0x8a4   : > { %s8566_s13 = scalar_lea.sflag [#allocation4], %s8565_s23 }
 0x8a5   : > { %p10354_p8 = pnand %p10360_p7, %p11974_p6 }
 0x8a7   : > { %11847 = dma.done.wait (!%p10354_p8), %s8566_s13, 3072  }
 0x8a8   : > { %11849 = vsyncadd (!%p10354_p8), %s8566_s13, 4294964224  ;;  %s8575_s0 = scalar_lea.sflag [#allocation6], %s8565_s23 }
 0x8a9   : > { %11851 = dma.done.wait (!%p10354_p8), %s8575_s0, 16  }
 0x8aa   : > { %11853 = vsyncadd (!%p10354_p8), %s8575_s0, 4294967280  ;;  %p23_p5 = scmp.ge.s32.totalorder %s11957_s15, 6   ;;  %s17161_s30 = smov %s11860_s10 }
 0x8ab   : > { %s17162_s10 = smov %s11864_s11  ;;  %s17163_s11 = smov %s11968_s18 }
 0x8ac   : > { %s17164_s12 = smov %s11957_s15  ;;  %25 = sbr.rel (!%p23_p5) target bundleno = 7 (0x7), region = 110 }
 0x8b3   :  { %8579 = vsyncpa [#allocation4], 1 }
 0x8b4   :  { %8581 = vsyncpa [#allocation4 + $0x1], 1 }
 0x8b5   :  { %8582 = vsyncpa [#allocation6], 1 }
 0x8b6   :  { %8584 = vsyncpa [#allocation6 + $0x1], 1 }

</bundles_post_ra>
